<compile_context>
chip_gen: v7x
topology: tpu7x:2x2x1
jax: 0.10.0
libtpu: 0.0.40
codegen_flags: <defaults>
</compile_context>

<pallas_src>
import jax
import jax.numpy as jnp
import numpy as np
from jax.experimental import pallas as pl
from jax.experimental.pallas import tpu as pltpu


def _round_up(x, m):
    return (x + m - 1) // m * m


def _make_rdb_kernel(n_layer, growth, c0_hbm, c0_slab, c_tot, wp, pp, pp_lanes, nb):
    L = nb * pp_lanes
    # Tap order matches the host-side (kh, kw)-major weight stacking.
    tap_offsets = [(kh - 1) * wp + (kw - 1) for kh in range(3) for kw in range(3)]

    def kernel(*refs):
        x_ref = refs[0]
        mask_ref = refs[1]
        w_refs = refs[2:2 + n_layer]
        wl_ref = refs[2 + n_layer]
        bl_ref = refs[3 + n_layer]
        o_ref = refs[4 + n_layer]
        feat_ref = refs[5 + n_layer]          # (c_tot, L) bf16 dense-feature slab
        z_ref = refs[6 + n_layer]             # (9*growth, L) f32 stacked-tap result

        interior = mask_ref[...] != 0.0       # (1, L) bool, hoisted once per step

        # Seed the slab with the (spatially zero-padded, lane-dense) input block.
        # Rows [c0_hbm, c0_slab) are bf16-tile alignment padding; zero them so the
        # matching zero weight columns never multiply uninitialized (possibly NaN) VMEM.
        x_in = x_ref[0]                                          # (c0_hbm, L) f32
        if c0_slab > c0_hbm:
            x_in = jnp.concatenate(
                [x_in, jnp.zeros((c0_slab - c0_hbm, L), jnp.float32)], axis=0)
        feat_ref[0:c0_slab, :] = x_in.astype(feat_ref.dtype)     # one aligned store

        row = c0_slab          # next free channel row in the slab
        cin = c0_slab          # channels visible to the current dense layer
        for li in range(n_layer):
            # One big MXU matmul per layer: all 9 taps stacked on the M dimension,
            # operand (cin, L) read once with fully aligned loads.
            z_ref[...] = jnp.dot(w_refs[li][...], feat_ref[0:cin, :],
                                 preferred_element_type=jnp.float32)
            # Result-side spatial shifts on the XLU (idle while the MXU runs).
            acc = None
            for t, off in enumerate(tap_offsets):
                zt = z_ref[t * growth:(t + 1) * growth, :]       # (growth, L), aligned
                rolled = zt if off == 0 else pltpu.roll(zt, (-off) % L, 1)
                acc = rolled if acc is None else acc + rolled
            # ReLU; `where` (not multiply) forces exact zeros on the padding ring and
            # the lane-padding tail so they keep acting as conv zero-padding next layer.
            y = jnp.where(interior, jnp.maximum(acc, 0.0), 0.0)
            feat_ref[row:row + growth, :] = y.astype(feat_ref.dtype)
            row += growth
            cin += growth

        # Local feature fusion (1x1 conv + bias) and residual add, fused.
        lff = jnp.dot(wl_ref[...], feat_ref[0:c_tot, :],
                      preferred_element_type=jnp.float32)
        # x is re-read from the input block here (not held live across the layers).
        o_ref[0] = (x_ref[0] + lff + bl_ref[...]).astype(o_ref.dtype)

    return kernel


def residual_block(x, dense_weights, lff_weight, lff_bias, *, samples_per_step=None):
    """Fused ResidualBlock forward.  x: (N, C0, H, W) f32, NCHW in / NCHW out."""
    N, C0, H, W = x.shape
    n_layer = len(dense_weights)
    growth = dense_weights[0].shape[0]

    SUB = 16                                   # bf16 sublane packing granularity
    assert growth % SUB == 0, "growth_rate must be a multiple of 16"
    c0_hbm = _round_up(C0, 8)                  # f32 sublane granularity for HBM I/O
    c0_slab = _round_up(C0, SUB)               # bf16 tile alignment inside the slab
    c_tot = c0_slab + n_layer * growth
    hp, wp = H + 2, W + 2                      # zero-padded spatial dims
    pp = hp * wp
    pp_lanes = _round_up(pp, 128)              # lane-dense flattened spatial axis

    # --- samples folded per grid step (amortize ~0.35us/step at small sizes) ---------
    per_sample = (c_tot * pp_lanes * 2 + 9 * growth * pp_lanes * 4
                  + 4 * c0_hbm * pp_lanes * 4)
    if samples_per_step is None:
        samples_per_step = max(1, min(N, 8, (8 << 20) // max(per_sample, 1)))
    nb = samples_per_step
    G = pl.cdiv(N, nb)
    n_pad = G * nb
    L = nb * pp_lanes

    # ---- tiny host-side weight re-layouts --------------------------------------------
    def pad_in_channels(w):
        # Insert zero in-channel columns after the first C0 channels so the growth
        # segments start at the 16-aligned slab row c0_slab.
        cout = w.shape[0]
        z = jnp.zeros((cout, c0_slab - C0) + w.shape[2:], w.dtype)
        return jnp.concatenate([w[:, :C0], z, w[:, C0:]], axis=1)

    dense_wstacks = []
    for w in dense_weights:
        wpad = pad_in_channels(w)                                    # (growth, cin_pad, 3, 3)
        cin_pad = wpad.shape[1]
        # (kh, kw)-major stacking: row index = (kh*3 + kw)*growth + g.
        ws = jnp.transpose(wpad, (2, 3, 0, 1)).reshape(9 * growth, cin_pad)
        dense_wstacks.append(ws.astype(jnp.bfloat16))

    wl = pad_in_channels(lff_weight)[:, :, 0, 0]                     # (C0, c_tot)
    wl = jnp.pad(wl, ((0, c0_hbm - C0), (0, 0))).astype(jnp.bfloat16)
    bl = jnp.pad(lff_bias, (0, c0_hbm - C0)).reshape(c0_hbm, 1).astype(jnp.float32)

    # Interior mask over the padded + lane-padded flattened spatial axis, tiled per
    # folded sample (precomputed & VMEM-resident across the grid).
    rr, cc = jnp.meshgrid(jnp.arange(hp), jnp.arange(wp), indexing="ij")
    m = ((rr >= 1) & (rr <= H) & (cc >= 1) & (cc <= W)).reshape(1, pp)
    m = jnp.pad(m, ((0, 0), (0, pp_lanes - pp)))
    mask = jnp.tile(m, (1, nb)).astype(jnp.float32)                  # (1, L)

    # x: NCHW -> (grid, c0_hbm, nb*pp_lanes): spatially zero-padded, lane-dense,
    # folded samples concatenated along the lane axis.
    xp = jnp.pad(x.astype(jnp.float32),
                 ((0, n_pad - N), (0, c0_hbm - C0), (1, 1), (1, 1)))
    xp = jnp.pad(xp.reshape(n_pad, c0_hbm, pp), ((0, 0), (0, 0), (0, pp_lanes - pp)))
    xp = xp.reshape(G, nb, c0_hbm, pp_lanes).transpose(0, 2, 1, 3).reshape(G, c0_hbm, L)

    # ---- VMEM budget ------------------------------------------------------------------
    weight_bytes = sum(int(w.size) * 2 for w in dense_wstacks) \
        + int(wl.size) * 2 + int(bl.size) * 4 + int(mask.size) * 4
    vmem_est = (c_tot * L * 2                    # bf16 feature slab (scratch)
                + 9 * growth * L * 4             # f32 stacked-tap result (scratch)
                + 2 * 2 * c0_hbm * L * 4         # double-buffered x / out blocks
                + weight_bytes
                + (2 * growth + c_tot) * L * 4)  # headroom for live f32 values
    if vmem_est > (56 << 20):
        # TODO(synk): halo-overlapped spatial tiling (extra "parallel" grid axis) so the
        # working set stays inside v7x's 64 MiB VMEM for large H*W.
        raise NotImplementedError(
            f"working set ~{vmem_est >> 20} MiB needs halo spatial tiling")
    vmem_limit = int(min(vmem_est * 2, 60 << 20)) if vmem_est > (14 << 20) else None

    kernel = _make_rdb_kernel(n_layer, growth, c0_hbm, c0_slab, c_tot,
                              wp, pp, pp_lanes, nb)

    in_specs = [
        pl.BlockSpec((1, c0_hbm, L), lambda g: (g, 0, 0)),           # x (per grid step)
        pl.BlockSpec((1, L), lambda g: (0, 0)),                      # interior mask (resident)
    ]
    for ws in dense_wstacks:                                         # resident weights
        in_specs.append(pl.BlockSpec(ws.shape, lambda g: (0, 0)))
    in_specs.append(pl.BlockSpec(wl.shape, lambda g: (0, 0)))
    in_specs.append(pl.BlockSpec(bl.shape, lambda g: (0, 0)))

    out = pl.pallas_call(
        kernel,
        out_shape=jax.ShapeDtypeStruct((G, c0_hbm, L), jnp.float32),
        grid_spec=pltpu.PrefetchScalarGridSpec(
            num_scalar_prefetch=0,
            grid=(G,),
            in_specs=in_specs,
            out_specs=pl.BlockSpec((1, c0_hbm, L), lambda g: (g, 0, 0)),
            scratch_shapes=[
                pltpu.VMEM((c_tot, L), jnp.bfloat16),                # dense feature slab
                pltpu.VMEM((9 * growth, L), jnp.float32),            # stacked-tap result
            ],
        ),
        compiler_params=pltpu.CompilerParams(
            dimension_semantics=("parallel",),
            vmem_limit_bytes=vmem_limit),
    )(xp, mask, *dense_wstacks, wl, bl)

    # Unfold samples, drop padded channels, lane tail and the spatial padding ring.
    out = out.reshape(G, c0_hbm, nb, pp_lanes).transpose(0, 2, 1, 3)
    out = out.reshape(n_pad, c0_hbm, pp_lanes)[:N, :C0, :pp]
    return out.reshape(N, C0, hp, wp)[:, :, 1:H + 1, 1:W + 1]


if __name__ == "__main__":
    N, C0, H, W = 2, 4, 16, 16
    n_layer, growth = 3, 32

    key = jax.random.PRNGKey(0)
    keys = jax.random.split(key, n_layer + 3)
    x = jax.random.normal(keys[0], (N, C0, H, W), dtype=jnp.float32)

    dense_ws = []
    cin = C0
    for i in range(n_layer):
        w = jax.random.normal(keys[1 + i], (growth, cin, 3, 3),
                              jnp.float32) / np.sqrt(cin * 9)
        dense_ws.append(w)
        cin += growth
    lff_w = jax.random.normal(keys[1 + n_layer], (C0, cin, 1, 1),
                              jnp.float32) / np.sqrt(cin)
    lff_b = 0.1 * jax.random.normal(keys[2 + n_layer], (C0,), jnp.float32)

    out = jax.block_until_ready(residual_block(x, dense_ws, lff_w, lff_b))

    # Pure-JAX f32 reference with the PyTorch ResidualBlock semantics.
    def conv(inp, w, pad):
        return jax.lax.conv_general_dilated(
            inp, w, (1, 1), ((pad, pad), (pad, pad)),
            dimension_numbers=("NCHW", "OIHW", "NCHW"),
            precision=jax.lax.Precision.HIGHEST)

    feat = x
    for w in dense_ws:
        feat = jnp.concatenate([feat, jnp.maximum(conv(feat, w, 1), 0.0)], axis=1)
    ref = x + conv(feat, lff_w, 0) + lff_b.reshape(1, C0, 1, 1)

    # Kernel uses bf16 matmul operands + bf16-resident activations vs an f32
    # reference, so tolerances are loosened accordingly (values are O(1)).
    np.testing.assert_allclose(np.asarray(out), np.asarray(ref), rtol=5e-2, atol=5e-2)
    print("KERNEL_OK")
</pallas_src>

<mosaic_0001>
module attributes {stable_mosaic.version = 11 : i64} {
  func.func @kernel(%arg0: i32, %arg1: memref<1x8x768xf32, #tpu.memory_space<vmem>>, %arg2: memref<1x768xf32, #tpu.memory_space<vmem>>, %arg3: memref<288x16xbf16, #tpu.memory_space<vmem>>, %arg4: memref<288x48xbf16, #tpu.memory_space<vmem>>, %arg5: memref<288x80xbf16, #tpu.memory_space<vmem>>, %arg6: memref<8x112xbf16, #tpu.memory_space<vmem>>, %arg7: memref<8x1xf32, #tpu.memory_space<vmem>>, %arg8: memref<1x8x768xf32, #tpu.memory_space<vmem>>, %arg9: memref<112x768xbf16, #tpu.memory_space<vmem>>, %arg10: memref<288x768xf32, #tpu.memory_space<vmem>>) attributes {dimension_semantics = [#tpu.dimension_semantics<parallel>], iteration_bounds = array<i64: 1>, scalar_prefetch = 0 : i64, scratch_operands = 2 : i64, tpu.core_type = #tpu.core_type<tc>, window_params = [{transform_indices = @transform_0, window_bounds = array<i64: 1, 8, 768>}, {pipeline_mode = #tpu.pipeline_mode<synchronous>, transform_indices = @transform_1, window_bounds = array<i64: 1, 768>}, {pipeline_mode = #tpu.pipeline_mode<synchronous>, transform_indices = @transform_2, window_bounds = array<i64: 288, 16>}, {pipeline_mode = #tpu.pipeline_mode<synchronous>, transform_indices = @transform_3, window_bounds = array<i64: 288, 48>}, {pipeline_mode = #tpu.pipeline_mode<synchronous>, transform_indices = @transform_4, window_bounds = array<i64: 288, 80>}, {pipeline_mode = #tpu.pipeline_mode<synchronous>, transform_indices = @transform_5, window_bounds = array<i64: 8, 112>}, {pipeline_mode = #tpu.pipeline_mode<synchronous>, transform_indices = @transform_6, window_bounds = array<i64: 8, 1>}, {transform_indices = @transform_7, window_bounds = array<i64: 1, 8, 768>}]} {
    %c0 = arith.constant 0 : index
    %c0_0 = arith.constant 0 : index
    %0 = vector.load %arg2[%c0, %c0_0] : memref<1x768xf32, #tpu.memory_space<vmem>>, vector<1x768xf32>
    %cst = arith.constant 0.000000e+00 : f32
    %1 = vector.broadcast %cst : f32 to vector<1x768xf32>
    %2 = arith.cmpf one, %0, %1 : vector<1x768xf32>
    %c0_1 = arith.constant 0 : index
    %c0_2 = arith.constant 0 : index
    %c0_3 = arith.constant 0 : index
    %3 = vector.load %arg1[%c0_1, %c0_2, %c0_3] : memref<1x8x768xf32, #tpu.memory_space<vmem>>, vector<1x8x768xf32>
    %4 = vector.shape_cast %3 : vector<1x8x768xf32> to vector<8x768xf32>
    %cst_4 = arith.constant 0.000000e+00 : f32
    %5 = vector.broadcast %cst_4 : f32 to vector<8x768xf32>
    %6 = tpu.concatenate %4, %5 in 0 : vector<8x768xf32>, vector<8x768xf32> -> vector<16x768xf32>
    %7 = arith.truncf %6 : vector<16x768xf32> to vector<16x768xbf16>
    %c0_5 = arith.constant 0 : index
    %c0_6 = arith.constant 0 : index
    %8 = vector.load %arg9[%c0_5, %c0_6] : memref<112x768xbf16, #tpu.memory_space<vmem>>, vector<16x768xbf16>
    tpu.vector_store %arg9[%c0_5, %c0_6], %7 {strides = array<i32>} : memref<112x768xbf16, #tpu.memory_space<vmem>>, vector<16x768xbf16>,
    %c0_7 = arith.constant 0 : index
    %c0_8 = arith.constant 0 : index
    %9 = vector.load %arg3[%c0_7, %c0_8] : memref<288x16xbf16, #tpu.memory_space<vmem>>, vector<288x16xbf16>
    %c0_9 = arith.constant 0 : index
    %c0_10 = arith.constant 0 : index
    %10 = vector.load %arg9[%c0_9, %c0_10] : memref<112x768xbf16, #tpu.memory_space<vmem>>, vector<16x768xbf16>
    %cst_11 = arith.constant dense<0.000000e+00> : vector<288x768xf32>
    %11 = tpu.matmul %9, %10, %cst_11 {dimension_numbers = #tpu.dot_dimension_numbers<[1], [0], [0], [1], [0, 0, 1, 1], [], []>} : vector<288x16xbf16>, vector<16x768xbf16>, vector<288x768xf32> -> vector<288x768xf32>
    %c0_12 = arith.constant 0 : index
    %c0_13 = arith.constant 0 : index
    %12 = vector.load %arg10[%c0_12, %c0_13] : memref<288x768xf32, #tpu.memory_space<vmem>>, vector<288x768xf32>
    tpu.vector_store %arg10[%c0_12, %c0_13], %11 {strides = array<i32>} : memref<288x768xf32, #tpu.memory_space<vmem>>, vector<288x768xf32>,
    %c0_14 = arith.constant 0 : index
    %c0_15 = arith.constant 0 : index
    %13 = vector.load %arg10[%c0_14, %c0_15] : memref<288x768xf32, #tpu.memory_space<vmem>>, vector<32x768xf32>
    %c19_i32 = arith.constant 19 : i32
    %14 = tpu.dynamic_rotate %13 by %c19_i32 dim 1 : vector<32x768xf32>, i32 -> vector<32x768xf32>
    %c32 = arith.constant 32 : index
    %c0_16 = arith.constant 0 : index
    %15 = vector.load %arg10[%c32, %c0_16] : memref<288x768xf32, #tpu.memory_space<vmem>>, vector<32x768xf32>
    %c18_i32 = arith.constant 18 : i32
    %16 = tpu.dynamic_rotate %15 by %c18_i32 dim 1 : vector<32x768xf32>, i32 -> vector<32x768xf32>
    %17 = arith.addf %14, %16 : vector<32x768xf32>
    %c64 = arith.constant 64 : index
    %c0_17 = arith.constant 0 : index
    %18 = vector.load %arg10[%c64, %c0_17] : memref<288x768xf32, #tpu.memory_space<vmem>>, vector<32x768xf32>
    %c17_i32 = arith.constant 17 : i32
    %19 = tpu.dynamic_rotate %18 by %c17_i32 dim 1 : vector<32x768xf32>, i32 -> vector<32x768xf32>
    %20 = arith.addf %17, %19 : vector<32x768xf32>
    %c96 = arith.constant 96 : index
    %c0_18 = arith.constant 0 : index
    %21 = vector.load %arg10[%c96, %c0_18] : memref<288x768xf32, #tpu.memory_space<vmem>>, vector<32x768xf32>
    %c1_i32 = arith.constant 1 : i32
    %22 = tpu.dynamic_rotate %21 by %c1_i32 dim 1 : vector<32x768xf32>, i32 -> vector<32x768xf32>
    %23 = arith.addf %20, %22 : vector<32x768xf32>
    %c128 = arith.constant 128 : index
    %c0_19 = arith.constant 0 : index
    %24 = vector.load %arg10[%c128, %c0_19] : memref<288x768xf32, #tpu.memory_space<vmem>>, vector<32x768xf32>
    %25 = arith.addf %23, %24 : vector<32x768xf32>
    %c160 = arith.constant 160 : index
    %c0_20 = arith.constant 0 : index
    %26 = vector.load %arg10[%c160, %c0_20] : memref<288x768xf32, #tpu.memory_space<vmem>>, vector<32x768xf32>
    %c767_i32 = arith.constant 767 : i32
    %27 = tpu.dynamic_rotate %26 by %c767_i32 dim 1 : vector<32x768xf32>, i32 -> vector<32x768xf32>
    %28 = arith.addf %25, %27 : vector<32x768xf32>
    %c192 = arith.constant 192 : index
    %c0_21 = arith.constant 0 : index
    %29 = vector.load %arg10[%c192, %c0_21] : memref<288x768xf32, #tpu.memory_space<vmem>>, vector<32x768xf32>
    %c751_i32 = arith.constant 751 : i32
    %30 = tpu.dynamic_rotate %29 by %c751_i32 dim 1 : vector<32x768xf32>, i32 -> vector<32x768xf32>
    %31 = arith.addf %28, %30 : vector<32x768xf32>
    %c224 = arith.constant 224 : index
    %c0_22 = arith.constant 0 : index
    %32 = vector.load %arg10[%c224, %c0_22] : memref<288x768xf32, #tpu.memory_space<vmem>>, vector<32x768xf32>
    %c750_i32 = arith.constant 750 : i32
    %33 = tpu.dynamic_rotate %32 by %c750_i32 dim 1 : vector<32x768xf32>, i32 -> vector<32x768xf32>
    %34 = arith.addf %31, %33 : vector<32x768xf32>
    %c256 = arith.constant 256 : index
    %c0_23 = arith.constant 0 : index
    %35 = vector.load %arg10[%c256, %c0_23] : memref<288x768xf32, #tpu.memory_space<vmem>>, vector<32x768xf32>
    %c749_i32 = arith.constant 749 : i32
    %36 = tpu.dynamic_rotate %35 by %c749_i32 dim 1 : vector<32x768xf32>, i32 -> vector<32x768xf32>
    %37 = arith.addf %34, %36 : vector<32x768xf32>
    %cst_24 = arith.constant 0.000000e+00 : f32
    %38 = vector.broadcast %cst_24 : f32 to vector<32x768xf32>
    %39 = arith.maximumf %37, %38 : vector<32x768xf32>
    %cst_25 = arith.constant 0.000000e+00 : f32
    %40 = vector.shape_cast %2 : vector<1x768xi1> to vector<1x768xi1>
    %41 = vector.broadcast %40 : vector<1x768xi1> to vector<32x768xi1>
    %42 = vector.broadcast %cst_25 : f32 to vector<32x768xf32>
    %43 = arith.select %41, %39, %42 : vector<32x768xi1>, vector<32x768xf32>
    %44 = arith.truncf %43 : vector<32x768xf32> to vector<32x768xbf16>
    %c16 = arith.constant 16 : index
    %c0_26 = arith.constant 0 : index
    %45 = vector.load %arg9[%c16, %c0_26] : memref<112x768xbf16, #tpu.memory_space<vmem>>, vector<32x768xbf16>
    tpu.vector_store %arg9[%c16, %c0_26], %44 {strides = array<i32>} : memref<112x768xbf16, #tpu.memory_space<vmem>>, vector<32x768xbf16>,
    %c0_27 = arith.constant 0 : index
    %c0_28 = arith.constant 0 : index
    %46 = vector.load %arg4[%c0_27, %c0_28] : memref<288x48xbf16, #tpu.memory_space<vmem>>, vector<288x48xbf16>
    %c0_29 = arith.constant 0 : index
    %c0_30 = arith.constant 0 : index
    %47 = vector.load %arg9[%c0_29, %c0_30] : memref<112x768xbf16, #tpu.memory_space<vmem>>, vector<48x768xbf16>
    %cst_31 = arith.constant dense<0.000000e+00> : vector<288x768xf32>
    %48 = tpu.matmul %46, %47, %cst_31 {dimension_numbers = #tpu.dot_dimension_numbers<[1], [0], [0], [1], [0, 0, 1, 1], [], []>} : vector<288x48xbf16>, vector<48x768xbf16>, vector<288x768xf32> -> vector<288x768xf32>
    %c0_32 = arith.constant 0 : index
    %c0_33 = arith.constant 0 : index
    %49 = vector.load %arg10[%c0_32, %c0_33] : memref<288x768xf32, #tpu.memory_space<vmem>>, vector<288x768xf32>
    tpu.vector_store %arg10[%c0_32, %c0_33], %48 {strides = array<i32>} : memref<288x768xf32, #tpu.memory_space<vmem>>, vector<288x768xf32>,
    %c0_34 = arith.constant 0 : index
    %c0_35 = arith.constant 0 : index
    %50 = vector.load %arg10[%c0_34, %c0_35] : memref<288x768xf32, #tpu.memory_space<vmem>>, vector<32x768xf32>
    %c19_i32_36 = arith.constant 19 : i32
    %51 = tpu.dynamic_rotate %50 by %c19_i32_36 dim 1 : vector<32x768xf32>, i32 -> vector<32x768xf32>
    %c32_37 = arith.constant 32 : index
    %c0_38 = arith.constant 0 : index
    %52 = vector.load %arg10[%c32_37, %c0_38] : memref<288x768xf32, #tpu.memory_space<vmem>>, vector<32x768xf32>
    %c18_i32_39 = arith.constant 18 : i32
    %53 = tpu.dynamic_rotate %52 by %c18_i32_39 dim 1 : vector<32x768xf32>, i32 -> vector<32x768xf32>
    %54 = arith.addf %51, %53 : vector<32x768xf32>
    %c64_40 = arith.constant 64 : index
    %c0_41 = arith.constant 0 : index
    %55 = vector.load %arg10[%c64_40, %c0_41] : memref<288x768xf32, #tpu.memory_space<vmem>>, vector<32x768xf32>
    %c17_i32_42 = arith.constant 17 : i32
    %56 = tpu.dynamic_rotate %55 by %c17_i32_42 dim 1 : vector<32x768xf32>, i32 -> vector<32x768xf32>
    %57 = arith.addf %54, %56 : vector<32x768xf32>
    %c96_43 = arith.constant 96 : index
    %c0_44 = arith.constant 0 : index
    %58 = vector.load %arg10[%c96_43, %c0_44] : memref<288x768xf32, #tpu.memory_space<vmem>>, vector<32x768xf32>
    %c1_i32_45 = arith.constant 1 : i32
    %59 = tpu.dynamic_rotate %58 by %c1_i32_45 dim 1 : vector<32x768xf32>, i32 -> vector<32x768xf32>
    %60 = arith.addf %57, %59 : vector<32x768xf32>
    %c128_46 = arith.constant 128 : index
    %c0_47 = arith.constant 0 : index
    %61 = vector.load %arg10[%c128_46, %c0_47] : memref<288x768xf32, #tpu.memory_space<vmem>>, vector<32x768xf32>
    %62 = arith.addf %60, %61 : vector<32x768xf32>
    %c160_48 = arith.constant 160 : index
    %c0_49 = arith.constant 0 : index
    %63 = vector.load %arg10[%c160_48, %c0_49] : memref<288x768xf32, #tpu.memory_space<vmem>>, vector<32x768xf32>
    %c767_i32_50 = arith.constant 767 : i32
    %64 = tpu.dynamic_rotate %63 by %c767_i32_50 dim 1 : vector<32x768xf32>, i32 -> vector<32x768xf32>
    %65 = arith.addf %62, %64 : vector<32x768xf32>
    %c192_51 = arith.constant 192 : index
    %c0_52 = arith.constant 0 : index
    %66 = vector.load %arg10[%c192_51, %c0_52] : memref<288x768xf32, #tpu.memory_space<vmem>>, vector<32x768xf32>
    %c751_i32_53 = arith.constant 751 : i32
    %67 = tpu.dynamic_rotate %66 by %c751_i32_53 dim 1 : vector<32x768xf32>, i32 -> vector<32x768xf32>
    %68 = arith.addf %65, %67 : vector<32x768xf32>
    %c224_54 = arith.constant 224 : index
    %c0_55 = arith.constant 0 : index
    %69 = vector.load %arg10[%c224_54, %c0_55] : memref<288x768xf32, #tpu.memory_space<vmem>>, vector<32x768xf32>
    %c750_i32_56 = arith.constant 750 : i32
    %70 = tpu.dynamic_rotate %69 by %c750_i32_56 dim 1 : vector<32x768xf32>, i32 -> vector<32x768xf32>
    %71 = arith.addf %68, %70 : vector<32x768xf32>
    %c256_57 = arith.constant 256 : index
    %c0_58 = arith.constant 0 : index
    %72 = vector.load %arg10[%c256_57, %c0_58] : memref<288x768xf32, #tpu.memory_space<vmem>>, vector<32x768xf32>
    %c749_i32_59 = arith.constant 749 : i32
    %73 = tpu.dynamic_rotate %72 by %c749_i32_59 dim 1 : vector<32x768xf32>, i32 -> vector<32x768xf32>
    %74 = arith.addf %71, %73 : vector<32x768xf32>
    %cst_60 = arith.constant 0.000000e+00 : f32
    %75 = vector.broadcast %cst_60 : f32 to vector<32x768xf32>
    %76 = arith.maximumf %74, %75 : vector<32x768xf32>
    %cst_61 = arith.constant 0.000000e+00 : f32
    %77 = vector.shape_cast %2 : vector<1x768xi1> to vector<1x768xi1>
    %78 = vector.broadcast %77 : vector<1x768xi1> to vector<32x768xi1>
    %79 = vector.broadcast %cst_61 : f32 to vector<32x768xf32>
    %80 = arith.select %78, %76, %79 : vector<32x768xi1>, vector<32x768xf32>
    %81 = arith.truncf %80 : vector<32x768xf32> to vector<32x768xbf16>
    %c48 = arith.constant 48 : index
    %c0_62 = arith.constant 0 : index
    %82 = vector.load %arg9[%c48, %c0_62] : memref<112x768xbf16, #tpu.memory_space<vmem>>, vector<32x768xbf16>
    tpu.vector_store %arg9[%c48, %c0_62], %81 {strides = array<i32>} : memref<112x768xbf16, #tpu.memory_space<vmem>>, vector<32x768xbf16>,
    %c0_63 = arith.constant 0 : index
    %c0_64 = arith.constant 0 : index
    %83 = vector.load %arg5[%c0_63, %c0_64] : memref<288x80xbf16, #tpu.memory_space<vmem>>, vector<288x80xbf16>
    %c0_65 = arith.constant 0 : index
    %c0_66 = arith.constant 0 : index
    %84 = vector.load %arg9[%c0_65, %c0_66] : memref<112x768xbf16, #tpu.memory_space<vmem>>, vector<80x768xbf16>
    %cst_67 = arith.constant dense<0.000000e+00> : vector<288x768xf32>
    %85 = tpu.matmul %83, %84, %cst_67 {dimension_numbers = #tpu.dot_dimension_numbers<[1], [0], [0], [1], [0, 0, 1, 1], [], []>} : vector<288x80xbf16>, vector<80x768xbf16>, vector<288x768xf32> -> vector<288x768xf32>
    %c0_68 = arith.constant 0 : index
    %c0_69 = arith.constant 0 : index
    %86 = vector.load %arg10[%c0_68, %c0_69] : memref<288x768xf32, #tpu.memory_space<vmem>>, vector<288x768xf32>
    tpu.vector_store %arg10[%c0_68, %c0_69], %85 {strides = array<i32>} : memref<288x768xf32, #tpu.memory_space<vmem>>, vector<288x768xf32>,
    %c0_70 = arith.constant 0 : index
    %c0_71 = arith.constant 0 : index
    %87 = vector.load %arg10[%c0_70, %c0_71] : memref<288x768xf32, #tpu.memory_space<vmem>>, vector<32x768xf32>
    %c19_i32_72 = arith.constant 19 : i32
    %88 = tpu.dynamic_rotate %87 by %c19_i32_72 dim 1 : vector<32x768xf32>, i32 -> vector<32x768xf32>
    %c32_73 = arith.constant 32 : index
    %c0_74 = arith.constant 0 : index
    %89 = vector.load %arg10[%c32_73, %c0_74] : memref<288x768xf32, #tpu.memory_space<vmem>>, vector<32x768xf32>
    %c18_i32_75 = arith.constant 18 : i32
    %90 = tpu.dynamic_rotate %89 by %c18_i32_75 dim 1 : vector<32x768xf32>, i32 -> vector<32x768xf32>
    %91 = arith.addf %88, %90 : vector<32x768xf32>
    %c64_76 = arith.constant 64 : index
    %c0_77 = arith.constant 0 : index
    %92 = vector.load %arg10[%c64_76, %c0_77] : memref<288x768xf32, #tpu.memory_space<vmem>>, vector<32x768xf32>
    %c17_i32_78 = arith.constant 17 : i32
    %93 = tpu.dynamic_rotate %92 by %c17_i32_78 dim 1 : vector<32x768xf32>, i32 -> vector<32x768xf32>
    %94 = arith.addf %91, %93 : vector<32x768xf32>
    %c96_79 = arith.constant 96 : index
    %c0_80 = arith.constant 0 : index
    %95 = vector.load %arg10[%c96_79, %c0_80] : memref<288x768xf32, #tpu.memory_space<vmem>>, vector<32x768xf32>
    %c1_i32_81 = arith.constant 1 : i32
    %96 = tpu.dynamic_rotate %95 by %c1_i32_81 dim 1 : vector<32x768xf32>, i32 -> vector<32x768xf32>
    %97 = arith.addf %94, %96 : vector<32x768xf32>
    %c128_82 = arith.constant 128 : index
    %c0_83 = arith.constant 0 : index
    %98 = vector.load %arg10[%c128_82, %c0_83] : memref<288x768xf32, #tpu.memory_space<vmem>>, vector<32x768xf32>
    %99 = arith.addf %97, %98 : vector<32x768xf32>
    %c160_84 = arith.constant 160 : index
    %c0_85 = arith.constant 0 : index
    %100 = vector.load %arg10[%c160_84, %c0_85] : memref<288x768xf32, #tpu.memory_space<vmem>>, vector<32x768xf32>
    %c767_i32_86 = arith.constant 767 : i32
    %101 = tpu.dynamic_rotate %100 by %c767_i32_86 dim 1 : vector<32x768xf32>, i32 -> vector<32x768xf32>
    %102 = arith.addf %99, %101 : vector<32x768xf32>
    %c192_87 = arith.constant 192 : index
    %c0_88 = arith.constant 0 : index
    %103 = vector.load %arg10[%c192_87, %c0_88] : memref<288x768xf32, #tpu.memory_space<vmem>>, vector<32x768xf32>
    %c751_i32_89 = arith.constant 751 : i32
    %104 = tpu.dynamic_rotate %103 by %c751_i32_89 dim 1 : vector<32x768xf32>, i32 -> vector<32x768xf32>
    %105 = arith.addf %102, %104 : vector<32x768xf32>
    %c224_90 = arith.constant 224 : index
    %c0_91 = arith.constant 0 : index
    %106 = vector.load %arg10[%c224_90, %c0_91] : memref<288x768xf32, #tpu.memory_space<vmem>>, vector<32x768xf32>
    %c750_i32_92 = arith.constant 750 : i32
    %107 = tpu.dynamic_rotate %106 by %c750_i32_92 dim 1 : vector<32x768xf32>, i32 -> vector<32x768xf32>
    %108 = arith.addf %105, %107 : vector<32x768xf32>
    %c256_93 = arith.constant 256 : index
    %c0_94 = arith.constant 0 : index
    %109 = vector.load %arg10[%c256_93, %c0_94] : memref<288x768xf32, #tpu.memory_space<vmem>>, vector<32x768xf32>
    %c749_i32_95 = arith.constant 749 : i32
    %110 = tpu.dynamic_rotate %109 by %c749_i32_95 dim 1 : vector<32x768xf32>, i32 -> vector<32x768xf32>
    %111 = arith.addf %108, %110 : vector<32x768xf32>
    %cst_96 = arith.constant 0.000000e+00 : f32
    %112 = vector.broadcast %cst_96 : f32 to vector<32x768xf32>
    %113 = arith.maximumf %111, %112 : vector<32x768xf32>
    %cst_97 = arith.constant 0.000000e+00 : f32
    %114 = vector.shape_cast %2 : vector<1x768xi1> to vector<1x768xi1>
    %115 = vector.broadcast %114 : vector<1x768xi1> to vector<32x768xi1>
    %116 = vector.broadcast %cst_97 : f32 to vector<32x768xf32>
    %117 = arith.select %115, %113, %116 : vector<32x768xi1>, vector<32x768xf32>
    %118 = arith.truncf %117 : vector<32x768xf32> to vector<32x768xbf16>
    %c80 = arith.constant 80 : index
    %c0_98 = arith.constant 0 : index
    %119 = vector.load %arg9[%c80, %c0_98] : memref<112x768xbf16, #tpu.memory_space<vmem>>, vector<32x768xbf16>
    tpu.vector_store %arg9[%c80, %c0_98], %118 {strides = array<i32>} : memref<112x768xbf16, #tpu.memory_space<vmem>>, vector<32x768xbf16>,
    %c0_99 = arith.constant 0 : index
    %c0_100 = arith.constant 0 : index
    %120 = vector.load %arg6[%c0_99, %c0_100] : memref<8x112xbf16, #tpu.memory_space<vmem>>, vector<8x112xbf16>
    %c0_101 = arith.constant 0 : index
    %c0_102 = arith.constant 0 : index
    %121 = vector.load %arg9[%c0_101, %c0_102] : memref<112x768xbf16, #tpu.memory_space<vmem>>, vector<112x768xbf16>
    %cst_103 = arith.constant dense<0.000000e+00> : vector<8x768xf32>
    %122 = tpu.matmul %120, %121, %cst_103 {dimension_numbers = #tpu.dot_dimension_numbers<[1], [0], [0], [1], [0, 0, 1, 1], [], []>} : vector<8x112xbf16>, vector<112x768xbf16>, vector<8x768xf32> -> vector<8x768xf32>
    %c0_104 = arith.constant 0 : index
    %c0_105 = arith.constant 0 : index
    %c0_106 = arith.constant 0 : index
    %123 = vector.load %arg1[%c0_104, %c0_105, %c0_106] : memref<1x8x768xf32, #tpu.memory_space<vmem>>, vector<1x8x768xf32>
    %124 = vector.shape_cast %123 : vector<1x8x768xf32> to vector<8x768xf32>
    %125 = arith.addf %124, %122 : vector<8x768xf32>
    %c0_107 = arith.constant 0 : index
    %c0_108 = arith.constant 0 : index
    %126 = vector.load %arg7[%c0_107, %c0_108] : memref<8x1xf32, #tpu.memory_space<vmem>>, vector<8x1xf32>
    %127 = vector.broadcast %126 : vector<8x1xf32> to vector<8x768xf32>
    %128 = arith.addf %125, %127 : vector<8x768xf32>
    %c0_109 = arith.constant 0 : index
    %c0_110 = arith.constant 0 : index
    %c0_111 = arith.constant 0 : index
    %129 = vector.load %arg8[%c0_109, %c0_110, %c0_111] : memref<1x8x768xf32, #tpu.memory_space<vmem>>, vector<1x8x768xf32>
    %130 = vector.shape_cast %129 : vector<1x8x768xf32> to vector<8x768xf32>
    %131 = vector.shape_cast %128 : vector<8x768xf32> to vector<1x8x768xf32>
    tpu.vector_store %arg8[%c0_109, %c0_110, %c0_111], %131 {strides = array<i32>} : memref<1x8x768xf32, #tpu.memory_space<vmem>>, vector<1x8x768xf32>,
    return
  }
  func.func @transform_0(%arg0: i32) -> (i32, i32, i32) {
    %c0_i32 = arith.constant 0 : i32
    %c0_i32_0 = arith.constant 0 : i32
    %c0_i32_1 = arith.constant 0 : i32
    return %arg0, %c0_i32, %c0_i32_0 : i32, i32, i32
  }
  func.func @transform_1(%arg0: i32) -> (i32, i32) {
    %c0_i32 = arith.constant 0 : i32
    %c0_i32_0 = arith.constant 0 : i32
    %c0_i32_1 = arith.constant 0 : i32
    return %c0_i32, %c0_i32_0 : i32, i32
  }
  func.func @transform_2(%arg0: i32) -> (i32, i32) {
    %c0_i32 = arith.constant 0 : i32
    %c0_i32_0 = arith.constant 0 : i32
    %c0_i32_1 = arith.constant 0 : i32
    return %c0_i32, %c0_i32_0 : i32, i32
  }
  func.func @transform_3(%arg0: i32) -> (i32, i32) {
    %c0_i32 = arith.constant 0 : i32
    %c0_i32_0 = arith.constant 0 : i32
    %c0_i32_1 = arith.constant 0 : i32
    return %c0_i32, %c0_i32_0 : i32, i32
  }
  func.func @transform_4(%arg0: i32) -> (i32, i32) {
    %c0_i32 = arith.constant 0 : i32
    %c0_i32_0 = arith.constant 0 : i32
    %c0_i32_1 = arith.constant 0 : i32
    return %c0_i32, %c0_i32_0 : i32, i32
  }
  func.func @transform_5(%arg0: i32) -> (i32, i32) {
    %c0_i32 = arith.constant 0 : i32
    %c0_i32_0 = arith.constant 0 : i32
    %c0_i32_1 = arith.constant 0 : i32
    return %c0_i32, %c0_i32_0 : i32, i32
  }
  func.func @transform_6(%arg0: i32) -> (i32, i32) {
    %c0_i32 = arith.constant 0 : i32
    %c0_i32_0 = arith.constant 0 : i32
    %c0_i32_1 = arith.constant 0 : i32
    return %c0_i32, %c0_i32_0 : i32, i32
  }
  func.func @transform_7(%arg0: i32) -> (i32, i32, i32) {
    %c0_i32 = arith.constant 0 : i32
    %c0_i32_0 = arith.constant 0 : i32
    %c0_i32_1 = arith.constant 0 : i32
    return %arg0, %c0_i32, %c0_i32_0 : i32, i32, i32
  }
}

</mosaic_0001>

<bundles_post_ra>
// kernel: tpu_custom_call.1
= control target key start
LH: loop header
LB: loop body
LE: loop exit
PB: predicated region body
PF: predicated region fallthrough
CT: control target
= control target key end

     0   :  { %v7160_v2 = vmov 0.0   ;;  %v13600_v5 = vmov 0   ;;  %vm180_vm0 = vcmask 130048   ;;  %s13592_s0 = inlined_call_operand.vmem [shape: f32[1,8,768], index: 0, kind: input, shape index: {}]   ;;  %s13593_s1 = inlined_call_operand.vmem [shape: f32[1,768], index: 1, kind: input, shape index: {}]   ;;  %s13594_s2 = inlined_call_operand.vmem [shape: bf16[288,16], index: 2, kind: input, shape index: {}]   ;;  %s13595_s3 = inlined_call_operand.vmem [shape: bf16[288,48], index: 3, kind: input, shape index: {}]   ;;  %s13596_s4 = inlined_call_operand.vmem [shape: bf16[288,80], index: 4, kind: input, shape index: {}]   ;;  %s13597_s5 = inlined_call_operand.vmem [shape: bf16[8,112], index: 5, kind: input, shape index: {}]   ;;  %s13598_s6 = inlined_call_operand.vmem [shape: f32[8,1], index: 6, kind: input, shape index: {}]   ;;  %s13599_s7 = inlined_call_operand.hbm [shape: f32[1,8,768], index: 7, kind: output, shape index: {}]  }
   0x1   :  { %v31_v0 = vld [vmem:[%s13592_s0 + $0x8] sm:$0xff]  ;;  %v30_v1 = vld [vmem:[%s13592_s0] sm:$0xff]  ;;  %267 = vmatprep.mubr.bf16.mxu0 %v13600_v5  ;;  %397 = vmatprep.mubr.bf16.mxu1 %v13600_v5  ;;  %v7252_v9 = vld [vmem:[%s13594_s2 + $0x70] sm:$0xff]  }
   0x2   :  { %v7217_v3 = vpack.c.bf16 %v7160_v2, %v31_v0  ;;  %v7219_v4 = vpack.c.bf16 %v7160_v2, %v30_v1  ;;  %v7226_v6 = vld [vmem:[%s13594_s2] sm:$0xff]   ;;  %7081 = vset.pattern.permute.xlu0 %v13600_v5  ;;  %v7234_v7 = vld [vmem:[%s13594_s2 + $0x68] sm:$0xff]   ;;  %v33_v10 = vld [vmem:[%s13592_s0 + $0x18] sm:$0xff] }
   0x3   :  { %v7247_v8 = vld [vmem:[%s13594_s2 + $0x8] sm:$0xff]   ;;  %v7257_v11 = vpack.c.bf16 %v7160_v2, %v33_v10  ;;  %v32_v12 = vld [vmem:[%s13592_s0 + $0x10] sm:$0xff]  ;;  %v34_v16 = vld [vmem:[%s13592_s0 + $0x20] sm:$0xff] }
   0x4   :  { %14022 = vst [vmem:[#allocation7_spill] sm:$0xff] %v7217_v3  ;;  %14023 = vst [vmem:[#allocation8_spill] sm:$0xff] %v7219_v4  ;;  %235 = vmatprep.subr.bf16.mxu0 %v7217_v3  ;;  %7068 = vmatprep.subr.bf16.mxu1 %v7217_v3  ;;  %v7262_v13 = vpack.c.bf16 %v7160_v2, %v32_v12  ;;  %v7275_v14 = vld [vmem:[%s13594_s2 + $0x10] sm:$0xff]   ;;  %v35_v15 = vld [vmem:[%s13592_s0 + $0x28] sm:$0xff]  ;;  %v7291_v19 = vpack.c.bf16 %v7160_v2, %v34_v16 }
   0x5   :  { %236 = vmatpush1.bf16.msra.mxu0 %v7219_v4  ;;  %7069 = vmatpush1.bf16.msra.mxu1 %v7219_v4  ;;  %14024 = vst [vmem:[#allocation9_spill] sm:$0xff] %v7257_v11  ;;  %v7287_v17 = vld [vmem:[%s13594_s2 + $0x78] sm:$0xff]   ;;  %v7289_v18 = vpack.c.bf16 %v7160_v2, %v35_v15  ;;  %v7309_v21 = vld [vmem:[%s13594_s2 + $0x80] sm:$0xff]   ;;  %v7326_v23 = vld [vmem:[%s13594_s2 + $0x88] sm:$0xff]  }
   0x6   :  { %14025 = vst [vmem:[#allocation10_spill] sm:$0xff] %v7262_v13  ;;  %448 = vmatprep.subr.bf16.mxu1 %v7257_v11  ;;  %14027 = vst [vmem:[#allocation12_spill] sm:$0xff] %v7291_v19  ;;  %v7304_v20 = vld [vmem:[%s13594_s2 + $0x18] sm:$0xff]   ;;  %v7321_v22 = vld [vmem:[%s13594_s2 + $0x20] sm:$0xff]  }
   0x7   :  { %14026 = vst [vmem:[#allocation11_spill] sm:$0xff] %v7289_v18  ;;  %661 = vmatprep.subr.bf16.mxu0 %v7289_v18  ;;  %v7337_v24 = vld [vmem:[%s13594_s2 + $0x28] sm:$0xff]  }
   0x8   :  { %6651 = vmatmul.mubr.msk.bf16.vlgmr.msra.gmra.mrb[0].mxu0 %vm180_vm0, %v7226_v6  ;;  %6664 = vmatmul.mubr.msk.bf16.vlgmr.msra.gmra.mrb[0].mxu1 %vm180_vm0, %v7234_v7 }
   0x9   :  { %277 = vmatprep.mubr.bf16.mxu0 %v13600_v5  ;;  %407 = vmatprep.mubr.bf16.mxu1 %v13600_v5 }
   0xa   :  { %449 = vmatpush1.bf16.msra.mxu1 %v7262_v13  ;;  %662 = vmatpush1.bf16.msra.mxu0 %v7291_v19 }
   0xb   :  { %2386 = vmatprep.subr.bf16.mxu1 %v7217_v3  ;;  %2599 = vmatprep.subr.bf16.mxu0 %v7257_v11 }
  0x10   :  { %6652 = vmatmul.mubr.msk.bf16.gmra.mrb[4].mxu0 %vm180_vm0, %v7247_v8  ;;  %6665 = vmatmul.mubr.msk.bf16.gmra.mrb[4].mxu1 %vm180_vm0, %v7252_v9 }
  0x11   :  { %287 = vmatprep.mubr.bf16.mxu0 %v13600_v5  ;;  %417 = vmatprep.mubr.bf16.mxu1 %v13600_v5 }
  0x18   :  { %6653 = vmatmul.mubr.msk.bf16.gmra.mrb[8].mxu0 %vm180_vm0, %v7275_v14  ;;  %6666 = vmatmul.mubr.msk.bf16.gmra.mrb[8].mxu1 %vm180_vm0, %v7287_v17 }
  0x19   :  { %297 = vmatprep.mubr.bf16.mxu0 %v13600_v5  ;;  %427 = vmatprep.mubr.bf16.mxu1 %v13600_v5 }
  0x20   :  { %6654 = vmatmul.mubr.msk.bf16.gmra.mrb[12].mxu0 %vm180_vm0, %v7304_v20  ;;  %6667 = vmatmul.mubr.msk.bf16.gmra.mrb[12].mxu1 %vm180_vm0, %v7309_v21 }
  0x21   :  { %307 = vmatprep.mubr.bf16.mxu0 %v13600_v5  ;;  %437 = vmatprep.mubr.bf16.mxu1 %v13600_v5 }
  0x28   :  { %6655 = vmatmul.mubr.msk.bf16.gmra.mrb[16].mxu0 %vm180_vm0, %v7321_v22  ;;  %6668 = vmatmul.mubr.msk.bf16.gmra.mrb[16].mxu1 %vm180_vm0, %v7326_v23 }
  0x29   :  { %317 = vmatprep.mubr.bf16.mxu0 %v13600_v5  ;;  %480 = vmatprep.mubr.bf16.mxu1 %v13600_v5 }
  0x2a   :  { %12 = vsyncpa [#allocation5], 0  ;;  %v7093_v25 = vld [vmem:[%s13594_s2 + $0x30] sm:$0xff]   ;;  %v7094_v26 = vld [vmem:[%s13594_s2 + $0x38] sm:$0xff]   ;;  %s7163_s26 = smov 111   ;;  %s7164_s27 = smov 110  }
  0x2b   :  { %v7095_v27 = vld [vmem:[%s13594_s2 + $0x40] sm:$0xff]   ;;  %v7096_v28 = vld [vmem:[%s13594_s2 + $0x48] sm:$0xff]   ;;  %v7097_v29 = vld [vmem:[%s13594_s2 + $0x50] sm:$0xff]   ;;  %s7165_s28 = smov 18   ;;  %s7166_s29 = smov 109   ;;  %vm2331_vm14 = vcmask 392192  }
  0x2c   :  { %v7098_v30 = vld [vmem:[%s13594_s2 + $0x58] sm:$0xff]   ;;  %v7099_v31 = vld [vmem:[%s13594_s2 + $0x60] sm:$0xff]   ;;  %s7162_s2 = smov 19   ;;  %s7167_s30 = smov 17  }
  0x2d   :  { %s7168_s8 = smov 1   ;;  %s7169_s9 = smov 127  }
  0x2e   :  { %s7170_s17 = smov [#allocation4]  }
  0x2f   :  { %s6625_s18 = sshll.u32 %s7170_s17, 4  ;;  %s6626_s18 = int_to_ptr.vmem [resolvable:$true] %s6625_s18 }
  0x30   :  { %6656 = vmatmul.mubr.msk.bf16.gmra.mrb[20].mxu0 %vm180_vm0, %v7337_v24  ;;  %6669 = vmatmul.mubr.msk.bf16.vlgmr.msra.gmra.mrb[20].mxu1 %vm180_vm0, %v7226_v6  ;;  %s7136_s19 = scalar_lea.vmem %s6626_s18, 768  ;;  %p7141_p1 = scmp.lt.s32.totalorder %s6626_s18, %s6626_s18 }
  0x31   :  { %327 = vmatprep.mubr.bf16.mxu0 %v13600_v5  ;;  %490 = vmatprep.mubr.bf16.mxu1 %v13600_v5  ;;  %p7137_p0 = scmp.ne.s32.totalorder %s6626_s18, %s7136_s19  ;;  %p7142_p2 = scmp.lt.s32.totalorder %s7136_s19, %s7136_s19 }
  0x32   :  { %2387 = vmatpush1.bf16.msra.mxu1 %v7219_v4 }
  0x33   :  { %p7143_p3 = por %p7142_p2, %p7141_p1 }
  0x35   :  { %p7144_p4 = pnand %p7143_p3, %p7137_p0 }
  0x38   :  { %6657 = vmatmul.mubr.msk.bf16.gmra.mrb[24].mxu0 %vm180_vm0, %v7093_v25  ;;  %6670 = vmatmul.mubr.msk.bf16.gmra.mrb[24].mxu1 %vm180_vm0, %v7247_v8 }
  0x39   :  { %337 = vmatprep.mubr.bf16.mxu0 %v13600_v5  ;;  %500 = vmatprep.mubr.bf16.mxu1 %v13600_v5 }
  0x40   :  { %6658 = vmatmul.mubr.msk.bf16.gmra.mrb[28].mxu0 %vm180_vm0, %v7094_v26  ;;  %6671 = vmatmul.mubr.msk.bf16.gmra.mrb[28].mxu1 %vm180_vm0, %v7275_v14 }
  0x41   :  { %347 = vmatprep.mubr.bf16.mxu0 %v13600_v5  ;;  %510 = vmatprep.mubr.bf16.mxu1 %v13600_v5 }
  0x48   :  { %6659 = vmatmul.mubr.msk.bf16.gmra.mrb[32].mxu0 %vm180_vm0, %v7095_v27  ;;  %6672 = vmatmul.mubr.msk.bf16.gmra.mrb[32].mxu1 %vm180_vm0, %v7304_v20 }
  0x49   :  { %357 = vmatprep.mubr.bf16.mxu0 %v13600_v5  ;;  %520 = vmatprep.mubr.bf16.mxu1 %v13600_v5 }
  0x50   :  { %6660 = vmatmul.mubr.msk.bf16.gmra.mrb[36].mxu0 %vm180_vm0, %v7096_v28  ;;  %6673 = vmatmul.mubr.msk.bf16.gmra.mrb[36].mxu1 %vm180_vm0, %v7321_v22 }
  0x51   :  { %367 = vmatprep.mubr.bf16.mxu0 %v13600_v5  ;;  %530 = vmatprep.mubr.bf16.mxu1 %v13600_v5 }
  0x58   :  { %6661 = vmatmul.mubr.msk.bf16.gmra.mrb[40].mxu0 %vm180_vm0, %v7097_v29  ;;  %6674 = vmatmul.mubr.msk.bf16.gmra.mrb[40].mxu1 %vm180_vm0, %v7337_v24 }
  0x59   :  { %540 = vmatprep.mubr.bf16.mxu1 %v13600_v5  ;;  %377 = vmatprep.mubr.bf16.mxu0 %v13600_v5 }
  0x60   :  { %6675 = vmatmul.mubr.msk.bf16.gmra.mrb[44].mxu1 %vm180_vm0, %v7093_v25  ;;  %6662 = vmatmul.mubr.msk.bf16.gmra.mrb[44].mxu0 %vm180_vm0, %v7098_v30 }
  0x61   :  { %550 = vmatprep.mubr.bf16.mxu1 %v13600_v5  ;;  %387 = vmatprep.mubr.bf16.mxu0 %v13600_v5 }
  0x68   :  { %6676 = vmatmul.mubr.msk.bf16.gmra.mrb[48].mxu1 %vm180_vm0, %v7094_v26  ;;  %6663 = vmatmul.mubr.msk.bf16.gmra.mrb[48].mxu0 %vm180_vm0, %v7099_v31 }
  0x69   :  { %560 = vmatprep.mubr.bf16.mxu1 %v13600_v5  ;;  %693 = vmatprep.mubr.bf16.mxu0 %v13600_v5 }
  0x70   :  { %6677 = vmatmul.mubr.msk.bf16.gmra.mrb[52].mxu1 %vm180_vm0, %v7095_v27  ;;  %6687 = vmatmul.mubr.msk.bf16.vlgmr.msra.gmra.mrb[52].mxu0 %vm180_vm0, %v7226_v6 }
  0x71   :  { %570 = vmatprep.mubr.bf16.mxu1 %v13600_v5  ;;  %703 = vmatprep.mubr.bf16.mxu0 %v13600_v5 }
  0x72   :  { %2600 = vmatpush1.bf16.msra.mxu0 %v7262_v13 }
  0x78   :  { %6678 = vmatmul.mubr.msk.bf16.gmra.mrb[56].mxu1 %vm180_vm0, %v7096_v28  ;;  %6688 = vmatmul.mubr.msk.bf16.gmra.mrb[56].mxu0 %vm180_vm0, %v7247_v8 }
  0x79   :  { %580 = vmatprep.mubr.bf16.mxu1 %v13600_v5  ;;  %713 = vmatprep.mubr.bf16.mxu0 %v13600_v5 }
  0x80   :  { %6679 = vmatmul.mubr.msk.bf16.gmra.mrb[60].mxu1 %vm180_vm0, %v7097_v29  ;;  %6689 = vmatmul.mubr.msk.bf16.gmra.mrb[60].mxu0 %vm180_vm0, %v7275_v14 }
  0x81   :  { %590 = vmatprep.mubr.bf16.mxu1 %v13600_v5  ;;  %723 = vmatprep.mubr.bf16.mxu0 %v13600_v5 }
  0x88   :  { %6680 = vmatmul.mubr.msk.bf16.gmra.mrb[64].mxu1 %vm180_vm0, %v7098_v30  ;;  %6690 = vmatmul.mubr.msk.bf16.gmra.mrb[64].mxu0 %vm180_vm0, %v7304_v20 }
  0x89   :  { %600 = vmatprep.mubr.bf16.mxu1 %v13600_v5  ;;  %733 = vmatprep.mubr.bf16.mxu0 %v13600_v5 }
  0x90   :  { %6681 = vmatmul.mubr.msk.bf16.gmra.mrb[68].mxu1 %vm180_vm0, %v7099_v31  ;;  %6691 = vmatmul.mubr.msk.bf16.gmra.mrb[68].mxu0 %vm180_vm0, %v7321_v22 }
  0x91   :  { %610 = vmatprep.mubr.bf16.mxu1 %v13600_v5  ;;  %743 = vmatprep.mubr.bf16.mxu0 %v13600_v5 }
  0x98   :  { %6682 = vmatmul.mubr.msk.bf16.gmra.mrb[72].mxu1 %vm180_vm0, %v7234_v7  ;;  %6692 = vmatmul.mubr.msk.bf16.gmra.mrb[72].mxu0 %vm180_vm0, %v7337_v24 }
  0x99   :  { %620 = vmatprep.mubr.bf16.mxu1 %v13600_v5  ;;  %753 = vmatprep.mubr.bf16.mxu0 %v13600_v5 }
  0xa0   :  { %6683 = vmatmul.mubr.msk.bf16.gmra.mrb[76].mxu1 %vm180_vm0, %v7252_v9  ;;  %6693 = vmatmul.mubr.msk.bf16.gmra.mrb[76].mxu0 %vm180_vm0, %v7093_v25 }
  0xa1   :  { %630 = vmatprep.mubr.bf16.mxu1 %v13600_v5  ;;  %763 = vmatprep.mubr.bf16.mxu0 %v13600_v5 }
  0xa8   :  { %6684 = vmatmul.mubr.msk.bf16.gmra.mrb[80].mxu1 %vm180_vm0, %v7287_v17  ;;  %6694 = vmatmul.mubr.msk.bf16.gmra.mrb[80].mxu0 %vm180_vm0, %v7094_v26 }
  0xa9   :  { %640 = vmatprep.mubr.bf16.mxu1 %v13600_v5  ;;  %773 = vmatprep.mubr.bf16.mxu0 %v13600_v5 }
  0xb0   :  { %6685 = vmatmul.mubr.msk.bf16.gmra.mrb[84].mxu1 %vm180_vm0, %v7309_v21  ;;  %6695 = vmatmul.mubr.msk.bf16.gmra.mrb[84].mxu0 %vm180_vm0, %v7095_v27 }
  0xb1   :  { %650 = vmatprep.mubr.bf16.mxu1 %v13600_v5  ;;  %783 = vmatprep.mubr.bf16.mxu0 %v13600_v5 }
  0xb8   :  { %6686 = vmatmul.mubr.msk.bf16.gmra.mrb[88].mxu1 %vm180_vm0, %v7326_v23  ;;  %6696 = vmatmul.mubr.msk.bf16.gmra.mrb[88].mxu0 %vm180_vm0, %v7096_v28 }
  0xb9   :  { %793 = vmatprep.mubr.bf16.mxu0 %v13600_v5  ;;  %2418 = vmatprep.mubr.bf16.mxu1 %v13600_v5 }
  0xc0   :  { %6697 = vmatmul.mubr.msk.bf16.gmra.mrb[92].mxu0 %vm180_vm0, %v7097_v29 }
  0xc1   :  { %803 = vmatprep.mubr.bf16.mxu0 %v13600_v5 }
  0xc8   :  { %6698 = vmatmul.mubr.msk.bf16.gmra.mrb[96].mxu0 %vm180_vm0, %v7098_v30 }
  0xc9   :  { %813 = vmatprep.mubr.bf16.mxu0 %v13600_v5 }
  0xd0   :  { %6699 = vmatmul.mubr.msk.bf16.gmra.mrb[100].mxu0 %vm180_vm0, %v7099_v31 }
  0xd1   :  { %823 = vmatprep.mubr.bf16.mxu0 %v13600_v5 }
  0xd8   :  { %6700 = vmatmul.mubr.msk.bf16.gmra.mrb[104].mxu0 %vm180_vm0, %v7234_v7 }
  0xd9   :  { %833 = vmatprep.mubr.bf16.mxu0 %v13600_v5 }
  0xdb   :  { %v269_v32 = vpop.f32.mrb[0].mxu0  ;;  %v399_v33 = vpop.f32.mrb[0].mxu1 }
  0xdc   :  { %v401_v34 = vpop.f32.mrb[1].mxu1  ;;  %1114 = vrot.lane.b32.xlu0 %v269_v32, %s7162_s2  ;;  %v271_v35 = vpop.f32.mrb[1].mxu0 }
  0xdd   :  { %v403_v36 = vpop.f32.mrb[2].mxu1  ;;  %1122 = vrot.lane.b32.xlu1 %v271_v35, %s7162_s2  ;;  %v273_v37 = vpop.f32.mrb[2].mxu0 }
  0xde   :  { %v275_v38 = vpop.f32.mrb[3].mxu0  ;;  %v405_v39 = vpop.f32.mrb[3].mxu1 }
  0xe0   :  { %1749 = vrot.lane.b32.xlu0 %v399_v33, %s7163_s26  ;;  %6701 = vmatmul.mubr.msk.bf16.gmra.mrb[108].mxu0 %vm180_vm0, %v7252_v9 }
  0xe1   :  { %1751 = vrot.lane.b32.xlu1 %v403_v36, %s7163_s26  ;;  %843 = vmatprep.mubr.bf16.mxu0 %v13600_v5 }
  0xe3   :  { %v279_v40 = vpop.f32.mrb[4].mxu0  ;;  %v409_v41 = vpop.f32.mrb[4].mxu1 }
  0xe4   :  { %1757 = vrot.lane.b32.xlu0 %v401_v34, %s7163_s26  ;;  %v281_v42 = vpop.f32.mrb[5].mxu0  ;;  %v411_v43 = vpop.f32.mrb[5].mxu1 }
  0xe5   :  { %1124 = vrot.lane.b32.xlu1 %v275_v38, %s7162_s2  ;;  %v283_v44 = vpop.f32.mrb[6].mxu0  ;;  %v413_v45 = vpop.f32.mrb[6].mxu1 }
  0xe6   :  { %v285_v46 = vpop.f32.mrb[7].mxu0  ;;  %v415_v47 = vpop.f32.mrb[7].mxu1 }
  0xe8   :  { %1116 = vrot.lane.b32.xlu0 %v273_v37, %s7162_s2  ;;  %6702 = vmatmul.mubr.msk.bf16.gmra.mrb[112].mxu0 %vm180_vm0, %v7287_v17 }
  0xe9   :  { %1759 = vrot.lane.b32.xlu1 %v405_v39, %s7163_s26  ;;  %853 = vmatprep.mubr.bf16.mxu0 %v13600_v5 }
  0xeb   :  { %v289_v48 = vpop.f32.mrb[8].mxu0  ;;  %v419_v49 = vpop.f32.mrb[8].mxu1 }
  0xec   :  { %1118 = vrot.lane.b32.xlu0 %v279_v40, %s7162_s2  ;;  %v291_v50 = vpop.f32.mrb[9].mxu0  ;;  %v421_v51 = vpop.f32.mrb[9].mxu1 }
  0xed   :  { %1120 = vrot.lane.b32.xlu1 %v283_v44, %s7162_s2  ;;  %v293_v52 = vpop.f32.mrb[10].mxu0  ;;  %v423_v53 = vpop.f32.mrb[10].mxu1 }
  0xee   :  { %v295_v54 = vpop.f32.mrb[11].mxu0  ;;  %v425_v55 = vpop.f32.mrb[11].mxu1 }
  0xf0   :  { %1866 = vrot.lane.b32.xlu0 %v409_v41, %s7164_s27  ;;  %6703 = vmatmul.mubr.msk.bf16.gmra.mrb[116].mxu0 %vm180_vm0, %v7309_v21 }
  0xf1   :  { %1868 = vrot.lane.b32.xlu1 %v413_v45, %s7164_s27  ;;  %863 = vmatprep.mubr.bf16.mxu0 %v13600_v5 }
  0xf3   :  { %v299_v56 = vpop.f32.mrb[12].mxu0  ;;  %v429_v57 = vpop.f32.mrb[12].mxu1 }
  0xf4   :  { %1126 = vrot.lane.b32.xlu0 %v281_v42, %s7162_s2  ;;  %v301_v58 = vpop.f32.mrb[13].mxu0  ;;  %v431_v59 = vpop.f32.mrb[13].mxu1 }
  0xf5   :  { %1128 = vrot.lane.b32.xlu1 %v285_v46, %s7162_s2  ;;  %v303_v60 = vpop.f32.mrb[14].mxu0  ;;  %v433_v61 = vpop.f32.mrb[14].mxu1 }
  0xf6   :  { %v305_v62 = vpop.f32.mrb[15].mxu0  ;;  %v435_v63 = vpop.f32.mrb[15].mxu1 }
  0xf8   :  { %1874 = vrot.lane.b32.xlu0 %v411_v43, %s7164_s27  ;;  %6704 = vmatmul.mubr.msk.bf16.gmra.mrb[120].mxu0 %vm180_vm0, %v7326_v23 }
  0xf9   :  { %1876 = vrot.lane.b32.xlu1 %v415_v47, %s7164_s27  ;;  %2631 = vmatprep.mubr.bf16.mxu0 %v13600_v5 }
  0xfb   :  { %v309_v0 = vpop.f32.mrb[16].mxu0  ;;  %v439_v1 = vpop.f32.mrb[16].mxu1 }
  0xfc   :  { %1213 = vrot.lane.b32.xlu0 %v289_v48, %s7165_s28  ;;  %v311_v2 = vpop.f32.mrb[17].mxu0  ;;  %v7490_v6 = vpop.f32.mrb[17].mxu1 }
  0xfd   :  { %1215 = vrot.lane.b32.xlu1 %v293_v52, %s7165_s28  ;;  %v313_v7 = vpop.f32.mrb[18].mxu0  ;;  %v443_v8 = vpop.f32.mrb[18].mxu1 }
  0xfe   :  { %v315_v9 = vpop.f32.mrb[19].mxu0  ;;  %v7493_v10 = vpop.f32.mrb[19].mxu1 }
 0x100   :  { %1870 = vrot.lane.b32.xlu0 %v419_v49, %s7164_s27 }
 0x101   :  { %1872 = vrot.lane.b32.xlu1 %v423_v53, %s7164_s27 }
 0x103   :  { %v7497_v12 = vpop.f32.mrb[20].mxu0  ;;  %v7499_v14 = vpop.f32.mrb[20].mxu1 }
 0x104   :  { %1221 = vrot.lane.b32.xlu0 %v291_v50, %s7165_s28  ;;  %v7502_v15 = vpop.f32.mrb[21].mxu0  ;;  %v7504_v16 = vpop.f32.mrb[21].mxu1 }
 0x105   :  { %1223 = vrot.lane.b32.xlu1 %v295_v54, %s7165_s28  ;;  %v323_v17 = vpop.f32.mrb[22].mxu0  ;;  %v7507_v20 = vpop.f32.mrb[22].mxu1 }
 0x106   :  { %v7509_v21 = vpop.f32.mrb[23].mxu0  ;;  %v7511_v22 = vpop.f32.mrb[23].mxu1 }
 0x108   :  { %1878 = vrot.lane.b32.xlu0 %v421_v51, %s7164_s27 }
 0x109   :  { %1880 = vrot.lane.b32.xlu1 %v425_v55, %s7164_s27 }
 0x10b   :  { %v7515_v23 = vpop.f32.mrb[24].mxu0  ;;  %v7517_v24 = vpop.f32.mrb[24].mxu1 }
 0x10c   :  { %1217 = vrot.lane.b32.xlu0 %v299_v56, %s7165_s28  ;;  %v7520_v25 = vpop.f32.mrb[25].mxu0  ;;  %v7522_v26 = vpop.f32.mrb[25].mxu1 }
 0x10d   :  { %1219 = vrot.lane.b32.xlu1 %v303_v60, %s7165_s28  ;;  %v7525_v27 = vpop.f32.mrb[26].mxu0  ;;  %v7527_v28 = vpop.f32.mrb[26].mxu1 }
 0x10e   :  { %v7529_v29 = vpop.f32.mrb[27].mxu0  ;;  %v7531_v30 = vpop.f32.mrb[27].mxu1 }
 0x110   :  { %1987 = vrot.lane.b32.xlu0 %v429_v57, %s7166_s29 }
 0x111   :  { %1989 = vrot.lane.b32.xlu1 %v433_v61, %s7166_s29 }
 0x113   :  { %v7535_v31 = vpop.f32.mrb[28].mxu0  ;;  %v7537_v32 = vpop.f32.mrb[28].mxu1 }
 0x114   :  { %1225 = vrot.lane.b32.xlu0 %v301_v58, %s7165_s28  ;;  %v7540_v33 = vpop.f32.mrb[29].mxu0  ;;  %v7542_v34 = vpop.f32.mrb[29].mxu1 }
 0x115   :  { %1227 = vrot.lane.b32.xlu1 %v305_v62, %s7165_s28  ;;  %v7545_v35 = vpop.f32.mrb[30].mxu0  ;;  %v7547_v36 = vpop.f32.mrb[30].mxu1 }
 0x116   :  { %v7549_v37 = vpop.f32.mrb[31].mxu0  ;;  %v7551_v38 = vpop.f32.mrb[31].mxu1 }
 0x118   :  { %1995 = vrot.lane.b32.xlu0 %v431_v59, %s7166_s29 }
 0x119   :  { %1997 = vrot.lane.b32.xlu1 %v435_v63, %s7166_s29 }
 0x11b   :  { %v7555_v39 = vpop.f32.mrb[32].mxu1  ;;  %v7557_v40 = vpop.f32.mrb[32].mxu0 }
 0x11c   :  { %14028 = vst [vmem:[#allocation13_spill] sm:$0xff] %v7557_v40  ;;  %1334 = vrot.lane.b32.xlu0 %v309_v0, %s7167_s30  ;;  %v7560_v41 = vpop.f32.mrb[33].mxu1  ;;  %v7562_v42 = vpop.f32.mrb[33].mxu0 }
 0x11d   :  { %14029 = vst [vmem:[#allocation14_spill] sm:$0xff] %v7562_v42  ;;  %1336 = vrot.lane.b32.xlu1 %v313_v7, %s7167_s30  ;;  %v7565_v43 = vpop.f32.mrb[34].mxu1  ;;  %v7567_v44 = vpop.f32.mrb[34].mxu0 }
 0x11e   :  { %14030 = vst [vmem:[#allocation15_spill] sm:$0xff] %v7567_v44  ;;  %v7569_v45 = vpop.f32.mrb[35].mxu1  ;;  %v7571_v46 = vpop.f32.mrb[35].mxu0 }
 0x11f   :  { %14031 = vst [vmem:[#allocation16_spill] sm:$0xff] %v7571_v46 }
 0x120   :  { %1991 = vrot.lane.b32.xlu0 %v439_v1, %s7166_s29 }
 0x121   :  { %1993 = vrot.lane.b32.xlu1 %v443_v8, %s7166_s29 }
 0x123   :  { %v7575_v47 = vpop.f32.mrb[36].mxu1  ;;  %v7577_v48 = vpop.f32.mrb[36].mxu0 }
 0x124   :  { %14032 = vst [vmem:[#allocation17_spill] sm:$0xff] %v7577_v48  ;;  %1342 = vrot.lane.b32.xlu0 %v311_v2, %s7167_s30  ;;  %v7580_v49 = vpop.f32.mrb[37].mxu1  ;;  %v7582_v50 = vpop.f32.mrb[37].mxu0 }
 0x125   :  { %14033 = vst [vmem:[#allocation18_spill] sm:$0xff] %v7582_v50  ;;  %1344 = vrot.lane.b32.xlu1 %v315_v9, %s7167_s30  ;;  %v7585_v51 = vpop.f32.mrb[38].mxu1  ;;  %v7587_v52 = vpop.f32.mrb[38].mxu0 }
 0x126   :  { %14034 = vst [vmem:[#allocation19_spill] sm:$0xff] %v7587_v52  ;;  %v7589_v53 = vpop.f32.mrb[39].mxu1  ;;  %v7591_v54 = vpop.f32.mrb[39].mxu0 }
 0x127   :  { %14035 = vst [vmem:[#allocation20_spill] sm:$0xff] %v7591_v54 }
 0x128   :  { %1999 = vrot.lane.b32.xlu0 %v7490_v6, %s7166_s29 }
 0x129   :  { %2001 = vrot.lane.b32.xlu1 %v7493_v10, %s7166_s29 }
 0x12b   :  { %v7597_v55 = vpop.f32.mrb[40].mxu1  ;;  %v7599_v56 = vpop.f32.mrb[40].mxu0 }
 0x12c   :  { %1338 = vrot.lane.b32.xlu0 %v7497_v12, %s7167_s30  ;;  %v7603_v57 = vpop.f32.mrb[41].mxu1  ;;  %v7605_v58 = vpop.f32.mrb[41].mxu0 }
 0x12d   :  { %1340 = vrot.lane.b32.xlu1 %v323_v17, %s7167_s30  ;;  %v7608_v59 = vpop.f32.mrb[42].mxu1  ;;  %v7610_v60 = vpop.f32.mrb[42].mxu0 }
 0x12e   :  { %v7612_v61 = vpop.f32.mrb[43].mxu1  ;;  %v7614_v62 = vpop.f32.mrb[43].mxu0 }
 0x130   :  { %1130 = vrot.lane.b32.xlu0 %v7499_v14, %s7162_s2 }
 0x131   :  { %1132 = vrot.lane.b32.xlu1 %v7507_v20, %s7162_s2 }
 0x133   :  { %v7620_v63 = vpop.f32.mrb[44].mxu1  ;;  %v7622_v0 = vpop.f32.mrb[44].mxu0 }
 0x134   :  { %1346 = vrot.lane.b32.xlu0 %v7502_v15, %s7167_s30  ;;  %v7626_v1 = vpop.f32.mrb[45].mxu1  ;;  %v7628_v2 = vpop.f32.mrb[45].mxu0 }
 0x135   :  { %1348 = vrot.lane.b32.xlu1 %v7509_v21, %s7167_s30  ;;  %v7632_v6 = vpop.f32.mrb[46].mxu1  ;;  %v7634_v7 = vpop.f32.mrb[46].mxu0 }
 0x136   :  { %v7636_v8 = vpop.f32.mrb[47].mxu1  ;;  %v7638_v9 = vpop.f32.mrb[47].mxu0 }
 0x138   :  { %1138 = vrot.lane.b32.xlu0 %v7504_v16, %s7162_s2 }
 0x139   :  { %1140 = vrot.lane.b32.xlu1 %v7511_v22, %s7162_s2 }
 0x13b   :  { %v7644_v10 = vpop.f32.mrb[48].mxu1  ;;  %v7646_v12 = vpop.f32.mrb[48].mxu0 }
 0x13c   :  { %1455 = vrot.lane.b32.xlu0 %v7515_v23, %s7168_s8  ;;  %v7650_v14 = vpop.f32.mrb[49].mxu1  ;;  %v7652_v15 = vpop.f32.mrb[49].mxu0 }
 0x13d   :  { %1457 = vrot.lane.b32.xlu1 %v7525_v27, %s7168_s8  ;;  %v7656_v17 = vpop.f32.mrb[50].mxu1  ;;  %v7658_v16 = vpop.f32.mrb[50].mxu0 }
 0x13e   :  { %v7660_v20 = vpop.f32.mrb[51].mxu1  ;;  %v7662_v21 = vpop.f32.mrb[51].mxu0 }
 0x140   :  { %1134 = vrot.lane.b32.xlu0 %v7517_v24, %s7162_s2 }
 0x141   :  { %1136 = vrot.lane.b32.xlu1 %v7527_v28, %s7162_s2 }
 0x143   :  { %v7668_v22 = vpop.f32.mrb[52].mxu1  ;;  %v7670_v23 = vpop.f32.mrb[52].mxu0 }
 0x144   :  { %14036 = vst [vmem:[#allocation21_spill] sm:$0xff] %v7668_v22  ;;  %1463 = vrot.lane.b32.xlu0 %v7520_v25, %s7168_s8  ;;  %v7674_v27 = vpop.f32.mrb[53].mxu1  ;;  %v7676_v5 = vpop.f32.mrb[53].mxu0 }
 0x145   :  { %14037 = vst [vmem:[#allocation22_spill] sm:$0xff] %v7674_v27  ;;  %1465 = vrot.lane.b32.xlu1 %v7529_v29, %s7168_s8  ;;  %v7680_v13 = vpop.f32.mrb[54].mxu1  ;;  %v7682_v24 = vpop.f32.mrb[54].mxu0 }
 0x146   :  { %14038 = vst [vmem:[#allocation23_spill] sm:$0xff] %v7680_v13  ;;  %v7684_v11 = vpop.f32.mrb[55].mxu1  ;;  %v7686_v28 = vpop.f32.mrb[55].mxu0 }
 0x147   :  { %14039 = vst [vmem:[#allocation24_spill] sm:$0xff] %v7684_v11 }
 0x148   :  { %1142 = vrot.lane.b32.xlu0 %v7522_v26, %s7162_s2 }
 0x149   :  { %1144 = vrot.lane.b32.xlu1 %v7531_v30, %s7162_s2 }
 0x14b   :  { %v7692_v25 = vpop.f32.mrb[56].mxu1  ;;  %v7694_v4 = vpop.f32.mrb[56].mxu0 }
 0x14c   :  { %14040 = vst [vmem:[#allocation25_spill] sm:$0xff] %v7692_v25  ;;  %14041 = vst [vmem:[#allocation26_spill] sm:$0xff] %v7694_v4  ;;  %1459 = vrot.lane.b32.xlu0 %v7535_v31, %s7168_s8  ;;  %v7698_v29 = vpop.f32.mrb[57].mxu1  ;;  %v7700_v3 = vpop.f32.mrb[57].mxu0 }
 0x14d   :  { %14042 = vst [vmem:[#allocation27_spill] sm:$0xff] %v7698_v29  ;;  %1461 = vrot.lane.b32.xlu1 %v7545_v35, %s7168_s8  ;;  %v7704_v11 = vpop.f32.mrb[58].mxu1  ;;  %v7706_v26 = vpop.f32.mrb[58].mxu0 }
 0x14e   :  { %14043 = vst [vmem:[#allocation28_spill] sm:$0xff] %v7704_v11  ;;  %14044 = vst [vmem:[#allocation29_spill] sm:$0xff] %v7706_v26  ;;  %v7708_v27 = vpop.permute.xlu0 %1114  ;;  %v7710_v30 = vpop.f32.mrb[59].mxu1 }
 0x14f   :  { %14045 = vst [vmem:[#allocation30_spill] sm:$0xff] %v7708_v27  ;;  %14046 = vst [vmem:[#allocation31_spill] sm:$0xff] %v7710_v30  ;;  %v7712_v25 = vpop.permute.xlu1 %1122  ;;  %v7714_v13 = vpop.f32.mrb[59].mxu0 }
 0x150   :  { %14047 = vst [vmem:[#allocation32_spill] sm:$0xff] %v7712_v25  ;;  %1229 = vrot.lane.b32.xlu0 %v7537_v32, %s7165_s28 }
 0x151   :  { %1231 = vrot.lane.b32.xlu1 %v7547_v36, %s7165_s28 }
 0x152   :  { %v7720_v31 = vpop.permute.xlu0 %1749 }
 0x153   :  { %14048 = vst [vmem:[#allocation33_spill] sm:$0xff] %v7720_v31  ;;  %v7722_v35 = vpop.permute.xlu1 %1751  ;;  %v7724_v29 = vpop.f32.mrb[60].mxu1 }
 0x154   :  { %14049 = vst [vmem:[#allocation34_spill] sm:$0xff] %v7722_v35  ;;  %1467 = vrot.lane.b32.xlu0 %v7540_v33, %s7168_s8  ;;  %v7728_v30 = vpop.f32.mrb[61].mxu1  ;;  %v7730_v11 = vpop.f32.mrb[60].mxu0 }
 0x155   :  { %14050 = vst [vmem:[#allocation35_spill] sm:$0xff] %v7730_v11  ;;  %1469 = vrot.lane.b32.xlu1 %v7549_v37, %s7168_s8  ;;  %v7734_v32 = vpop.f32.mrb[62].mxu1  ;;  %v7736_v22 = vpop.f32.mrb[61].mxu0 }
 0x156   :  { %v7738_v36 = vpop.permute.xlu0 %1757  ;;  %v7740_v19 = vpop.f32.mrb[63].mxu1 }
 0x157   :  { %14051 = vst [vmem:[#allocation36_spill] sm:$0xff] %v7738_v36  ;;  %v7742_v18 = vpop.permute.xlu1 %1124  ;;  %v7744_v52 = vpop.f32.mrb[62].mxu0 }
 0x158   :  { %14052 = vst [vmem:[#allocation37_spill] sm:$0xff] %v7742_v18  ;;  %14053 = vst [vmem:[#allocation38_spill] sm:$0xff] %v7744_v52  ;;  %1237 = vrot.lane.b32.xlu0 %v7542_v34, %s7165_s28  ;;  %v7748_v33 = vpop.f32.mrb[63].mxu0 }
 0x159   :  { %1239 = vrot.lane.b32.xlu1 %v7551_v38, %s7165_s28 }
 0x15a   :  { %v7752_v37 = vpop.permute.xlu0 %1116 }
 0x15b   :  { %14054 = vst [vmem:[#allocation39_spill] sm:$0xff] %v7752_v37  ;;  %v7754_v48 = vpop.permute.xlu1 %1759  ;;  %v7756_v44 = vpop.f32.mrb[64].mxu1 }
 0x15c   :  { %14055 = vst [vmem:[#allocation40_spill] sm:$0xff] %v7754_v48  ;;  %1233 = vrot.lane.b32.xlu0 %v7555_v39, %s7165_s28  ;;  %v7760_v40 = vpop.f32.mrb[65].mxu1  ;;  %v7762_v54 = vpop.f32.mrb[64].mxu0 }
 0x15d   :  { %14056 = vst [vmem:[#allocation41_spill] sm:$0xff] %v7762_v54  ;;  %1235 = vrot.lane.b32.xlu1 %v7565_v43, %s7165_s28  ;;  %v7766_v34 = vpop.f32.mrb[66].mxu1  ;;  %v7768_v50 = vpop.f32.mrb[65].mxu0 }
 0x15e   :  { %v7770_v38 = vpop.permute.xlu0 %1118  ;;  %v7772_v26 = vpop.f32.mrb[67].mxu1 }
 0x15f   :  { %14057 = vst [vmem:[#allocation42_spill] sm:$0xff] %v7770_v38  ;;  %v7774_v46 = vpop.permute.xlu1 %1120  ;;  %v7776_v42 = vpop.f32.mrb[66].mxu0 }
 0x160   :  { %14058 = vst [vmem:[#allocation43_spill] sm:$0xff] %v7774_v46  ;;  %14059 = vst [vmem:[#allocation44_spill] sm:$0xff] %v7776_v42  ;;  %1241 = vrot.lane.b32.xlu0 %v7560_v41, %s7165_s28  ;;  %v7780_v39 = vpop.f32.mrb[67].mxu0 }
 0x161   :  { %1243 = vrot.lane.b32.xlu1 %v7569_v45, %s7165_s28 }
 0x162   :  { %v7784_v43 = vpop.permute.xlu0 %1866 }
 0x163   :  { %14060 = vst [vmem:[#allocation45_spill] sm:$0xff] %v7784_v43  ;;  %v7786_v54 = vpop.permute.xlu1 %1868  ;;  %v7788_v4 = vpop.f32.mrb[68].mxu1 }
 0x164   :  { %14061 = vst [vmem:[#allocation46_spill] sm:$0xff] %v7786_v54  ;;  %1350 = vrot.lane.b32.xlu0 %v7575_v47, %s7167_s30  ;;  %v7792_v35 = vpop.f32.mrb[69].mxu1  ;;  %v7794_v42 = vpop.f32.mrb[68].mxu0 }
 0x165   :  { %14062 = vst [vmem:[#allocation47_spill] sm:$0xff] %v7794_v42  ;;  %1352 = vrot.lane.b32.xlu1 %v7585_v51, %s7167_s30  ;;  %v7798_v41 = vpop.f32.mrb[70].mxu1  ;;  %v7800_v48 = vpop.f32.mrb[69].mxu0 }
 0x166   :  { %v7802_v45 = vpop.permute.xlu0 %1126  ;;  %v7804_v43 = vpop.f32.mrb[71].mxu1 }
 0x167   :  { %14063 = vst [vmem:[#allocation48_spill] sm:$0xff] %v7802_v45  ;;  %v7806_v54 = vpop.permute.xlu1 %1128  ;;  %v7808_v31 = vpop.f32.mrb[70].mxu0 }
 0x168   :  { %14064 = vst [vmem:[#allocation49_spill] sm:$0xff] %v7806_v54  ;;  %14065 = vst [vmem:[#allocation50_spill] sm:$0xff] %v7808_v31  ;;  %1358 = vrot.lane.b32.xlu0 %v7580_v49, %s7167_s30  ;;  %v7812_v47 = vpop.f32.mrb[71].mxu0 }
 0x169   :  { %1360 = vrot.lane.b32.xlu1 %v7589_v53, %s7167_s30 }
 0x16a   :  { %v7816_v51 = vpop.permute.xlu0 %1874 }
 0x16b   :  { %14066 = vst [vmem:[#allocation51_spill] sm:$0xff] %v7816_v51  ;;  %v7818_v36 = vpop.permute.xlu1 %1876  ;;  %v7820_v42 = vpop.f32.mrb[72].mxu1 }
 0x16c   :  { %14067 = vst [vmem:[#allocation52_spill] sm:$0xff] %v7818_v36  ;;  %1624 = vrot.lane.b32.xlu0 %v7599_v56, %s7169_s9  ;;  %v7824_v52 = vpop.f32.mrb[73].mxu1  ;;  %v7826_v31 = vpop.f32.mrb[72].mxu0 }
 0x16d   :  { %14068 = vst [vmem:[#allocation53_spill] sm:$0xff] %v7826_v31  ;;  %1626 = vrot.lane.b32.xlu1 %v7610_v60, %s7169_s9  ;;  %v7830_v49 = vpop.f32.mrb[74].mxu1  ;;  %v7832_v53 = vpop.f32.mrb[73].mxu0 }
 0x16e   :  { %v7834_v51 = vpop.permute.xlu0 %1213  ;;  %v7836_v36 = vpop.f32.mrb[75].mxu1 }
 0x16f   :  { %14069 = vst [vmem:[#allocation54_spill] sm:$0xff] %v7834_v51  ;;  %v7838_v11 = vpop.permute.xlu1 %1215  ;;  %v7840_v46 = vpop.f32.mrb[74].mxu0 }
 0x170   :  { %14070 = vst [vmem:[#allocation55_spill] sm:$0xff] %v7838_v11  ;;  %14071 = vst [vmem:[#allocation56_spill] sm:$0xff] %v7840_v46  ;;  %1354 = vrot.lane.b32.xlu0 %v7597_v55, %s7167_s30  ;;  %v7844_v56 = vpop.f32.mrb[75].mxu0 }
 0x171   :  { %1356 = vrot.lane.b32.xlu1 %v7608_v59, %s7167_s30 }
 0x172   :  { %v7848_v60 = vpop.permute.xlu0 %1870 }
 0x173   :  { %14072 = vst [vmem:[#allocation57_spill] sm:$0xff] %v7848_v60  ;;  %v7850_v31 = vpop.permute.xlu1 %1872  ;;  %v7852_v54 = vpop.f32.mrb[76].mxu1 }
 0x174   :  { %14073 = vst [vmem:[#allocation58_spill] sm:$0xff] %v7850_v31  ;;  %1632 = vrot.lane.b32.xlu0 %v7605_v58, %s7169_s9  ;;  %v7856_v38 = vpop.f32.mrb[77].mxu1  ;;  %v7858_v46 = vpop.f32.mrb[76].mxu0 }
 0x175   :  { %14074 = vst [vmem:[#allocation59_spill] sm:$0xff] %v7858_v46  ;;  %1634 = vrot.lane.b32.xlu1 %v7614_v62, %s7169_s9  ;;  %v7862_v55 = vpop.f32.mrb[78].mxu1  ;;  %v7864_v45 = vpop.f32.mrb[77].mxu0 }
 0x176   :  { %v7866_v59 = vpop.permute.xlu0 %1221  ;;  %v7868_v60 = vpop.f32.mrb[79].mxu1 }
 0x177   :  { %14075 = vst [vmem:[#allocation60_spill] sm:$0xff] %v7866_v59  ;;  %v7870_v31 = vpop.permute.xlu1 %1223  ;;  %v7872_v37 = vpop.f32.mrb[78].mxu0 }
 0x178   :  { %14076 = vst [vmem:[#allocation61_spill] sm:$0xff] %v7870_v31  ;;  %14077 = vst [vmem:[#allocation62_spill] sm:$0xff] %v7872_v37  ;;  %1628 = vrot.lane.b32.xlu0 %v7622_v0, %s7169_s9  ;;  %v7876_v58 = vpop.f32.mrb[79].mxu0 }
 0x179   :  { %1630 = vrot.lane.b32.xlu1 %v7634_v7, %s7169_s9 }
 0x17a   :  { %v7880_v62 = vpop.permute.xlu0 %1878 }
 0x17b   :  { %14078 = vst [vmem:[#allocation63_spill] sm:$0xff] %v7880_v62  ;;  %v7882_v46 = vpop.permute.xlu1 %1880  ;;  %v7884_v18 = vpop.f32.mrb[80].mxu1 }
 0x17c   :  { %14079 = vst [vmem:[#allocation64_spill] sm:$0xff] %v7882_v46  ;;  %1471 = vrot.lane.b32.xlu0 %v7620_v63, %s7168_s8  ;;  %v7888_v27 = vpop.f32.mrb[81].mxu1  ;;  %v7890_v37 = vpop.f32.mrb[80].mxu0 }
 0x17d   :  { %14080 = vst [vmem:[#allocation65_spill] sm:$0xff] %v7890_v37  ;;  %1473 = vrot.lane.b32.xlu1 %v7632_v6, %s7168_s8  ;;  %v7894_v0 = vpop.f32.mrb[82].mxu1  ;;  %v7896_v25 = vpop.f32.mrb[81].mxu0 }
 0x17e   :  { %v7898_v7 = vpop.permute.xlu0 %1217  ;;  %v7900_v62 = vpop.f32.mrb[83].mxu1 }
 0x17f   :  { %14081 = vst [vmem:[#allocation66_spill] sm:$0xff] %v7898_v7  ;;  %v7902_v46 = vpop.permute.xlu1 %1219  ;;  %v7904_v11 = vpop.f32.mrb[82].mxu0 }
 0x180   :  { %14082 = vst [vmem:[#allocation67_spill] sm:$0xff] %v7902_v46  ;;  %14083 = vst [vmem:[#allocation68_spill] sm:$0xff] %v7904_v11  ;;  %1636 = vrot.lane.b32.xlu0 %v7628_v2, %s7169_s9  ;;  %v7908_v63 = vpop.f32.mrb[83].mxu0 }
 0x181   :  { %1638 = vrot.lane.b32.xlu1 %v7638_v9, %s7169_s9 }
 0x182   :  { %v7912_v6 = vpop.permute.xlu0 %1987 }
 0x183   :  { %14084 = vst [vmem:[#allocation69_spill] sm:$0xff] %v7912_v6  ;;  %v7914_v37 = vpop.permute.xlu1 %1989  ;;  %v7916_v31 = vpop.f32.mrb[84].mxu1 }
 0x184   :  { %14085 = vst [vmem:[#allocation70_spill] sm:$0xff] %v7914_v37  ;;  %1479 = vrot.lane.b32.xlu0 %v7626_v1, %s7168_s8  ;;  %v7920_v46 = vpop.f32.mrb[85].mxu1  ;;  %v7922_v11 = vpop.f32.mrb[84].mxu0 }
 0x185   :  { %14086 = vst [vmem:[#allocation71_spill] sm:$0xff] %v7922_v11  ;;  %1481 = vrot.lane.b32.xlu1 %v7636_v8, %s7168_s8  ;;  %v7926_v2 = vpop.f32.mrb[86].mxu1  ;;  %v7928_v7 = vpop.f32.mrb[85].mxu0 }
 0x186   :  { %14087 = vst [vmem:[#allocation72_spill] sm:$0xff] %v7928_v7  ;;  %v7930_v9 = vpop.permute.xlu0 %1225  ;;  %v7932_v6 = vpop.f32.mrb[87].mxu1 }
 0x187   :  { %14088 = vst [vmem:[#allocation73_spill] sm:$0xff] %v7930_v9  ;;  %v7934_v37 = vpop.permute.xlu1 %1227  ;;  %v7936_v51 = vpop.f32.mrb[86].mxu0 }
 0x188   :  { %14089 = vst [vmem:[#allocation74_spill] sm:$0xff] %v7934_v37  ;;  %14090 = vst [vmem:[#allocation75_spill] sm:$0xff] %v7936_v51  ;;  %1745 = vrot.lane.b32.xlu0 %v7646_v12, %s7163_s26  ;;  %v7940_v1 = vpop.f32.mrb[87].mxu0 }
 0x189   :  { %14091 = vst [vmem:[#allocation76_spill] sm:$0xff] %v7940_v1  ;;  %1747 = vrot.lane.b32.xlu1 %v7658_v16, %s7163_s26 }
 0x18a   :  { %v7944_v8 = vpop.permute.xlu0 %1995 }
 0x18b   :  { %14092 = vst [vmem:[#allocation77_spill] sm:$0xff] %v7944_v8  ;;  %v7946_v11 = vpop.permute.xlu1 %1997  ;;  %v7948_v7 = vpop.f32.mrb[88].mxu1 }
 0x18c   :  { %14093 = vst [vmem:[#allocation78_spill] sm:$0xff] %v7946_v11  ;;  %1753 = vrot.lane.b32.xlu0 %v7652_v15, %s7163_s26  ;;  %v7952_v37 = vpop.f32.mrb[89].mxu1  ;;  %v7954_v51 = vpop.f32.mrb[88].mxu0 }
 0x18d   :  { %14094 = vst [vmem:[#allocation79_spill] sm:$0xff] %v7954_v51  ;;  %1755 = vrot.lane.b32.xlu1 %v7662_v21, %s7163_s26  ;;  %v7958_v12 = vpop.f32.mrb[90].mxu1  ;;  %v7960_v1 = vpop.f32.mrb[89].mxu0 }
 0x18e   :  { %14095 = vst [vmem:[#allocation80_spill] sm:$0xff] %v7960_v1  ;;  %v7962_v16 = vpop.permute.xlu0 %1334  ;;  %v7964_v8 = vpop.f32.mrb[91].mxu1 }
 0x18f   :  { %v7966_v11 = vpop.permute.xlu1 %1336  ;;  %v7968_v9 = vpop.f32.mrb[90].mxu0 }
 0x190   :  { %14096 = vst [vmem:[#allocation81_spill] sm:$0xff] %v7966_v11  ;;  %14097 = vst [vmem:[#allocation82_spill] sm:$0xff] %v7968_v9  ;;  %1154 = vrot.lane.b32.xlu0 %v7676_v5, %s7162_s2  ;;  %v7972_v15 = vpop.f32.mrb[91].mxu0 }
 0x191   :  { %14098 = vst [vmem:[#allocation83_spill] sm:$0xff] %v7972_v15  ;;  %1156 = vrot.lane.b32.xlu1 %v7686_v28, %s7162_s2 }
 0x192   :  { %v7976_v21 = vpop.permute.xlu0 %1991 }
 0x193   :  { %14099 = vst [vmem:[#allocation84_spill] sm:$0xff] %v7976_v21  ;;  %v7978_v51 = vpop.permute.xlu1 %1993  ;;  %v7980_v1 = vpop.f32.mrb[92].mxu0 }
 0x194   :  { %14100 = vst [vmem:[#allocation85_spill] sm:$0xff] %v7978_v51  ;;  %1158 = vrot.lane.b32.xlu0 %v7700_v3, %s7162_s2  ;;  %v7984_v11 = vpop.f32.mrb[93].mxu0 }
 0x195   :  { %14101 = vst [vmem:[#allocation86_spill] sm:$0xff] %v7984_v11  ;;  %1160 = vrot.lane.b32.xlu1 %v7714_v13, %s7162_s2  ;;  %v7988_v5 = vpop.f32.mrb[94].mxu0 }
 0x196   :  { %v7990_v15 = vpop.permute.xlu0 %1342  ;;  %v7992_v9 = vpop.f32.mrb[95].mxu0 }
 0x197   :  { %14102 = vst [vmem:[#allocation87_spill] sm:$0xff] %v7990_v15  ;;  %14103 = vst [vmem:[#allocation88_spill] sm:$0xff] %v7992_v9  ;;  %v7994_v28 = vpop.permute.xlu1 %1344 }
 0x198   :  { %14104 = vst [vmem:[#allocation89_spill] sm:$0xff] %v7994_v28  ;;  %1640 = vrot.lane.b32.xlu0 %v7724_v29, %s7169_s9 }
 0x199   :  { %1642 = vrot.lane.b32.xlu1 %v7734_v32, %s7169_s9 }
 0x19a   :  { %v8000_v3 = vpop.permute.xlu0 %1999 }
 0x19b   :  { %14105 = vst [vmem:[#allocation90_spill] sm:$0xff] %v8000_v3  ;;  %v8002_v51 = vpop.permute.xlu1 %2001  ;;  %v8004_v21 = vpop.f32.mrb[96].mxu0 }
 0x19c   :  { %14106 = vst [vmem:[#allocation91_spill] sm:$0xff] %v8002_v51  ;;  %1253 = vrot.lane.b32.xlu0 %v7736_v22, %s7165_s28  ;;  %v8008_v13 = vpop.f32.mrb[97].mxu0 }
 0x19d   :  { %14107 = vst [vmem:[#allocation92_spill] sm:$0xff] %v8008_v13  ;;  %1255 = vrot.lane.b32.xlu1 %v7748_v33, %s7165_s28  ;;  %v8012_v9 = vpop.f32.mrb[98].mxu0 }
 0x19e   :  { %v8014_v29 = vpop.permute.xlu0 %1338  ;;  %v8016_v11 = vpop.f32.mrb[99].mxu0 }
 0x19f   :  { %14108 = vst [vmem:[#allocation93_spill] sm:$0xff] %v8016_v11  ;;  %v8018_v32 = vpop.permute.xlu1 %1340 }
 0x1a0   :  { %1644 = vrot.lane.b32.xlu0 %v7756_v44, %s7169_s9 }
 0x1a1   :  { %1646 = vrot.lane.b32.xlu1 %v7766_v34, %s7169_s9 }
 0x1a2   :  { %v8024_v22 = vpop.permute.xlu0 %1130 }
 0x1a3   :  { %14109 = vst [vmem:[#allocation94_spill] sm:$0xff] %v8024_v22  ;;  %v8026_v13 = vpop.permute.xlu1 %1132  ;;  %v8028_v51 = vpop.f32.mrb[100].mxu0 }
 0x1a4   :  { %14110 = vst [vmem:[#allocation95_spill] sm:$0xff] %v8026_v13  ;;  %1257 = vrot.lane.b32.xlu0 %v7768_v50, %s7165_s28  ;;  %v8032_v33 = vpop.f32.mrb[101].mxu0 }
 0x1a5   :  { %14111 = vst [vmem:[#allocation96_spill] sm:$0xff] %v8032_v33  ;;  %1259 = vrot.lane.b32.xlu1 %v7780_v39, %s7165_s28  ;;  %v8036_v11 = vpop.f32.mrb[102].mxu0 }
 0x1a6   :  { %v8038_v44 = vpop.permute.xlu0 %1346  ;;  %v8040_v3 = vpop.f32.mrb[103].mxu0 }
 0x1a7   :  { %14112 = vst [vmem:[#allocation97_spill] sm:$0xff] %v8038_v44  ;;  %14113 = vst [vmem:[#allocation98_spill] sm:$0xff] %v8040_v3  ;;  %v8042_v34 = vpop.permute.xlu1 %1348 }
 0x1a8   :  { %14114 = vst [vmem:[#allocation99_spill] sm:$0xff] %v8042_v34  ;;  %1761 = vrot.lane.b32.xlu0 %v7788_v4, %s7163_s26 }
 0x1a9   :  { %1763 = vrot.lane.b32.xlu1 %v7798_v41, %s7163_s26 }
 0x1aa   :  { %v8048_v50 = vpop.permute.xlu0 %1138 }
 0x1ab   :  { %14115 = vst [vmem:[#allocation100_spill] sm:$0xff] %v8048_v50  ;;  %v8050_v13 = vpop.permute.xlu1 %1140  ;;  %v8052_v22 = vpop.f32.mrb[104].mxu0 }
 0x1ac   :  { %14116 = vst [vmem:[#allocation101_spill] sm:$0xff] %v8050_v13  ;;  %1374 = vrot.lane.b32.xlu0 %v7800_v48, %s7167_s30  ;;  %v8056_v39 = vpop.f32.mrb[105].mxu0 }
 0x1ad   :  { %14117 = vst [vmem:[#allocation102_spill] sm:$0xff] %v8056_v39  ;;  %1376 = vrot.lane.b32.xlu1 %v7812_v47, %s7167_s30  ;;  %v8060_v3 = vpop.f32.mrb[106].mxu0 }
 0x1ae   :  { %v8062_v4 = vpop.permute.xlu0 %1455  ;;  %v8064_v33 = vpop.f32.mrb[107].mxu0 }
 0x1af   :  { %14118 = vst [vmem:[#allocation103_spill] sm:$0xff] %v8064_v33  ;;  %v8066_v41 = vpop.permute.xlu1 %1457 }
 0x1b0   :  { %1765 = vrot.lane.b32.xlu0 %v7820_v42, %s7163_s26 }
 0x1b1   :  { %1767 = vrot.lane.b32.xlu1 %v7830_v49, %s7163_s26 }
 0x1b2   :  { %v8072_v48 = vpop.permute.xlu0 %1134 }
 0x1b3   :  { %14119 = vst [vmem:[#allocation104_spill] sm:$0xff] %v8072_v48  ;;  %v8074_v13 = vpop.permute.xlu1 %1136  ;;  %v8076_v50 = vpop.f32.mrb[108].mxu0 }
 0x1b4   :  { %14120 = vst [vmem:[#allocation105_spill] sm:$0xff] %v8074_v13  ;;  %1378 = vrot.lane.b32.xlu0 %v7832_v53, %s7167_s30  ;;  %v8080_v47 = vpop.f32.mrb[109].mxu0 }
 0x1b5   :  { %14121 = vst [vmem:[#allocation106_spill] sm:$0xff] %v8080_v47  ;;  %1380 = vrot.lane.b32.xlu1 %v7844_v56, %s7167_s30  ;;  %v8084_v33 = vpop.f32.mrb[110].mxu0 }
 0x1b6   :  { %v8086_v42 = vpop.permute.xlu0 %1463  ;;  %v8088_v39 = vpop.f32.mrb[111].mxu0 }
 0x1b7   :  { %14122 = vst [vmem:[#allocation107_spill] sm:$0xff] %v8086_v42  ;;  %14123 = vst [vmem:[#allocation108_spill] sm:$0xff] %v8088_v39  ;;  %v8090_v49 = vpop.permute.xlu1 %1465 }
 0x1b8   :  { %14124 = vst [vmem:[#allocation109_spill] sm:$0xff] %v8090_v49  ;;  %1882 = vrot.lane.b32.xlu0 %v7852_v54, %s7164_s27 }
 0x1b9   :  { %1884 = vrot.lane.b32.xlu1 %v7862_v55, %s7164_s27 }
 0x1ba   :  { %v8096_v53 = vpop.permute.xlu0 %1142 }
 0x1bb   :  { %14125 = vst [vmem:[#allocation110_spill] sm:$0xff] %v8096_v53  ;;  %v8098_v13 = vpop.permute.xlu1 %1144  ;;  %v8100_v48 = vpop.f32.mrb[112].mxu0 }
 0x1bc   :  { %14126 = vst [vmem:[#allocation111_spill] sm:$0xff] %v8098_v13  ;;  %1495 = vrot.lane.b32.xlu0 %v7864_v45, %s7168_s8  ;;  %v8104_v56 = vpop.f32.mrb[113].mxu0 }
 0x1bd   :  { %14127 = vst [vmem:[#allocation112_spill] sm:$0xff] %v8104_v56  ;;  %1497 = vrot.lane.b32.xlu1 %v7876_v58, %s7168_s8  ;;  %v8108_v39 = vpop.f32.mrb[114].mxu0 }
 0x1be   :  { %v8110_v54 = vpop.permute.xlu0 %1459  ;;  %v8112_v47 = vpop.f32.mrb[115].mxu0 }
 0x1bf   :  { %14128 = vst [vmem:[#allocation113_spill] sm:$0xff] %v8110_v54  ;;  %14129 = vst [vmem:[#allocation114_spill] sm:$0xff] %v8112_v47  ;;  %v8114_v55 = vpop.permute.xlu1 %1461 }
 0x1c0   :  { %14130 = vst [vmem:[#allocation115_spill] sm:$0xff] %v8114_v55  ;;  %1886 = vrot.lane.b32.xlu0 %v7884_v18, %s7164_s27 }
 0x1c1   :  { %1888 = vrot.lane.b32.xlu1 %v7894_v0, %s7164_s27 }
 0x1c2   :  { %v8120_v45 = vpop.permute.xlu0 %1229 }
 0x1c3   :  { %14131 = vst [vmem:[#allocation116_spill] sm:$0xff] %v8120_v45  ;;  %v8122_v13 = vpop.permute.xlu1 %1231  ;;  %v8124_v53 = vpop.f32.mrb[116].mxu0 }
 0x1c4   :  { %14132 = vst [vmem:[#allocation117_spill] sm:$0xff] %v8122_v13  ;;  %1499 = vrot.lane.b32.xlu0 %v7896_v25, %s7168_s8  ;;  %v8128_v58 = vpop.f32.mrb[117].mxu0 }
 0x1c5   :  { %14133 = vst [vmem:[#allocation118_spill] sm:$0xff] %v8128_v58  ;;  %1501 = vrot.lane.b32.xlu1 %v7908_v63, %s7168_s8  ;;  %v8132_v47 = vpop.f32.mrb[118].mxu0 }
 0x1c6   :  { %v8134_v18 = vpop.permute.xlu0 %1467  ;;  %v8136_v56 = vpop.f32.mrb[119].mxu0 }
 0x1c7   :  { %14134 = vst [vmem:[#allocation119_spill] sm:$0xff] %v8134_v18  ;;  %14135 = vst [vmem:[#allocation120_spill] sm:$0xff] %v8136_v56  ;;  %v8138_v0 = vpop.permute.xlu1 %1469 }
 0x1c8   :  { %14136 = vst [vmem:[#allocation121_spill] sm:$0xff] %v8138_v0  ;;  %2003 = vrot.lane.b32.xlu0 %v7916_v31, %s7166_s29 }
 0x1c9   :  { %2005 = vrot.lane.b32.xlu1 %v7926_v2, %s7166_s29 }
 0x1ca   :  { %v8144_v25 = vpop.permute.xlu0 %1237 }
 0x1cb   :  { %14137 = vst [vmem:[#allocation122_spill] sm:$0xff] %v8144_v25  ;;  %v8146_v13 = vpop.permute.xlu1 %1239  ;;  %v8148_v45 = vpop.f32.mrb[120].mxu0 }
 0x1cc   :  { %14138 = vst [vmem:[#allocation123_spill] sm:$0xff] %v8146_v13  ;;  %2007 = vrot.lane.b32.xlu0 %v7948_v7, %s7166_s29  ;;  %v8152_v63 = vpop.f32.mrb[121].mxu0 }
 0x1cd   :  { %14139 = vst [vmem:[#allocation124_spill] sm:$0xff] %v8152_v63  ;;  %2009 = vrot.lane.b32.xlu1 %v7958_v12, %s7166_s29  ;;  %v8156_v56 = vpop.f32.mrb[122].mxu0  ;;  %v14182_v63 = vld [vmem:[#allocation48_spill] sm:$0xff] }
 0x1ce   :  { %v8158_v31 = vpop.permute.xlu0 %1233  ;;  %v8160_v58 = vpop.f32.mrb[123].mxu0 }
 0x1cf   :  { %14140 = vst [vmem:[#allocation125_spill] sm:$0xff] %v8158_v31  ;;  %14141 = vst [vmem:[#allocation126_spill] sm:$0xff] %v8160_v58  ;;  %v8162_v2 = vpop.permute.xlu1 %1235  ;;  %v14181_v58 = vld [vmem:[#allocation39_spill] sm:$0xff] }
 0x1d0   :  { %14142 = vst [vmem:[#allocation127_spill] sm:$0xff] %v8162_v2  ;;  %1362 = vrot.lane.b32.xlu0 %v7603_v57, %s7167_s30  ;;  %v14180_v2 = vld [vmem:[#allocation37_spill] sm:$0xff] }
 0x1d1   :  { %1364 = vrot.lane.b32.xlu1 %v7612_v61, %s7167_s30 }
 0x1d2   :  { %v8168_v7 = vpop.permute.xlu0 %1241 }
 0x1d3   :  { %14143 = vst [vmem:[#allocation128_spill] sm:$0xff] %v8168_v7  ;;  %v8170_v13 = vpop.permute.xlu1 %1243  ;;  %v14175_v7 = vld [vmem:[#allocation73_spill] sm:$0xff] }
 0x1d4   :  { %14144 = vst [vmem:[#allocation129_spill] sm:$0xff] %v8170_v13  ;;  %1475 = vrot.lane.b32.xlu0 %v7644_v10, %s7168_s8 }
 0x1d5   :  { %1477 = vrot.lane.b32.xlu1 %v7656_v17, %s7168_s8 }
 0x1d6   :  { %v8176_v12 = vpop.permute.xlu0 %1350 }
 0x1d7   :  { %14145 = vst [vmem:[#allocation130_spill] sm:$0xff] %v8176_v12  ;;  %v8178_v25 = vpop.permute.xlu1 %1352  ;;  %v14186_v12 = vld [vmem:[#allocation43_spill] sm:$0xff] }
 0x1d8   :  { %14146 = vst [vmem:[#allocation131_spill] sm:$0xff] %v8178_v25  ;;  %1483 = vrot.lane.b32.xlu0 %v7650_v14, %s7168_s8  ;;  %v14185_v25 = vld [vmem:[#allocation49_spill] sm:$0xff] }
 0x1d9   :  { %1485 = vrot.lane.b32.xlu1 %v7660_v20, %s7168_s8 }
 0x1da   :  { %v8184_v57 = vpop.permute.xlu0 %1358 }
 0x1db   :  { %14147 = vst [vmem:[#allocation132_spill] sm:$0xff] %v8184_v57  ;;  %v8186_v61 = vpop.permute.xlu1 %1360 }
 0x1dc   :  { %14148 = vst [vmem:[#allocation133_spill] sm:$0xff] %v8186_v61  ;;  %1648 = vrot.lane.b32.xlu0 %v7728_v30, %s7169_s9  ;;  %v14176_v61 = vld [vmem:[#allocation66_spill] sm:$0xff] }
 0x1dd   :  { %1650 = vrot.lane.b32.xlu1 %v7740_v19, %s7169_s9 }
 0x1de   :  { %v8192_v10 = vpop.permute.xlu0 %1624 }
 0x1df   :  { %14149 = vst [vmem:[#allocation134_spill] sm:$0xff] %v8192_v10  ;;  %v8194_v17 = vpop.permute.xlu1 %1626 }
 0x1e0   :  { %14150 = vst [vmem:[#allocation135_spill] sm:$0xff] %v8194_v17  ;;  %1769 = vrot.lane.b32.xlu0 %v7792_v35, %s7163_s26 }
 0x1e1   :  { %1771 = vrot.lane.b32.xlu1 %v7804_v43, %s7163_s26 }
 0x1e2   :  { %v8200_v14 = vpop.permute.xlu0 %1354 }
 0x1e3   :  { %14151 = vst [vmem:[#allocation136_spill] sm:$0xff] %v8200_v14  ;;  %v8202_v20 = vpop.permute.xlu1 %1356 }
 0x1e4   :  { %14152 = vst [vmem:[#allocation137_spill] sm:$0xff] %v8202_v20  ;;  %1652 = vrot.lane.b32.xlu0 %v7760_v40, %s7169_s9  ;;  %v14179_v20 = vld [vmem:[#allocation30_spill] sm:$0xff] }
 0x1e5   :  { %1654 = vrot.lane.b32.xlu1 %v7772_v26, %s7169_s9 }
 0x1e6   :  { %v8208_v19 = vpop.permute.xlu0 %1632 }
 0x1e7   :  { %v8210_v30 = vpop.permute.xlu1 %1634 }
 0x1e8   :  { %1890 = vrot.lane.b32.xlu0 %v7856_v38, %s7164_s27 }
 0x1e9   :  { %1892 = vrot.lane.b32.xlu1 %v7868_v60, %s7164_s27 }
 0x1ea   :  { %v8216_v35 = vpop.permute.xlu0 %1628 }
 0x1eb   :  { %14153 = vst [vmem:[#allocation138_spill] sm:$0xff] %v8216_v35  ;;  %v8218_v43 = vpop.permute.xlu1 %1630 }
 0x1ec   :  { %14154 = vst [vmem:[#allocation139_spill] sm:$0xff] %v8218_v43  ;;  %1773 = vrot.lane.b32.xlu0 %v7824_v52, %s7163_s26 }
 0x1ed   :  { %1775 = vrot.lane.b32.xlu1 %v7836_v36, %s7163_s26 }
 0x1ee   :  { %v8224_v40 = vpop.permute.xlu0 %1471 }
 0x1ef   :  { %14155 = vst [vmem:[#allocation140_spill] sm:$0xff] %v8224_v40  ;;  %v8226_v26 = vpop.permute.xlu1 %1473 }
 0x1f0   :  { %14156 = vst [vmem:[#allocation141_spill] sm:$0xff] %v8226_v26  ;;  %2011 = vrot.lane.b32.xlu0 %v7920_v46, %s7166_s29  ;;  %v14183_v26 = vld [vmem:[#allocation42_spill] sm:$0xff] }
 0x1f1   :  { %2013 = vrot.lane.b32.xlu1 %v7932_v6, %s7166_s29 }
 0x1f2   :  { %v8232_v38 = vpop.permute.xlu0 %1636 }
 0x1f3   :  { %v8234_v60 = vpop.permute.xlu1 %1638 }
 0x1f4   :  { %1894 = vrot.lane.b32.xlu0 %v7888_v27, %s7164_s27 }
 0x1f5   :  { %1896 = vrot.lane.b32.xlu1 %v7900_v62, %s7164_s27 }
 0x1f6   :  { %v8240_v52 = vpop.permute.xlu0 %1479 }
 0x1f7   :  { %14157 = vst [vmem:[#allocation142_spill] sm:$0xff] %v8240_v52  ;;  %v8242_v36 = vpop.permute.xlu1 %1481 }
 0x1f8   :  { %14158 = vst [vmem:[#allocation143_spill] sm:$0xff] %v8242_v36  ;;  %2015 = vrot.lane.b32.xlu0 %v7952_v37, %s7166_s29  ;;  %v1162_v36 = vlaneseq }
 0x1f9   :  { %2017 = vrot.lane.b32.xlu1 %v7964_v8, %s7166_s29 }
 0x1fa   :  { %v8248_v46 = vpop.permute.xlu0 %1745  ;;  %v8308_v13 = vand.u32 127, %v1162_v36 }
 0x1fb   :  { %14159 = vst [vmem:[#allocation144_spill] sm:$0xff] %v8248_v46  ;;  %v8250_v6 = vpop.permute.xlu1 %1747 }
 0x1fc   :  { %14160 = vst [vmem:[#allocation145_spill] sm:$0xff] %v8250_v6  ;;  %1656 = vrot.lane.b32.xlu0 %v7980_v1, %s7169_s9  ;;  %14169 = vst [vmem:[#allocation154_spill] sm:$0xff] %v8308_v13  ;;  %vm1261_vm1 = vcmp.lt.s32.totalorder %v8308_v13, 18  ;;  %vm1164_vm2 = vcmp.lt.s32.totalorder %v8308_v13, 19  ;;  %vm1382_vm3 = vcmp.lt.s32.totalorder %v8308_v13, 17  ;;  %vm1793_vm4 = vcmp.lt.s32.totalorder %v8308_v13, 111 }
 0x1fd   :  { %1658 = vrot.lane.b32.xlu1 %v7988_v5, %s7169_s9  ;;  %v1182_v31 = vsel %vm1164_vm2, %v14181_v58, %v14180_v2  ;;  %v1183_v40 = vsel %vm1164_vm2, %v14183_v26, %v14182_v63  ;;  %vm1503_vm5 = vcmp.lt.s32.totalorder %v8308_v13, 1  ;;  %v1399_v2 = vsel %vm1382_vm3, %v7962_v16, %v7990_v15  ;;  %v14189_v63 = vld [vmem:[#allocation81_spill] sm:$0xff] }
 0x1fe   :  { %v8256_v27 = vpop.permute.xlu0 %1753  ;;  %v28_v15 = vld [vmem:[%s13593_s1] sm:$0x3f]  ;;  %vm1914_vm6 = vcmp.lt.s32.totalorder %v8308_v13, 110  ;;  %vm2035_vm8 = vcmp.lt.s32.totalorder %v8308_v13, 109  ;;  %vm1672_vm9 = vcmp.lt.s32.totalorder %v8308_v13, 127 }
 0x1ff   :  { %v8258_v62 = vpop.permute.xlu1 %1755  ;;  %vm29_vm7 = vcmp.ne.f32.partialorder %v28_v15, 0.0 }
 0x200   :  { %1660 = vrot.lane.b32.xlu0 %v8004_v21, %s7169_s9 }
 0x201   :  { %1662 = vrot.lane.b32.xlu1 %v8012_v9, %s7169_s9 }
 0x202   :  { %v8264_v37 = vpop.permute.xlu0 %1154 }
 0x203   :  { %14161 = vst [vmem:[#allocation146_spill] sm:$0xff] %v8264_v37  ;;  %v8266_v8 = vpop.permute.xlu1 %1156 }
 0x204   :  { %14162 = vst [vmem:[#allocation147_spill] sm:$0xff] %v8266_v8  ;;  %1777 = vrot.lane.b32.xlu0 %v8028_v51, %s7163_s26 }
 0x205   :  { %1779 = vrot.lane.b32.xlu1 %v8036_v11, %s7163_s26 }
 0x206   :  { %v8272_v1 = vpop.permute.xlu0 %1158 }
 0x207   :  { %14163 = vst [vmem:[#allocation148_spill] sm:$0xff] %v8272_v1  ;;  %v8274_v5 = vpop.permute.xlu1 %1160 }
 0x208   :  { %14164 = vst [vmem:[#allocation149_spill] sm:$0xff] %v8274_v5  ;;  %1781 = vrot.lane.b32.xlu0 %v8052_v22, %s7163_s26 }
 0x209   :  { %1783 = vrot.lane.b32.xlu1 %v8060_v3, %s7163_s26 }
 0x20a   :  { %v8280_v9 = vpop.permute.xlu0 %1640 }
 0x20b   :  { %v8282_v21 = vpop.permute.xlu1 %1642 }
 0x20c   :  { %1898 = vrot.lane.b32.xlu0 %v8076_v50, %s7164_s27 }
 0x20d   :  { %1900 = vrot.lane.b32.xlu1 %v8084_v33, %s7164_s27 }
 0x20e   :  { %v8288_v11 = vpop.permute.xlu0 %1253 }
 0x20f   :  { %14165 = vst [vmem:[#allocation150_spill] sm:$0xff] %v8288_v11  ;;  %v8290_v51 = vpop.permute.xlu1 %1255 }
 0x210   :  { %14166 = vst [vmem:[#allocation151_spill] sm:$0xff] %v8290_v51  ;;  %1902 = vrot.lane.b32.xlu0 %v8100_v48, %s7164_s27 }
 0x211   :  { %1904 = vrot.lane.b32.xlu1 %v8108_v39, %s7164_s27 }
 0x212   :  { %v8296_v3 = vpop.permute.xlu0 %1644 }
 0x213   :  { %v8298_v22 = vpop.permute.xlu1 %1646 }
 0x214   :  { %2019 = vrot.lane.b32.xlu0 %v8124_v53, %s7166_s29 }
 0x215   :  { %2021 = vrot.lane.b32.xlu1 %v8132_v47, %s7166_s29  ;;  %v14172_v47 = vld [vmem:[#allocation54_spill] sm:$0xff] }
 0x216   :  { %v8304_v33 = vpop.permute.xlu0 %1257  ;;  %v1278_v53 = vsel %vm1261_vm1, %v14172_v47, %v7866_v59  ;;  %v14188_v59 = vld [vmem:[#allocation67_spill] sm:$0xff] }
 0x217   :  { %14167 = vst [vmem:[#allocation152_spill] sm:$0xff] %v8304_v33  ;;  %v8306_v50 = vpop.permute.xlu1 %1259 }
 0x218   :  { %14168 = vst [vmem:[#allocation153_spill] sm:$0xff] %v8306_v50  ;;  %2023 = vrot.lane.b32.xlu0 %v8148_v45, %s7166_s29  ;;  %v14174_v45 = vld [vmem:[#allocation55_spill] sm:$0xff] }
 0x219   :  { %2025 = vrot.lane.b32.xlu1 %v8156_v56, %s7166_s29  ;;  %v14173_v56 = vld [vmem:[#allocation61_spill] sm:$0xff]  ;;  %v14190_v50 = vld [vmem:[#allocation35_spill] sm:$0xff] }
 0x21a   :  { %v8314_v39 = vpop.permute.xlu0 %1761  ;;  %v1279_v52 = vsel %vm1261_vm1, %v14174_v45, %v14173_v56  ;;  %v1184_v56 = vsel %vm1164_vm2, %v14186_v12, %v14185_v25 }
 0x21b   :  { %14170 = vst [vmem:[#allocation155_spill] sm:$0xff] %v8314_v39  ;;  %v8317_v48 = vpop.permute.xlu1 %1763  ;;  %v1400_v39 = vsel %vm1382_vm3, %v14189_v63, %v7994_v28  ;;  %v1293_v25 = vadd.f32 %v1279_v52, %v1182_v31  ;;  %v1520_v31 = vsel %vm1503_vm5, %v8062_v4, %v8086_v42 }
 0x21c   :  { %14171 = vst [vmem:[#allocation156_spill] sm:$0xff] %v8317_v48  ;;  %1146 = vrot.lane.b32.xlu0 %v7670_v23, %s7162_s2  ;;  %v1280_v23 = vsel %vm1261_vm1, %v14176_v61, %v14175_v7 }
 0x21d   :  { %1148 = vrot.lane.b32.xlu1 %v7682_v24, %s7162_s2  ;;  %v14178_v24 = vld [vmem:[#allocation32_spill] sm:$0xff]  ;;  %v1299_v61 = vadd.f32 %v1280_v23, %v1183_v40  ;;  %v8396_v40 = vshrl.u32 %v1162_v36, 7  ;;  %v1414_v23 = vadd.f32 %v1400_v39, %v1293_v25  ;;  %v14193_v36 = vld [vmem:[#allocation47_spill] sm:$0xff]  ;;  %v14194_v39 = vld [vmem:[#allocation50_spill] sm:$0xff] }
 0x21e   :  { %v8338_v57 = vpop.permute.xlu0 %1374  ;;  %v1181_v14 = vsel %vm1164_vm2, %v14179_v20, %v14178_v24  ;;  %v14187_v24 = vld [vmem:[#allocation74_spill] sm:$0xff] }
 0x21f   :  { %14177 = vst [vmem:[#allocation54_spill] sm:$0xff] %v8338_v57  ;;  %v8353_v7 = vpop.permute.xlu1 %1376  ;;  %v1281_v48 = vsel %vm1261_vm1, %v14188_v59, %v14187_v24  ;;  %v1287_v33 = vadd.f32 %v1278_v53, %v1181_v14  ;;  %v1401_v24 = vsel %vm1382_vm3, %v8014_v29, %v8038_v44  ;;  %v14191_v59 = vld [vmem:[#allocation38_spill] sm:$0xff]  ;;  %v1521_v14 = vsel %vm1503_vm5, %v8066_v41, %v8090_v49 }
 0x220   :  { %14184 = vst [vmem:[#allocation55_spill] sm:$0xff] %v8353_v7  ;;  %1245 = vrot.lane.b32.xlu0 %v14190_v50, %s7165_s28  ;;  %v1402_v50 = vsel %vm1382_vm3, %v8018_v32, %v8042_v34  ;;  %14192 = vst [vmem:[#allocation30_spill] sm:$0xff] %v8396_v40  ;;  %v1305_v52 = vadd.f32 %v1281_v48, %v1184_v56  ;;  %v1522_v34 = vsel %vm1503_vm5, %v8110_v54, %v8134_v18  ;;  %v14195_v48 = vld [vmem:[#allocation36_spill] sm:$0xff]  ;;  %v14196_v56 = vld [vmem:[#allocation33_spill] sm:$0xff] }
 0x221   :  { %1247 = vrot.lane.b32.xlu1 %v14191_v59, %s7165_s28  ;;  %v1408_v53 = vadd.f32 %v1399_v2, %v1287_v33  ;;  %v1420_v42 = vadd.f32 %v1401_v24, %v1299_v61  ;;  %v1523_v49 = vsel %vm1503_vm5, %v8114_v55, %v8138_v0  ;;  %v1535_v33 = vadd.f32 %v1521_v14, %v1414_v23  ;;  %v14199_v18 = vld [vmem:[#allocation40_spill] sm:$0xff]  ;;  %v14216_v55 = vld [vmem:[#allocation78_spill] sm:$0xff] }
 0x222   :  { %v8394_v59 = vpop.permute.xlu0 %1765  ;;  %v1426_v25 = vadd.f32 %v1402_v50, %v1305_v52  ;;  %v8418_v61 = vsel %vm1793_vm4, %v14196_v56, %v14195_v48  ;;  %v2111_v15 = vsub.s32 0, %v8396_v40  ;;  %v14200_v50 = vld [vmem:[#allocation34_spill] sm:$0xff]  ;;  %v14207_v56 = vld [vmem:[#allocation52_spill] sm:$0xff] }
 0x223   :  { %v8402_v44 = vpop.permute.xlu1 %1767  ;;  %v1529_v2 = vadd.f32 %v1520_v31, %v1408_v53  ;;  %14197 = vst [vmem:[#allocation39_spill] sm:$0xff] %v8418_v61  ;;  %v1541_v24 = vadd.f32 %v1522_v34, %v1420_v42  ;;  %v8428_v31 = vsel %vm1793_vm4, %v14200_v50, %v14199_v18  ;;  %v14203_v53 = vmov 0   ;;  %v14204_v34 = vld [vmem:[#allocation51_spill] sm:$0xff]  ;;  %v14205_v42 = vld [vmem:[#allocation45_spill] sm:$0xff] }
 0x224   :  { %1366 = vrot.lane.b32.xlu0 %v14193_v36, %s7167_s30  ;;  %v2115_v36 = vsub.s32 1, %v8396_v40  ;;  %14201 = vst [vmem:[#allocation43_spill] sm:$0xff] %v8428_v31  ;;  %v1547_v14 = vadd.f32 %v1523_v49, %v1426_v25  ;;  %v8434_v23 = vsel %vm29_vm7, 1, %v14203_v53  ;;  %v14208_v40 = vld [vmem:[#allocation46_spill] sm:$0xff]  ;;  %v14210_v49 = vld [vmem:[#allocation63_spill] sm:$0xff]  ;;  %v14211_v25 = vld [vmem:[#allocation57_spill] sm:$0xff] }
 0x225   :  { %1368 = vrot.lane.b32.xlu1 %v14194_v39, %s7167_s30  ;;  %v8440_v39 = vsel %vm1914_vm6, %v14205_v42, %v14204_v34  ;;  %v8446_v50 = vsel %vm1914_vm6, %v14208_v40, %v14207_v56  ;;  %v8452_v28 = vsel %vm1914_vm6, %v14211_v25, %v14210_v49  ;;  %v14213_v53 = vld [vmem:[#allocation77_spill] sm:$0xff]  ;;  %v14215_v42 = vld [vmem:[#allocation26_spill] sm:$0xff]  ;;  %v14219_v56 = vld [vmem:[#allocation16_spill] sm:$0xff] }
 0x226   :  { %v8420_v0 = vpop.permute.xlu0 %1378  ;;  %14206 = vst [vmem:[#allocation35_spill] sm:$0xff] %v8440_v39  ;;  %14209 = vst [vmem:[#allocation38_spill] sm:$0xff] %v8446_v50  ;;  %v14214_v31 = vld [vmem:[#allocation69_spill] sm:$0xff]  ;;  %v14217_v39 = vld [vmem:[#allocation70_spill] sm:$0xff]  ;;  %v1583_v25 = vadd.f32 %v1535_v33, %v14219_v56  ;;  %v8487_v33 = vrot.slane %v8434_v23, %v2111_v15  ;;  %v1690_v15 = vsel %vm1672_vm9, %v8194_v17, %v8210_v30 }
 0x227   :  { %14198 = vst [vmem:[#allocation42_spill] sm:$0xff] %v8420_v0  ;;  %v8431_v52 = vpop.permute.xlu1 %1380  ;;  %14212 = vst [vmem:[#allocation47_spill] sm:$0xff] %v8452_v28  ;;  %v8458_v61 = vsel %vm2035_vm8, %v14214_v31, %v14213_v53  ;;  %v8466_v40 = vsel %vm2035_vm8, %v14217_v39, %v14216_v55  ;;  %v14218_v50 = vld [vmem:[#allocation14_spill] sm:$0xff]  ;;  %v1282_v28 = vsel %vm1261_vm1, %v8288_v11, %v14172_v47  ;;  %v14220_v31 = vld [vmem:[#allocation29_spill] sm:$0xff] }
 0x228   :  { %14202 = vst [vmem:[#allocation81_spill] sm:$0xff] %v8431_v52  ;;  %1150 = vrot.lane.b32.xlu0 %v14215_v42, %s7162_s2  ;;  %v1577_v54 = vadd.f32 %v1529_v2, %v14218_v50  ;;  %v1283_v42 = vsel %vm1261_vm1, %v8290_v51, %v14174_v45  ;;  %v14221_v53 = vld [vmem:[#allocation18_spill] sm:$0xff]  ;;  %v8484_v2 = vrot.slane %v8434_v23, %v2115_v36  ;;  %v14222_v56 = vld [vmem:[#allocation20_spill] sm:$0xff]  ;;  %v14230_v17 = vld [vmem:[#allocation67_spill] sm:$0xff]  ;;  %vm2133_vm11 = vcmp.eq.s32.totalorder %v8487_v33, 1 }
 0x229   :  { %1152 = vrot.lane.b32.xlu1 %v14220_v31, %s7162_s2  ;;  %v1589_v39 = vadd.f32 %v1541_v24, %v14221_v53  ;;  %v1689_v47 = vsel %vm1672_vm9, %v8192_v10, %v8208_v19  ;;  %v1185_v45 = vsel %vm1164_vm2, %v8264_v37, %v14179_v20  ;;  %v1595_v24 = vadd.f32 %v1547_v14, %v14222_v56  ;;  %v14231_v10 = vld [vmem:[#allocation153_spill] sm:$0xff]  ;;  %vm8721_vm13 = vmpackc.low %vm2133_vm11, %vm2133_vm11  ;;  %v14314_v51 = vld [vmem:[#allocation48_spill] sm:$0xff] }
 0x22a   :  { %v8481_v55 = vpop.permute.xlu0 %1882  ;;  %v1403_v36 = vsel %vm1382_vm3, %v8338_v57, %v7962_v16  ;;  %v1186_v31 = vsel %vm1164_vm2, %v8266_v8, %v14181_v58  ;;  %v1286_v20 = vadd.f32 %v1282_v28, %v1185_v45  ;;  %v1404_v14 = vsel %vm1382_vm3, %v8353_v7, %v14189_v63  ;;  %v14223_v16 = vld [vmem:[#allocation41_spill] sm:$0xff]  ;;  %v14224_v45 = vld [vmem:[#allocation44_spill] sm:$0xff]  ;;  %v14310_v8 = vld [vmem:[#allocation126_spill] sm:$0xff] }
 0x22b   :  { %v8502_v50 = vpop.permute.xlu1 %1884  ;;  %v8522_v53 = vsel %vm1672_vm9, %v8216_v35, %v8232_v38  ;;  %v8528_v58 = vsel %vm1672_vm9, %v8218_v43, %v8234_v60  ;;  %v1810_v28 = vsel %vm1793_vm4, %v8248_v46, %v8256_v27  ;;  %v1292_v63 = vadd.f32 %v1283_v42, %v1186_v31  ;;  %v14229_v46 = vld [vmem:[#allocation152_spill] sm:$0xff]  ;;  %v14315_v11 = vld [vmem:[#allocation105_spill] sm:$0xff] }
 0x22c   :  { %1249 = vrot.lane.b32.xlu0 %v14223_v16, %s7165_s28  ;;  %v1811_v56 = vsel %vm1793_vm4, %v8250_v6, %v8258_v62  ;;  %v1187_v16 = vsel %vm1164_vm2, %v8272_v1, %v14183_v26  ;;  %v1685_v43 = vsel %vm1672_vm9, %v8208_v19, %v8280_v9  ;;  %v1407_v35 = vadd.f32 %v1403_v36, %v1286_v20  ;;  %v14306_v57 = vld [vmem:[#allocation124_spill] sm:$0xff] }
 0x22d   :  { %1251 = vrot.lane.b32.xlu1 %v14224_v45, %s7165_s28  ;;  %v1188_v31 = vsel %vm1164_vm2, %v8274_v5, %v14186_v12  ;;  %v1686_v45 = vsel %vm1672_vm9, %v8210_v30, %v8282_v21  ;;  %v1413_v6 = vadd.f32 %v1404_v14, %v1292_v63  ;;  %v1687_v36 = vsel %vm1672_vm9, %v8232_v38, %v8296_v3  ;;  %v14228_v63 = vld [vmem:[#allocation66_spill] sm:$0xff] }
 0x22e   :  { %v8548_v42 = vpop.permute.xlu0 %1495  ;;  %v1688_v12 = vsel %vm1672_vm9, %v8234_v60, %v8298_v22  ;;  %v1698_v14 = vadd.f32 %v1685_v43, %v1577_v54  ;;  %v1284_v38 = vsel %vm1261_vm1, %v14229_v46, %v14228_v63  ;;  %v1285_v60 = vsel %vm1261_vm1, %v14231_v10, %v14230_v17  ;;  %v14234_v43 = vld [vmem:[#allocation156_spill] sm:$0xff]  ;;  %v14235_v63 = vld [vmem:[#allocation13_spill] sm:$0xff] }
 0x22f   :  { %14225 = vst [vmem:[#allocation50_spill] sm:$0xff] %v8548_v42  ;;  %v1524_v26 = vsel %vm1503_vm5, %v8548_v42, %v8062_v4  ;;  %v8562_v19 = vpop.permute.xlu1 %1497  ;;  %v14227_v4 = vld [vmem:[#allocation59_spill] sm:$0xff]  ;;  %v1704_v42 = vadd.f32 %v1686_v45, %v1583_v25  ;;  %v1710_v17 = vadd.f32 %v1687_v36, %v1589_v39  ;;  %v1405_v25 = vsel %vm1382_vm3, %v8420_v0, %v8014_v29  ;;  %v14237_v39 = vld [vmem:[#allocation53_spill] sm:$0xff] }
 0x230   :  { %14226 = vst [vmem:[#allocation36_spill] sm:$0xff] %v8562_v19  ;;  %v1528_v20 = vadd.f32 %v1524_v26, %v1407_v35  ;;  %v1525_v30 = vsel %vm1503_vm5, %v8562_v19, %v8066_v41  ;;  %1487 = vrot.lane.b32.xlu0 %v14227_v4, %s7168_s8  ;;  %v14232_v26 = vld [vmem:[#allocation62_spill] sm:$0xff]  ;;  %v14233_v41 = vld [vmem:[#allocation155_spill] sm:$0xff]  ;;  %v1807_v4 = vsel %vm1793_vm4, %v8258_v62, %v14234_v43  ;;  %vm2134_vm10 = vcmp.eq.s32.totalorder %v8484_v2, 1 }
 0x231   :  { %v1534_v35 = vadd.f32 %v1525_v30, %v1413_v6  ;;  %1489 = vrot.lane.b32.xlu1 %v14232_v26, %s7168_s8  ;;  %v1806_v54 = vsel %vm1793_vm4, %v8256_v27, %v14233_v41  ;;  %v1716_v6 = vadd.f32 %v1688_v12, %v1595_v24  ;;  %v14236_v45 = vld [vmem:[#allocation15_spill] sm:$0xff]  ;;  %v1298_v27 = vadd.f32 %v1284_v38, %v1187_v16  ;;  %v14238_v16 = vld [vmem:[#allocation56_spill] sm:$0xff]  ;;  %vm8706_vm12 = vmpackc.low %vm2134_vm10, %vm2134_vm10 }
 0x232   :  { %v1576_v19 = vadd.f32 %v1528_v20, %v14235_v63  ;;  %v8597_v5 = vpop.permute.xlu0 %1886  ;;  %v1304_v1 = vadd.f32 %v1285_v60, %v1188_v31  ;;  %v1406_v62 = vsel %vm1382_vm3, %v8431_v52, %v8018_v32  ;;  %v1819_v24 = vadd.f32 %v1806_v54, %v1698_v14  ;;  %v14241_v60 = vld [vmem:[#allocation113_spill] sm:$0xff]  ;;  %v14244_v63 = vld [vmem:[#allocation115_spill] sm:$0xff]  ;;  %v14301_v52 = vld [vmem:[#allocation140_spill] sm:$0xff] }
 0x233   :  { %v1582_v30 = vadd.f32 %v1534_v35, %v14236_v45  ;;  %v8604_v26 = vpop.permute.xlu1 %1888  ;;  %v1825_v36 = vadd.f32 %v1807_v4, %v1704_v42  ;;  %v1808_v29 = vsel %vm1793_vm4, %v14195_v48, %v8394_v59  ;;  %v1809_v32 = vsel %vm1793_vm4, %v14199_v18, %v8402_v44  ;;  %v14243_v4 = vld [vmem:[#allocation35_spill] sm:$0xff] }
 0x234   :  { %v1697_v20 = vadd.f32 %v1689_v47, %v1576_v19  ;;  %1370 = vrot.lane.b32.xlu0 %v14237_v39, %s7167_s30  ;;  %v1419_v47 = vadd.f32 %v1405_v25, %v1298_v27  ;;  %v1927_v42 = vsel %vm1914_vm6, %v14204_v34, %v8481_v55  ;;  %v1425_v48 = vadd.f32 %v1406_v62, %v1304_v1  ;;  %v14245_v25 = vld [vmem:[#allocation65_spill] sm:$0xff]  ;;  %v14302_v0 = vld [vmem:[#allocation107_spill] sm:$0xff] }
 0x235   :  { %v1703_v12 = vadd.f32 %v1690_v15, %v1582_v30  ;;  %1372 = vrot.lane.b32.xlu1 %v14238_v16, %s7167_s30  ;;  %v14240_v15 = vld [vmem:[#allocation52_spill] sm:$0xff]  ;;  %v1831_v54 = vadd.f32 %v1808_v29, %v1710_v17  ;;  %v1940_v45 = vadd.f32 %v1927_v42, %v1819_v24  ;;  %v14246_v30 = vld [vmem:[#allocation38_spill] sm:$0xff]  ;;  %v1929_v39 = vsel %vm1914_vm6, %v14210_v49, %v8597_v5  ;;  %v14248_v29 = vld [vmem:[#allocation17_spill] sm:$0xff] }
 0x236   :  { %v1818_v31 = vadd.f32 %v1810_v28, %v1697_v20  ;;  %v8627_v19 = vpop.permute.xlu0 %1499  ;;  %v1928_v14 = vsel %vm1914_vm6, %v14240_v15, %v8502_v50  ;;  %v14247_v20 = vld [vmem:[#allocation68_spill] sm:$0xff]  ;;  %v14269_v2 = vmov 0  ;;  %v1516_v10 = vsel %vm1503_vm5, %v14302_v0, %v14301_v52  ;;  %v8844_v0 = vld [vmem:[%s13595_s3 + $0x10] sm:$0xff]  }
 0x237   :  { %14239 = vst [vmem:[#allocation40_spill] sm:$0xff] %v8627_v19  ;;  %v1824_v38 = vadd.f32 %v1811_v56, %v1703_v12  ;;  %v1526_v18 = vsel %vm1503_vm5, %v8627_v19, %v14241_v60  ;;  %v8637_v35 = vpop.permute.xlu1 %1501  ;;  %v1837_v56 = vadd.f32 %v1809_v32, %v1716_v6  ;;  %v1946_v17 = vadd.f32 %v1928_v14, %v1825_v36  ;;  %v14249_v6 = vld [vmem:[#allocation64_spill] sm:$0xff]  ;;  %v14250_v32 = vld [vmem:[#allocation19_spill] sm:$0xff]  ;;  %v14251_v36 = vld [vmem:[#allocation77_spill] sm:$0xff] }
 0x238   :  { %14242 = vst [vmem:[#allocation51_spill] sm:$0xff] %v8637_v35  ;;  %v1939_v34 = vadd.f32 %v14243_v4, %v1818_v31  ;;  %v1540_v28 = vadd.f32 %v1526_v18, %v1419_v47  ;;  %v1527_v1 = vsel %vm1503_vm5, %v8637_v35, %v14244_v63  ;;  %1491 = vrot.lane.b32.xlu0 %v14245_v25, %s7168_s8  ;;  %v14253_v60 = vld [vmem:[#allocation86_spill] sm:$0xff]  ;;  %v14270_v2 = vsel %vm8721_vm13, 4294967295, %v14269_v2  ;;  %v14299_v35 = vld [vmem:[#allocation89_spill] sm:$0xff] }
 0x239   :  { %v1945_v27 = vadd.f32 %v14246_v30, %v1824_v38  ;;  %v1546_v62 = vadd.f32 %v1527_v1, %v1425_v48  ;;  %1493 = vrot.lane.b32.xlu1 %v14247_v20, %s7168_s8  ;;  %v1930_v24 = vsel %vm1914_vm6, %v14249_v6, %v8604_v26  ;;  %v14255_v1 = vld [vmem:[#allocation39_spill] sm:$0xff]  ;;  %14271 = vst [vmem:[#allocation16_spill] sm:$0xff] %v14270_v2  ;;  %14307 = vst [vmem:[#allocation44_spill] sm:$0xff] %v8844_v0  ;;  %v14319_v2 = vld [vmem:[#allocation137_spill] sm:$0xff] }
 0x23a   :  { %v1588_v12 = vadd.f32 %v1540_v28, %v14248_v29  ;;  %v8654_v16 = vpop.permute.xlu0 %2003  ;;  %v2060_v47 = vadd.f32 %v8458_v61, %v1939_v34  ;;  %v14252_v61 = vld [vmem:[#allocation78_spill] sm:$0xff]  ;;  %v14254_v28 = vld [vmem:[#allocation88_spill] sm:$0xff] }
 0x23b   :  { %v1594_v42 = vadd.f32 %v1546_v62, %v14250_v32  ;;  %v2048_v31 = vsel %vm2035_vm8, %v14251_v36, %v8654_v16  ;;  %v8666_v48 = vpop.permute.xlu1 %2005  ;;  %v2066_v49 = vadd.f32 %v8466_v40, %v1945_v27  ;;  %v1952_v40 = vadd.f32 %v1929_v39, %v1831_v54  ;;  %v14256_v27 = vld [vmem:[#allocation43_spill] sm:$0xff]  ;;  %v14257_v29 = vld [vmem:[#allocation90_spill] sm:$0xff]  ;;  %v14262_v36 = vld [vmem:[#allocation96_spill] sm:$0xff] }
 0x23c   :  { %v1709_v15 = vadd.f32 %v8522_v53, %v1588_v12  ;;  %v2061_v14 = vadd.f32 %v2048_v31, %v1940_v45  ;;  %v2049_v38 = vsel %vm2035_vm8, %v14252_v61, %v8666_v48  ;;  %1664 = vrot.lane.b32.xlu0 %v14253_v60, %s7169_s9  ;;  %v2084_v18 = vmax.f32 %v2060_v47, 0.0  ;;  %v14259_v54 = vld [vmem:[#allocation58_spill] sm:$0xff]  ;;  %v14260_v39 = vld [vmem:[#allocation47_spill] sm:$0xff]  ;;  %v14272_v60 = vld [vmem:[#allocation85_spill] sm:$0xff] }
 0x23d   :  { %v1715_v4 = vadd.f32 %v8528_v58, %v1594_v42  ;;  %v2067_v34 = vadd.f32 %v2049_v38, %v1946_v17  ;;  %1666 = vrot.lane.b32.xlu1 %v14254_v28, %s7169_s9  ;;  %v2090_v63 = vmax.f32 %v2066_v49, 0.0  ;;  %v1958_v53 = vadd.f32 %v1930_v24, %v1837_v56  ;;  %v14261_v32 = vld [vmem:[#allocation91_spill] sm:$0xff]  ;;  %v14268_v38 = vld [vmem:[#allocation98_spill] sm:$0xff] }
 0x23e   :  { %v1830_v25 = vadd.f32 %v14255_v1, %v1709_v15  ;;  %v2085_v45 = vmax.f32 %v2061_v14, 0.0  ;;  %v8681_v30 = vpop.permute.xlu0 %2007  ;;  %v1934_v56 = vsel %vm1914_vm6, %v14259_v54, %v14249_v6  ;;  %v14263_v31 = vmov 0  ;;  %v14266_v6 = vld [vmem:[#allocation84_spill] sm:$0xff]  ;;  %v14298_v54 = vld [vmem:[#allocation131_spill] sm:$0xff] }
 0x23f   :  { %v1836_v62 = vadd.f32 %v14256_v27, %v1715_v4  ;;  %v2091_v20 = vmax.f32 %v2067_v34, 0.0  ;;  %v2050_v58 = vsel %vm2035_vm8, %v14257_v29, %v8681_v30  ;;  %v8688_v17 = vpop.permute.xlu1 %2009  ;;  %v8690_v12 = vpack.c.bf16 %v2090_v63, %v2084_v18 }
 0x240   :  { %v1951_v47 = vadd.f32 %v14260_v39, %v1830_v25  ;;  %v2073_v24 = vadd.f32 %v2050_v58, %v1952_v40  ;;  %v2051_v42 = vsel %vm2035_vm8, %v14261_v32, %v8688_v17  ;;  %1785 = vrot.lane.b32.xlu0 %v14262_v36, %s7163_s26  ;;  %v14264_v31 = vsel %vm8706_vm12, 4294967295, %v14263_v31  ;;  %v14277_v58 = vld [vmem:[#allocation106_spill] sm:$0xff]  ;;  %v14279_v39 = vld [vmem:[#allocation108_spill] sm:$0xff]  ;;  %v14282_v36 = vld [vmem:[#allocation103_spill] sm:$0xff] }
 0x241   :  { %14258 = vst [vmem:[#allocation63_spill] sm:$0xff] %v8690_v12  ;;  %14265 = vst [vmem:[#allocation26_spill] sm:$0xff] %v14264_v31  ;;  %v2054_v49 = vsel %vm2035_vm8, %v14266_v6, %v14257_v29  ;;  %v1957_v15 = vadd.f32 %v1934_v56, %v1836_v62  ;;  %v8714_v14 = vpack.c.bf16 %v2091_v20, %v2085_v45  ;;  %1787 = vrot.lane.b32.xlu1 %v14268_v38, %s7163_s26  ;;  %v14275_v45 = vld [vmem:[#allocation93_spill] sm:$0xff] }
 0x242   :  { %v2079_v61 = vadd.f32 %v2051_v42, %v1958_v53  ;;  %v2055_v18 = vsel %vm2035_vm8, %v14272_v60, %v14261_v32  ;;  %v2097_v4 = vmax.f32 %v2073_v24, 0.0  ;;  %v8729_v34 = vpop.permute.xlu0 %1362  ;;  %v2072_v28 = vadd.f32 %v2054_v49, %v1951_v47  ;;  %v14273_v53 = vld [vmem:[#allocation92_spill] sm:$0xff]  ;;  %v8759_v56 = vld [vmem:[%s13595_s3] sm:$0xff]   ;;  %v14280_v24 = vld [vmem:[#allocation11_spill] sm:$0xff] }
 0x243   :  { %14267 = vst [vmem:[#allocation14_spill] sm:$0xff] %v8714_v14  ;;  %v8731_v40 = vpop.permute.xlu1 %1364  ;;  %6854 = vmatprep.subr.msk.bf16.mxu1 %vm8706_vm12, %v8714_v14  ;;  %v2078_v33 = vadd.f32 %v2055_v18, %v1957_v15  ;;  %14278 = vst [vmem:[#allocation20_spill] sm:$0xff] %v8759_v56  ;;  %v14281_v42 = vld [vmem:[#allocation102_spill] sm:$0xff]  ;;  %v14283_v49 = vmov 0   ;;  %v14297_v60 = vld [vmem:[#allocation37_spill] sm:$0xff]  ;;  %v1396_v19 = vsel %vm1382_vm3, %v14299_v35, %v14298_v54 }
 0x244   :  { %v2103_v63 = vmax.f32 %v2079_v61, 0.0  ;;  %1668 = vrot.lane.b32.xlu0 %v14273_v53, %s7169_s9  ;;  %6857 = vmatpush1.bf16.msk.msra.mxu1 %vm8721_vm13, %v8690_v12  ;;  %v2096_v1 = vmax.f32 %v2072_v28, 0.0  ;;  %v14284_v61 = vld [vmem:[#allocation12_spill] sm:$0xff]  ;;  %v14285_v18 = vld [vmem:[#allocation118_spill] sm:$0xff]  ;;  %v14305_v35 = vld [vmem:[#allocation109_spill] sm:$0xff] }
 0x245   :  { %1670 = vrot.lane.b32.xlu1 %v14275_v45, %s7169_s9  ;;  %v2102_v27 = vmax.f32 %v2078_v33, 0.0  ;;  %v14287_v28 = vld [vmem:[#allocation116_spill] sm:$0xff]  ;;  %v14291_v45 = vld [vmem:[#allocation61_spill] sm:$0xff] }
 0x246   :  { %v8741_v25 = vpack.c.bf16 %v2103_v63, %v2097_v4  ;;  %v8745_v62 = vpop.permute.xlu0 %1475  ;;  %v8788_v4 = vld [vmem:[%s13595_s3 + $0x8] sm:$0xff]   ;;  %v14288_v63 = vld [vmem:[#allocation60_spill] sm:$0xff]  ;;  %v14321_v31 = vld [vmem:[#allocation21_spill] sm:$0xff] }
 0x247   :  { %v8747_v20 = vpop.permute.xlu1 %1477  ;;  %v8752_v29 = vpack.c.bf16 %v2102_v27, %v2096_v1  ;;  %14286 = vst [vmem:[#allocation41_spill] sm:$0xff] %v8788_v4  ;;  %v1274_v33 = vsel %vm1261_vm1, %v14288_v63, %v14287_v28  ;;  %v14289_v53 = vld [vmem:[#allocation120_spill] sm:$0xff]  ;;  %v14290_v1 = vld [vmem:[#allocation117_spill] sm:$0xff] }
 0x248   :  { %14274 = vst [vmem:[#allocation29_spill] sm:$0xff] %v8741_v25  ;;  %6860 = vmatprep.subr.msk.bf16.mxu1 %vm8706_vm12, %v8741_v25  ;;  %1906 = vrot.lane.b32.xlu0 %v14277_v58, %s7164_s27  ;;  %v1275_v27 = vsel %vm1261_vm1, %v14291_v45, %v14290_v1 }
 0x249   :  { %14276 = vst [vmem:[#allocation18_spill] sm:$0xff] %v8752_v29  ;;  %1908 = vrot.lane.b32.xlu1 %v14279_v39, %s7164_s27  ;;  %6863 = vmatpush1.bf16.msk.msra.mxu1 %vm8721_vm13, %v8752_v29  ;;  %v14292_v39 = vld [vmem:[#allocation94_spill] sm:$0xff]  ;;  %v14316_v29 = vld [vmem:[#allocation49_spill] sm:$0xff] }
 0x24a   :  { %v8766_v47 = vpop.permute.xlu0 %1483  ;;  %2812 = vmatprep.subr.bf16.mxu1 %v14280_v24 }
 0x24b   :  { %v8769_v32 = vpop.permute.xlu1 %1485 }
 0x24c   :  { %1789 = vrot.lane.b32.xlu0 %v14281_v42, %s7163_s26  ;;  %6723 = vmatmul.mubr.msk.bf16.vlgmr.msra.gmra.mrb[92].mxu1 %vm2331_vm14, %v8759_v56  ;;  %v14293_v42 = vld [vmem:[#allocation32_spill] sm:$0xff] }
 0x24d   :  { %1791 = vrot.lane.b32.xlu1 %v14282_v36, %s7163_s26  ;;  %2428 = vmatprep.mubr.bf16.mxu1 %v14283_v49  ;;  %v1177_v36 = vsel %vm1164_vm2, %v14293_v42, %v14292_v39  ;;  %v14300_v42 = vld [vmem:[#allocation112_spill] sm:$0xff] }
 0x24e   :  { %v8778_v15 = vpop.permute.xlu0 %1648  ;;  %2813 = vmatpush1.bf16.msra.mxu1 %v14284_v61  ;;  %v14295_v61 = vld [vmem:[#allocation87_spill] sm:$0xff]  ;;  %v1288_v45 = vadd.f32 %v1274_v33, %v1177_v36  ;;  %v14304_v36 = vld [vmem:[#allocation141_spill] sm:$0xff] }
 0x24f   :  { %v8781_v38 = vpop.permute.xlu1 %1650 }
 0x250   :  { %2027 = vrot.lane.b32.xlu0 %v14285_v18, %s7166_s29  ;;  %v14294_v18 = vld [vmem:[#allocation130_spill] sm:$0xff] }
 0x251   :  { %2029 = vrot.lane.b32.xlu1 %v14289_v53, %s7166_s29  ;;  %v1395_v63 = vsel %vm1382_vm3, %v14295_v61, %v14294_v18  ;;  %v14296_v53 = vld [vmem:[#allocation95_spill] sm:$0xff] }
 0x252   :  { %v8800_v58 = vpop.permute.xlu0 %1769  ;;  %v1178_v6 = vsel %vm1164_vm2, %v14297_v60, %v14296_v53  ;;  %v14303_v60 = vld [vmem:[#allocation114_spill] sm:$0xff]  ;;  %v1409_v33 = vadd.f32 %v1395_v63, %v1288_v45  ;;  %v14308_v63 = vld [vmem:[#allocation125_spill] sm:$0xff] }
 0x253   :  { %v8810_v24 = vpop.permute.xlu1 %1771  ;;  %v1294_v61 = vadd.f32 %v1275_v27, %v1178_v6  ;;  %v14309_v45 = vld [vmem:[#allocation73_spill] sm:$0xff] }
 0x254   :  { %1910 = vrot.lane.b32.xlu0 %v14300_v42, %s7164_s27  ;;  %6724 = vmatmul.mubr.msk.bf16.gmra.mrb[96].mxu1 %vm2331_vm14, %v8788_v4  ;;  %v1517_v42 = vsel %vm1503_vm5, %v14305_v35, %v14304_v36  ;;  %v1530_v27 = vadd.f32 %v1516_v10, %v1409_v33  ;;  %v14313_v33 = vld [vmem:[#allocation104_spill] sm:$0xff] }
 0x255   :  { %1912 = vrot.lane.b32.xlu1 %v14303_v60, %s7164_s27  ;;  %2438 = vmatprep.mubr.bf16.mxu1 %v14283_v49  ;;  %v1415_v7 = vadd.f32 %v1396_v19, %v1294_v61  ;;  %v1276_v60 = vsel %vm1261_vm1, %v14309_v45, %v14308_v63  ;;  %v14311_v19 = vld [vmem:[#allocation127_spill] sm:$0xff]  ;;  %v14312_v61 = vld [vmem:[#allocation74_spill] sm:$0xff]  ;;  %v1179_v37 = vsel %vm1164_vm2, %v14314_v51, %v14313_v33  ;;  %v14318_v45 = vld [vmem:[#allocation97_spill] sm:$0xff] }
 0x256   :  { %v8835_v46 = vpop.permute.xlu0 %1652  ;;  %v1277_v10 = vsel %vm1261_vm1, %v14312_v61, %v14311_v19  ;;  %v1681_v61 = vsel %vm1672_vm9, %v8280_v9, %v8778_v15  ;;  %v1300_v25 = vadd.f32 %v1276_v60, %v1179_v37  ;;  %v14320_v51 = vld [vmem:[#allocation99_spill] sm:$0xff] }
 0x257   :  { %v8837_v6 = vpop.permute.xlu1 %1654  ;;  %v1536_v35 = vadd.f32 %v1517_v42, %v1415_v7  ;;  %v1180_v7 = vsel %vm1164_vm2, %v14316_v29, %v14315_v11  ;;  %v14317_v42 = vld [vmem:[#allocation136_spill] sm:$0xff]  ;;  %v1398_v12 = vsel %vm1382_vm3, %v14320_v51, %v14319_v2  ;;  %v1578_v29 = vadd.f32 %v1530_v27, %v14321_v31  ;;  %v14322_v9 = vld [vmem:[#allocation119_spill] sm:$0xff] }
 0x258   :  { %2031 = vrot.lane.b32.xlu0 %v14306_v57, %s7166_s29  ;;  %v1306_v14 = vadd.f32 %v1277_v10, %v1180_v7  ;;  %v1518_v37 = vsel %vm1503_vm5, %v14322_v9, %v8745_v62  ;;  %v14323_v60 = vld [vmem:[#allocation23_spill] sm:$0xff]  ;;  %v1802_v31 = vsel %vm1793_vm4, %v14233_v41, %v8800_v58  ;;  %v1803_v51 = vsel %vm1793_vm4, %v14234_v43, %v8810_v24  ;;  %v8920_v43 = vld [vmem:[%s13595_s3 + $0x18] sm:$0xff]  }
 0x259   :  { %2033 = vrot.lane.b32.xlu1 %v14310_v8, %s7166_s29  ;;  %v1397_v8 = vsel %vm1382_vm3, %v14318_v45, %v14317_v42  ;;  %v1682_v45 = vsel %vm1672_vm9, %v8282_v21, %v8781_v38  ;;  %v1584_v56 = vadd.f32 %v1536_v35, %v14323_v60  ;;  %v14324_v21 = vld [vmem:[#allocation121_spill] sm:$0xff]  ;;  %v1699_v7 = vadd.f32 %v1681_v61, %v1578_v29 }
 0x25a   :  { %v8856_v57 = vpop.permute.xlu0 %1890  ;;  %v1421_v27 = vadd.f32 %v1397_v8, %v1300_v25  ;;  %v1519_v10 = vsel %vm1503_vm5, %v14324_v21, %v8747_v20  ;;  %v1427_v9 = vadd.f32 %v1398_v12, %v1306_v14  ;;  %14325 = vst [vmem:[#allocation59_spill] sm:$0xff] %v8920_v43 }
 0x25b   :  { %v8874_v4 = vpop.permute.xlu1 %1892  ;;  %v1705_v60 = vadd.f32 %v1682_v45, %v1584_v56  ;;  %v1923_v41 = vsel %vm1914_vm6, %v8481_v55, %v8856_v57  ;;  %v1683_v55 = vsel %vm1672_vm9, %v8296_v3, %v8835_v46 }
 0x25c   :  { %6725 = vmatmul.mubr.msk.bf16.gmra.mrb[100].mxu1 %vm2331_vm14, %v8844_v0  ;;  %v1542_v8 = vadd.f32 %v1518_v37, %v1421_v27  ;;  %v1820_v0 = vadd.f32 %v1802_v31, %v1699_v7  ;;  %v1924_v61 = vsel %vm1914_vm6, %v8502_v50, %v8874_v4  ;;  %v1548_v12 = vadd.f32 %v1519_v10, %v1427_v9  ;;  %v14326_v31 = vld [vmem:[#allocation25_spill] sm:$0xff]  ;;  %v14327_v10 = vld [vmem:[#allocation28_spill] sm:$0xff] }
 0x25d   :  { %2448 = vmatprep.mubr.bf16.mxu1 %v14283_v49  ;;  %v1826_v14 = vadd.f32 %v1803_v51, %v1705_v60 }
 0x25e   :  { %v8905_v35 = vpop.permute.xlu0 %1773  ;;  %v1941_v56 = vadd.f32 %v1923_v41, %v1820_v0  ;;  %v1590_v27 = vadd.f32 %v1542_v8, %v14326_v31  ;;  %v1684_v0 = vsel %vm1672_vm9, %v8298_v22, %v8837_v6 }
 0x25f   :  { %v8911_v25 = vpop.permute.xlu1 %1775  ;;  %v1947_v45 = vadd.f32 %v1924_v61, %v1826_v14  ;;  %v1804_v7 = vsel %vm1793_vm4, %v8394_v59, %v8905_v35 }
 0x260   :  { %v1711_v22 = vadd.f32 %v1683_v55, %v1590_v27  ;;  %v1805_v9 = vsel %vm1793_vm4, %v8402_v44, %v8911_v25  ;;  %v8970_v44 = vld [vmem:[%s13595_s3 + $0x20] sm:$0xff]  }
 0x261   :  { %14328 = vst [vmem:[#allocation66_spill] sm:$0xff] %v8970_v44 }
 0x262   :  { %v8922_v29 = vpop.permute.xlu0 %2011 }
 0x263   :  { %v2044_v50 = vsel %vm2035_vm8, %v8654_v16, %v8922_v29  ;;  %v8932_v37 = vpop.permute.xlu1 %2013  ;;  %v1596_v16 = vadd.f32 %v1548_v12, %v14327_v10  ;;  %v1832_v12 = vadd.f32 %v1804_v7, %v1711_v22 }
 0x264   :  { %v2062_v21 = vadd.f32 %v2044_v50, %v1941_v56  ;;  %v2045_v3 = vsel %vm2035_vm8, %v8666_v48, %v8932_v37  ;;  %6726 = vmatmul.mubr.msk.bf16.gmra.mrb[104].mxu1 %vm2331_vm14, %v8920_v43 }
 0x265   :  { %v2068_v51 = vadd.f32 %v2045_v3, %v1947_v45  ;;  %2458 = vmatprep.mubr.bf16.mxu1 %v14283_v49  ;;  %v1717_v41 = vadd.f32 %v1684_v0, %v1596_v16 }
 0x266   :  { %v2086_v48 = vmax.f32 %v2062_v21, 0.0  ;;  %v8955_v60 = vpop.permute.xlu0 %1894 }
 0x267   :  { %v2092_v8 = vmax.f32 %v2068_v51, 0.0  ;;  %v1925_v61 = vsel %vm1914_vm6, %v8597_v5, %v8955_v60  ;;  %v8961_v59 = vpop.permute.xlu1 %1896  ;;  %v1838_v56 = vadd.f32 %v1805_v9, %v1717_v41  ;;  %v14332_v9 = vld [vmem:[#allocation122_spill] sm:$0xff]  ;;  %v14333_v41 = vld [vmem:[#allocation123_spill] sm:$0xff] }
 0x268   :  { %v1926_v14 = vsel %vm1914_vm6, %v8604_v26, %v8961_v59  ;;  %v1953_v45 = vadd.f32 %v1925_v61, %v1832_v12  ;;  %v14334_v12 = vld [vmem:[#allocation100_spill] sm:$0xff] }
 0x269   :  { %v8972_v55 = vpack.c.bf16 %v2092_v8, %v2086_v48  ;;  %v1959_v5 = vadd.f32 %v1926_v14, %v1838_v56  ;;  %v1270_v48 = vsel %vm1261_vm1, %v14287_v28, %v14332_v9  ;;  %v1271_v8 = vsel %vm1261_vm1, %v14290_v1, %v14333_v41  ;;  %v14335_v56 = vld [vmem:[#allocation132_spill] sm:$0xff] }
 0x26a   :  { %v8974_v50 = vpop.permute.xlu0 %2015  ;;  %v1173_v14 = vsel %vm1164_vm2, %v14292_v39, %v14334_v12  ;;  %v9038_v39 = vld [vmem:[%s13595_s3 + $0x30] sm:$0xff]  }
 0x26b   :  { %14329 = vst [vmem:[#allocation67_spill] sm:$0xff] %v8972_v55  ;;  %v2046_v31 = vsel %vm2035_vm8, %v8681_v30, %v8974_v50  ;;  %v8980_v27 = vpop.permute.xlu1 %2017  ;;  %v8996_v30 = vld [vmem:[%s13595_s3 + $0x28] sm:$0xff]   ;;  %v1289_v1 = vadd.f32 %v1270_v48, %v1173_v14  ;;  %v14340_v48 = vld [vmem:[#allocation129_spill] sm:$0xff] }
 0x26c   :  { %v2074_v26 = vadd.f32 %v2046_v31, %v1953_v45  ;;  %v2047_v0 = vsel %vm2035_vm8, %v8688_v17, %v8980_v27  ;;  %6727 = vmatmul.mubr.msk.bf16.gmra.mrb[108].mxu1 %vm2331_vm14, %v8970_v44  ;;  %14330 = vst [vmem:[#allocation62_spill] sm:$0xff] %v8996_v30  ;;  %v1391_v45 = vsel %vm1382_vm3, %v14294_v18, %v14335_v56  ;;  %v14338_v18 = vld [vmem:[#allocation128_spill] sm:$0xff]  ;;  %v14342_v44 = vld [vmem:[#allocation110_spill] sm:$0xff] }
 0x26d   :  { %v2080_v21 = vadd.f32 %v2047_v0, %v1959_v5  ;;  %2468 = vmatprep.mubr.bf16.mxu1 %v14283_v49  ;;  %v14336_v5 = vld [vmem:[#allocation101_spill] sm:$0xff]  ;;  %v1410_v14 = vadd.f32 %v1391_v45, %v1289_v1  ;;  %v14343_v45 = vld [vmem:[#allocation111_spill] sm:$0xff] }
 0x26e   :  { %v2098_v3 = vmax.f32 %v2074_v26, 0.0  ;;  %v8989_v10 = vpop.permute.xlu0 %1656  ;;  %v1174_v31 = vsel %vm1164_vm2, %v14296_v53, %v14336_v5  ;;  %v14337_v26 = vld [vmem:[#allocation133_spill] sm:$0xff] }
 0x26f   :  { %v2104_v16 = vmax.f32 %v2080_v21, 0.0  ;;  %v8991_v7 = vpop.permute.xlu1 %1658  ;;  %v1392_v0 = vsel %vm1382_vm3, %v14298_v54, %v14337_v26  ;;  %v1295_v21 = vadd.f32 %v1271_v8, %v1174_v31  ;;  %v1273_v54 = vsel %vm1261_vm1, %v14311_v19, %v14340_v48 }
 0x271   :  { %v8998_v51 = vpack.c.bf16 %v2104_v16, %v2098_v3  ;;  %v1272_v3 = vsel %vm1261_vm1, %v14308_v63, %v14338_v18  ;;  %v14339_v16 = vld [vmem:[#allocation142_spill] sm:$0xff]  ;;  %v1175_v63 = vsel %vm1164_vm2, %v14313_v33, %v14342_v44  ;;  %v1416_v43 = vadd.f32 %v1392_v0, %v1295_v21 }
 0x272   :  { %v9000_v17 = vpop.permute.xlu0 %1660  ;;  %v1512_v53 = vsel %vm1503_vm5, %v14301_v52, %v14339_v16  ;;  %v1393_v52 = vsel %vm1382_vm3, %v14317_v42, %v8729_v34  ;;  %v1301_v1 = vadd.f32 %v1272_v3, %v1175_v63  ;;  %v1394_v33 = vsel %vm1382_vm3, %v14319_v2, %v8731_v40 }
 0x273   :  { %14331 = vst [vmem:[#allocation155_spill] sm:$0xff] %v8998_v51  ;;  %v9002_v22 = vpop.permute.xlu1 %1662  ;;  %v1514_v42 = vsel %vm1503_vm5, %v8745_v62, %v8766_v47  ;;  %v1515_v3 = vsel %vm1503_vm5, %v8747_v20, %v8769_v32  ;;  %v14344_v62 = vld [vmem:[#allocation22_spill] sm:$0xff]  ;;  %v1678_v63 = vsel %vm1672_vm9, %v8781_v38, %v8991_v7  ;;  %v9103_v20 = vld [vmem:[%s13595_s3 + $0x38] sm:$0xff]  }
 0x274   :  { %6728 = vmatmul.mubr.msk.bf16.gmra.mrb[112].mxu1 %vm2331_vm14, %v8996_v30  ;;  %v14341_v30 = vld [vmem:[#allocation143_spill] sm:$0xff] }
 0x275   :  { %2478 = vmatprep.mubr.bf16.mxu1 %v14283_v49  ;;  %v1513_v8 = vsel %vm1503_vm5, %v14304_v36, %v14341_v30  ;;  %v1176_v36 = vsel %vm1164_vm2, %v14315_v11, %v14343_v45  ;;  %v1531_v30 = vadd.f32 %v1512_v53, %v1410_v14  ;;  %v1422_v11 = vadd.f32 %v1393_v52, %v1301_v1 }
 0x276   :  { %v9015_v61 = vpop.permute.xlu0 %1777  ;;  %v1307_v0 = vadd.f32 %v1273_v54, %v1176_v36  ;;  %v1537_v21 = vadd.f32 %v1513_v8, %v1416_v43  ;;  %v1677_v43 = vsel %vm1672_vm9, %v8778_v15, %v8989_v10  ;;  %v14345_v36 = vld [vmem:[#allocation24_spill] sm:$0xff] }
 0x277   :  { %v9025_v28 = vpop.permute.xlu1 %1779  ;;  %v1543_v14 = vadd.f32 %v1514_v42, %v1422_v11  ;;  %v1579_v8 = vadd.f32 %v1531_v30, %v14344_v62  ;;  %v1798_v15 = vsel %vm1793_vm4, %v8800_v58, %v9015_v61 }
 0x278   :  { %v1428_v2 = vadd.f32 %v1394_v33, %v1307_v0  ;;  %v1585_v1 = vadd.f32 %v1537_v21, %v14345_v36  ;;  %v14346_v33 = vld [vmem:[#allocation30_spill] sm:$0xff]  ;;  %v1799_v38 = vsel %vm1793_vm4, %v8810_v24, %v9025_v28  ;;  %v1679_v21 = vsel %vm1672_vm9, %v8835_v46, %v9000_v17 }
 0x279   :  { %v2123_v30 = vsub.s32 3, %v14346_v33  ;;  %v1700_v0 = vadd.f32 %v1677_v43, %v1579_v8  ;;  %v2119_v11 = vsub.s32 2, %v14346_v33  ;;  %v14347_v43 = vld [vmem:[#allocation27_spill] sm:$0xff]  ;;  %v1680_v24 = vsel %vm1672_vm9, %v8837_v6, %v9002_v22 }
 0x27a   :  { %v9056_v31 = vpop.permute.xlu0 %1781  ;;  %v1549_v52 = vadd.f32 %v1515_v3, %v1428_v2  ;;  %v1706_v3 = vadd.f32 %v1678_v63, %v1585_v1  ;;  %v1591_v62 = vadd.f32 %v1543_v14, %v14347_v43  ;;  %v14348_v63 = vld [vmem:[#allocation31_spill] sm:$0xff] }
 0x27b   :  { %v9066_v19 = vpop.permute.xlu1 %1783  ;;  %v1821_v8 = vadd.f32 %v1798_v15, %v1700_v0  ;;  %v1800_v14 = vsel %vm1793_vm4, %v8905_v35, %v9056_v31  ;;  %v2124_v6 = vrot.slane %v8434_v23, %v2123_v30 }
 0x27c   :  { %6729 = vmatmul.mubr.msk.bf16.gmra.mrb[116].mxu1 %vm2331_vm14, %v9038_v39  ;;  %v1827_v36 = vadd.f32 %v1799_v38, %v1706_v3  ;;  %v1712_v1 = vadd.f32 %v1679_v21, %v1591_v62 }
 0x27d   :  { %2488 = vmatprep.mubr.bf16.mxu1 %v14283_v49  ;;  %vm2136_vm15 = vcmp.eq.s32.totalorder %v2124_v6, 1  ;;  %v14350_v6 = vmov 0 }
 0x27e   :  { %v9087_v53 = vpop.permute.xlu0 %1898  ;;  %vm9190_vm7 = vmpackc.low %vm2136_vm15, %vm2136_vm15 }
 0x27f   :  { %v9093_v54 = vpop.permute.xlu1 %1900  ;;  %v1919_v58 = vsel %vm1914_vm6, %v8856_v57, %v9087_v53  ;;  %v1597_v57 = vadd.f32 %v1549_v52, %v14348_v63  ;;  %v2120_v52 = vrot.slane %v8434_v23, %v2119_v11  ;;  %v14351_v6 = vsel %vm9190_vm7, 4294967295, %v14350_v6 }
 0x280   :  { %v1920_v46 = vsel %vm1914_vm6, %v8874_v4, %v9093_v54  ;;  %v1801_v4 = vsel %vm1793_vm4, %v8911_v25, %v9066_v19  ;;  %v1942_v15 = vadd.f32 %v1919_v58, %v1821_v8  ;;  %v1833_v25 = vadd.f32 %v1800_v14, %v1712_v1  ;;  %14352 = vst [vmem:[#allocation13_spill] sm:$0xff] %v14351_v6 }
 0x281   :  { %v1718_v38 = vadd.f32 %v1680_v24, %v1597_v57  ;;  %v1948_v3 = vadd.f32 %v1920_v46, %v1827_v36  ;;  %vm2135_vm0 = vcmp.eq.s32.totalorder %v2120_v52, 1 }
 0x282   :  { %v9115_v42 = vpop.permute.xlu0 %1902  ;;  %vm9196_vm10 = vmpackc.low %vm2135_vm0, %vm2135_vm0 }
 0x283   :  { %v9126_v2 = vpop.permute.xlu1 %1904  ;;  %v1921_v35 = vsel %vm1914_vm6, %v8955_v60, %v9115_v42  ;;  %v9174_v60 = vld [vmem:[%s13595_s3 + $0x40] sm:$0xff]  }
 0x284   :  { %6730 = vmatmul.mubr.msk.bf16.gmra.mrb[120].mxu1 %vm2331_vm14, %v9103_v20  ;;  %v1922_v11 = vsel %vm1914_vm6, %v8961_v59, %v9126_v2  ;;  %14349 = vst [vmem:[#allocation156_spill] sm:$0xff] %v9174_v60  ;;  %v1954_v24 = vadd.f32 %v1921_v35, %v1833_v25 }
 0x285   :  { %2498 = vmatprep.mubr.bf16.mxu1 %v14283_v49 }
 0x286   :  { %v9150_v0 = vpop.permute.xlu0 %2019 }
 0x287   :  { %v2040_v30 = vsel %vm2035_vm8, %v8922_v29, %v9150_v0  ;;  %v9161_v21 = vpop.permute.xlu1 %2021  ;;  %v1839_v29 = vadd.f32 %v1801_v4, %v1718_v38 }
 0x288   :  { %v2063_v58 = vadd.f32 %v2040_v30, %v1942_v15  ;;  %v2041_v43 = vsel %vm2035_vm8, %v8932_v37, %v9161_v21 }
 0x289   :  { %v2069_v62 = vadd.f32 %v2041_v43, %v1948_v3  ;;  %v1960_v59 = vadd.f32 %v1922_v11, %v1839_v29  ;;  %v9210_v3 = vld [vmem:[%s13595_s3 + $0x48] sm:$0xff]   ;;  %v14360_v29 = vld [vmem:[#allocation20_spill] sm:$0xff] }
 0x28a   :  { %v2087_v8 = vmax.f32 %v2063_v58, 0.0  ;;  %v9176_v46 = vpop.permute.xlu0 %2023  ;;  %14357 = vst [vmem:[#allocation56_spill] sm:$0xff] %v9210_v3  ;;  %v14359_v58 = vld [vmem:[#allocation7_spill] sm:$0xff] }
 0x28b   :  { %v2093_v63 = vmax.f32 %v2069_v62, 0.0  ;;  %v2042_v37 = vsel %vm2035_vm8, %v8974_v50, %v9176_v46  ;;  %v9182_v57 = vpop.permute.xlu1 %2025  ;;  %v14354_v50 = vmov 0  ;;  %v9229_v62 = vld [vmem:[%s13595_s3 + $0x50] sm:$0xff]  }
 0x28c   :  { %v2075_v36 = vadd.f32 %v2042_v37, %v1954_v24  ;;  %v2043_v14 = vsel %vm2035_vm8, %v8980_v27, %v9182_v57  ;;  %6731 = vmatmul.mubr.msk.bf16.gmra.mrb[124].mxu1 %vm2331_vm14, %v9174_v60  ;;  %v14355_v50 = vsel %vm9196_vm10, 4294967295, %v14354_v50  ;;  %14361 = vst [vmem:[#allocation113_spill] sm:$0xff] %v9229_v62  ;;  %v14362_v24 = vld [vmem:[#allocation8_spill] sm:$0xff] }
 0x28d   :  { %v9194_v1 = vpack.c.bf16 %v2093_v63, %v2087_v8  ;;  %v2081_v4 = vadd.f32 %v2043_v14, %v1960_v59  ;;  %14356 = vst [vmem:[#allocation53_spill] sm:$0xff] %v14355_v50  ;;  %2508 = vmatprep.mubr.bf16.mxu1 %v14283_v49  ;;  %v14363_v8 = vld [vmem:[#allocation14_spill] sm:$0xff]  ;;  %v14375_v50 = vld [vmem:[#allocation147_spill] sm:$0xff]  ;;  %v14378_v60 = vld [vmem:[#allocation152_spill] sm:$0xff] }
 0x28e   :  { %v2099_v15 = vmax.f32 %v2075_v36, 0.0  ;;  %v1147_v52 = vpop.permute.xlu0 %1146  ;;  %v14365_v36 = vld [vmem:[#allocation63_spill] sm:$0xff] }
 0x28f   :  { %14353 = vst [vmem:[#allocation15_spill] sm:$0xff] %v9194_v1  ;;  %v2105_v38 = vmax.f32 %v2081_v4, 0.0  ;;  %v1149_v27 = vpop.permute.xlu1 %1148  ;;  %6866 = vmatprep.subr.msk.bf16.mxu0 %vm9190_vm7, %v9194_v1  ;;  %v14367_v4 = vld [vmem:[#allocation29_spill] sm:$0xff]  ;;  %v1169_v6 = vsel %vm1164_vm2, %v14334_v12, %v1147_v52  ;;  %v14374_v1 = vld [vmem:[#allocation151_spill] sm:$0xff] }
 0x290   :  { %6869 = vmatpush1.bf16.msk.msra.mxu0 %vm9196_vm10, %v8972_v55  ;;  %v14373_v55 = vld [vmem:[#allocation146_spill] sm:$0xff] }
 0x291   :  { %v9212_v35 = vpack.c.bf16 %v2105_v38, %v2099_v15 }
 0x292   :  { %v1246_v30 = vpop.permute.xlu0 %1245 }
 0x293   :  { %14358 = vst [vmem:[#allocation52_spill] sm:$0xff] %v9212_v35  ;;  %v1248_v25 = vpop.permute.xlu1 %1247  ;;  %6872 = vmatprep.subr.msk.bf16.mxu0 %vm9190_vm7, %v9212_v35 }
 0x294   :  { %6732 = vmatmul.mubr.msk.bf16.gmra.mrb[128].mxu1 %vm2331_vm14, %v9210_v3  ;;  %6875 = vmatpush1.bf16.msk.msra.mxu0 %vm9196_vm10, %v8998_v51  ;;  %v14371_v51 = vld [vmem:[#allocation44_spill] sm:$0xff]  ;;  %v1165_v3 = vsel %vm1164_vm2, %v1147_v52, %v14373_v55  ;;  %v1170_v55 = vsel %vm1164_vm2, %v14336_v5, %v1149_v27 }
 0x295   :  { %2518 = vmatprep.mubr.bf16.mxu1 %v14283_v49  ;;  %4508 = vmatprep.subr.bf16.mxu0 %v14359_v58  ;;  %v14370_v58 = vld [vmem:[#allocation18_spill] sm:$0xff] }
 0x296   :  { %v1367_v11 = vpop.permute.xlu0 %1366 }
 0x297   :  { %v1369_v43 = vpop.permute.xlu1 %1368  ;;  %6741 = vmatmul.mubr.msk.bf16.vlgmr.msra.gmra.mrb[124].mxu0 %vm2331_vm14, %v14360_v29  ;;  %v14376_v29 = vld [vmem:[#allocation54_spill] sm:$0xff] }
 0x298   :  { %4509 = vmatpush1.bf16.msra.mxu0 %v14362_v24  ;;  %2641 = vmatprep.mubr.bf16.mxu0 %v14283_v49  ;;  %v14368_v24 = vld [vmem:[#allocation41_spill] sm:$0xff]  ;;  %v1383_v12 = vsel %vm1382_vm3, %v1367_v11, %v14376_v29  ;;  %v1388_v5 = vsel %vm1382_vm3, %v14337_v26, %v1369_v43 }
 0x299   :  { %6890 = vmatprep.subr.msk.bf16.mxu0 %vm8706_vm12, %v14363_v8  ;;  %v9250_v8 = vld [vmem:[%s13595_s3 + $0x58] sm:$0xff]  }
 0x29a   :  { %v1151_v63 = vpop.permute.xlu0 %1150  ;;  %14369 = vst [vmem:[#allocation35_spill] sm:$0xff] %v9250_v8 }
 0x29b   :  { %v1153_v37 = vpop.permute.xlu1 %1152 }
 0x29c   :  { %6733 = vmatmul.mubr.msk.bf16.gmra.mrb[132].mxu1 %vm2331_vm14, %v9229_v62  ;;  %6893 = vmatpush1.bf16.msk.msra.mxu0 %vm8721_vm13, %v14365_v36 }
 0x29d   :  { %2528 = vmatprep.mubr.bf16.mxu1 %v14283_v49  ;;  %6896 = vmatprep.subr.msk.bf16.mxu0 %vm8706_vm12, %v14367_v4 }
 0x29e   :  { %v1250_v15 = vpop.permute.xlu0 %1249 }
 0x29f   :  { %v1252_v38 = vpop.permute.xlu1 %1251  ;;  %6742 = vmatmul.mubr.msk.bf16.gmra.mrb[128].mxu0 %vm2331_vm14, %v14368_v24  ;;  %v9264_v24 = vld [vmem:[%s13595_s3 + $0x60] sm:$0xff]  }
 0x2a0   :  { %6899 = vmatpush1.bf16.msk.msra.mxu0 %vm8721_vm13, %v14370_v58  ;;  %2651 = vmatprep.mubr.bf16.mxu0 %v14283_v49  ;;  %v14372_v58 = vld [vmem:[#allocation150_spill] sm:$0xff]  ;;  %v1269_v26 = vsel %vm1261_vm1, %v14340_v48, %v1252_v38  ;;  %v14382_v48 = vld [vmem:[#allocation149_spill] sm:$0xff] }
 0x2a1   :  { %v1262_v14 = vsel %vm1261_vm1, %v1246_v30, %v14372_v58  ;;  %v1263_v58 = vsel %vm1261_vm1, %v1248_v25, %v14374_v1  ;;  %v1387_v1 = vsel %vm1382_vm3, %v14335_v56, %v1367_v11  ;;  %v1264_v56 = vsel %vm1261_vm1, %v1250_v15, %v14378_v60 }
 0x2a2   :  { %v1488_v36 = vpop.permute.xlu0 %1487  ;;  %v1291_v52 = vadd.f32 %v1262_v14, %v1165_v3  ;;  %v14379_v14 = vld [vmem:[#allocation153_spill] sm:$0xff] }
 0x2a3   :  { %v1490_v62 = vpop.permute.xlu1 %1489 }
 0x2a4   :  { %6734 = vmatmul.mubr.msk.bf16.gmra.mrb[136].mxu1 %vm2331_vm14, %v9250_v8  ;;  %v1266_v8 = vsel %vm1261_vm1, %v14332_v9, %v1246_v30  ;;  %v1267_v9 = vsel %vm1261_vm1, %v14333_v41, %v1248_v25  ;;  %v14377_v25 = vld [vmem:[#allocation55_spill] sm:$0xff] }
 0x2a5   :  { %2538 = vmatprep.mubr.bf16.mxu1 %v14283_v49  ;;  %v1290_v41 = vadd.f32 %v1266_v8, %v1169_v6  ;;  %v1268_v6 = vsel %vm1261_vm1, %v14338_v18, %v1250_v15  ;;  %v1412_v8 = vadd.f32 %v1383_v12, %v1291_v52  ;;  %v1171_v18 = vsel %vm1164_vm2, %v14342_v44, %v1151_v63  ;;  %v9329_v15 = vld [vmem:[%s13595_s3 + $0x68] sm:$0xff]  }
 0x2a6   :  { %v1371_v4 = vpop.permute.xlu0 %1370  ;;  %v1172_v12 = vsel %vm1164_vm2, %v14343_v45, %v1153_v37  ;;  %v14383_v52 = vld [vmem:[#allocation42_spill] sm:$0xff]  ;;  %v1508_v45 = vsel %vm1503_vm5, %v14339_v16, %v1488_v36 }
 0x2a7   :  { %v1373_v59 = vpop.permute.xlu1 %1372  ;;  %6743 = vmatmul.mubr.msk.bf16.gmra.mrb[132].mxu0 %vm2331_vm14, %v14371_v51  ;;  %v1166_v51 = vsel %vm1164_vm2, %v1149_v27, %v14375_v50  ;;  %v1384_v50 = vsel %vm1382_vm3, %v1369_v43, %v14377_v25  ;;  %v1296_v27 = vadd.f32 %v1267_v9, %v1170_v55  ;;  %v1411_v11 = vadd.f32 %v1387_v1, %v1290_v41  ;;  %v14380_v9 = vld [vmem:[#allocation148_spill] sm:$0xff]  ;;  %v14381_v55 = vld [vmem:[#allocation59_spill] sm:$0xff] }
 0x2a8   :  { %2661 = vmatprep.mubr.bf16.mxu0 %v14283_v49  ;;  %v1297_v29 = vadd.f32 %v1263_v58, %v1166_v51  ;;  %v1265_v25 = vsel %vm1261_vm1, %v1252_v38, %v14379_v14  ;;  %v1167_v60 = vsel %vm1164_vm2, %v1151_v63, %v14380_v9  ;;  %v1168_v38 = vsel %vm1164_vm2, %v1153_v37, %v14382_v48  ;;  %v14385_v37 = vld [vmem:[#allocation81_spill] sm:$0xff] }
 0x2a9   :  { %v1417_v43 = vadd.f32 %v1388_v5, %v1296_v27  ;;  %v1302_v1 = vadd.f32 %v1268_v6, %v1171_v18  ;;  %v1303_v41 = vadd.f32 %v1264_v56, %v1167_v60  ;;  %v1308_v44 = vadd.f32 %v1269_v26, %v1172_v12  ;;  %v14386_v26 = vld [vmem:[#allocation36_spill] sm:$0xff]  ;;  %v14389_v18 = vld [vmem:[#allocation51_spill] sm:$0xff] }
 0x2aa   :  { %v1492_v35 = vpop.permute.xlu0 %1491  ;;  %v1418_v58 = vadd.f32 %v1384_v50, %v1297_v29  ;;  %v1309_v63 = vadd.f32 %v1265_v25, %v1168_v38  ;;  %v1385_v50 = vsel %vm1382_vm3, %v1371_v4, %v14383_v52  ;;  %v1389_v5 = vsel %vm1382_vm3, %v8729_v34, %v1371_v4  ;;  %v14384_v29 = vld [vmem:[#allocation50_spill] sm:$0xff]  ;;  %v14387_v4 = vld [vmem:[#allocation143_spill] sm:$0xff]  ;;  %v14388_v60 = vld [vmem:[#allocation40_spill] sm:$0xff] }
 0x2ab   :  { %v1494_v30 = vpop.permute.xlu1 %1493  ;;  %v1504_v14 = vsel %vm1503_vm5, %v1488_v36, %v14384_v29  ;;  %v1386_v56 = vsel %vm1382_vm3, %v1373_v59, %v14385_v37  ;;  %v1390_v6 = vsel %vm1382_vm3, %v8731_v40, %v1373_v59  ;;  %v1505_v34 = vsel %vm1503_vm5, %v1490_v62, %v14386_v26 }
 0x2ac   :  { %6735 = vmatmul.mubr.msk.bf16.gmra.mrb[140].mxu1 %vm2331_vm14, %v9264_v24  ;;  %v1509_v9 = vsel %vm1503_vm5, %v14387_v4, %v1490_v62  ;;  %v1506_v16 = vsel %vm1503_vm5, %v1492_v35, %v14388_v60  ;;  %v1510_v36 = vsel %vm1503_vm5, %v8766_v47, %v1492_v35  ;;  %v1423_v40 = vadd.f32 %v1389_v5, %v1302_v1  ;;  %v9382_v4 = vld [vmem:[%s13595_s3 + $0x70] sm:$0xff]  }
 0x2ad   :  { %2548 = vmatprep.mubr.bf16.mxu1 %v14283_v49  ;;  %v1424_v59 = vadd.f32 %v1385_v50, %v1303_v41  ;;  %v1507_v48 = vsel %vm1503_vm5, %v1494_v30, %v14389_v18  ;;  %v1511_v62 = vsel %vm1503_vm5, %v8769_v32, %v1494_v30  ;;  %v1532_v38 = vadd.f32 %v1508_v45, %v1411_v11  ;;  %v14390_v32 = vld [vmem:[#allocation66_spill] sm:$0xff]  ;;  %v14397_v60 = vld [vmem:[#allocation75_spill] sm:$0xff] }
 0x2ae   :  { %v1665_v3 = vpop.permute.xlu0 %1664  ;;  %v1533_v12 = vadd.f32 %v1504_v14, %v1412_v8  ;;  %v1429_v52 = vadd.f32 %v1390_v6, %v1308_v44  ;;  %v1430_v29 = vadd.f32 %v1386_v56, %v1309_v63  ;;  %v1538_v35 = vadd.f32 %v1509_v9, %v1417_v43  ;;  %v14391_v11 = vld [vmem:[#allocation134_spill] sm:$0xff]  ;;  %v14394_v14 = vld [vmem:[#allocation71_spill] sm:$0xff]  ;;  %v14395_v56 = vld [vmem:[#allocation72_spill] sm:$0xff] }
 0x2af   :  { %v1667_v51 = vpop.permute.xlu1 %1666  ;;  %6744 = vmatmul.mubr.msk.bf16.gmra.mrb[136].mxu0 %vm2331_vm14, %v14381_v55  ;;  %v1539_v37 = vadd.f32 %v1505_v34, %v1418_v58  ;;  %v1544_v26 = vadd.f32 %v1510_v36, %v1423_v40  ;;  %v1545_v1 = vadd.f32 %v1506_v16, %v1424_v59  ;;  %v1673_v30 = vsel %vm1672_vm9, %v8989_v10, %v1665_v3  ;;  %v14396_v6 = vld [vmem:[#allocation135_spill] sm:$0xff]  ;;  %v14398_v16 = vld [vmem:[#allocation76_spill] sm:$0xff] }
 0x2b0   :  { %2671 = vmatprep.mubr.bf16.mxu0 %v14283_v49  ;;  %v1550_v50 = vadd.f32 %v1511_v62, %v1429_v52  ;;  %v1551_v5 = vadd.f32 %v1507_v48, %v1430_v29  ;;  %v1693_v8 = vsel %vm1672_vm9, %v1665_v3, %v14391_v11  ;;  %v14392_v43 = vsub.s32 5, %v14346_v33  ;;  %v14399_v36 = vld [vmem:[#allocation79_spill] sm:$0xff]  ;;  %v14400_v59 = vld [vmem:[#allocation80_spill] sm:$0xff] }
 0x2b1   :  { %v14393_v44 = vsub.s32 4, %v14346_v33  ;;  %v1580_v45 = vadd.f32 %v1532_v38, %v14394_v14  ;;  %v1581_v10 = vadd.f32 %v1533_v12, %v14395_v56  ;;  %v1674_v3 = vsel %vm1672_vm9, %v8991_v7, %v1667_v51  ;;  %v14401_v12 = vld [vmem:[#allocation82_spill] sm:$0xff]  ;;  %v14402_v29 = vld [vmem:[#allocation83_spill] sm:$0xff]  ;;  %v14407_v14 = vld [vmem:[#allocation45_spill] sm:$0xff] }
 0x2b2   :  { %v1786_v27 = vpop.permute.xlu0 %1785  ;;  %v9395_v58 = vrot.slane %v8434_v23, %v14392_v43  ;;  %v1694_v34 = vsel %vm1672_vm9, %v1667_v51, %v14396_v6  ;;  %v1586_v33 = vadd.f32 %v1538_v35, %v14397_v60  ;;  %v1592_v40 = vadd.f32 %v1544_v26, %v14399_v36 }
 0x2b3   :  { %v1788_v25 = vpop.permute.xlu1 %1787  ;;  %v9400_v63 = vrot.slane %v8434_v23, %v14393_v44  ;;  %v1587_v23 = vadd.f32 %v1539_v37, %v14398_v16  ;;  %v1593_v18 = vadd.f32 %v1545_v1, %v14400_v59  ;;  %v1701_v62 = vadd.f32 %v1673_v30, %v1580_v45  ;;  %v14403_v37 = vld [vmem:[#allocation144_spill] sm:$0xff]  ;;  %v14405_v30 = vld [vmem:[#allocation138_spill] sm:$0xff]  ;;  %v14406_v44 = vld [vmem:[#allocation139_spill] sm:$0xff] }
 0x2b4   :  { %6736 = vmatmul.mubr.msk.bf16.gmra.mrb[144].mxu1 %vm2331_vm14, %v9329_v15  ;;  %v1702_v38 = vadd.f32 %v1693_v8, %v1581_v10  ;;  %v1598_v52 = vadd.f32 %v1550_v50, %v14401_v12  ;;  %v1599_v7 = vadd.f32 %v1551_v5, %v14402_v29  ;;  %v1707_v51 = vadd.f32 %v1674_v3, %v1586_v33  ;;  %v14404_v50 = vld [vmem:[#allocation145_spill] sm:$0xff]  ;;  %v14408_v10 = vld [vmem:[#allocation46_spill] sm:$0xff] }
 0x2b5   :  { %2558 = vmatprep.mubr.bf16.mxu1 %v14283_v49  ;;  %v1708_v11 = vadd.f32 %v1694_v34, %v1587_v23  ;;  %v1794_v35 = vsel %vm1793_vm4, %v9015_v61, %v1786_v27  ;;  %v1814_v26 = vsel %vm1793_vm4, %v1786_v27, %v14403_v37  ;;  %vm2138_vm11 = vcmp.eq.s32.totalorder %v9395_v58, 1  ;;  %v14409_v3 = vld [vmem:[#allocation62_spill] sm:$0xff] }
 0x2b6   :  { %v1669_v47 = vpop.permute.xlu0 %1668  ;;  %v1795_v1 = vsel %vm1793_vm4, %v9025_v28, %v1788_v25  ;;  %v1815_v5 = vsel %vm1793_vm4, %v1788_v25, %v14404_v50  ;;  %vm2137_vm15 = vcmp.eq.s32.totalorder %v9400_v63, 1  ;;  %v1823_v56 = vadd.f32 %v1814_v26, %v1702_v38  ;;  %v14410_v38 = vld [vmem:[#allocation69_spill] sm:$0xff]  ;;  %vm9508_vm0 = vmpackc.low %vm2138_vm11, %vm2138_vm11 }
 0x2b7   :  { %v1671_v41 = vpop.permute.xlu1 %1670  ;;  %6745 = vmatmul.mubr.msk.bf16.gmra.mrb[140].mxu0 %vm2331_vm14, %v14390_v32  ;;  %v1675_v61 = vsel %vm1672_vm9, %v9000_v17, %v1669_v47  ;;  %v1695_v27 = vsel %vm1672_vm9, %v1669_v47, %v14405_v30  ;;  %v1822_v47 = vadd.f32 %v1794_v35, %v1701_v62  ;;  %v1828_v6 = vadd.f32 %v1795_v1, %v1707_v51  ;;  %v14413_v1 = vld [vmem:[#allocation34_spill] sm:$0xff]  ;;  %vm9527_vm11 = vmpackc.low %vm2137_vm15, %vm2137_vm15 }
 0x2b8   :  { %2681 = vmatprep.mubr.bf16.mxu0 %v14283_v49  ;;  %v1676_v43 = vsel %vm1672_vm9, %v9002_v22, %v1671_v41  ;;  %v1696_v28 = vsel %vm1672_vm9, %v1671_v41, %v14406_v44  ;;  %v1829_v34 = vadd.f32 %v1815_v5, %v1708_v11  ;;  %v1714_v60 = vadd.f32 %v1695_v27, %v1593_v18  ;;  %v14412_v11 = vld [vmem:[#allocation33_spill] sm:$0xff] }
 0x2b9   :  { %v1719_v33 = vadd.f32 %v1676_v43, %v1598_v52  ;;  %v14414_v43 = vld [vmem:[#allocation57_spill] sm:$0xff] }
 0x2ba   :  { %v1907_v9 = vpop.permute.xlu0 %1906 }
 0x2bb   :  { %v1909_v48 = vpop.permute.xlu1 %1908  ;;  %v1915_v25 = vsel %vm1914_vm6, %v9087_v53, %v1907_v9  ;;  %v1935_v17 = vsel %vm1914_vm6, %v1907_v9, %v14407_v14  ;;  %v9461_v53 = vld [vmem:[%s13595_s3 + $0x78] sm:$0xff]   ;;  %v1713_v9 = vadd.f32 %v1675_v61, %v1592_v40 }
 0x2bc   :  { %6737 = vmatmul.mubr.msk.bf16.gmra.mrb[148].mxu1 %vm2331_vm14, %v9382_v4  ;;  %v1916_v22 = vsel %vm1914_vm6, %v9093_v54, %v1909_v48  ;;  %v1936_v41 = vsel %vm1914_vm6, %v1909_v48, %v14408_v10  ;;  %v1720_v54 = vadd.f32 %v1696_v28, %v1599_v7  ;;  %v1943_v16 = vadd.f32 %v1915_v25, %v1822_v47  ;;  %v14411_v7 = vld [vmem:[#allocation70_spill] sm:$0xff]  ;;  %v9515_v47 = vld [vmem:[%s13595_s3 + $0x80] sm:$0xff]  }
 0x2bd   :  { %2568 = vmatprep.mubr.bf16.mxu1 %v14283_v49  ;;  %v1944_v23 = vadd.f32 %v1935_v17, %v1823_v56  ;;  %v1949_v59 = vadd.f32 %v1916_v22, %v1828_v6  ;;  %v1950_v48 = vadd.f32 %v1936_v41, %v1829_v34  ;;  %v14415_v17 = vld [vmem:[#allocation58_spill] sm:$0xff]  ;;  %v14421_v34 = vmov 0 }
 0x2be   :  { %v1790_v8 = vpop.permute.xlu0 %1789  ;;  %v14422_v34 = vsel %vm9527_vm11, 4294967295, %v14421_v34 }
 0x2bf   :  { %v1792_v45 = vpop.permute.xlu1 %1791  ;;  %6746 = vmatmul.mubr.msk.bf16.gmra.mrb[144].mxu0 %vm2331_vm14, %v14409_v3  ;;  %v1816_v35 = vsel %vm1793_vm4, %v1790_v8, %v14412_v11  ;;  %14423 = vst [vmem:[#allocation68_spill] sm:$0xff] %v14422_v34  ;;  %v14430_v11 = vld [vmem:[#allocation20_spill] sm:$0xff] }
 0x2c0   :  { %2691 = vmatprep.mubr.bf16.mxu0 %v14283_v49  ;;  %v1817_v50 = vsel %vm1793_vm4, %v1792_v45, %v14413_v1  ;;  %v14435_v1 = vld [vmem:[#allocation67_spill] sm:$0xff] }
 0x2c1   :  { %v1841_v56 = vadd.f32 %v1817_v50, %v1720_v54  ;;  %v14424_v54 = vld [vmem:[#allocation84_spill] sm:$0xff] }
 0x2c2   :  { %v2028_v36 = vpop.permute.xlu0 %2027 }
 0x2c3   :  { %v2036_v62 = vsel %vm2035_vm8, %v9150_v0, %v2028_v36  ;;  %v2056_v12 = vsel %vm2035_vm8, %v2028_v36, %v14410_v38  ;;  %v2030_v29 = vpop.permute.xlu1 %2029  ;;  %v1796_v0 = vsel %vm1793_vm4, %v9056_v31, %v1790_v8 }
 0x2c4   :  { %v2064_v40 = vadd.f32 %v2036_v62, %v1943_v16  ;;  %v2065_v18 = vadd.f32 %v2056_v12, %v1944_v23  ;;  %v2037_v52 = vsel %vm2035_vm8, %v9161_v21, %v2030_v29  ;;  %v2057_v51 = vsel %vm2035_vm8, %v2030_v29, %v14411_v7  ;;  %6738 = vmatmul.mubr.msk.bf16.gmra.mrb[152].mxu1 %vm2331_vm14, %v9461_v53 }
 0x2c5   :  { %v2070_v37 = vadd.f32 %v2037_v52, %v1949_v59  ;;  %v2071_v26 = vadd.f32 %v2057_v51, %v1950_v48  ;;  %2578 = vmatprep.mubr.bf16.mxu1 %v14283_v49  ;;  %v1797_v21 = vsel %vm1793_vm4, %v9066_v19, %v1792_v45  ;;  %v1834_v25 = vadd.f32 %v1796_v0, %v1713_v9  ;;  %v14425_v48 = vld [vmem:[#allocation85_spill] sm:$0xff]  ;;  %v14429_v0 = vld [vmem:[#allocation156_spill] sm:$0xff] }
 0x2c6   :  { %v2088_v5 = vmax.f32 %v2064_v40, 0.0  ;;  %v2089_v61 = vmax.f32 %v2065_v18, 0.0  ;;  %v1911_v30 = vpop.permute.xlu0 %1910  ;;  %v1835_v19 = vadd.f32 %v1816_v35, %v1714_v60  ;;  %v14428_v51 = vld [vmem:[#allocation9_spill] sm:$0xff]  ;;  %v14431_v35 = vld [vmem:[#allocation10_spill] sm:$0xff] }
 0x2c7   :  { %v2094_v31 = vmax.f32 %v2070_v37, 0.0  ;;  %v2095_v27 = vmax.f32 %v2071_v26, 0.0  ;;  %v1917_v8 = vsel %vm1914_vm6, %v9115_v42, %v1911_v30  ;;  %v1937_v44 = vsel %vm1914_vm6, %v1911_v30, %v14414_v43  ;;  %v1913_v28 = vpop.permute.xlu1 %1912  ;;  %6747 = vmatmul.mubr.msk.bf16.gmra.mrb[148].mxu0 %vm2331_vm14, %v9038_v39  ;;  %v14432_v37 = vld [vmem:[#allocation15_spill] sm:$0xff] }
 0x2c8   :  { %v1918_v14 = vsel %vm1914_vm6, %v9126_v2, %v1913_v28  ;;  %v1938_v45 = vsel %vm1914_vm6, %v1913_v28, %v14415_v17  ;;  %v14416_v42 = vmov 0  ;;  %v1840_v2 = vadd.f32 %v1797_v21, %v1719_v33  ;;  %2701 = vmatprep.mubr.bf16.mxu0 %v14283_v49  ;;  %v14434_v21 = vld [vmem:[#allocation56_spill] sm:$0xff]  ;;  %v14439_v30 = vld [vmem:[#allocation155_spill] sm:$0xff] }
 0x2c9   :  { %v14417_v42 = vsel %vm9508_vm0, 4294967295, %v14416_v42  ;;  %v9519_v22 = vpack.c.bf16 %v2095_v27, %v2089_v61  ;;  %v9521_v10 = vpack.c.bf16 %v2094_v31, %v2088_v5  ;;  %v1955_v58 = vadd.f32 %v1917_v8, %v1834_v25  ;;  %v14437_v5 = vld [vmem:[#allocation52_spill] sm:$0xff]  ;;  %v14438_v61 = vld [vmem:[#allocation41_spill] sm:$0xff]  ;;  %v14442_v8 = vld [vmem:[#allocation35_spill] sm:$0xff] }
 0x2ca   :  { %14418 = vst [vmem:[#allocation115_spill] sm:$0xff] %v14417_v42  ;;  %v1956_v41 = vadd.f32 %v1937_v44, %v1835_v19  ;;  %v2032_v6 = vpop.permute.xlu0 %2031  ;;  %v1961_v9 = vadd.f32 %v1918_v14, %v1840_v2  ;;  %v1962_v60 = vadd.f32 %v1938_v45, %v1841_v56  ;;  %v14440_v31 = vld [vmem:[#allocation113_spill] sm:$0xff]  ;;  %v14441_v27 = vld [vmem:[#allocation44_spill] sm:$0xff] }
 0x2cb   :  { %14419 = vst [vmem:[#allocation65_spill] sm:$0xff] %v9519_v22  ;;  %14420 = vst [vmem:[#allocation38_spill] sm:$0xff] %v9521_v10  ;;  %v2038_v33 = vsel %vm2035_vm8, %v9176_v46, %v2032_v6  ;;  %v2058_v16 = vsel %vm2035_vm8, %v2032_v6, %v14424_v54  ;;  %v2034_v23 = vpop.permute.xlu1 %2033  ;;  %6878 = vmatprep.subr.msk.bf16.mxu1 %vm9508_vm0, %v9519_v22 }
 0x2cc   :  { %v2076_v63 = vadd.f32 %v2038_v33, %v1955_v58  ;;  %v2077_v36 = vadd.f32 %v2058_v16, %v1956_v41  ;;  %v2039_v59 = vsel %vm2035_vm8, %v9182_v57, %v2034_v23  ;;  %v2059_v62 = vsel %vm2035_vm8, %v2034_v23, %v14425_v48  ;;  %6739 = vmatmul.mubr.msk.bf16.gmra.mrb[156].mxu1 %vm2331_vm14, %v9515_v47  ;;  %v9555_v57 = vld [vmem:[%s13595_s3 + $0x88] sm:$0xff]  }
 0x2cd   :  { %v2082_v46 = vadd.f32 %v2039_v59, %v1961_v9  ;;  %v2083_v38 = vadd.f32 %v2059_v62, %v1962_v60  ;;  %6881 = vmatpush1.bf16.msk.msra.mxu1 %vm9527_vm11, %v9521_v10  ;;  %2588 = vmatprep.mubr.bf16.mxu1 %v14283_v49 }
 0x2ce   :  { %v2100_v12 = vmax.f32 %v2076_v63, 0.0  ;;  %v2101_v29 = vmax.f32 %v2077_v36, 0.0 }
 0x2cf   :  { %v2106_v40 = vmax.f32 %v2082_v46, 0.0  ;;  %v2107_v18 = vmax.f32 %v2083_v38, 0.0  ;;  %6748 = vmatmul.mubr.msk.bf16.gmra.mrb[152].mxu0 %vm2331_vm14, %v9103_v20 }
 0x2d0   :  { %2711 = vmatprep.mubr.bf16.mxu0 %v14283_v49 }
 0x2d1   :  { %v9559_v52 = vpack.c.bf16 %v2107_v18, %v2101_v29  ;;  %v9561_v7 = vpack.c.bf16 %v2106_v40, %v2100_v12 }
 0x2d3   :  { %14426 = vst [vmem:[#allocation17_spill] sm:$0xff] %v9559_v52  ;;  %14427 = vst [vmem:[#allocation64_spill] sm:$0xff] %v9561_v7  ;;  %6884 = vmatprep.subr.msk.bf16.mxu1 %vm9508_vm0, %v9559_v52 }
 0x2d4   :  { %6740 = vmatmul.mubr.msk.bf16.gmra.mrb[160].mxu1 %vm2331_vm14, %v9555_v57 }
 0x2d5   :  { %6887 = vmatpush1.bf16.msk.msra.mxu1 %vm9527_vm11, %v9561_v7  ;;  %2844 = vmatprep.mubr.bf16.mxu1 %v14283_v49 }
 0x2d6   :  { %4721 = vmatprep.subr.bf16.mxu1 %v14428_v51 }
 0x2d7   :  { %6749 = vmatmul.mubr.msk.bf16.gmra.mrb[156].mxu0 %vm2331_vm14, %v14429_v0 }
 0x2d8   :  { %2721 = vmatprep.mubr.bf16.mxu0 %v14283_v49 }
 0x2dc   :  { %6759 = vmatmul.mubr.msk.bf16.vlgmr.msra.gmra.mrb[164].mxu1 %vm2331_vm14, %v14430_v11 }
 0x2dd   :  { %4722 = vmatpush1.bf16.msra.mxu1 %v14431_v35  ;;  %2854 = vmatprep.mubr.bf16.mxu1 %v14283_v49 }
 0x2de   :  { %6914 = vmatprep.subr.msk.bf16.mxu1 %vm9190_vm7, %v14432_v37 }
 0x2df   :  { %6750 = vmatmul.mubr.msk.bf16.gmra.mrb[160].mxu0 %vm2331_vm14, %v14434_v21 }
 0x2e0   :  { %2731 = vmatprep.mubr.bf16.mxu0 %v14283_v49 }
 0x2e1   :  { %6917 = vmatpush1.bf16.msk.msra.mxu1 %vm9196_vm10, %v14435_v1 }
 0x2e2   :  { %6920 = vmatprep.subr.msk.bf16.mxu1 %vm9190_vm7, %v14437_v5 }
 0x2e4   :  { %6760 = vmatmul.mubr.msk.bf16.gmra.mrb[168].mxu1 %vm2331_vm14, %v14438_v61 }
 0x2e5   :  { %6923 = vmatpush1.bf16.msk.msra.mxu1 %vm9196_vm10, %v14439_v30  ;;  %2864 = vmatprep.mubr.bf16.mxu1 %v14283_v49 }
 0x2e7   :  { %6751 = vmatmul.mubr.msk.bf16.gmra.mrb[164].mxu0 %vm2331_vm14, %v14440_v31 }
 0x2e8   :  { %2741 = vmatprep.mubr.bf16.mxu0 %v14283_v49 }
 0x2ec   :  { %6761 = vmatmul.mubr.msk.bf16.gmra.mrb[172].mxu1 %vm2331_vm14, %v14441_v27 }
 0x2ed   :  { %2874 = vmatprep.mubr.bf16.mxu1 %v14283_v49 }
 0x2ef   :  { %6752 = vmatmul.mubr.msk.bf16.gmra.mrb[168].mxu0 %vm2331_vm14, %v14442_v8 }
 0x2f0   :  { %2751 = vmatprep.mubr.bf16.mxu0 %v14283_v49 }
 0x2f4   :  { %6762 = vmatmul.mubr.msk.bf16.gmra.mrb[176].mxu1 %vm2331_vm14, %v14381_v55 }
 0x2f5   :  { %2884 = vmatprep.mubr.bf16.mxu1 %v14283_v49 }
 0x2f7   :  { %6753 = vmatmul.mubr.msk.bf16.gmra.mrb[172].mxu0 %vm2331_vm14, %v9264_v24 }
 0x2f8   :  { %2761 = vmatprep.mubr.bf16.mxu0 %v14283_v49 }
 0x2fc   :  { %6763 = vmatmul.mubr.msk.bf16.gmra.mrb[180].mxu1 %vm2331_vm14, %v14390_v32 }
 0x2fd   :  { %2894 = vmatprep.mubr.bf16.mxu1 %v14283_v49 }
 0x2ff   :  { %6754 = vmatmul.mubr.msk.bf16.gmra.mrb[176].mxu0 %vm2331_vm14, %v9329_v15 }
 0x300   :  { %2771 = vmatprep.mubr.bf16.mxu0 %v14283_v49 }
 0x304   :  { %6764 = vmatmul.mubr.msk.bf16.gmra.mrb[184].mxu1 %vm2331_vm14, %v14409_v3 }
 0x305   :  { %2904 = vmatprep.mubr.bf16.mxu1 %v14283_v49 }
 0x307   :  { %6755 = vmatmul.mubr.msk.bf16.gmra.mrb[180].mxu0 %vm2331_vm14, %v9382_v4 }
 0x308   :  { %2781 = vmatprep.mubr.bf16.mxu0 %v14283_v49 }
 0x30c   :  { %6765 = vmatmul.mubr.msk.bf16.gmra.mrb[188].mxu1 %vm2331_vm14, %v9038_v39 }
 0x30d   :  { %2914 = vmatprep.mubr.bf16.mxu1 %v14283_v49 }
 0x30f   :  { %6756 = vmatmul.mubr.msk.bf16.gmra.mrb[184].mxu0 %vm2331_vm14, %v9461_v53 }
 0x310   :  { %2791 = vmatprep.mubr.bf16.mxu0 %v14283_v49 }
 0x314   :  { %6766 = vmatmul.mubr.msk.bf16.gmra.mrb[192].mxu1 %vm2331_vm14, %v9103_v20 }
 0x315   :  { %2924 = vmatprep.mubr.bf16.mxu1 %v14283_v49 }
 0x317   :  { %6757 = vmatmul.mubr.msk.bf16.gmra.mrb[188].mxu0 %vm2331_vm14, %v9515_v47 }
 0x318   :  { %2801 = vmatprep.mubr.bf16.mxu0 %v14283_v49 }
 0x31c   :  { %6767 = vmatmul.mubr.msk.bf16.gmra.mrb[196].mxu1 %vm2331_vm14, %v14429_v0 }
 0x31d   :  { %2934 = vmatprep.mubr.bf16.mxu1 %v14283_v49 }
 0x31f   :  { %v2420_v39 = vpop.f32.mrb[92].mxu1  ;;  %6758 = vmatmul.mubr.msk.bf16.gmra.mrb[192].mxu0 %vm2331_vm14, %v9555_v57 }
 0x320   :  { %3265 = vrot.lane.b32.xlu0 %v2420_v39, %s7162_s2  ;;  %v2422_v55 = vpop.f32.mrb[93].mxu1  ;;  %4540 = vmatprep.mubr.bf16.mxu0 %v14283_v49 }
 0x321   :  { %v2424_v20 = vpop.f32.mrb[94].mxu1 }
 0x322   :  { %3267 = vrot.lane.b32.xlu1 %v2424_v20, %s7162_s2  ;;  %v2426_v32 = vpop.f32.mrb[95].mxu1 }
 0x324   :  { %3273 = vrot.lane.b32.xlu0 %v2422_v55, %s7162_s2  ;;  %6768 = vmatmul.mubr.msk.bf16.gmra.mrb[200].mxu1 %vm2331_vm14, %v14434_v21 }
 0x325   :  { %2944 = vmatprep.mubr.bf16.mxu1 %v14283_v49 }
 0x326   :  { %3275 = vrot.lane.b32.xlu1 %v2426_v32, %s7162_s2 }
 0x327   :  { %v2430_v3 = vpop.f32.mrb[96].mxu1 }
 0x328   :  { %3269 = vrot.lane.b32.xlu0 %v2430_v3, %s7162_s2  ;;  %v2432_v43 = vpop.f32.mrb[97].mxu1 }
 0x329   :  { %v2434_v44 = vpop.f32.mrb[98].mxu1 }
 0x32a   :  { %3271 = vrot.lane.b32.xlu1 %v2434_v44, %s7162_s2  ;;  %v2436_v28 = vpop.f32.mrb[99].mxu1 }
 0x32c   :  { %3277 = vrot.lane.b32.xlu0 %v2432_v43, %s7162_s2  ;;  %6769 = vmatmul.mubr.msk.bf16.gmra.mrb[204].mxu1 %vm2331_vm14, %v14440_v31 }
 0x32d   :  { %2954 = vmatprep.mubr.bf16.mxu1 %v14283_v49 }
 0x32e   :  { %3279 = vrot.lane.b32.xlu1 %v2436_v28, %s7162_s2 }
 0x32f   :  { %v2440_v25 = vpop.f32.mrb[100].mxu1 }
 0x330   :  { %3361 = vrot.lane.b32.xlu0 %v2440_v25, %s7165_s28  ;;  %v2442_v19 = vpop.f32.mrb[101].mxu1 }
 0x331   :  { %v2444_v14 = vpop.f32.mrb[102].mxu1 }
 0x332   :  { %3363 = vrot.lane.b32.xlu1 %v2444_v14, %s7165_s28  ;;  %v2446_v17 = vpop.f32.mrb[103].mxu1 }
 0x334   :  { %3369 = vrot.lane.b32.xlu0 %v2442_v19, %s7165_s28  ;;  %6770 = vmatmul.mubr.msk.bf16.gmra.mrb[208].mxu1 %vm2331_vm14, %v14442_v8 }
 0x335   :  { %2964 = vmatprep.mubr.bf16.mxu1 %v14283_v49 }
 0x336   :  { %3371 = vrot.lane.b32.xlu1 %v2446_v17, %s7165_s28 }
 0x337   :  { %v2450_v45 = vpop.f32.mrb[104].mxu1 }
 0x338   :  { %3365 = vrot.lane.b32.xlu0 %v2450_v45, %s7165_s28  ;;  %v2452_v2 = vpop.f32.mrb[105].mxu1 }
 0x339   :  { %v2454_v56 = vpop.f32.mrb[106].mxu1 }
 0x33a   :  { %3367 = vrot.lane.b32.xlu1 %v2454_v56, %s7165_s28  ;;  %v2456_v58 = vpop.f32.mrb[107].mxu1 }
 0x33c   :  { %3373 = vrot.lane.b32.xlu0 %v2452_v2, %s7165_s28  ;;  %6771 = vmatmul.mubr.msk.bf16.gmra.mrb[212].mxu1 %vm2331_vm14, %v9264_v24 }
 0x33d   :  { %2974 = vmatprep.mubr.bf16.mxu1 %v14283_v49 }
 0x33e   :  { %3375 = vrot.lane.b32.xlu1 %v2456_v58, %s7165_s28 }
 0x33f   :  { %v2460_v41 = vpop.f32.mrb[108].mxu1 }
 0x340   :  { %3481 = vrot.lane.b32.xlu0 %v2460_v41, %s7167_s30  ;;  %v2462_v6 = vpop.f32.mrb[109].mxu1 }
 0x341   :  { %v2464_v9 = vpop.f32.mrb[110].mxu1 }
 0x342   :  { %3483 = vrot.lane.b32.xlu1 %v2464_v9, %s7167_s30  ;;  %v2466_v60 = vpop.f32.mrb[111].mxu1 }
 0x344   :  { %3489 = vrot.lane.b32.xlu0 %v2462_v6, %s7167_s30  ;;  %6772 = vmatmul.mubr.msk.bf16.gmra.mrb[216].mxu1 %vm2331_vm14, %v9329_v15 }
 0x345   :  { %2984 = vmatprep.mubr.bf16.mxu1 %v14283_v49 }
 0x346   :  { %3491 = vrot.lane.b32.xlu1 %v2466_v60, %s7167_s30 }
 0x347   :  { %v2470_v24 = vpop.f32.mrb[112].mxu1 }
 0x348   :  { %3485 = vrot.lane.b32.xlu0 %v2470_v24, %s7167_s30  ;;  %v2472_v33 = vpop.f32.mrb[113].mxu1 }
 0x349   :  { %v2474_v54 = vpop.f32.mrb[114].mxu1 }
 0x34a   :  { %3487 = vrot.lane.b32.xlu1 %v2474_v54, %s7167_s30  ;;  %v2476_v16 = vpop.f32.mrb[115].mxu1 }
 0x34c   :  { %3493 = vrot.lane.b32.xlu0 %v2472_v33, %s7167_s30  ;;  %6773 = vmatmul.mubr.msk.bf16.gmra.mrb[220].mxu1 %vm2331_vm14, %v9382_v4 }
 0x34d   :  { %2994 = vmatprep.mubr.bf16.mxu1 %v14283_v49 }
 0x34e   :  { %3495 = vrot.lane.b32.xlu1 %v2476_v16, %s7167_s30 }
 0x34f   :  { %v2480_v15 = vpop.f32.mrb[116].mxu1 }
 0x350   :  { %3601 = vrot.lane.b32.xlu0 %v2480_v15, %s7168_s8  ;;  %v2482_v23 = vpop.f32.mrb[117].mxu1 }
 0x351   :  { %v2484_v63 = vpop.f32.mrb[118].mxu1 }
 0x352   :  { %3603 = vrot.lane.b32.xlu1 %v2484_v63, %s7168_s8  ;;  %v2486_v36 = vpop.f32.mrb[119].mxu1 }
 0x354   :  { %3609 = vrot.lane.b32.xlu0 %v2482_v23, %s7168_s8  ;;  %6774 = vmatmul.mubr.msk.bf16.gmra.mrb[224].mxu1 %vm2331_vm14, %v9461_v53 }
 0x355   :  { %3004 = vmatprep.mubr.bf16.mxu1 %v14283_v49 }
 0x356   :  { %3611 = vrot.lane.b32.xlu1 %v2486_v36, %s7168_s8 }
 0x357   :  { %v2490_v4 = vpop.f32.mrb[120].mxu1 }
 0x358   :  { %3605 = vrot.lane.b32.xlu0 %v2490_v4, %s7168_s8  ;;  %v2492_v59 = vpop.f32.mrb[121].mxu1 }
 0x359   :  { %v2494_v48 = vpop.f32.mrb[122].mxu1 }
 0x35a   :  { %3607 = vrot.lane.b32.xlu1 %v2494_v48, %s7168_s8  ;;  %v2496_v62 = vpop.f32.mrb[123].mxu1 }
 0x35c   :  { %3613 = vrot.lane.b32.xlu0 %v2492_v59, %s7168_s8  ;;  %6775 = vmatmul.mubr.msk.bf16.gmra.mrb[228].mxu1 %vm2331_vm14, %v9515_v47 }
 0x35d   :  { %3014 = vmatprep.mubr.bf16.mxu1 %v14283_v49 }
 0x35e   :  { %3615 = vrot.lane.b32.xlu1 %v2496_v62, %s7168_s8 }
 0x35f   :  { %v9700_v53 = vpop.f32.mrb[124].mxu1 }
 0x360   :  { %14443 = vst [vmem:[#allocation19_spill] sm:$0xff] %v9700_v53  ;;  %v9702_v46 = vpop.f32.mrb[125].mxu1 }
 0x361   :  { %14444 = vst [vmem:[#allocation77_spill] sm:$0xff] %v9702_v46  ;;  %v9704_v38 = vpop.f32.mrb[126].mxu1 }
 0x362   :  { %14445 = vst [vmem:[#allocation78_spill] sm:$0xff] %v9704_v38  ;;  %v9706_v12 = vpop.f32.mrb[127].mxu1 }
 0x363   :  { %14446 = vst [vmem:[#allocation86_spill] sm:$0xff] %v9706_v12 }
 0x364   :  { %6776 = vmatmul.mubr.msk.bf16.gmra.mrb[232].mxu1 %vm2331_vm14, %v9555_v57  ;;  %vm4453_vm14 = vcmask 654336  }
 0x365   :  { %4753 = vmatprep.mubr.bf16.mxu1 %v14283_v49 }
 0x367   :  { %v9711_v29 = vpop.f32.mrb[128].mxu1 }
 0x368   :  { %14447 = vst [vmem:[#allocation88_spill] sm:$0xff] %v9711_v29  ;;  %v9713_v47 = vpop.f32.mrb[129].mxu1 }
 0x369   :  { %14448 = vst [vmem:[#allocation39_spill] sm:$0xff] %v9713_v47  ;;  %v9715_v40 = vpop.f32.mrb[130].mxu1 }
 0x36a   :  { %14449 = vst [vmem:[#allocation43_spill] sm:$0xff] %v9715_v40  ;;  %v9717_v18 = vpop.f32.mrb[131].mxu1  ;;  %v2633_v0 = vpop.f32.mrb[124].mxu0 }
 0x36b   :  { %14450 = vst [vmem:[#allocation90_spill] sm:$0xff] %v9717_v18  ;;  %v2635_v11 = vpop.f32.mrb[125].mxu0  ;;  %3281 = vrot.lane.b32.xlu0 %v2633_v0, %s7162_s2 }
 0x36c   :  { %v2637_v21 = vpop.f32.mrb[126].mxu0 }
 0x36d   :  { %3283 = vrot.lane.b32.xlu1 %v2637_v21, %s7162_s2  ;;  %v2639_v61 = vpop.f32.mrb[127].mxu0 }
 0x36f   :  { %v2520_v31 = vpop.f32.mrb[132].mxu1  ;;  %3289 = vrot.lane.b32.xlu0 %v2635_v11, %s7162_s2 }
 0x370   :  { %v2522_v57 = vpop.f32.mrb[133].mxu1 }
 0x371   :  { %v2524_v27 = vpop.f32.mrb[134].mxu1  ;;  %3291 = vrot.lane.b32.xlu1 %v2639_v61, %s7162_s2 }
 0x372   :  { %v2526_v8 = vpop.f32.mrb[135].mxu1  ;;  %v2643_v39 = vpop.f32.mrb[128].mxu0 }
 0x373   :  { %v2645_v55 = vpop.f32.mrb[129].mxu0  ;;  %3285 = vrot.lane.b32.xlu0 %v2643_v39, %s7162_s2 }
 0x374   :  { %v2647_v20 = vpop.f32.mrb[130].mxu0 }
 0x375   :  { %3287 = vrot.lane.b32.xlu1 %v2647_v20, %s7162_s2  ;;  %v2649_v32 = vpop.f32.mrb[131].mxu0 }
 0x377   :  { %v2530_v3 = vpop.f32.mrb[136].mxu1  ;;  %3293 = vrot.lane.b32.xlu0 %v2645_v55, %s7162_s2 }
 0x378   :  { %v2532_v43 = vpop.f32.mrb[137].mxu1 }
 0x379   :  { %v2534_v44 = vpop.f32.mrb[138].mxu1  ;;  %3295 = vrot.lane.b32.xlu1 %v2649_v32, %s7162_s2 }
 0x37a   :  { %v2536_v28 = vpop.f32.mrb[139].mxu1  ;;  %v2653_v25 = vpop.f32.mrb[132].mxu0 }
 0x37b   :  { %3769 = vrot.lane.b32.xlu0 %v2520_v31, %s7169_s9  ;;  %v2655_v19 = vpop.f32.mrb[133].mxu0 }
 0x37c   :  { %v2657_v14 = vpop.f32.mrb[134].mxu0 }
 0x37d   :  { %3771 = vrot.lane.b32.xlu1 %v2524_v27, %s7169_s9  ;;  %v2659_v17 = vpop.f32.mrb[135].mxu0 }
 0x37f   :  { %v2540_v45 = vpop.f32.mrb[140].mxu1  ;;  %3377 = vrot.lane.b32.xlu0 %v2653_v25, %s7165_s28 }
 0x380   :  { %v2542_v2 = vpop.f32.mrb[141].mxu1 }
 0x381   :  { %v2544_v56 = vpop.f32.mrb[142].mxu1  ;;  %3379 = vrot.lane.b32.xlu1 %v2657_v14, %s7165_s28 }
 0x382   :  { %v2546_v58 = vpop.f32.mrb[143].mxu1  ;;  %v2663_v41 = vpop.f32.mrb[136].mxu0 }
 0x383   :  { %3777 = vrot.lane.b32.xlu0 %v2522_v57, %s7169_s9  ;;  %v9732_v6 = vpop.f32.mrb[137].mxu0 }
 0x384   :  { %v2667_v9 = vpop.f32.mrb[138].mxu0 }
 0x385   :  { %3779 = vrot.lane.b32.xlu1 %v2526_v8, %s7169_s9  ;;  %v9735_v60 = vpop.f32.mrb[139].mxu0 }
 0x387   :  { %v2550_v24 = vpop.f32.mrb[144].mxu1  ;;  %3385 = vrot.lane.b32.xlu0 %v2655_v19, %s7165_s28 }
 0x388   :  { %v9738_v33 = vpop.f32.mrb[145].mxu1 }
 0x389   :  { %v2554_v54 = vpop.f32.mrb[146].mxu1  ;;  %3387 = vrot.lane.b32.xlu1 %v2659_v17, %s7165_s28 }
 0x38a   :  { %v9741_v16 = vpop.f32.mrb[147].mxu1  ;;  %v2673_v15 = vpop.f32.mrb[140].mxu0 }
 0x38b   :  { %3773 = vrot.lane.b32.xlu0 %v2530_v3, %s7169_s9  ;;  %v2675_v23 = vpop.f32.mrb[141].mxu0 }
 0x38c   :  { %v2677_v63 = vpop.f32.mrb[142].mxu0 }
 0x38d   :  { %3775 = vrot.lane.b32.xlu1 %v2534_v44, %s7169_s9  ;;  %v2679_v36 = vpop.f32.mrb[143].mxu0 }
 0x38f   :  { %v9745_v4 = vpop.f32.mrb[148].mxu1  ;;  %3381 = vrot.lane.b32.xlu0 %v2663_v41, %s7165_s28 }
 0x390   :  { %v9748_v59 = vpop.f32.mrb[149].mxu1 }
 0x391   :  { %v9750_v48 = vpop.f32.mrb[150].mxu1  ;;  %3383 = vrot.lane.b32.xlu1 %v2667_v9, %s7165_s28 }
 0x392   :  { %v9753_v62 = vpop.permute.xlu0 %3265  ;;  %v9755_v0 = vpop.f32.mrb[151].mxu1 }
 0x393   :  { %14451 = vst [vmem:[#allocation47_spill] sm:$0xff] %v9753_v62  ;;  %v9757_v11 = vpop.f32.mrb[144].mxu0  ;;  %3781 = vrot.lane.b32.xlu0 %v2532_v43, %s7169_s9 }
 0x394   :  { %v9760_v21 = vpop.permute.xlu1 %3267  ;;  %v9762_v61 = vpop.f32.mrb[145].mxu0 }
 0x395   :  { %14452 = vst [vmem:[#allocation91_spill] sm:$0xff] %v9760_v21  ;;  %v9764_v31 = vpop.f32.mrb[146].mxu0  ;;  %3783 = vrot.lane.b32.xlu1 %v2536_v28, %s7169_s9 }
 0x396   :  { %v9767_v57 = vpop.permute.xlu0 %3273  ;;  %v9769_v27 = vpop.f32.mrb[147].mxu0 }
 0x397   :  { %14453 = vst [vmem:[#allocation96_spill] sm:$0xff] %v9767_v57  ;;  %v9771_v8 = vpop.f32.mrb[152].mxu1  ;;  %3889 = vrot.lane.b32.xlu0 %v2540_v45, %s7163_s26 }
 0x398   :  { %v9774_v39 = vpop.permute.xlu1 %3275  ;;  %v9776_v55 = vpop.f32.mrb[153].mxu1 }
 0x399   :  { %14454 = vst [vmem:[#allocation98_spill] sm:$0xff] %v9774_v39  ;;  %v9778_v20 = vpop.f32.mrb[154].mxu1  ;;  %3891 = vrot.lane.b32.xlu1 %v2544_v56, %s7163_s26 }
 0x39a   :  { %v9781_v32 = vpop.permute.xlu0 %3269  ;;  %v9783_v3 = vpop.f32.mrb[155].mxu1 }
 0x39b   :  { %14455 = vst [vmem:[#allocation92_spill] sm:$0xff] %v9781_v32  ;;  %v9785_v43 = vpop.f32.mrb[148].mxu0  ;;  %3497 = vrot.lane.b32.xlu0 %v2673_v15, %s7167_s30 }
 0x39c   :  { %v9788_v44 = vpop.permute.xlu1 %3271  ;;  %v9790_v28 = vpop.f32.mrb[149].mxu0 }
 0x39d   :  { %14456 = vst [vmem:[#allocation93_spill] sm:$0xff] %v9788_v44  ;;  %v9792_v25 = vpop.f32.mrb[150].mxu0  ;;  %3499 = vrot.lane.b32.xlu1 %v2677_v63, %s7167_s30 }
 0x39e   :  { %v9795_v19 = vpop.permute.xlu0 %3277  ;;  %v9797_v14 = vpop.f32.mrb[151].mxu0 }
 0x39f   :  { %14457 = vst [vmem:[#allocation106_spill] sm:$0xff] %v9795_v19  ;;  %v9799_v17 = vpop.f32.mrb[156].mxu1  ;;  %3897 = vrot.lane.b32.xlu0 %v2542_v2, %s7163_s26 }
 0x3a0   :  { %v9802_v45 = vpop.permute.xlu1 %3279  ;;  %v9804_v56 = vpop.f32.mrb[157].mxu1 }
 0x3a1   :  { %14458 = vst [vmem:[#allocation108_spill] sm:$0xff] %v9802_v45  ;;  %v9806_v41 = vpop.f32.mrb[158].mxu1  ;;  %3899 = vrot.lane.b32.xlu1 %v2546_v58, %s7163_s26 }
 0x3a2   :  { %v9809_v9 = vpop.permute.xlu0 %3361  ;;  %v9811_v15 = vpop.f32.mrb[159].mxu1 }
 0x3a3   :  { %v9813_v63 = vpop.f32.mrb[152].mxu0  ;;  %3505 = vrot.lane.b32.xlu0 %v2675_v23, %s7167_s30 }
 0x3a4   :  { %v9816_v30 = vpop.permute.xlu1 %3363  ;;  %v9818_v5 = vpop.f32.mrb[153].mxu0 }
 0x3a5   :  { %14459 = vst [vmem:[#allocation102_spill] sm:$0xff] %v9816_v30  ;;  %v9820_v2 = vpop.f32.mrb[154].mxu0  ;;  %3507 = vrot.lane.b32.xlu1 %v2679_v36, %s7167_s30 }
 0x3a6   :  { %v9823_v1 = vpop.permute.xlu0 %3369  ;;  %v9825_v37 = vpop.f32.mrb[155].mxu0 }
 0x3a7   :  { %14460 = vst [vmem:[#allocation103_spill] sm:$0xff] %v9823_v1  ;;  %v2590_v58 = vpop.f32.mrb[160].mxu1  ;;  %3893 = vrot.lane.b32.xlu0 %v2550_v24, %s7163_s26 }
 0x3a8   :  { %v9828_v35 = vpop.permute.xlu1 %3371  ;;  %v9830_v51 = vpop.f32.mrb[161].mxu1 }
 0x3a9   :  { %14461 = vst [vmem:[#allocation118_spill] sm:$0xff] %v9828_v35  ;;  %v2594_v23 = vpop.f32.mrb[162].mxu1  ;;  %3895 = vrot.lane.b32.xlu1 %v2554_v54, %s7163_s26 }
 0x3aa   :  { %v9833_v50 = vpop.permute.xlu0 %3365  ;;  %v9835_v26 = vpop.f32.mrb[163].mxu1 }
 0x3ab   :  { %14462 = vst [vmem:[#allocation116_spill] sm:$0xff] %v9833_v50  ;;  %v9837_v7 = vpop.f32.mrb[156].mxu0  ;;  %3901 = vrot.lane.b32.xlu0 %v9738_v33, %s7163_s26 }
 0x3ac   :  { %14463 = vst [vmem:[#allocation60_spill] sm:$0xff] %v9837_v7  ;;  %v9841_v36 = vpop.permute.xlu1 %3367  ;;  %v9843_v52 = vpop.f32.mrb[157].mxu0 }
 0x3ad   :  { %14464 = vst [vmem:[#allocation120_spill] sm:$0xff] %v9841_v36  ;;  %14465 = vst [vmem:[#allocation117_spill] sm:$0xff] %v9843_v52  ;;  %v9845_v24 = vpop.f32.mrb[158].mxu0  ;;  %3903 = vrot.lane.b32.xlu1 %v9741_v16, %s7163_s26 }
 0x3ae   :  { %14466 = vst [vmem:[#allocation61_spill] sm:$0xff] %v9845_v24  ;;  %v9849_v34 = vpop.permute.xlu0 %3373  ;;  %v9851_v54 = vpop.f32.mrb[159].mxu0 }
 0x3af   :  { %14467 = vst [vmem:[#allocation94_spill] sm:$0xff] %v9849_v34  ;;  %14468 = vst [vmem:[#allocation32_spill] sm:$0xff] %v9851_v54  ;;  %v9853_v10 = vpop.f32.mrb[164].mxu1  ;;  %4009 = vrot.lane.b32.xlu0 %v9745_v4, %s7164_s27 }
 0x3b0   :  { %v9857_v7 = vpop.permute.xlu1 %3375  ;;  %v9859_v33 = vpop.f32.mrb[165].mxu1 }
 0x3b1   :  { %14469 = vst [vmem:[#allocation130_spill] sm:$0xff] %v9857_v7  ;;  %v9861_v49 = vpop.f32.mrb[166].mxu1  ;;  %4011 = vrot.lane.b32.xlu1 %v9750_v48, %s7164_s27 }
 0x3b2   :  { %v9865_v52 = vpop.permute.xlu0 %3481  ;;  %v9867_v16 = vpop.f32.mrb[167].mxu1 }
 0x3b3   :  { %14470 = vst [vmem:[#allocation87_spill] sm:$0xff] %v9865_v52  ;;  %v9869_v24 = vpop.f32.mrb[160].mxu0  ;;  %4017 = vrot.lane.b32.xlu0 %v9748_v59, %s7164_s27 }
 0x3b4   :  { %14471 = vst [vmem:[#allocation95_spill] sm:$0xff] %v9869_v24  ;;  %v9873_v54 = vpop.permute.xlu1 %3483  ;;  %v9875_v4 = vpop.f32.mrb[161].mxu0 }
 0x3b5   :  { %14472 = vst [vmem:[#allocation37_spill] sm:$0xff] %v9873_v54  ;;  %14473 = vst [vmem:[#allocation131_spill] sm:$0xff] %v9875_v4  ;;  %v9877_v42 = vpop.f32.mrb[162].mxu0  ;;  %4019 = vrot.lane.b32.xlu1 %v9755_v0, %s7164_s27 }
 0x3b6   :  { %14474 = vst [vmem:[#allocation89_spill] sm:$0xff] %v9877_v42  ;;  %v9881_v22 = vpop.permute.xlu0 %3489  ;;  %v9883_v48 = vpop.f32.mrb[163].mxu0 }
 0x3b7   :  { %14475 = vst [vmem:[#allocation112_spill] sm:$0xff] %v9881_v22  ;;  %14476 = vst [vmem:[#allocation140_spill] sm:$0xff] %v9883_v48  ;;  %v9885_v40 = vpop.f32.mrb[168].mxu1  ;;  %4013 = vrot.lane.b32.xlu0 %v9771_v8, %s7164_s27 }
 0x3b8   :  { %v9889_v24 = vpop.permute.xlu1 %3491  ;;  %v9891_v59 = vpop.f32.mrb[169].mxu1 }
 0x3b9   :  { %14477 = vst [vmem:[#allocation107_spill] sm:$0xff] %v9889_v24  ;;  %v9893_v29 = vpop.f32.mrb[170].mxu1  ;;  %4015 = vrot.lane.b32.xlu1 %v9778_v20, %s7164_s27 }
 0x3ba   :  { %v9897_v4 = vpop.f32.mrb[171].mxu1  ;;  %v2733_v0 = vpop.f32.mrb[164].mxu0 }
 0x3bb   :  { %v9899_v42 = vpop.permute.xlu0 %3485  ;;  %4021 = vrot.lane.b32.xlu0 %v9776_v55, %s7164_s27  ;;  %v9903_v48 = vpop.f32.mrb[165].mxu0 }
 0x3bc   :  { %14478 = vst [vmem:[#allocation114_spill] sm:$0xff] %v9899_v42  ;;  %v2737_v8 = vpop.f32.mrb[166].mxu0  ;;  %v9905_v38 = vpop.permute.xlu1 %3487 }
 0x3bd   :  { %14479 = vst [vmem:[#allocation141_spill] sm:$0xff] %v9905_v38  ;;  %4023 = vrot.lane.b32.xlu1 %v9783_v3, %s7164_s27  ;;  %v9909_v53 = vpop.f32.mrb[167].mxu0 }
 0x3bf   :  { %v9911_v18 = vpop.f32.mrb[172].mxu1  ;;  %4129 = vrot.lane.b32.xlu0 %v9799_v17, %s7166_s29  ;;  %v9919_v55 = vpop.permute.xlu0 %3493 }
 0x3c0   :  { %v9915_v20 = vpop.f32.mrb[173].mxu1  ;;  %14480 = vst [vmem:[#allocation109_spill] sm:$0xff] %v9919_v55  ;;  %v9925_v3 = vpop.permute.xlu1 %3495 }
 0x3c1   :  { %v9917_v47 = vpop.f32.mrb[174].mxu1  ;;  %4131 = vrot.lane.b32.xlu1 %v9806_v41, %s7166_s29  ;;  %14481 = vst [vmem:[#allocation124_spill] sm:$0xff] %v9925_v3 }
 0x3c2   :  { %v9923_v12 = vpop.f32.mrb[175].mxu1  ;;  %v2743_v46 = vpop.f32.mrb[168].mxu0 }
 0x3c3   :  { %4137 = vrot.lane.b32.xlu0 %v9804_v56, %s7166_s29  ;;  %v9929_v38 = vpop.f32.mrb[169].mxu0  ;;  %v9937_v54 = vpop.permute.xlu0 %3601 }
 0x3c4   :  { %v2747_v17 = vpop.f32.mrb[170].mxu0  ;;  %14482 = vst [vmem:[#allocation125_spill] sm:$0xff] %v9937_v54  ;;  %v9944_v24 = vpop.permute.xlu1 %3603 }
 0x3c5   :  { %4139 = vrot.lane.b32.xlu1 %v9811_v15, %s7166_s29  ;;  %v9933_v42 = vpop.f32.mrb[171].mxu0  ;;  %14483 = vst [vmem:[#allocation73_spill] sm:$0xff] %v9944_v24 }
 0x3c7   :  { %v9935_v55 = vpop.f32.mrb[176].mxu1  ;;  %4133 = vrot.lane.b32.xlu0 %v2590_v58, %s7166_s29  ;;  %v9953_v54 = vpop.permute.xlu0 %3609 }
 0x3c8   :  { %v9940_v41 = vpop.f32.mrb[177].mxu1  ;;  %14484 = vst [vmem:[#allocation126_spill] sm:$0xff] %v9953_v54  ;;  %v9961_v24 = vpop.permute.xlu1 %3611 }
 0x3c9   :  { %v9942_v3 = vpop.f32.mrb[178].mxu1  ;;  %4135 = vrot.lane.b32.xlu1 %v2594_v23, %s7166_s29  ;;  %14485 = vst [vmem:[#allocation127_spill] sm:$0xff] %v9961_v24 }
 0x3ca   :  { %v9947_v56 = vpop.f32.mrb[179].mxu1  ;;  %v2753_v44 = vpop.f32.mrb[172].mxu0 }
 0x3cb   :  { %4141 = vrot.lane.b32.xlu0 %v9830_v51, %s7166_s29  ;;  %v9951_v15 = vpop.f32.mrb[173].mxu0  ;;  %v9971_v21 = vpop.permute.xlu0 %3605 }
 0x3cc   :  { %v2757_v45 = vpop.f32.mrb[174].mxu0  ;;  %14486 = vst [vmem:[#allocation74_spill] sm:$0xff] %v9971_v21  ;;  %v9977_v24 = vpop.permute.xlu1 %3607 }
 0x3cd   :  { %4143 = vrot.lane.b32.xlu1 %v9835_v26, %s7166_s29  ;;  %v9957_v58 = vpop.f32.mrb[175].mxu0  ;;  %14487 = vst [vmem:[#allocation104_spill] sm:$0xff] %v9977_v24 }
 0x3cf   :  { %v9959_v32 = vpop.f32.mrb[180].mxu1  ;;  %3785 = vrot.lane.b32.xlu0 %v2733_v0, %s7169_s9  ;;  %v9990_v22 = vpop.permute.xlu0 %3613 }
 0x3d0   :  { %v9964_v23 = vpop.f32.mrb[181].mxu1  ;;  %14490 = vst [vmem:[#allocation49_spill] sm:$0xff] %v9990_v22  ;;  %v9995_v36 = vpop.permute.xlu1 %3615 }
 0x3d1   :  { %v9966_v19 = vpop.f32.mrb[182].mxu1  ;;  %3787 = vrot.lane.b32.xlu1 %v2737_v8, %s7169_s9  ;;  %14491 = vst [vmem:[#allocation136_spill] sm:$0xff] %v9995_v36 }
 0x3d2   :  { %v9969_v51 = vpop.f32.mrb[183].mxu1  ;;  %v2763_v54 = vpop.f32.mrb[176].mxu0 }
 0x3d3   :  { %3305 = vrot.lane.b32.xlu0 %v9859_v33, %s7162_s2  ;;  %v9975_v26 = vpop.f32.mrb[177].mxu0 }
 0x3d4   :  { %v2767_v39 = vpop.f32.mrb[178].mxu0 }
 0x3d5   :  { %3307 = vrot.lane.b32.xlu1 %v9867_v16, %s7162_s2  ;;  %v9981_v0 = vpop.f32.mrb[179].mxu0 }
 0x3d7   :  { %v9983_v52 = vpop.f32.mrb[184].mxu1  ;;  %3789 = vrot.lane.b32.xlu0 %v2743_v46, %s7169_s9 }
 0x3d8   :  { %14488 = vst [vmem:[#allocation48_spill] sm:$0xff] %v9983_v52  ;;  %v9986_v8 = vpop.f32.mrb[185].mxu1 }
 0x3d9   :  { %v9988_v21 = vpop.f32.mrb[186].mxu1  ;;  %3791 = vrot.lane.b32.xlu1 %v2747_v17, %s7169_s9 }
 0x3da   :  { %14489 = vst [vmem:[#allocation105_spill] sm:$0xff] %v9988_v21  ;;  %v9993_v33 = vpop.f32.mrb[187].mxu1  ;;  %v2773_v24 = vpop.f32.mrb[180].mxu0 }
 0x3db   :  { %3309 = vrot.lane.b32.xlu0 %v9891_v59, %s7162_s2  ;;  %v9999_v16 = vpop.f32.mrb[181].mxu0 }
 0x3dc   :  { %v2777_v52 = vpop.f32.mrb[182].mxu0 }
 0x3dd   :  { %v10001_v46 = vpop.permute.xlu0 %3281  ;;  %3311 = vrot.lane.b32.xlu1 %v9897_v4, %s7162_s2  ;;  %v10005_v7 = vpop.f32.mrb[183].mxu0 }
 0x3de   :  { %14492 = vst [vmem:[#allocation97_spill] sm:$0xff] %v10001_v46 }
 0x3df   :  { %v10007_v22 = vpop.f32.mrb[188].mxu1  ;;  %v10009_v17 = vpop.permute.xlu1 %3283  ;;  %3905 = vrot.lane.b32.xlu0 %v2753_v44, %s7163_s26 }
 0x3e0   :  { %14493 = vst [vmem:[#allocation137_spill] sm:$0xff] %v10009_v17  ;;  %v10012_v36 = vpop.f32.mrb[189].mxu1 }
 0x3e1   :  { %v10014_v50 = vpop.f32.mrb[190].mxu1  ;;  %v10016_v59 = vpop.permute.xlu0 %3289  ;;  %3907 = vrot.lane.b32.xlu1 %v2757_v45, %s7163_s26 }
 0x3e2   :  { %14494 = vst [vmem:[#allocation99_spill] sm:$0xff] %v10016_v59  ;;  %v10019_v46 = vpop.f32.mrb[191].mxu1  ;;  %v2783_v34 = vpop.f32.mrb[184].mxu0 }
 0x3e3   :  { %v10021_v4 = vpop.permute.xlu1 %3291  ;;  %3401 = vrot.lane.b32.xlu0 %v9915_v20, %s7165_s28  ;;  %v10025_v30 = vpop.f32.mrb[185].mxu0 }
 0x3e4   :  { %14495 = vst [vmem:[#allocation21_spill] sm:$0xff] %v10021_v4  ;;  %v2787_v17 = vpop.f32.mrb[186].mxu0 }
 0x3e5   :  { %v10027_v44 = vpop.permute.xlu0 %3285  ;;  %3403 = vrot.lane.b32.xlu1 %v9923_v12, %s7165_s28  ;;  %v10031_v35 = vpop.f32.mrb[187].mxu0 }
 0x3e6   :  { %14496 = vst [vmem:[#allocation119_spill] sm:$0xff] %v10027_v44 }
 0x3e7   :  { %v10033_v59 = vpop.f32.mrb[192].mxu1  ;;  %v10035_v45 = vpop.permute.xlu1 %3287  ;;  %3909 = vrot.lane.b32.xlu0 %v2763_v54, %s7163_s26 }
 0x3e8   :  { %14497 = vst [vmem:[#allocation23_spill] sm:$0xff] %v10033_v59  ;;  %14498 = vst [vmem:[#allocation121_spill] sm:$0xff] %v10035_v45  ;;  %v2918_v4 = vpop.f32.mrb[193].mxu1 }
 0x3e9   :  { %v10038_v21 = vpop.f32.mrb[194].mxu1  ;;  %v10040_v20 = vpop.permute.xlu0 %3293  ;;  %3911 = vrot.lane.b32.xlu1 %v2767_v39, %s7163_s26 }
 0x3ea   :  { %14499 = vst [vmem:[#allocation25_spill] sm:$0xff] %v10038_v21  ;;  %14500 = vst [vmem:[#allocation28_spill] sm:$0xff] %v10040_v20  ;;  %v2922_v62 = vpop.f32.mrb[195].mxu1  ;;  %v2793_v44 = vpop.f32.mrb[188].mxu0 }
 0x3eb   :  { %v10043_v57 = vpop.permute.xlu1 %3295  ;;  %3405 = vrot.lane.b32.xlu0 %v9940_v41, %s7165_s28  ;;  %v10047_v12 = vpop.f32.mrb[189].mxu0 }
 0x3ec   :  { %14501 = vst [vmem:[#allocation122_spill] sm:$0xff] %v10043_v57  ;;  %v2797_v59 = vpop.f32.mrb[190].mxu0 }
 0x3ed   :  { %v10049_v45 = vpop.permute.xlu0 %3769  ;;  %3407 = vrot.lane.b32.xlu1 %v9947_v56, %s7165_s28  ;;  %v10053_v54 = vpop.f32.mrb[191].mxu0 }
 0x3ee   :  { %14502 = vst [vmem:[#allocation123_spill] sm:$0xff] %v10049_v45 }
 0x3ef   :  { %v10055_v20 = vpop.f32.mrb[196].mxu1  ;;  %v10057_v39 = vpop.permute.xlu1 %3771  ;;  %4025 = vrot.lane.b32.xlu0 %v2773_v24, %s7164_s27 }
 0x3f0   :  { %14503 = vst [vmem:[#allocation100_spill] sm:$0xff] %v10055_v20  ;;  %14504 = vst [vmem:[#allocation132_spill] sm:$0xff] %v10057_v39  ;;  %v10060_v57 = vpop.f32.mrb[197].mxu1 }
 0x3f1   :  { %14505 = vst [vmem:[#allocation101_spill] sm:$0xff] %v10060_v57  ;;  %v10062_v21 = vpop.f32.mrb[198].mxu1  ;;  %v10064_v41 = vpop.permute.xlu0 %3377  ;;  %4027 = vrot.lane.b32.xlu1 %v2777_v52, %s7164_s27 }
 0x3f2   :  { %14506 = vst [vmem:[#allocation133_spill] sm:$0xff] %v10062_v21  ;;  %14507 = vst [vmem:[#allocation128_spill] sm:$0xff] %v10064_v41  ;;  %v10067_v45 = vpop.f32.mrb[199].mxu1  ;;  %v2803_v13 = vpop.f32.mrb[192].mxu0 }
 0x3f3   :  { %14508 = vst [vmem:[#allocation142_spill] sm:$0xff] %v10067_v45  ;;  %v10069_v56 = vpop.permute.xlu1 %3379  ;;  %3521 = vrot.lane.b32.xlu0 %v9964_v23, %s7167_s30  ;;  %v10073_v20 = vpop.f32.mrb[193].mxu0 }
 0x3f4   :  { %14509 = vst [vmem:[#allocation129_spill] sm:$0xff] %v10069_v56  ;;  %v2807_v39 = vpop.f32.mrb[194].mxu0 }
 0x3f5   :  { %v10075_v24 = vpop.permute.xlu0 %3777  ;;  %3523 = vrot.lane.b32.xlu1 %v9969_v51, %s7167_s30  ;;  %v10079_v21 = vpop.f32.mrb[195].mxu0 }
 0x3f6   :  { %14510 = vst [vmem:[#allocation110_spill] sm:$0xff] %v10075_v24 }
 0x3f7   :  { %v10081_v57 = vpop.f32.mrb[200].mxu1  ;;  %v10083_v52 = vpop.permute.xlu1 %3779  ;;  %4029 = vrot.lane.b32.xlu0 %v2783_v34, %s7164_s27 }
 0x3f8   :  { %14511 = vst [vmem:[#allocation111_spill] sm:$0xff] %v10081_v57  ;;  %v10086_v45 = vpop.f32.mrb[201].mxu1 }
 0x3f9   :  { %14512 = vst [vmem:[#allocation22_spill] sm:$0xff] %v10086_v45  ;;  %v10088_v56 = vpop.f32.mrb[202].mxu1  ;;  %v10090_v23 = vpop.permute.xlu0 %3385  ;;  %4031 = vrot.lane.b32.xlu1 %v2787_v17, %s7164_s27 }
 0x3fa   :  { %14513 = vst [vmem:[#allocation24_spill] sm:$0xff] %v10088_v56  ;;  %14514 = vst [vmem:[#allocation30_spill] sm:$0xff] %v10090_v23  ;;  %v10093_v41 = vpop.f32.mrb[203].mxu1 }
 0x3fb   :  { %14515 = vst [vmem:[#allocation27_spill] sm:$0xff] %v10093_v41  ;;  %v10095_v24 = vpop.permute.xlu1 %3387  ;;  %3525 = vrot.lane.b32.xlu0 %v9986_v8, %s7167_s30 }
 0x3fc   :  { %14516 = vst [vmem:[#allocation31_spill] sm:$0xff] %v10095_v24 }
 0x3fd   :  { %v10099_v51 = vpop.permute.xlu0 %3773  ;;  %3527 = vrot.lane.b32.xlu1 %v9993_v33, %s7167_s30 }
 0x3fe   :  { %14517 = vst [vmem:[#allocation150_spill] sm:$0xff] %v10099_v51 }
 0x3ff   :  { %v10103_v34 = vpop.f32.mrb[204].mxu1  ;;  %v10105_v45 = vpop.permute.xlu1 %3775  ;;  %4145 = vrot.lane.b32.xlu0 %v2793_v44, %s7166_s29 }
 0x400   :  { %14518 = vst [vmem:[#allocation146_spill] sm:$0xff] %v10105_v45  ;;  %v10108_v56 = vpop.f32.mrb[205].mxu1 }
 0x401   :  { %v10110_v17 = vpop.f32.mrb[206].mxu1  ;;  %v10112_v41 = vpop.permute.xlu0 %3381  ;;  %4147 = vrot.lane.b32.xlu1 %v2797_v59, %s7166_s29 }
 0x402   :  { %14519 = vst [vmem:[#allocation151_spill] sm:$0xff] %v10112_v41  ;;  %v10115_v8 = vpop.f32.mrb[207].mxu1 }
 0x403   :  { %v10117_v57 = vpop.permute.xlu1 %3383  ;;  %3641 = vrot.lane.b32.xlu0 %v10012_v36, %s7168_s8 }
 0x404   :  { %14520 = vst [vmem:[#allocation147_spill] sm:$0xff] %v10117_v57 }
 0x405   :  { %v10121_v33 = vpop.permute.xlu0 %3781  ;;  %3643 = vrot.lane.b32.xlu1 %v10019_v46, %s7168_s8 }
 0x407   :  { %v10125_v44 = vpop.f32.mrb[208].mxu1  ;;  %v10127_v24 = vpop.permute.xlu1 %3783  ;;  %4149 = vrot.lane.b32.xlu0 %v2803_v13, %s7166_s29 }
 0x408   :  { %v10130_v23 = vpop.f32.mrb[209].mxu1 }
 0x409   :  { %14521 = vst [vmem:[#allocation54_spill] sm:$0xff] %v10130_v23  ;;  %v10132_v59 = vpop.f32.mrb[210].mxu1  ;;  %v10134_v41 = vpop.permute.xlu0 %3889  ;;  %4151 = vrot.lane.b32.xlu1 %v2807_v39, %s7166_s29 }
 0x40a   :  { %14522 = vst [vmem:[#allocation55_spill] sm:$0xff] %v10132_v59  ;;  %14523 = vst [vmem:[#allocation152_spill] sm:$0xff] %v10134_v41  ;;  %v10137_v36 = vpop.f32.mrb[211].mxu1  ;;  %v14593_v41 = vld [vmem:[#allocation93_spill] sm:$0xff] }
 0x40b   :  { %14524 = vst [vmem:[#allocation153_spill] sm:$0xff] %v10137_v36  ;;  %v10139_v57 = vpop.permute.xlu1 %3891  ;;  %3645 = vrot.lane.b32.xlu0 %v2918_v4, %s7168_s8 }
 0x40c   :  { %14525 = vst [vmem:[#allocation148_spill] sm:$0xff] %v10139_v57  ;;  %v14592_v57 = vld [vmem:[#allocation108_spill] sm:$0xff] }
 0x40d   :  { %v10142_v46 = vpop.permute.xlu0 %3497  ;;  %3647 = vrot.lane.b32.xlu1 %v2922_v62, %s7168_s8 }
 0x40e   :  { %14526 = vst [vmem:[#allocation59_spill] sm:$0xff] %v10142_v46 }
 0x40f   :  { %v10145_v45 = vpop.f32.mrb[212].mxu1  ;;  %v10147_v13 = vpop.permute.xlu1 %3499  ;;  %3389 = vrot.lane.b32.xlu0 %v9732_v6, %s7165_s28 }
 0x410   :  { %14527 = vst [vmem:[#allocation149_spill] sm:$0xff] %v10145_v45  ;;  %14528 = vst [vmem:[#allocation42_spill] sm:$0xff] %v10147_v13  ;;  %v10151_v23 = vpop.f32.mrb[213].mxu1  ;;  %v14598_v45 = vld [vmem:[#allocation114_spill] sm:$0xff] }
 0x411   :  { %14529 = vst [vmem:[#allocation50_spill] sm:$0xff] %v10151_v23  ;;  %v10153_v39 = vpop.f32.mrb[214].mxu1  ;;  %v10155_v36 = vpop.permute.xlu0 %3897  ;;  %3391 = vrot.lane.b32.xlu1 %v9735_v60, %s7165_s28 }
 0x412   :  { %14530 = vst [vmem:[#allocation81_spill] sm:$0xff] %v10153_v39  ;;  %v10159_v4 = vpop.f32.mrb[215].mxu1  ;;  %v14595_v39 = vld [vmem:[#allocation107_spill] sm:$0xff] }
 0x413   :  { %14531 = vst [vmem:[#allocation36_spill] sm:$0xff] %v10159_v4  ;;  %v10161_v46 = vpop.permute.xlu1 %3899  ;;  %3617 = vrot.lane.b32.xlu0 %v9785_v43, %s7168_s8 }
 0x415   :  { %v10165_v62 = vpop.permute.xlu0 %3505  ;;  %3619 = vrot.lane.b32.xlu1 %v9792_v25, %s7168_s8 }
 0x416   :  { %14532 = vst [vmem:[#allocation143_spill] sm:$0xff] %v10165_v62 }
 0x417   :  { %v10169_v6 = vpop.f32.mrb[216].mxu1  ;;  %v10171_v13 = vpop.permute.xlu1 %3507  ;;  %3625 = vrot.lane.b32.xlu0 %v9790_v28, %s7168_s8 }
 0x418   :  { %14533 = vst [vmem:[#allocation40_spill] sm:$0xff] %v10169_v6  ;;  %14534 = vst [vmem:[#allocation51_spill] sm:$0xff] %v10171_v13  ;;  %v10175_v60 = vpop.f32.mrb[217].mxu1 }
 0x419   :  { %14535 = vst [vmem:[#allocation66_spill] sm:$0xff] %v10175_v60  ;;  %v10177_v4 = vpop.f32.mrb[218].mxu1  ;;  %v10179_v23 = vpop.permute.xlu0 %3893  ;;  %3627 = vrot.lane.b32.xlu1 %v9797_v14, %s7168_s8 }
 0x41a   :  { %14536 = vst [vmem:[#allocation134_spill] sm:$0xff] %v10177_v4  ;;  %14537 = vst [vmem:[#allocation71_spill] sm:$0xff] %v10179_v23  ;;  %v10183_v43 = vpop.f32.mrb[219].mxu1  ;;  %v14590_v4 = vld [vmem:[#allocation106_spill] sm:$0xff] }
 0x41b   :  { %14538 = vst [vmem:[#allocation72_spill] sm:$0xff] %v10183_v43  ;;  %v10185_v62 = vpop.permute.xlu1 %3895  ;;  %3501 = vrot.lane.b32.xlu0 %v9757_v11, %s7167_s30 }
 0x41c   :  { %14539 = vst [vmem:[#allocation135_spill] sm:$0xff] %v10185_v62 }
 0x41d   :  { %v10189_v25 = vpop.permute.xlu0 %3901  ;;  %3503 = vrot.lane.b32.xlu1 %v9764_v31, %s7167_s30 }
 0x41f   :  { %v10193_v28 = vpop.f32.mrb[220].mxu1  ;;  %v10195_v13 = vpop.permute.xlu1 %3903  ;;  %3509 = vrot.lane.b32.xlu0 %v9762_v61, %s7167_s30 }
 0x420   :  { %14540 = vst [vmem:[#allocation75_spill] sm:$0xff] %v10193_v28  ;;  %14541 = vst [vmem:[#allocation76_spill] sm:$0xff] %v10195_v13  ;;  %v10199_v14 = vpop.f32.mrb[221].mxu1  ;;  %v14588_v28 = vld [vmem:[#allocation98_spill] sm:$0xff] }
 0x421   :  { %14542 = vst [vmem:[#allocation79_spill] sm:$0xff] %v10199_v14  ;;  %v10201_v43 = vpop.f32.mrb[222].mxu1  ;;  %v10203_v60 = vpop.permute.xlu0 %4009  ;;  %3511 = vrot.lane.b32.xlu1 %v9769_v27, %s7167_s30 }
 0x422   :  { %14543 = vst [vmem:[#allocation80_spill] sm:$0xff] %v10201_v43  ;;  %14544 = vst [vmem:[#allocation82_spill] sm:$0xff] %v10203_v60  ;;  %v10207_v11 = vpop.f32.mrb[223].mxu1  ;;  %v14585_v43 = vld [vmem:[#allocation120_spill] sm:$0xff]  ;;  %v14589_v60 = vld [vmem:[#allocation91_spill] sm:$0xff] }
 0x423   :  { %14545 = vst [vmem:[#allocation83_spill] sm:$0xff] %v10207_v11  ;;  %v10209_v62 = vpop.permute.xlu1 %4011  ;;  %3621 = vrot.lane.b32.xlu0 %v9813_v63, %s7168_s8 }
 0x424   :  { %14546 = vst [vmem:[#allocation144_spill] sm:$0xff] %v10209_v62  ;;  %v14587_v62 = vld [vmem:[#allocation87_spill] sm:$0xff] }
 0x425   :  { %v10213_v31 = vpop.permute.xlu0 %4017  ;;  %3623 = vrot.lane.b32.xlu1 %v9820_v2, %s7168_s8 }
 0x427   :  { %v10217_v61 = vpop.f32.mrb[224].mxu1  ;;  %v10219_v14 = vpop.permute.xlu1 %4019  ;;  %3629 = vrot.lane.b32.xlu0 %v9818_v5, %s7168_s8 }
 0x428   :  { %14547 = vst [vmem:[#allocation145_spill] sm:$0xff] %v10217_v61  ;;  %v10223_v27 = vpop.f32.mrb[225].mxu1  ;;  %v14583_v61 = vld [vmem:[#allocation116_spill] sm:$0xff] }
 0x429   :  { %14548 = vst [vmem:[#allocation138_spill] sm:$0xff] %v10223_v27  ;;  %v10225_v11 = vpop.f32.mrb[226].mxu1  ;;  %v10227_v23 = vpop.permute.xlu0 %4013  ;;  %3631 = vrot.lane.b32.xlu1 %v9825_v37, %s7168_s8 }
 0x42a   :  { %14549 = vst [vmem:[#allocation139_spill] sm:$0xff] %v10225_v11  ;;  %14550 = vst [vmem:[#allocation45_spill] sm:$0xff] %v10227_v23  ;;  %v10231_v63 = vpop.f32.mrb[227].mxu1  ;;  %v14582_v11 = vld [vmem:[#allocation94_spill] sm:$0xff] }
 0x42b   :  { %14551 = vst [vmem:[#allocation46_spill] sm:$0xff] %v10231_v63  ;;  %v10233_v51 = vpop.permute.xlu1 %4015  ;;  %3793 = vrot.lane.b32.xlu0 %v9903_v48, %s7169_s9 }
 0x42c   :  { %14552 = vst [vmem:[#allocation62_spill] sm:$0xff] %v10233_v51 }
 0x42d   :  { %v10237_v2 = vpop.permute.xlu0 %4021  ;;  %3795 = vrot.lane.b32.xlu1 %v9909_v53, %s7169_s9 }
 0x42e   :  { %14553 = vst [vmem:[#allocation69_spill] sm:$0xff] %v10237_v2  ;;  %v14600_v2 = vld [vmem:[#allocation141_spill] sm:$0xff] }
 0x42f   :  { %v10241_v5 = vpop.f32.mrb[228].mxu1  ;;  %v10243_v27 = vpop.permute.xlu1 %4023  ;;  %3913 = vrot.lane.b32.xlu0 %v9951_v15, %s7163_s26 }
 0x430   :  { %14554 = vst [vmem:[#allocation70_spill] sm:$0xff] %v10241_v5  ;;  %14555 = vst [vmem:[#allocation33_spill] sm:$0xff] %v10243_v27  ;;  %v10247_v37 = vpop.f32.mrb[229].mxu1  ;;  %v14599_v27 = vld [vmem:[#allocation124_spill] sm:$0xff] }
 0x431   :  { %14556 = vst [vmem:[#allocation34_spill] sm:$0xff] %v10247_v37  ;;  %v10249_v63 = vpop.f32.mrb[230].mxu1  ;;  %v10251_v51 = vpop.permute.xlu0 %4129  ;;  %3915 = vrot.lane.b32.xlu1 %v9957_v58, %s7163_s26 }
 0x432   :  { %14557 = vst [vmem:[#allocation57_spill] sm:$0xff] %v10249_v63  ;;  %14558 = vst [vmem:[#allocation58_spill] sm:$0xff] %v10251_v51  ;;  %v10255_v48 = vpop.f32.mrb[231].mxu1  ;;  %v14586_v51 = vld [vmem:[#allocation112_spill] sm:$0xff] }
 0x433   :  { %14559 = vst [vmem:[#allocation84_spill] sm:$0xff] %v10255_v48  ;;  %v10257_v23 = vpop.permute.xlu1 %4131  ;;  %3797 = vrot.lane.b32.xlu0 %v9929_v38, %s7169_s9 }
 0x434   :  { %14560 = vst [vmem:[#allocation85_spill] sm:$0xff] %v10257_v23  ;;  %v14584_v23 = vld [vmem:[#allocation130_spill] sm:$0xff] }
 0x435   :  { %v10261_v53 = vpop.permute.xlu0 %4137  ;;  %3799 = vrot.lane.b32.xlu1 %v9933_v42, %s7169_s9 }
 0x437   :  { %v10265_v15 = vpop.f32.mrb[232].mxu1  ;;  %v10267_v37 = vpop.permute.xlu1 %4139  ;;  %4033 = vrot.lane.b32.xlu0 %v9999_v16, %s7164_s27 }
 0x438   :  { %14561 = vst [vmem:[#allocation156_spill] sm:$0xff] %v10265_v15  ;;  %14562 = vst [vmem:[#allocation20_spill] sm:$0xff] %v10267_v37  ;;  %v10271_v58 = vpop.f32.mrb[233].mxu1 }
 0x439   :  { %14563 = vst [vmem:[#allocation56_spill] sm:$0xff] %v10271_v58  ;;  %v10273_v48 = vpop.f32.mrb[234].mxu1  ;;  %v10275_v63 = vpop.permute.xlu0 %4133  ;;  %4035 = vrot.lane.b32.xlu1 %v10005_v7, %s7164_s27 }
 0x43a   :  { %14564 = vst [vmem:[#allocation41_spill] sm:$0xff] %v10273_v48  ;;  %14565 = vst [vmem:[#allocation113_spill] sm:$0xff] %v10275_v63  ;;  %v10279_v38 = vpop.f32.mrb[235].mxu1  ;;  %v14578_v48 = vld [vmem:[#allocation47_spill] sm:$0xff]  ;;  %v14581_v63 = vld [vmem:[#allocation102_spill] sm:$0xff] }
 0x43b   :  { %14566 = vst [vmem:[#allocation44_spill] sm:$0xff] %v10279_v38  ;;  %v10281_v5 = vpop.permute.xlu1 %4135  ;;  %3917 = vrot.lane.b32.xlu0 %v9975_v26, %s7163_s26  ;;  %v14577_v38 = vld [vmem:[#allocation96_spill] sm:$0xff] }
 0x43c   :  { %14567 = vst [vmem:[#allocation35_spill] sm:$0xff] %v10281_v5  ;;  %v14579_v5 = vld [vmem:[#allocation105_spill] sm:$0xff] }
 0x43d   :  { %v10285_v42 = vpop.permute.xlu0 %4141  ;;  %3919 = vrot.lane.b32.xlu1 %v9981_v0, %s7163_s26 }
 0x43e   :  { %14568 = vst [vmem:[#allocation157_spill] sm:$0xff] %v10285_v42 }
 0x43f   :  { %v10289_v16 = vpop.permute.xlu1 %4143  ;;  %4153 = vrot.lane.b32.xlu0 %v10047_v12, %s7166_s29 }
 0x440   :  { %14569 = vst [vmem:[#allocation158_spill] sm:$0xff] %v10289_v16  ;;  %v14591_v16 = vld [vmem:[#allocation92_spill] sm:$0xff] }
 0x441   :  { %v10293_v58 = vpop.permute.xlu0 %3785  ;;  %4155 = vrot.lane.b32.xlu1 %v10053_v54, %s7166_s29 }
 0x443   :  { %v10297_v7 = vpop.permute.xlu1 %3787  ;;  %4037 = vrot.lane.b32.xlu0 %v10025_v30, %s7164_s27 }
 0x445   :  { %v10301_v26 = vpop.permute.xlu0 %3305  ;;  %4039 = vrot.lane.b32.xlu1 %v10031_v35, %s7164_s27 }
 0x446   :  { %14570 = vst [vmem:[#allocation159_spill] sm:$0xff] %v10301_v26 }
 0x447   :  { %v10305_v0 = vpop.permute.xlu1 %3307  ;;  %4157 = vrot.lane.b32.xlu0 %v10073_v20, %s7166_s29 }
 0x449   :  { %v10309_v12 = vpop.permute.xlu0 %3789  ;;  %3299 = vrot.lane.b32.xlu1 %v9861_v49, %s7162_s2 }
 0x44b   :  { %v10313_v54 = vpop.permute.xlu1 %3791  ;;  %3297 = vrot.lane.b32.xlu0 %v9853_v10, %s7162_s2 }
 0x44d   :  { %v10317_v30 = vpop.permute.xlu0 %3309  ;;  %3395 = vrot.lane.b32.xlu1 %v9917_v47, %s7165_s28 }
 0x44e   :  { %14571 = vst [vmem:[#allocation160_spill] sm:$0xff] %v10317_v30 }
 0x44f   :  { %v10321_v35 = vpop.permute.xlu1 %3311  ;;  %3393 = vrot.lane.b32.xlu0 %v9911_v18, %s7165_s28 }
 0x450   :  { %14572 = vst [vmem:[#allocation161_spill] sm:$0xff] %v10321_v35 }
 0x451   :  { %v10325_v20 = vpop.permute.xlu0 %3905  ;;  %3515 = vrot.lane.b32.xlu1 %v9966_v19, %s7167_s30 }
 0x453   :  { %v10329_v49 = vpop.permute.xlu1 %3907  ;;  %3513 = vrot.lane.b32.xlu0 %v9959_v32, %s7167_s30 }
 0x455   :  { %v10333_v10 = vpop.permute.xlu0 %3401  ;;  %3303 = vrot.lane.b32.xlu1 %v9893_v29, %s7162_s2 }
 0x457   :  { %v10337_v47 = vpop.permute.xlu1 %3403  ;;  %3301 = vrot.lane.b32.xlu0 %v9885_v40, %s7162_s2 }
 0x459   :  { %v10341_v18 = vpop.permute.xlu0 %3909  ;;  %3399 = vrot.lane.b32.xlu1 %v9942_v3, %s7165_s28  ;;  %v3425_v3 = vsel %vm1261_vm1, %v9809_v9, %v9823_v1  ;;  %v3427_v1 = vsel %vm1261_vm1, %v14583_v61, %v14582_v11  ;;  %v3331_v11 = vsel %vm1164_vm2, %v14591_v16, %v14590_v4 }
 0x45b   :  { %v10345_v19 = vpop.permute.xlu1 %3911  ;;  %3397 = vrot.lane.b32.xlu0 %v9935_v55, %s7165_s28  ;;  %v3329_v55 = vsel %vm1164_vm2, %v14578_v48, %v14577_v38  ;;  %v3428_v38 = vsel %vm1261_vm1, %v14585_v43, %v14584_v23  ;;  %v3332_v23 = vsel %vm1164_vm2, %v14593_v41, %v14592_v57  ;;  %v14597_v43 = vld [vmem:[#allocation109_spill] sm:$0xff] }
 0x45c   :  { %14573 = vst [vmem:[#allocation162_spill] sm:$0xff] %v10345_v19  ;;  %v3434_v6 = vadd.f32 %v3425_v3, %v3329_v55  ;;  %v3547_v4 = vsel %vm1382_vm3, %v14598_v45, %v14597_v43  ;;  %v3548_v3 = vsel %vm1382_vm3, %v14600_v2, %v14599_v27  ;;  %v14601_v55 = vld [vmem:[#allocation126_spill] sm:$0xff]  ;;  %v14602_v57 = vld [vmem:[#allocation125_spill] sm:$0xff]  ;;  %v3452_v61 = vadd.f32 %v3428_v38, %v3332_v23  ;;  %v14605_v43 = vld [vmem:[#allocation127_spill] sm:$0xff] }
 0x45d   :  { %v10349_v32 = vpop.permute.xlu0 %3405  ;;  %3635 = vrot.lane.b32.xlu1 %v10014_v50, %s7168_s8  ;;  %v14580_v50 = vld [vmem:[#allocation118_spill] sm:$0xff]  ;;  %v14604_v19 = vld [vmem:[#allocation25_spill] sm:$0xff] }
 0x45e   :  { %14574 = vst [vmem:[#allocation163_spill] sm:$0xff] %v10349_v32  ;;  %v3446_v32 = vadd.f32 %v3427_v1, %v3331_v11  ;;  %v14606_v45 = vld [vmem:[#allocation73_spill] sm:$0xff]  ;;  %v14608_v2 = vld [vmem:[#allocation74_spill] sm:$0xff]  ;;  %v3572_v11 = vadd.f32 %v3548_v3, %v3452_v61  ;;  %v3830_v61 = vsel %vm1672_vm9, %v10083_v52, %v10297_v7  ;;  %v14616_v3 = vld [vmem:[#allocation39_spill] sm:$0xff] }
 0x45f   :  { %v10353_v29 = vpop.permute.xlu1 %3407  ;;  %3633 = vrot.lane.b32.xlu0 %v10007_v22, %s7168_s8  ;;  %v3426_v22 = vsel %vm1261_vm1, %v14581_v63, %v14580_v50  ;;  %v3330_v50 = vsel %vm1164_vm2, %v14589_v60, %v14588_v28  ;;  %v3666_v37 = vsel %vm1503_vm5, %v14606_v45, %v14605_v43  ;;  %v14607_v27 = vld [vmem:[#allocation49_spill] sm:$0xff] }
 0x460   :  { %14575 = vst [vmem:[#allocation164_spill] sm:$0xff] %v10353_v29  ;;  %v14596_v29 = vld [vmem:[#allocation37_spill] sm:$0xff]  ;;  %v3440_v59 = vadd.f32 %v3426_v22, %v3330_v50  ;;  %v3667_v35 = vsel %vm1503_vm5, %v14608_v2, %v14607_v27  ;;  %v14610_v50 = vld [vmem:[#allocation104_spill] sm:$0xff]  ;;  %v14612_v22 = vld [vmem:[#allocation23_spill] sm:$0xff] }
 0x461   :  { %v10365_v15 = vpop.permute.xlu0 %4025  ;;  %3519 = vrot.lane.b32.xlu1 %v14579_v5, %s7167_s30  ;;  %v3545_v5 = vsel %vm1382_vm3, %v14587_v62, %v14586_v51  ;;  %v14594_v51 = vld [vmem:[#allocation48_spill] sm:$0xff]  ;;  %v3546_v28 = vsel %vm1382_vm3, %v14596_v29, %v14595_v39  ;;  %v14613_v27 = vld [vmem:[#allocation110_spill] sm:$0xff] }
 0x462   :  { %v3554_v13 = vadd.f32 %v3545_v5, %v3434_v6  ;;  %v3560_v23 = vadd.f32 %v3546_v28, %v3440_v59  ;;  %v3566_v6 = vadd.f32 %v3547_v4, %v3446_v32  ;;  %v3829_v59 = vsel %vm1672_vm9, %v14613_v27, %v10293_v58  ;;  %v14614_v4 = vld [vmem:[#allocation77_spill] sm:$0xff] }
 0x463   :  { %v10397_v42 = vpop.permute.xlu1 %4027  ;;  %3517 = vrot.lane.b32.xlu0 %v14594_v51, %s7167_s30  ;;  %v3665_v51 = vsel %vm1503_vm5, %v14602_v57, %v14601_v55  ;;  %v14609_v55 = vld [vmem:[#allocation136_spill] sm:$0xff] }
 0x464   :  { %v3668_v1 = vsel %vm1503_vm5, %v14610_v50, %v14609_v55  ;;  %v3674_v38 = vadd.f32 %v3665_v51, %v3554_v13  ;;  %v3680_v5 = vadd.f32 %v3666_v37, %v3560_v23  ;;  %v3686_v43 = vadd.f32 %v3667_v35, %v3566_v6  ;;  %v14615_v35 = vld [vmem:[#allocation86_spill] sm:$0xff] }
 0x465   :  { %v10417_v39 = vpop.permute.xlu0 %3521  ;;  %3639 = vrot.lane.b32.xlu1 %v14604_v19, %s7168_s8  ;;  %v3692_v45 = vadd.f32 %v3668_v1, %v3572_v11  ;;  %v14617_v1 = vld [vmem:[#allocation90_spill] sm:$0xff] }
 0x466   :  { %14603 = vst [vmem:[#allocation47_spill] sm:$0xff] %v10417_v39  ;;  %v3722_v13 = vadd.f32 %v3674_v38, %v14614_v4  ;;  %v3728_v32 = vadd.f32 %v3680_v5, %v14615_v35  ;;  %v3734_v51 = vadd.f32 %v3686_v43, %v14616_v3  ;;  %v3831_v38 = vsel %vm1672_vm9, %v10121_v33, %v10309_v12  ;;  %v14621_v4 = vld [vmem:[#allocation132_spill] sm:$0xff] }
 0x467   :  { %v10433_v19 = vpop.permute.xlu1 %3523  ;;  %3637 = vrot.lane.b32.xlu0 %v14612_v22, %s7168_s8  ;;  %v3740_v23 = vadd.f32 %v3692_v45, %v14617_v1  ;;  %v3950_v45 = vsel %vm1793_vm4, %v10161_v46, %v10329_v49  ;;  %v3429_v5 = vsel %vm1261_vm1, %v10333_v10, %v9809_v9  ;;  %v3334_v9 = vsel %vm1164_vm2, %v10305_v0, %v14589_v60 }
 0x468   :  { %14611 = vst [vmem:[#allocation105_spill] sm:$0xff] %v10433_v19  ;;  %v3842_v37 = vadd.f32 %v3829_v59, %v3722_v13  ;;  %v3848_v43 = vadd.f32 %v3830_v61, %v3728_v32  ;;  %v10499_v13 = vsel %vm1672_vm9, %v14621_v4, %v10083_v52  ;;  %v3333_v61 = vsel %vm1164_vm2, %v10301_v26, %v14578_v48  ;;  %v14630_v4 = vld [vmem:[#allocation69_spill] sm:$0xff] }
 0x469   :  { %v10437_v57 = vpop.permute.xlu0 %4029  ;;  %4159 = vrot.lane.b32.xlu1 %v10079_v21, %s7166_s29  ;;  %v3949_v21 = vsel %vm1793_vm4, %v10155_v36, %v10325_v20  ;;  %v3430_v52 = vsel %vm1261_vm1, %v10337_v47, %v14581_v63  ;;  %v3433_v60 = vadd.f32 %v3429_v5, %v3333_v61  ;;  %v3549_v3 = vsel %vm1382_vm3, %v10417_v39, %v14587_v62  ;;  %v14625_v5 = vld [vmem:[#allocation76_spill] sm:$0xff] }
 0x46a   :  { %v3962_v22 = vadd.f32 %v3949_v21, %v3842_v37  ;;  %v3854_v21 = vadd.f32 %v3831_v38, %v3734_v51  ;;  %v3968_v37 = vadd.f32 %v3950_v45, %v3848_v43  ;;  %v3951_v63 = vsel %vm1793_vm4, %v10189_v25, %v10341_v18  ;;  %v14622_v45 = vld [vmem:[#allocation161_spill] sm:$0xff]  ;;  %v14626_v61 = vld [vmem:[#allocation116_spill] sm:$0xff] }
 0x46b   :  { %v10446_v28 = vpop.permute.xlu1 %4031  ;;  %3801 = vrot.lane.b32.xlu0 %v10103_v34, %s7169_s9  ;;  %v14619_v34 = vld [vmem:[#allocation123_spill] sm:$0xff]  ;;  %v3335_v62 = vsel %vm1164_vm2, %v10317_v30, %v14591_v16  ;;  %v3439_v43 = vadd.f32 %v3430_v52, %v3334_v9  ;;  %v14631_v30 = vld [vmem:[#allocation125_spill] sm:$0xff] }
 0x46c   :  { %v10469_v11 = vsel %vm1672_vm9, %v14619_v34, %v14613_v27  ;;  %v3832_v27 = vsel %vm1672_vm9, %v10127_v24, %v10313_v54  ;;  %v3974_v9 = vadd.f32 %v3951_v63, %v3854_v21  ;;  %v4071_v34 = vsel %vm1914_vm6, %v14630_v4, %v10437_v57  ;;  %v14634_v63 = vld [vmem:[#allocation149_spill] sm:$0xff] }
 0x46d   :  { %v10461_v6 = vpop.permute.xlu0 %3525  ;;  %3803 = vrot.lane.b32.xlu1 %v10110_v17, %s7169_s9  ;;  %v4069_v17 = vsel %vm1914_vm6, %v10213_v31, %v10365_v15  ;;  %v3860_v48 = vadd.f32 %v3832_v27, %v3740_v23  ;;  %v14623_v27 = vld [vmem:[#allocation20_spill] sm:$0xff] }
 0x46e   :  { %14618 = vst [vmem:[#allocation102_spill] sm:$0xff] %v10461_v6  ;;  %v4082_v35 = vadd.f32 %v4069_v17, %v3962_v22  ;;  %v3336_v17 = vsel %vm1164_vm2, %v14622_v45, %v14593_v41  ;;  %v14624_v22 = vld [vmem:[#allocation162_spill] sm:$0xff]  ;;  %v14629_v41 = vld [vmem:[#allocation55_spill] sm:$0xff] }
 0x46f   :  { %v10491_v59 = vpop.permute.xlu1 %3527  ;;  %3809 = vrot.lane.b32.xlu0 %v10108_v56, %s7169_s9  ;;  %v4070_v56 = vsel %vm1914_vm6, %v10219_v14, %v10397_v42 }
 0x470   :  { %14620 = vst [vmem:[#allocation87_spill] sm:$0xff] %v10491_v59  ;;  %v4088_v1 = vadd.f32 %v4070_v56, %v3968_v37  ;;  %v14627_v56 = vld [vmem:[#allocation163_spill] sm:$0xff]  ;;  %v3553_v37 = vadd.f32 %v3549_v3, %v3433_v60  ;;  %v14632_v60 = vld [vmem:[#allocation33_spill] sm:$0xff] }
 0x471   :  { %v10517_v32 = vpop.permute.xlu0 %4145  ;;  %3811 = vrot.lane.b32.xlu1 %v10115_v8, %s7169_s9  ;;  %v3550_v8 = vsel %vm1382_vm3, %v10433_v19, %v14596_v29  ;;  %v3431_v16 = vsel %vm1261_vm1, %v14627_v56, %v14626_v61  ;;  %v4072_v3 = vsel %vm1914_vm6, %v14632_v60, %v10446_v28  ;;  %v14636_v56 = vld [vmem:[#allocation164_spill] sm:$0xff] }
 0x472   :  { %v4189_v51 = vsel %vm2035_vm8, %v10261_v53, %v10517_v32  ;;  %v3559_v52 = vadd.f32 %v3550_v8, %v3439_v43  ;;  %v3445_v43 = vadd.f32 %v3431_v16, %v3335_v62 }
 0x473   :  { %v4202_v23 = vadd.f32 %v4189_v51, %v4082_v35  ;;  %v10537_v38 = vpop.permute.xlu1 %4147  ;;  %3805 = vrot.lane.b32.xlu0 %v10125_v44, %s7169_s9  ;;  %v3952_v44 = vsel %vm1793_vm4, %v14625_v5, %v14624_v22 }
 0x474   :  { %v4190_v29 = vsel %vm2035_vm8, %v14623_v27, %v10537_v38  ;;  %v3980_v8 = vadd.f32 %v3952_v44, %v3860_v48  ;;  %v14640_v48 = vld [vmem:[#allocation81_spill] sm:$0xff]  ;;  %v14641_v44 = vld [vmem:[#allocation114_spill] sm:$0xff] }
 0x475   :  { %v4208_v35 = vadd.f32 %v4190_v29, %v4088_v1  ;;  %v10561_v51 = vpop.permute.xlu0 %3641  ;;  %3807 = vrot.lane.b32.xlu1 %v14629_v41, %s7169_s9  ;;  %v4226_v1 = vmax.f32 %v4202_v23, 0.0  ;;  %v14635_v41 = vld [vmem:[#allocation120_spill] sm:$0xff]  ;;  %v4094_v23 = vadd.f32 %v4071_v34, %v3974_v9  ;;  %v3551_v16 = vsel %vm1382_vm3, %v10461_v6, %v14641_v44 }
 0x476   :  { %14628 = vst [vmem:[#allocation91_spill] sm:$0xff] %v10561_v51  ;;  %v3669_v45 = vsel %vm1503_vm5, %v10561_v51, %v14631_v30  ;;  %v3432_v30 = vsel %vm1261_vm1, %v14636_v56, %v14635_v41  ;;  %v14637_v51 = vld [vmem:[#allocation73_spill] sm:$0xff]  ;;  %v4100_v62 = vadd.f32 %v4072_v3, %v3980_v8  ;;  %v14646_v8 = vld [vmem:[#allocation40_spill] sm:$0xff]  ;;  %v3565_v44 = vadd.f32 %v3551_v16, %v3445_v43 }
 0x477   :  { %v4232_v29 = vmax.f32 %v4208_v35, 0.0  ;;  %v3673_v61 = vadd.f32 %v3669_v45, %v3553_v37  ;;  %v10577_v21 = vpop.permute.xlu1 %3643  ;;  %3921 = vrot.lane.b32.xlu0 %v14634_v63, %s7163_s26  ;;  %v14639_v45 = vld [vmem:[#allocation19_spill] sm:$0xff]  ;;  %v14642_v63 = vld [vmem:[#allocation141_spill] sm:$0xff]  ;;  %v14647_v41 = vld [vmem:[#allocation152_spill] sm:$0xff] }
 0x478   :  { %14633 = vst [vmem:[#allocation92_spill] sm:$0xff] %v10577_v21  ;;  %v3670_v39 = vsel %vm1503_vm5, %v10577_v21, %v14637_v51  ;;  %v3552_v34 = vsel %vm1382_vm3, %v10491_v59, %v14642_v63  ;;  %v14643_v51 = vld [vmem:[#allocation157_spill] sm:$0xff]  ;;  %v14741_v21 = vld [vmem:[#allocation119_spill] sm:$0xff] }
 0x479   :  { %v10589_v35 = vpack.c.bf16 %v4232_v29, %v4226_v1  ;;  %v3721_v37 = vadd.f32 %v3673_v61, %v14639_v45  ;;  %v3679_v19 = vadd.f32 %v3670_v39, %v3559_v52  ;;  %v10592_v26 = vpop.permute.xlu0 %4149  ;;  %3923 = vrot.lane.b32.xlu1 %v14640_v48, %s7163_s26  ;;  %v14644_v52 = vld [vmem:[#allocation78_spill] sm:$0xff]  ;;  %v3953_v45 = vsel %vm1793_vm4, %v14647_v41, %v10155_v36  ;;  %v14648_v48 = vld [vmem:[#allocation148_spill] sm:$0xff] }
 0x47a   :  { %v4191_v39 = vsel %vm2035_vm8, %v14643_v51, %v10592_v26  ;;  %v14651_v36 = vld [vmem:[#allocation134_spill] sm:$0xff] }
 0x47b   :  { %14638 = vst [vmem:[#allocation93_spill] sm:$0xff] %v10589_v35  ;;  %v3841_v9 = vadd.f32 %v10469_v11, %v3721_v37  ;;  %v3727_v1 = vadd.f32 %v3679_v19, %v14644_v52  ;;  %v4214_v3 = vadd.f32 %v4191_v39, %v4094_v23  ;;  %6902 = vmatprep.subr.msk.bf16.mxu0 %vm8706_vm12, %v10589_v35  ;;  %v10613_v61 = vpop.permute.xlu1 %4151  ;;  %v14649_v23 = vld [vmem:[#allocation158_spill] sm:$0xff] }
 0x47c   :  { %3925 = vrot.lane.b32.xlu0 %v14646_v8, %s7163_s26  ;;  %v3954_v19 = vsel %vm1793_vm4, %v14648_v48, %v10161_v46  ;;  %v3451_v11 = vadd.f32 %v3432_v30, %v3336_v17  ;;  %v4192_v37 = vsel %vm2035_vm8, %v14649_v23, %v10613_v61  ;;  %v14652_v35 = vld [vmem:[#allocation82_spill] sm:$0xff] }
 0x47d   :  { %v3961_v63 = vadd.f32 %v3953_v45, %v3841_v9  ;;  %v3847_v39 = vadd.f32 %v10499_v13, %v3727_v1  ;;  %v4220_v52 = vadd.f32 %v4192_v37, %v4100_v62  ;;  %v10630_v8 = vpop.permute.xlu0 %3645  ;;  %3927 = vrot.lane.b32.xlu1 %v14651_v36, %s7163_s26  ;;  %v4073_v46 = vsel %vm1914_vm6, %v14652_v35, %v10213_v31  ;;  %v14654_v45 = vld [vmem:[#allocation75_spill] sm:$0xff]  ;;  %v14655_v37 = vld [vmem:[#allocation144_spill] sm:$0xff]  ;;  %v14660_v36 = vld [vmem:[#allocation150_spill] sm:$0xff] }
 0x47e   :  { %14650 = vst [vmem:[#allocation48_spill] sm:$0xff] %v10630_v8  ;;  %v3571_v17 = vadd.f32 %v3552_v34, %v3451_v11  ;;  %v4238_v30 = vmax.f32 %v4214_v3, 0.0  ;;  %v3671_v43 = vsel %vm1503_vm5, %v10630_v8, %v14608_v2  ;;  %v4074_v31 = vsel %vm1914_vm6, %v14655_v37, %v10219_v14  ;;  %v14656_v34 = vld [vmem:[#allocation58_spill] sm:$0xff]  ;;  %v14659_v14 = vld [vmem:[#allocation80_spill] sm:$0xff] }
 0x47f   :  { %v4081_v16 = vadd.f32 %v4073_v46, %v3961_v63  ;;  %v3967_v13 = vadd.f32 %v3954_v19, %v3847_v39  ;;  %v4244_v62 = vmax.f32 %v4220_v52, 0.0  ;;  %v3685_v9 = vadd.f32 %v3671_v43, %v3565_v44  ;;  %v10642_v1 = vpop.permute.xlu1 %3647  ;;  %v14658_v44 = vld [vmem:[#allocation88_spill] sm:$0xff]  ;;  %v14661_v46 = vld [vmem:[#allocation85_spill] sm:$0xff]  ;;  %v14715_v48 = vld [vmem:[#allocation98_spill] sm:$0xff] }
 0x480   :  { %14653 = vst [vmem:[#allocation37_spill] sm:$0xff] %v10642_v1  ;;  %4041 = vrot.lane.b32.xlu0 %v14654_v45, %s7164_s27  ;;  %v4193_v3 = vsel %vm2035_vm8, %v14656_v34, %v10261_v53  ;;  %v3672_v2 = vsel %vm1503_vm5, %v10642_v1, %v14610_v50  ;;  %v3835_v53 = vsel %vm1672_vm9, %v14660_v36, %v10121_v33  ;;  %v14709_v34 = vld [vmem:[#allocation118_spill] sm:$0xff]  ;;  %v14711_v37 = vld [vmem:[#allocation112_spill] sm:$0xff]  ;;  %v14714_v36 = vld [vmem:[#allocation137_spill] sm:$0xff] }
 0x481   :  { %v4087_v19 = vadd.f32 %v4074_v31, %v3967_v13  ;;  %v10658_v11 = vpack.c.bf16 %v4244_v62, %v4238_v30  ;;  %v3733_v63 = vadd.f32 %v3685_v9, %v14658_v44  ;;  %v3691_v39 = vadd.f32 %v3672_v2, %v3571_v17  ;;  %v10661_v52 = vpop.permute.xlu0 %3389  ;;  %4043 = vrot.lane.b32.xlu1 %v14659_v14, %s7164_s27  ;;  %v14662_v13 = vld [vmem:[#allocation43_spill] sm:$0xff]  ;;  %v14663_v9 = vld [vmem:[#allocation145_spill] sm:$0xff]  ;;  %v14664_v31 = vld [vmem:[#allocation146_spill] sm:$0xff] }
 0x482   :  { %v4194_v50 = vsel %vm2035_vm8, %v14661_v46, %v14623_v27  ;;  %v4201_v30 = vadd.f32 %v4193_v3, %v4081_v16  ;;  %v3836_v33 = vsel %vm1672_vm9, %v14664_v31, %v10127_v24  ;;  %v14665_v2 = vld [vmem:[#allocation71_spill] sm:$0xff]  ;;  %v14668_v24 = vld [vmem:[#allocation45_spill] sm:$0xff]  ;;  %v14716_v41 = vld [vmem:[#allocation42_spill] sm:$0xff] }
 0x483   :  { %14657 = vst [vmem:[#allocation25_spill] sm:$0xff] %v10658_v11  ;;  %v3853_v43 = vadd.f32 %v3835_v53, %v3733_v63  ;;  %v3739_v62 = vadd.f32 %v3691_v39, %v14662_v13  ;;  %v10674_v17 = vpop.permute.xlu1 %3391  ;;  %v4207_v45 = vadd.f32 %v4194_v50, %v4087_v19  ;;  %v3955_v27 = vsel %vm1793_vm4, %v14665_v2, %v10189_v25  ;;  %v14666_v63 = vld [vmem:[#allocation139_spill] sm:$0xff]  ;;  %v14706_v46 = vld [vmem:[#allocation97_spill] sm:$0xff]  ;;  %v14718_v8 = vld [vmem:[#allocation126_spill] sm:$0xff] }
 0x484   :  { %4045 = vrot.lane.b32.xlu0 %v14663_v9, %s7164_s27  ;;  %v4225_v39 = vmax.f32 %v4201_v30, 0.0  ;;  %v14667_v19 = vld [vmem:[#allocation135_spill] sm:$0xff]  ;;  %v4075_v50 = vsel %vm1914_vm6, %v14668_v24, %v14630_v4  ;;  %v14671_v30 = vld [vmem:[#allocation62_spill] sm:$0xff]  ;;  %v14697_v24 = vld [vmem:[#allocation64_spill] sm:$0xff] }
 0x485   :  { %v3973_v16 = vadd.f32 %v3955_v27, %v3853_v43  ;;  %v3859_v3 = vadd.f32 %v3836_v33, %v3739_v62  ;;  %v10686_v44 = vpop.permute.xlu0 %3617  ;;  %4047 = vrot.lane.b32.xlu1 %v14666_v63, %s7164_s27  ;;  %v4231_v14 = vmax.f32 %v4207_v45, 0.0  ;;  %v3956_v53 = vsel %vm1793_vm4, %v14667_v19, %v14625_v5  ;;  %v14669_v62 = vld [vmem:[#allocation70_spill] sm:$0xff]  ;;  %v14672_v5 = vld [vmem:[#allocation113_spill] sm:$0xff]  ;;  %v14710_v27 = vld [vmem:[#allocation59_spill] sm:$0xff] }
 0x486   :  { %v4076_v45 = vsel %vm1914_vm6, %v14671_v30, %v14632_v60  ;;  %v4195_v33 = vsel %vm2035_vm8, %v14672_v5, %v14643_v51  ;;  %v14691_v5 = vld [vmem:[#allocation38_spill] sm:$0xff]  ;;  %v14708_v2 = vld [vmem:[#allocation129_spill] sm:$0xff]  ;;  %v3541_v35 = vsel %vm1382_vm3, %v14711_v37, %v14710_v27  ;;  %v3661_v37 = vsel %vm1503_vm5, %v14718_v8, %v10686_v44 }
 0x487   :  { %v4093_v25 = vadd.f32 %v4075_v50, %v3973_v16  ;;  %v3979_v43 = vadd.f32 %v3956_v53, %v3859_v3  ;;  %v10698_v13 = vpop.permute.xlu1 %3619  ;;  %v10702_v9 = vpack.c.bf16 %v4231_v14, %v4225_v39  ;;  %v14674_v3 = vld [vmem:[#allocation57_spill] sm:$0xff]  ;;  %v14675_v39 = vld [vmem:[#allocation35_spill] sm:$0xff]  ;;  %v14676_v14 = vld [vmem:[#allocation156_spill] sm:$0xff] }
 0x488   :  { %4161 = vrot.lane.b32.xlu0 %v14669_v62, %s7166_s29  ;;  %v4196_v60 = vsel %vm2035_vm8, %v14675_v39, %v14649_v23  ;;  %v14678_v23 = vld [vmem:[#allocation50_spill] sm:$0xff] }
 0x489   :  { %14670 = vst [vmem:[#allocation74_spill] sm:$0xff] %v10702_v9  ;;  %v4099_v4 = vadd.f32 %v4076_v45, %v3979_v43  ;;  %6905 = vmatpush1.bf16.msk.msra.mxu0 %vm8721_vm13, %v10702_v9  ;;  %v10715_v16 = vpop.permute.xlu0 %3625  ;;  %4163 = vrot.lane.b32.xlu1 %v14674_v3, %s7166_s29  ;;  %v4213_v63 = vadd.f32 %v4195_v33, %v4093_v25  ;;  %v14677_v43 = vld [vmem:[#allocation41_spill] sm:$0xff]  ;;  %v10775_v39 = vld [vmem:[%s13596_s4 + $0x8] sm:$0xff]  }
 0x48a   :  { %6908 = vmatprep.subr.msk.bf16.mxu0 %vm8706_vm12, %v10658_v11  ;;  %v10743_v3 = vld [vmem:[%s13596_s4] sm:$0xff]   ;;  %14690 = vst [vmem:[#allocation23_spill] sm:$0xff] %v10775_v39  ;;  %v14719_v1 = vld [vmem:[#allocation46_spill] sm:$0xff] }
 0x48b   :  { %v10726_v51 = vpop.permute.xlu1 %3627  ;;  %v4219_v53 = vadd.f32 %v4196_v60, %v4099_v4  ;;  %v4237_v25 = vmax.f32 %v4213_v63, 0.0  ;;  %14680 = vst [vmem:[#allocation104_spill] sm:$0xff] %v10743_v3  ;;  %v14681_v63 = vld [vmem:[#allocation36_spill] sm:$0xff]  ;;  %v14682_v60 = vld [vmem:[#allocation11_spill] sm:$0xff]  ;;  %v14694_v11 = vld [vmem:[#allocation17_spill] sm:$0xff] }
 0x48c   :  { %4165 = vrot.lane.b32.xlu0 %v14676_v14, %s7166_s29 }
 0x48d   :  { %v10730_v50 = vpop.permute.xlu0 %3501  ;;  %4167 = vrot.lane.b32.xlu1 %v14677_v43, %s7166_s29  ;;  %v4243_v62 = vmax.f32 %v4219_v53, 0.0  ;;  %v14683_v53 = vld [vmem:[#allocation54_spill] sm:$0xff] }
 0x48f   :  { %v10734_v45 = vpop.permute.xlu1 %3503  ;;  %v10738_v33 = vpack.c.bf16 %v4243_v62, %v4237_v25  ;;  %v14684_v25 = vld [vmem:[#allocation12_spill] sm:$0xff]  ;;  %v14685_v62 = vld [vmem:[#allocation153_spill] sm:$0xff] }
 0x490   :  { %3929 = vrot.lane.b32.xlu0 %v14678_v23, %s7163_s26  ;;  %v14686_v23 = vld [vmem:[#allocation65_spill] sm:$0xff] }
 0x491   :  { %14679 = vst [vmem:[#allocation136_spill] sm:$0xff] %v10738_v33  ;;  %v10745_v4 = vpop.permute.xlu0 %3509  ;;  %6911 = vmatpush1.bf16.msk.msra.mxu0 %vm8721_vm13, %v10738_v33  ;;  %3931 = vrot.lane.b32.xlu1 %v14681_v63, %s7163_s26  ;;  %v14702_v63 = vld [vmem:[#allocation103_spill] sm:$0xff] }
 0x492   :  { %4934 = vmatprep.subr.bf16.mxu0 %v14682_v60  ;;  %v14688_v60 = vmov 0  }
 0x493   :  { %v10753_v14 = vpop.permute.xlu1 %3511 }
 0x494   :  { %3813 = vrot.lane.b32.xlu0 %v14683_v53, %s7169_s9  ;;  %6795 = vmatmul.mubr.msk.bf16.vlgmr.msra.gmra.mrb[196].mxu0 %vm4453_vm14, %v10743_v3  ;;  %v14689_v53 = vld [vmem:[#allocation79_spill] sm:$0xff] }
 0x495   :  { %v10759_v43 = vpop.permute.xlu0 %3621  ;;  %4935 = vmatpush1.bf16.msra.mxu0 %v14684_v25  ;;  %3815 = vrot.lane.b32.xlu1 %v14685_v62, %s7169_s9  ;;  %v10812_v62 = vld [vmem:[%s13596_s4 + $0x10] sm:$0xff]  }
 0x496   :  { %6938 = vmatprep.subr.msk.bf16.mxu0 %vm9508_vm0, %v14686_v23  ;;  %4550 = vmatprep.mubr.bf16.mxu0 %v14688_v60  ;;  %v14693_v23 = vld [vmem:[#allocation83_spill] sm:$0xff]  ;;  %14703 = vst [vmem:[#allocation86_spill] sm:$0xff] %v10812_v62 }
 0x497   :  { %v10768_v33 = vpop.permute.xlu1 %3623  ;;  %v14717_v3 = vld [vmem:[#allocation107_spill] sm:$0xff] }
 0x498   :  { %4049 = vrot.lane.b32.xlu0 %v14689_v53, %s7164_s27  ;;  %v14695_v53 = vld [vmem:[#allocation66_spill] sm:$0xff] }
 0x499   :  { %v10777_v25 = vpop.permute.xlu0 %3629  ;;  %6941 = vmatpush1.bf16.msk.msra.mxu0 %vm9527_vm11, %v14691_v5  ;;  %4051 = vrot.lane.b32.xlu1 %v14693_v23, %s7164_s27  ;;  %v14698_v23 = vld [vmem:[#allocation72_spill] sm:$0xff]  ;;  %v14700_v5 = vld [vmem:[#allocation34_spill] sm:$0xff] }
 0x49a   :  { %6944 = vmatprep.subr.msk.bf16.mxu0 %vm9508_vm0, %v14694_v11 }
 0x49b   :  { %v10787_v9 = vpop.permute.xlu1 %3631 }
 0x49c   :  { %3933 = vrot.lane.b32.xlu0 %v14695_v53, %s7163_s26  ;;  %6796 = vmatmul.mubr.msk.bf16.gmra.mrb[200].mxu0 %vm4453_vm14, %v10775_v39  ;;  %v14701_v53 = vld [vmem:[#allocation128_spill] sm:$0xff] }
 0x49d   :  { %v10793_v30 = vpop.permute.xlu0 %3793  ;;  %6947 = vmatpush1.bf16.msk.msra.mxu0 %vm9527_vm11, %v14697_v24  ;;  %3935 = vrot.lane.b32.xlu1 %v14698_v23, %s7163_s26  ;;  %v3421_v19 = vsel %vm1261_vm1, %v14702_v63, %v14701_v53  ;;  %v14705_v23 = vld [vmem:[#allocation84_spill] sm:$0xff]  ;;  %v3422_v63 = vsel %vm1261_vm1, %v14709_v34, %v14708_v2  ;;  %v3542_v34 = vsel %vm1382_vm3, %v14717_v3, %v14716_v41 }
 0x49e   :  { %14696 = vst [vmem:[#allocation110_spill] sm:$0xff] %v10793_v30  ;;  %4560 = vmatprep.mubr.bf16.mxu0 %v14688_v60  ;;  %v14707_v39 = vld [vmem:[#allocation96_spill] sm:$0xff] }
 0x49f   :  { %v10801_v11 = vpop.permute.xlu1 %3795 }
 0x4a0   :  { %14699 = vst [vmem:[#allocation77_spill] sm:$0xff] %v10801_v11  ;;  %4169 = vrot.lane.b32.xlu0 %v14700_v5, %s7166_s29  ;;  %v3325_v5 = vsel %vm1164_vm2, %v14707_v39, %v14706_v46  ;;  %v3326_v39 = vsel %vm1164_vm2, %v14715_v48, %v14714_v36  ;;  %v14720_v48 = vld [vmem:[#allocation127_spill] sm:$0xff] }
 0x4a1   :  { %v10814_v24 = vpop.permute.xlu0 %3913  ;;  %4171 = vrot.lane.b32.xlu1 %v14705_v23, %s7166_s29  ;;  %v3435_v31 = vadd.f32 %v3421_v19, %v3325_v5  ;;  %v14713_v23 = vld [vmem:[#allocation138_spill] sm:$0xff]  ;;  %v3441_v19 = vadd.f32 %v3422_v63, %v3326_v39  ;;  %v3662_v3 = vsel %vm1503_vm5, %v14720_v48, %v10698_v13  ;;  %v14724_v63 = vld [vmem:[#allocation44_spill] sm:$0xff]  ;;  %v3825_v39 = vsel %vm1672_vm9, %v10293_v58, %v10793_v30  ;;  %v14727_v48 = vld [vmem:[#allocation61_spill] sm:$0xff] }
 0x4a2   :  { %14704 = vst [vmem:[#allocation39_spill] sm:$0xff] %v10814_v24 }
 0x4a3   :  { %v10830_v29 = vpop.permute.xlu1 %3915  ;;  %v3555_v5 = vadd.f32 %v3541_v35, %v3435_v31  ;;  %v3561_v6 = vadd.f32 %v3542_v34, %v3441_v19  ;;  %v10864_v35 = vld [vmem:[%s13596_s4 + $0x18] sm:$0xff]  }
 0x4a4   :  { %14712 = vst [vmem:[#allocation90_spill] sm:$0xff] %v10830_v29  ;;  %4053 = vrot.lane.b32.xlu0 %v14713_v23, %s7164_s27  ;;  %6797 = vmatmul.mubr.msk.bf16.gmra.mrb[204].mxu0 %vm4453_vm14, %v10812_v62  ;;  %v14721_v62 = vld [vmem:[#allocation56_spill] sm:$0xff]  ;;  %14722 = vst [vmem:[#allocation20_spill] sm:$0xff] %v10864_v35 }
 0x4a5   :  { %v10848_v23 = vpop.permute.xlu0 %3797  ;;  %4055 = vrot.lane.b32.xlu1 %v14719_v1, %s7164_s27  ;;  %4570 = vmatprep.mubr.bf16.mxu0 %v14688_v60  ;;  %v3675_v59 = vadd.f32 %v3661_v37, %v3555_v5  ;;  %v3681_v1 = vadd.f32 %v3662_v3, %v3561_v6  ;;  %v14725_v34 = vld [vmem:[#allocation60_spill] sm:$0xff]  ;;  %v3945_v6 = vsel %vm1793_vm4, %v10325_v20, %v10814_v24  ;;  %v14747_v24 = vld [vmem:[#allocation121_spill] sm:$0xff] }
 0x4a7   :  { %v10857_v8 = vpop.permute.xlu1 %3799  ;;  %v3723_v37 = vadd.f32 %v3675_v59, %v14725_v34  ;;  %v3729_v58 = vadd.f32 %v3681_v1, %v14727_v48 }
 0x4a8   :  { %4173 = vrot.lane.b32.xlu0 %v14721_v62, %s7166_s29  ;;  %v3826_v62 = vsel %vm1672_vm9, %v10297_v7, %v10801_v11  ;;  %v3946_v7 = vsel %vm1793_vm4, %v10329_v49, %v10830_v29 }
 0x4a9   :  { %v10866_v31 = vpop.permute.xlu0 %4033  ;;  %4175 = vrot.lane.b32.xlu1 %v14724_v63, %s7166_s29  ;;  %v3843_v5 = vadd.f32 %v3825_v39, %v3723_v37  ;;  %v3849_v59 = vadd.f32 %v3826_v62, %v3729_v58  ;;  %v10908_v39 = vld [vmem:[%s13596_s4 + $0x20] sm:$0xff]  }
 0x4aa   :  { %14723 = vst [vmem:[#allocation162_spill] sm:$0xff] %v10866_v31  ;;  %v4065_v20 = vsel %vm1914_vm6, %v10365_v15, %v10866_v31  ;;  %14728 = vst [vmem:[#allocation116_spill] sm:$0xff] %v10908_v39  ;;  %v14745_v31 = vld [vmem:[#allocation109_spill] sm:$0xff] }
 0x4ab   :  { %v10875_v19 = vpop.permute.xlu1 %4035  ;;  %v3963_v63 = vadd.f32 %v3945_v6, %v3843_v5  ;;  %v3969_v49 = vadd.f32 %v3946_v7, %v3849_v59 }
 0x4ac   :  { %14726 = vst [vmem:[#allocation76_spill] sm:$0xff] %v10875_v19  ;;  %6798 = vmatmul.mubr.msk.bf16.gmra.mrb[208].mxu0 %vm4453_vm14, %v10864_v35  ;;  %v4066_v1 = vsel %vm1914_vm6, %v10397_v42, %v10875_v19  ;;  %v10970_v35 = vld [vmem:[%s13596_s4 + $0x38] sm:$0xff]   ;;  %v14744_v19 = vld [vmem:[#allocation130_spill] sm:$0xff] }
 0x4ad   :  { %v10888_v3 = vpop.permute.xlu0 %3917  ;;  %4580 = vmatprep.mubr.bf16.mxu0 %v14688_v60  ;;  %v4083_v37 = vadd.f32 %v4065_v20, %v3963_v63  ;;  %v4089_v62 = vadd.f32 %v4066_v1, %v3969_v49  ;;  %v10932_v63 = vld [vmem:[%s13596_s4 + $0x28] sm:$0xff]   ;;  %14739 = vst [vmem:[#allocation81_spill] sm:$0xff] %v10970_v35 }
 0x4ae   :  { %14731 = vst [vmem:[#allocation125_spill] sm:$0xff] %v10932_v63 }
 0x4af   :  { %v10899_v34 = vpop.permute.xlu1 %3919 }
 0x4b1   :  { %v10910_v48 = vpop.permute.xlu0 %4153 }
 0x4b2   :  { %14729 = vst [vmem:[#allocation55_spill] sm:$0xff] %v10910_v48  ;;  %v4185_v15 = vsel %vm2035_vm8, %v10517_v32, %v10910_v48  ;;  %v14743_v48 = vld [vmem:[#allocation147_spill] sm:$0xff] }
 0x4b3   :  { %v4203_v6 = vadd.f32 %v4185_v15, %v4083_v37  ;;  %v10916_v5 = vpop.permute.xlu1 %4155  ;;  %v3424_v56 = vsel %vm1261_vm1, %v14744_v19, %v14743_v48  ;;  %v14750_v19 = vld [vmem:[#allocation49_spill] sm:$0xff] }
 0x4b4   :  { %14730 = vst [vmem:[#allocation69_spill] sm:$0xff] %v10916_v5  ;;  %v4186_v42 = vsel %vm2035_vm8, %v10537_v38, %v10916_v5  ;;  %6799 = vmatmul.mubr.msk.bf16.gmra.mrb[212].mxu0 %vm4453_vm14, %v10908_v39 }
 0x4b5   :  { %v4209_v58 = vadd.f32 %v4186_v42, %v4089_v62  ;;  %v10924_v7 = vpop.permute.xlu0 %4037  ;;  %4590 = vmatprep.mubr.bf16.mxu0 %v14688_v60  ;;  %v4227_v20 = vmax.f32 %v4203_v6, 0.0  ;;  %v10950_v62 = vld [vmem:[%s13596_s4 + $0x30] sm:$0xff]  }
 0x4b6   :  { %14733 = vst [vmem:[#allocation149_spill] sm:$0xff] %v10950_v62 }
 0x4b7   :  { %v4233_v59 = vmax.f32 %v4209_v58, 0.0  ;;  %v10927_v32 = vpop.permute.xlu1 %4039 }
 0x4b9   :  { %v10934_v1 = vpack.c.bf16 %v4233_v59, %v4227_v20  ;;  %v10936_v38 = vpop.permute.xlu0 %4157  ;;  %v14737_v59 = vld [vmem:[#allocation151_spill] sm:$0xff] }
 0x4bb   :  { %14732 = vst [vmem:[#allocation33_spill] sm:$0xff] %v10934_v1  ;;  %v10938_v49 = vpop.permute.xlu1 %3299 }
 0x4bc   :  { %6800 = vmatmul.mubr.msk.bf16.gmra.mrb[216].mxu0 %vm4453_vm14, %v10932_v63  ;;  %v14738_v63 = vld [vmem:[#allocation94_spill] sm:$0xff] }
 0x4bd   :  { %v10942_v37 = vpop.permute.xlu0 %3297  ;;  %4600 = vmatprep.mubr.bf16.mxu0 %v14688_v60  ;;  %v3423_v39 = vsel %vm1261_vm1, %v14738_v63, %v14737_v59  ;;  %v3543_v63 = vsel %vm1382_vm3, %v14745_v31, %v10730_v50 }
 0x4bf   :  { %v10945_v15 = vpop.permute.xlu1 %3395 }
 0x4c1   :  { %v10952_v6 = vpop.permute.xlu0 %3393 }
 0x4c3   :  { %v10954_v42 = vpop.permute.xlu1 %3515 }
 0x4c4   :  { %14734 = vst [vmem:[#allocation120_spill] sm:$0xff] %v10954_v42  ;;  %6801 = vmatmul.mubr.msk.bf16.gmra.mrb[220].mxu0 %vm4453_vm14, %v10950_v62  ;;  %v14742_v62 = vld [vmem:[#allocation106_spill] sm:$0xff] }
 0x4c5   :  { %v10958_v58 = vpop.permute.xlu0 %3513  ;;  %4610 = vmatprep.mubr.bf16.mxu0 %v14688_v60  ;;  %v3327_v5 = vsel %vm1164_vm2, %v14742_v62, %v14741_v21  ;;  %v14749_v62 = vld [vmem:[#allocation124_spill] sm:$0xff] }
 0x4c6   :  { %14735 = vst [vmem:[#allocation73_spill] sm:$0xff] %v10958_v58  ;;  %v3447_v29 = vadd.f32 %v3423_v39, %v3327_v5  ;;  %v3544_v30 = vsel %vm1382_vm3, %v14749_v62, %v10734_v45  ;;  %v3663_v58 = vsel %vm1503_vm5, %v14750_v19, %v10759_v43  ;;  %v11014_v19 = vld [vmem:[%s13596_s4 + $0x40] sm:$0xff]  }
 0x4c7   :  { %v10961_v20 = vpop.permute.xlu1 %3303  ;;  %14751 = vst [vmem:[#allocation157_spill] sm:$0xff] %v11014_v19 }
 0x4c8   :  { %14736 = vst [vmem:[#allocation19_spill] sm:$0xff] %v10961_v20  ;;  %v3567_v39 = vadd.f32 %v3543_v63, %v3447_v29  ;;  %v14752_v63 = vld [vmem:[#allocation95_spill] sm:$0xff] }
 0x4c9   :  { %v10972_v1 = vpop.permute.xlu0 %3301 }
 0x4ca   :  { %14740 = vst [vmem:[#allocation114_spill] sm:$0xff] %v10972_v1  ;;  %v14748_v1 = vld [vmem:[#allocation108_spill] sm:$0xff] }
 0x4cb   :  { %v10986_v20 = vpop.permute.xlu1 %3399  ;;  %v3328_v11 = vsel %vm1164_vm2, %v14748_v1, %v14747_v24  ;;  %v3664_v1 = vsel %vm1503_vm5, %v14609_v55, %v10768_v33 }
 0x4cc   :  { %14746 = vst [vmem:[#allocation141_spill] sm:$0xff] %v10986_v20  ;;  %6802 = vmatmul.mubr.msk.bf16.gmra.mrb[224].mxu0 %vm4453_vm14, %v10970_v35  ;;  %v3453_v31 = vadd.f32 %v3424_v56, %v3328_v11  ;;  %v3687_v20 = vadd.f32 %v3663_v58, %v3567_v39  ;;  %v3827_v11 = vsel %vm1672_vm9, %v10309_v12, %v10848_v23  ;;  %v14753_v39 = vld [vmem:[#allocation89_spill] sm:$0xff] }
 0x4cd   :  { %v11002_v5 = vpop.permute.xlu0 %3397  ;;  %4620 = vmatprep.mubr.bf16.mxu0 %v14688_v60  ;;  %v3947_v58 = vsel %vm1793_vm4, %v10341_v18, %v10888_v3  ;;  %v4067_v18 = vsel %vm1914_vm6, %v10437_v57, %v10924_v7 }
 0x4ce   :  { %v3573_v62 = vadd.f32 %v3544_v30, %v3453_v31  ;;  %v3735_v35 = vadd.f32 %v3687_v20, %v14752_v63  ;;  %v3828_v30 = vsel %vm1672_vm9, %v10313_v54, %v10857_v8  ;;  %v3948_v54 = vsel %vm1793_vm4, %v14624_v22, %v10899_v34  ;;  %v11060_v22 = vld [vmem:[%s13596_s4 + $0x48] sm:$0xff]  }
 0x4cf   :  { %v11009_v42 = vpop.permute.xlu1 %3635  ;;  %14755 = vst [vmem:[#allocation40_spill] sm:$0xff] %v11060_v22 }
 0x4d0   :  { %v3693_v56 = vadd.f32 %v3664_v1, %v3573_v62  ;;  %v3855_v31 = vadd.f32 %v3827_v11, %v3735_v35  ;;  %v4068_v35 = vsel %vm1914_vm6, %v10446_v28, %v10927_v32 }
 0x4d1   :  { %v11016_v29 = vpop.permute.xlu0 %3633 }
 0x4d2   :  { %v3741_v12 = vadd.f32 %v3693_v56, %v14753_v39  ;;  %v3975_v62 = vadd.f32 %v3947_v58, %v3855_v31  ;;  %v4187_v56 = vsel %vm2035_vm8, %v10592_v26, %v10936_v38 }
 0x4d3   :  { %v11023_v55 = vpop.permute.xlu1 %3519 }
 0x4d4   :  { %6803 = vmatmul.mubr.msk.bf16.gmra.mrb[228].mxu0 %vm4453_vm14, %v11014_v19  ;;  %v3861_v20 = vadd.f32 %v3828_v30, %v3741_v12  ;;  %v4095_v11 = vadd.f32 %v4067_v18, %v3975_v62  ;;  %v11080_v62 = vld [vmem:[%s13596_s4 + $0x50] sm:$0xff]  }
 0x4d5   :  { %v11036_v1 = vpop.permute.xlu0 %3517  ;;  %4630 = vmatprep.mubr.bf16.mxu0 %v14688_v60  ;;  %14757 = vst [vmem:[#allocation134_spill] sm:$0xff] %v11080_v62 }
 0x4d6   :  { %v3981_v57 = vadd.f32 %v3948_v54, %v3861_v20  ;;  %v4215_v31 = vadd.f32 %v4187_v56, %v4095_v11  ;;  %v14760_v56 = vld [vmem:[#allocation30_spill] sm:$0xff] }
 0x4d7   :  { %v11047_v63 = vpop.permute.xlu1 %3639 }
 0x4d8   :  { %14754 = vst [vmem:[#allocation78_spill] sm:$0xff] %v11047_v63  ;;  %v4101_v58 = vadd.f32 %v4068_v35, %v3981_v57  ;;  %v4239_v54 = vmax.f32 %v4215_v31, 0.0  ;;  %v3417_v57 = vsel %vm1261_vm1, %v14701_v53, %v14760_v56  ;;  %v14764_v53 = vld [vmem:[#allocation31_spill] sm:$0xff] }
 0x4d9   :  { %v11062_v30 = vpop.permute.xlu0 %3637 }
 0x4da   :  { %14756 = vst [vmem:[#allocation158_spill] sm:$0xff] %v11062_v30 }
 0x4db   :  { %v11064_v39 = vpop.permute.xlu1 %4159 }
 0x4dc   :  { %v4188_v28 = vsel %vm2035_vm8, %v10613_v61, %v11064_v39  ;;  %6804 = vmatmul.mubr.msk.bf16.gmra.mrb[232].mxu0 %vm4453_vm14, %v11060_v22  ;;  %v3418_v22 = vsel %vm1261_vm1, %v14708_v2, %v14764_v53 }
 0x4dd   :  { %v4221_v26 = vadd.f32 %v4188_v28, %v4101_v58  ;;  %v11072_v12 = vpop.permute.xlu0 %3801  ;;  %4640 = vmatprep.mubr.bf16.mxu0 %v14688_v60  ;;  %v14762_v58 = vld [vmem:[#allocation99_spill] sm:$0xff] }
 0x4de   :  { %v3321_v31 = vsel %vm1164_vm2, %v14706_v46, %v14762_v58  ;;  %v14763_v28 = vld [vmem:[#allocation143_spill] sm:$0xff]  ;;  %v3657_v46 = vsel %vm1503_vm5, %v10686_v44, %v10715_v16 }
 0x4df   :  { %v4245_v18 = vmax.f32 %v4221_v26, 0.0  ;;  %v11075_v20 = vpop.permute.xlu1 %3803  ;;  %v3537_v26 = vsel %vm1382_vm3, %v14710_v27, %v14763_v28  ;;  %v3419_v27 = vsel %vm1261_vm1, %v14737_v59, %v10661_v52 }
 0x4e1   :  { %v11082_v35 = vpack.c.bf16 %v4245_v18, %v4239_v54  ;;  %v11084_v61 = vpop.permute.xlu0 %3809  ;;  %v3436_v54 = vadd.f32 %v3417_v57, %v3321_v31  ;;  %v3420_v57 = vsel %vm1261_vm1, %v14743_v48, %v10674_v17 }
 0x4e2   :  { %14759 = vst [vmem:[#allocation88_spill] sm:$0xff] %v11084_v61 }
 0x4e3   :  { %14758 = vst [vmem:[#allocation75_spill] sm:$0xff] %v11082_v35  ;;  %v11090_v11 = vpop.permute.xlu1 %3811  ;;  %v3556_v19 = vadd.f32 %v3537_v26, %v3436_v54  ;;  %v14766_v35 = vld [vmem:[#allocation28_spill] sm:$0xff]  ;;  %v14767_v26 = vld [vmem:[#allocation122_spill] sm:$0xff]  ;;  %v14768_v54 = vld [vmem:[#allocation51_spill] sm:$0xff] }
 0x4e4   :  { %14761 = vst [vmem:[#allocation80_spill] sm:$0xff] %v11090_v11  ;;  %6805 = vmatmul.mubr.msk.bf16.gmra.mrb[236].mxu0 %vm4453_vm14, %v11080_v62  ;;  %v14765_v62 = vld [vmem:[#allocation21_spill] sm:$0xff]  ;;  %v3323_v44 = vsel %vm1164_vm2, %v14741_v21, %v14766_v35  ;;  %v3324_v59 = vsel %vm1164_vm2, %v14747_v24, %v14767_v26  ;;  %v3538_v48 = vsel %vm1382_vm3, %v14716_v41, %v14768_v54  ;;  %v11142_v11 = vld [vmem:[%s13596_s4 + $0x58] sm:$0xff]  }
 0x4e5   :  { %v11102_v18 = vpop.permute.xlu0 %3805  ;;  %4650 = vmatprep.mubr.bf16.mxu0 %v14688_v60  ;;  %v3322_v2 = vsel %vm1164_vm2, %v14714_v36, %v14765_v62  ;;  %v3676_v61 = vadd.f32 %v3657_v46, %v3556_v19  ;;  %v3539_v21 = vsel %vm1382_vm3, %v10730_v50, %v10745_v4  ;;  %v3540_v24 = vsel %vm1382_vm3, %v10734_v45, %v10753_v14 }
 0x4e6   :  { %v3442_v36 = vadd.f32 %v3418_v22, %v3322_v2  ;;  %v3448_v41 = vadd.f32 %v3419_v27, %v3323_v44  ;;  %v3454_v63 = vadd.f32 %v3420_v57, %v3324_v59  ;;  %v3658_v22 = vsel %vm1503_vm5, %v10698_v13, %v10726_v51  ;;  %v14769_v13 = vld [vmem:[#allocation117_spill] sm:$0xff] }
 0x4e7   :  { %v11121_v31 = vpop.permute.xlu1 %3807  ;;  %v3659_v50 = vsel %vm1503_vm5, %v10759_v43, %v10777_v25  ;;  %v3660_v45 = vsel %vm1503_vm5, %v10768_v33, %v10787_v9  ;;  %v3724_v44 = vadd.f32 %v3676_v61, %v14769_v13  ;;  %v3410_v33 = vsel %vm1261_vm1, %v10945_v15, %v10337_v47 }
 0x4e8   :  { %v3562_v19 = vadd.f32 %v3538_v48, %v3442_v36  ;;  %v3568_v27 = vadd.f32 %v3539_v21, %v3448_v41  ;;  %v3574_v57 = vadd.f32 %v3540_v24, %v3454_v63  ;;  %v3414_v63 = vsel %vm1261_vm1, %v14764_v53, %v10945_v15  ;;  %v14770_v21 = vld [vmem:[#allocation159_spill] sm:$0xff]  ;;  %v14772_v24 = vld [vmem:[#allocation120_spill] sm:$0xff] }
 0x4e9   :  { %v11152_v30 = vpop.permute.xlu0 %3921  ;;  %v3314_v61 = vsel %vm1164_vm2, %v10938_v49, %v10305_v0  ;;  %v3318_v36 = vsel %vm1164_vm2, %v14765_v62, %v10938_v49  ;;  %v3409_v47 = vsel %vm1261_vm1, %v10952_v6, %v10333_v10  ;;  %v3413_v15 = vsel %vm1261_vm1, %v14760_v56, %v10952_v6  ;;  %v14771_v62 = vld [vmem:[#allocation105_spill] sm:$0xff] }
 0x4ea   :  { %v3682_v2 = vadd.f32 %v3658_v22, %v3562_v19  ;;  %v3688_v43 = vadd.f32 %v3659_v50, %v3568_v27  ;;  %v3694_v48 = vadd.f32 %v3660_v45, %v3574_v57  ;;  %v3313_v0 = vsel %vm1164_vm2, %v10942_v37, %v14770_v21  ;;  %v11219_v56 = vld [vmem:[%s13596_s4 + $0x60] sm:$0xff]   ;;  %v14773_v19 = vld [vmem:[#allocation47_spill] sm:$0xff]  ;;  %v14775_v57 = vld [vmem:[#allocation110_spill] sm:$0xff] }
 0x4eb   :  { %v11166_v46 = vpop.permute.xlu1 %3923  ;;  %v3317_v49 = vsel %vm1164_vm2, %v14762_v58, %v10942_v37  ;;  %v3530_v10 = vsel %vm1382_vm3, %v14772_v24, %v14771_v62  ;;  %v3534_v6 = vsel %vm1382_vm3, %v14768_v54, %v14772_v24  ;;  %v3443_v41 = vadd.f32 %v3414_v63, %v3318_v36  ;;  %v14774_v50 = vld [vmem:[#allocation73_spill] sm:$0xff]  ;;  %v14777_v21 = vld [vmem:[#allocation131_spill] sm:$0xff]  ;;  %v14778_v24 = vld [vmem:[#allocation140_spill] sm:$0xff] }
 0x4ec   :  { %6806 = vmatmul.mubr.msk.bf16.gmra.mrb[240].mxu0 %vm4453_vm14, %v11142_v11  ;;  %v3444_v22 = vadd.f32 %v3410_v33, %v3314_v61  ;;  %v3529_v37 = vsel %vm1382_vm3, %v14774_v50, %v14773_v19  ;;  %v3533_v58 = vsel %vm1382_vm3, %v14763_v28, %v14774_v50  ;;  %v3437_v54 = vadd.f32 %v3413_v15, %v3317_v49  ;;  %v14776_v33 = vld [vmem:[#allocation32_spill] sm:$0xff]  ;;  %v14779_v15 = vld [vmem:[#allocation77_spill] sm:$0xff] }
 0x4ed   :  { %4660 = vmatprep.mubr.bf16.mxu0 %v14688_v60  ;;  %v3438_v27 = vadd.f32 %v3409_v47, %v3313_v0  ;;  %v3821_v13 = vsel %vm1672_vm9, %v14775_v57, %v11072_v12  ;;  %v3730_v63 = vadd.f32 %v3682_v2, %v14776_v33  ;;  %v11236_v61 = vadd.f32 %v3534_v6, %v3443_v41  ;;  %v14780_v2 = vld [vmem:[#allocation39_spill] sm:$0xff]  ;;  %v14783_v41 = vld [vmem:[#allocation141_spill] sm:$0xff]  ;;  %v14786_v33 = vld [vmem:[#allocation90_spill] sm:$0xff] }
 0x4ee   :  { %v11171_v59 = vpop.permute.xlu0 %3925  ;;  %v11238_v36 = vadd.f32 %v3530_v10, %v3444_v22  ;;  %v3736_v62 = vadd.f32 %v3688_v43, %v14777_v21  ;;  %v3742_v19 = vadd.f32 %v3694_v48, %v14778_v24  ;;  %v11244_v50 = vadd.f32 %v3533_v58, %v3437_v54  ;;  %v14781_v43 = vld [vmem:[#allocation161_spill] sm:$0xff]  ;;  %v14782_v48 = vld [vmem:[#allocation19_spill] sm:$0xff]  ;;  %v14784_v54 = vld [vmem:[#allocation160_spill] sm:$0xff] }
 0x4ef   :  { %v11198_v53 = vpop.permute.xlu1 %3927  ;;  %v11246_v47 = vadd.f32 %v3529_v37, %v3438_v27  ;;  %v3822_v0 = vsel %vm1672_vm9, %v14779_v15, %v11075_v20  ;;  %v3941_v49 = vsel %vm1793_vm4, %v14780_v2, %v11152_v30  ;;  %v3316_v10 = vsel %vm1164_vm2, %v14782_v48, %v14781_v43  ;;  %v14785_v27 = vld [vmem:[#allocation114_spill] sm:$0xff]  ;;  %v14788_v24 = vld [vmem:[#allocation164_spill] sm:$0xff] }
 0x4f0   :  { %v3320_v6 = vsel %vm1164_vm2, %v14767_v26, %v14782_v48  ;;  %v3416_v22 = vsel %vm1261_vm1, %v10674_v17, %v14783_v41  ;;  %v3844_v37 = vadd.f32 %v3821_v13, %v3724_v44  ;;  %v3315_v57 = vsel %vm1164_vm2, %v14785_v27, %v14784_v54  ;;  %v14787_v44 = vld [vmem:[#allocation162_spill] sm:$0xff] }
 0x4f1   :  { %v3823_v26 = vsel %vm1672_vm9, %v10848_v23, %v11102_v18  ;;  %v3942_v17 = vsel %vm1793_vm4, %v14786_v33, %v11166_v46  ;;  %v3319_v21 = vsel %vm1164_vm2, %v14766_v35, %v14785_v27  ;;  %v3412_v23 = vsel %vm1261_vm1, %v14783_v41, %v14788_v24  ;;  %v14789_v27 = vld [vmem:[#allocation76_spill] sm:$0xff] }
 0x4f2   :  { %v11229_v45 = vpop.permute.xlu0 %4041  ;;  %v3850_v15 = vadd.f32 %v3822_v0, %v3730_v63  ;;  %v3964_v2 = vadd.f32 %v3941_v49, %v3844_v37  ;;  %v3455_v48 = vadd.f32 %v3416_v22, %v3320_v6  ;;  %v3824_v54 = vsel %vm1672_vm9, %v10857_v8, %v11121_v31  ;;  %v11314_v63 = vld [vmem:[%s13596_s4 + $0x68] sm:$0xff]  }
 0x4f3   :  { %v11242_v28 = vpop.permute.xlu1 %4043  ;;  %v4061_v13 = vsel %vm1914_vm6, %v14787_v44, %v11229_v45  ;;  %v3943_v35 = vsel %vm1793_vm4, %v10888_v3, %v11171_v59  ;;  %v3415_v8 = vsel %vm1261_vm1, %v10661_v52, %v11002_v5  ;;  %v3856_v0 = vadd.f32 %v3823_v26, %v3736_v62  ;;  %v14790_v3 = vld [vmem:[#allocation163_spill] sm:$0xff] }
 0x4f4   :  { %6807 = vmatmul.mubr.msk.bf16.gmra.mrb[244].mxu0 %vm4453_vm14, %v11219_v56  ;;  %v4062_v41 = vsel %vm1914_vm6, %v14789_v27, %v11242_v28  ;;  %v3970_v49 = vadd.f32 %v3942_v17, %v3850_v15  ;;  %v4084_v6 = vadd.f32 %v4061_v13, %v3964_v2  ;;  %v3411_v37 = vsel %vm1261_vm1, %v11002_v5, %v14790_v3  ;;  %v14791_v62 = vld [vmem:[#allocation55_spill] sm:$0xff] }
 0x4f5   :  { %4670 = vmatprep.mubr.bf16.mxu0 %v14688_v60  ;;  %v3944_v33 = vsel %vm1793_vm4, %v10899_v34, %v11198_v53  ;;  %v3862_v17 = vadd.f32 %v3824_v54, %v3742_v19  ;;  %v3976_v44 = vadd.f32 %v3943_v35, %v3856_v0  ;;  %v3456_v15 = vadd.f32 %v3412_v23, %v3316_v10  ;;  %v14793_v35 = vld [vmem:[#allocation92_spill] sm:$0xff] }
 0x4f6   :  { %v11270_v58 = vpop.permute.xlu0 %4045  ;;  %v4090_v13 = vadd.f32 %v4062_v41, %v3970_v49  ;;  %v3449_v2 = vadd.f32 %v3415_v8, %v3319_v21  ;;  %v3654_v19 = vsel %vm1503_vm5, %v10726_v51, %v11009_v42  ;;  %v3650_v41 = vsel %vm1503_vm5, %v11009_v42, %v14793_v35 }
 0x4f7   :  { %v11297_v43 = vpop.permute.xlu1 %4047  ;;  %v4063_v52 = vsel %vm1914_vm6, %v10924_v7, %v11270_v58  ;;  %v14792_v7 = vld [vmem:[#allocation69_spill] sm:$0xff]  ;;  %v3982_v10 = vadd.f32 %v3944_v33, %v3862_v17  ;;  %v3536_v8 = vsel %vm1382_vm3, %v10753_v14, %v11023_v55  ;;  %v14794_v33 = vld [vmem:[#allocation91_spill] sm:$0xff] }
 0x4f8   :  { %v4064_v34 = vsel %vm1914_vm6, %v10927_v32, %v11297_v43  ;;  %v4096_v21 = vadd.f32 %v4063_v52, %v3976_v44  ;;  %v3450_v32 = vadd.f32 %v3411_v37, %v3315_v57  ;;  %v3683_v37 = vadd.f32 %v3654_v19, %v11236_v61  ;;  %v14795_v52 = vld [vmem:[#allocation87_spill] sm:$0xff]  ;;  %v14796_v61 = vld [vmem:[#allocation102_spill] sm:$0xff] }
 0x4f9   :  { %v4102_v0 = vadd.f32 %v4064_v34, %v3982_v10  ;;  %v3649_v42 = vsel %vm1503_vm5, %v11016_v29, %v14794_v33  ;;  %v3532_v14 = vsel %vm1382_vm3, %v11023_v55, %v14795_v52  ;;  %v3535_v55 = vsel %vm1382_vm3, %v10745_v4, %v11036_v1  ;;  %v14798_v34 = vld [vmem:[#allocation37_spill] sm:$0xff]  ;;  %v14801_v19 = vld [vmem:[#allocation158_spill] sm:$0xff] }
 0x4fa   :  { %v11320_v22 = vpop.permute.xlu0 %4161  ;;  %v3576_v35 = vadd.f32 %v3532_v14, %v3456_v15 }
 0x4fb   :  { %v4181_v26 = vsel %vm2035_vm8, %v14791_v62, %v11320_v22  ;;  %v11338_v5 = vpop.permute.xlu1 %4163  ;;  %v11387_v62 = vld [vmem:[%s13596_s4 + $0x70] sm:$0xff]  }
 0x4fc   :  { %v4204_v24 = vadd.f32 %v4181_v26, %v4084_v6  ;;  %v4182_v27 = vsel %vm2035_vm8, %v14792_v7, %v11338_v5  ;;  %6808 = vmatmul.mubr.msk.bf16.gmra.mrb[248].mxu0 %vm4453_vm14, %v11314_v63  ;;  %v3531_v26 = vsel %vm1382_vm3, %v11036_v1, %v14796_v61  ;;  %v14799_v7 = vld [vmem:[#allocation78_spill] sm:$0xff]  ;;  %v14800_v1 = vld [vmem:[#allocation48_spill] sm:$0xff] }
 0x4fd   :  { %v4210_v23 = vadd.f32 %v4182_v27, %v4090_v13  ;;  %4680 = vmatprep.mubr.bf16.mxu0 %v14688_v60  ;;  %v3652_v27 = vsel %vm1503_vm5, %v14799_v7, %v14798_v34  ;;  %v3656_v4 = vsel %vm1503_vm5, %v10787_v9, %v14799_v7  ;;  %v3651_v10 = vsel %vm1503_vm5, %v14801_v19, %v14800_v1  ;;  %v14809_v61 = vld [vmem:[#allocation132_spill] sm:$0xff]  ;;  %v14813_v34 = vld [vmem:[#allocation133_spill] sm:$0xff] }
 0x4fe   :  { %v11354_v54 = vpop.permute.xlu0 %4165  ;;  %v4228_v49 = vmax.f32 %v4204_v24, 0.0  ;;  %v3575_v24 = vadd.f32 %v3536_v8, %v3455_v48  ;;  %v3569_v8 = vadd.f32 %v3535_v55, %v3449_v2  ;;  %v3570_v9 = vadd.f32 %v3531_v26, %v3450_v32  ;;  %v14810_v55 = vld [vmem:[#allocation75_spill] sm:$0xff] }
 0x4ff   :  { %v4183_v51 = vsel %vm2035_vm8, %v10936_v38, %v11354_v54  ;;  %v4234_v6 = vmax.f32 %v4210_v23, 0.0  ;;  %v11369_v57 = vpop.permute.xlu1 %4167  ;;  %v3696_v2 = vadd.f32 %v3652_v27, %v3576_v35  ;;  %v3731_v7 = vadd.f32 %v3683_v37, %v14813_v34  ;;  %v14814_v27 = vld [vmem:[#allocation142_spill] sm:$0xff]  ;;  %v14818_v35 = vld [vmem:[#allocation24_spill] sm:$0xff] }
 0x500   :  { %v4216_v3 = vadd.f32 %v4183_v51, %v4096_v21  ;;  %v4184_v38 = vsel %vm2035_vm8, %v11064_v39, %v11369_v57  ;;  %v3653_v39 = vsel %vm1503_vm5, %v10715_v16, %v11016_v29  ;;  %v3655_v16 = vsel %vm1503_vm5, %v10777_v25, %v14801_v19  ;;  %v14803_v51 = vld [vmem:[#allocation33_spill] sm:$0xff]  ;;  %v14815_v19 = vld [vmem:[#allocation7_spill] sm:$0xff] }
 0x501   :  { %v11397_v17 = vpack.c.bf16 %v4234_v6, %v4228_v49  ;;  %v4222_v44 = vadd.f32 %v4184_v38, %v4102_v0  ;;  %v3684_v49 = vadd.f32 %v3650_v41, %v11238_v36  ;;  %v3677_v25 = vadd.f32 %v3653_v39, %v11244_v50  ;;  %v14806_v38 = vld [vmem:[#allocation88_spill] sm:$0xff]  ;;  %v14807_v50 = vld [vmem:[#allocation123_spill] sm:$0xff]  ;;  %v14812_v39 = vld [vmem:[#allocation101_spill] sm:$0xff] }
 0x502   :  { %v3930_v13 = vpop.permute.xlu0 %3929  ;;  %v4240_v29 = vmax.f32 %v4216_v3, 0.0  ;;  %v3678_v6 = vadd.f32 %v3649_v42, %v11246_v47  ;;  %v3695_v15 = vadd.f32 %v3656_v4, %v3575_v24  ;;  %v3689_v32 = vadd.f32 %v3655_v16, %v3569_v8  ;;  %v14808_v41 = vld [vmem:[#allocation80_spill] sm:$0xff] }
 0x503   :  { %14797 = vst [vmem:[#allocation43_spill] sm:$0xff] %v11397_v17  ;;  %v4246_v48 = vmax.f32 %v4222_v44, 0.0  ;;  %6926 = vmatprep.subr.msk.bf16.mxu1 %vm9190_vm7, %v11397_v17  ;;  %v3932_v23 = vpop.permute.xlu1 %3931  ;;  %v3690_v52 = vadd.f32 %v3651_v10, %v3570_v9  ;;  %v3817_v36 = vsel %vm1672_vm9, %v11072_v12, %v14806_v38  ;;  %v3837_v47 = vsel %vm1672_vm9, %v14806_v38, %v14807_v50  ;;  %v14811_v12 = vld [vmem:[#allocation100_spill] sm:$0xff]  ;;  %v14816_v10 = vld [vmem:[#allocation111_spill] sm:$0xff] }
 0x504   :  { %6929 = vmatpush1.bf16.msk.msra.mxu1 %vm9196_vm10, %v14803_v51  ;;  %6809 = vmatmul.mubr.msk.bf16.gmra.mrb[252].mxu0 %vm4453_vm14, %v11387_v62  ;;  %v3818_v42 = vsel %vm1672_vm9, %v11075_v20, %v14808_v41  ;;  %v3838_v26 = vsel %vm1672_vm9, %v14808_v41, %v14809_v61  ;;  %v3725_v44 = vadd.f32 %v3677_v25, %v14811_v12  ;;  %v11463_v20 = vld [vmem:[%s13596_s4 + $0x78] sm:$0xff]   ;;  %v14819_v9 = vld [vmem:[#allocation27_spill] sm:$0xff] }
 0x505   :  { %v11430_v3 = vpack.c.bf16 %v4246_v48, %v4240_v29  ;;  %4690 = vmatprep.mubr.bf16.mxu0 %v14688_v60  ;;  %v3726_v24 = vadd.f32 %v3678_v6, %v14812_v39  ;;  %v3732_v4 = vadd.f32 %v3684_v49, %v14814_v27  ;;  %v3737_v16 = vadd.f32 %v3689_v32, %v14816_v10  ;;  %v14817_v29 = vld [vmem:[#allocation22_spill] sm:$0xff]  ;;  %v14820_v50 = vld [vmem:[#allocation104_spill] sm:$0xff] }
 0x506   :  { %v3814_v33 = vpop.permute.xlu0 %3813  ;;  %v3738_v48 = vadd.f32 %v3690_v52, %v14817_v29  ;;  %v3743_v8 = vadd.f32 %v3695_v15, %v14818_v35  ;;  %v3744_v25 = vadd.f32 %v3696_v2, %v14819_v9  ;;  %v3845_v6 = vadd.f32 %v3817_v36, %v3725_v44  ;;  %v14821_v12 = vld [vmem:[#allocation152_spill] sm:$0xff]  ;;  %v14828_v39 = vld [vmem:[#allocation82_spill] sm:$0xff]  ;;  %v14830_v35 = vld [vmem:[#allocation63_spill] sm:$0xff] }
 0x507   :  { %14805 = vst [vmem:[#allocation145_spill] sm:$0xff] %v11430_v3  ;;  %6932 = vmatprep.subr.msk.bf16.mxu1 %vm9190_vm7, %v11430_v3  ;;  %v3816_v14 = vpop.permute.xlu1 %3815  ;;  %v3846_v37 = vadd.f32 %v3837_v47, %v3726_v24  ;;  %v3851_v38 = vadd.f32 %v3818_v42, %v3731_v7  ;;  %v3852_v49 = vadd.f32 %v3838_v26, %v3732_v4  ;;  %v14822_v2 = vld [vmem:[#allocation8_spill] sm:$0xff]  ;;  %v14824_v47 = vld [vmem:[#allocation150_spill] sm:$0xff] }
 0x508   :  { %6935 = vmatpush1.bf16.msk.msra.mxu1 %vm9196_vm10, %v14810_v55  ;;  %v3937_v61 = vsel %vm1793_vm4, %v11152_v30, %v3930_v13  ;;  %v3957_v32 = vsel %vm1793_vm4, %v3930_v13, %v14821_v12  ;;  %v3938_v15 = vsel %vm1793_vm4, %v11166_v46, %v3932_v23  ;;  %v14823_v52 = vld [vmem:[#allocation148_spill] sm:$0xff]  ;;  %v3819_v30 = vsel %vm1672_vm9, %v11102_v18, %v3814_v33  ;;  %v14825_v26 = vld [vmem:[#allocation14_spill] sm:$0xff] }
 0x509   :  { %6466 = vmatprep.subr.bf16.mxu1 %v14815_v19  ;;  %v3958_v36 = vsel %vm1793_vm4, %v3932_v23, %v14823_v52  ;;  %v3839_v13 = vsel %vm1672_vm9, %v3814_v33, %v14824_v47  ;;  %v3820_v46 = vsel %vm1672_vm9, %v11121_v31, %v3816_v14  ;;  %v14827_v23 = vld [vmem:[#allocation146_spill] sm:$0xff]  ;;  %v3965_v34 = vadd.f32 %v3937_v61, %v3845_v6  ;;  %v14829_v27 = vld [vmem:[#allocation144_spill] sm:$0xff] }
 0x50a   :  { %v4050_v1 = vpop.permute.xlu0 %4049  ;;  %v3840_v18 = vsel %vm1672_vm9, %v3816_v14, %v14827_v23  ;;  %v3966_v7 = vadd.f32 %v3957_v32, %v3846_v37  ;;  %v3971_v19 = vadd.f32 %v3938_v15, %v3851_v38  ;;  %v3972_v10 = vadd.f32 %v3958_v36, %v3852_v49  ;;  %v14832_v32 = vld [vmem:[#allocation29_spill] sm:$0xff]  ;;  %v14835_v36 = vld [vmem:[#allocation23_spill] sm:$0xff] }
 0x50b   :  { %6813 = vmatmul.mubr.msk.bf16.vlgmr.msra.gmra.mrb[236].mxu1 %vm4453_vm14, %v14820_v50  ;;  %v4052_v41 = vpop.permute.xlu1 %4051  ;;  %v4057_v33 = vsel %vm1914_vm6, %v11229_v45, %v4050_v1  ;;  %v4077_v24 = vsel %vm1914_vm6, %v4050_v1, %v14828_v39  ;;  %v3857_v45 = vadd.f32 %v3819_v30, %v3737_v16  ;;  %v3858_v29 = vadd.f32 %v3839_v13, %v3738_v48  ;;  %v14836_v13 = vld [vmem:[#allocation85_spill] sm:$0xff] }
 0x50c   :  { %6467 = vmatpush1.bf16.msra.mxu1 %v14822_v2  ;;  %4763 = vmatprep.mubr.bf16.mxu1 %v14688_v60  ;;  %v4058_v31 = vsel %vm1914_vm6, %v11242_v28, %v4052_v41  ;;  %v4078_v14 = vsel %vm1914_vm6, %v4052_v41, %v14829_v27  ;;  %v3863_v1 = vadd.f32 %v3820_v46, %v3743_v8  ;;  %v11524_v28 = vld [vmem:[%s13596_s4 + $0x80] sm:$0xff]   ;;  %v14833_v8 = vld [vmem:[#allocation58_spill] sm:$0xff]  ;;  %v14834_v41 = vld [vmem:[#allocation71_spill] sm:$0xff] }
 0x50d   :  { %6962 = vmatprep.subr.msk.bf16.mxu1 %vm8706_vm12, %v14825_v26  ;;  %6810 = vmatmul.mubr.msk.bf16.gmra.mrb[0].mxu0 %vm4453_vm14, %v11463_v20  ;;  %v3864_v6 = vadd.f32 %v3840_v18, %v3744_v25  ;;  %v4085_v37 = vadd.f32 %v4057_v33, %v3965_v34  ;;  %v4086_v61 = vadd.f32 %v4077_v24, %v3966_v7  ;;  %v14837_v26 = vld [vmem:[#allocation18_spill] sm:$0xff]  ;;  %v14839_v33 = vld [vmem:[#allocation93_spill] sm:$0xff] }
 0x50e   :  { %v3934_v42 = vpop.permute.xlu0 %3933  ;;  %4700 = vmatprep.mubr.bf16.mxu0 %v14688_v60  ;;  %v4091_v16 = vadd.f32 %v4058_v31, %v3971_v19  ;;  %v4092_v48 = vadd.f32 %v4078_v14, %v3972_v10  ;;  %v14840_v34 = vld [vmem:[#allocation45_spill] sm:$0xff] }
 0x50f   :  { %v3936_v4 = vpop.permute.xlu1 %3935  ;;  %v3939_v49 = vsel %vm1793_vm4, %v11171_v59, %v3934_v42  ;;  %v3959_v15 = vsel %vm1793_vm4, %v3934_v42, %v14834_v41  ;;  %v14838_v42 = vld [vmem:[#allocation135_spill] sm:$0xff] }
 0x510   :  { %6965 = vmatpush1.bf16.msk.msra.mxu1 %vm8721_vm13, %v14830_v35  ;;  %v3960_v46 = vsel %vm1793_vm4, %v3936_v4, %v14838_v42  ;;  %v3978_v39 = vadd.f32 %v3959_v15, %v3858_v29  ;;  %v14841_v29 = vld [vmem:[#allocation62_spill] sm:$0xff] }
 0x511   :  { %6968 = vmatprep.subr.msk.bf16.mxu1 %vm8706_vm12, %v14832_v32  ;;  %v3984_v35 = vadd.f32 %v3960_v46, %v3864_v6  ;;  %v14845_v6 = vld [vmem:[#allocation25_spill] sm:$0xff] }
 0x512   :  { %v4170_v12 = vpop.permute.xlu0 %4169 }
 0x513   :  { %v4177_v38 = vsel %vm2035_vm8, %v11320_v22, %v4170_v12  ;;  %v4197_v25 = vsel %vm2035_vm8, %v4170_v12, %v14833_v8  ;;  %6814 = vmatmul.mubr.msk.bf16.gmra.mrb[240].mxu1 %vm4453_vm14, %v14835_v36  ;;  %v4172_v30 = vpop.permute.xlu1 %4171  ;;  %v3940_v22 = vsel %vm1793_vm4, %v11198_v53, %v3936_v4  ;;  %v14846_v8 = vld [vmem:[#allocation113_spill] sm:$0xff] }
 0x514   :  { %v4205_v2 = vadd.f32 %v4177_v38, %v4085_v37  ;;  %v4206_v52 = vadd.f32 %v4197_v25, %v4086_v61  ;;  %v4178_v47 = vsel %vm2035_vm8, %v11338_v5, %v4172_v30  ;;  %v4198_v59 = vsel %vm2035_vm8, %v4172_v30, %v14836_v13  ;;  %6971 = vmatpush1.bf16.msk.msra.mxu1 %vm8721_vm13, %v14837_v26  ;;  %v14842_v37 = vld [vmem:[#allocation74_spill] sm:$0xff] }
 0x515   :  { %4773 = vmatprep.mubr.bf16.mxu1 %v14688_v60  ;;  %v4211_v23 = vadd.f32 %v4178_v47, %v4091_v16  ;;  %v4212_v53 = vadd.f32 %v4198_v59, %v4092_v48  ;;  %6974 = vmatprep.subr.msk.bf16.mxu1 %vm8706_vm12, %v14839_v33  ;;  %v3977_v5 = vadd.f32 %v3939_v49, %v3857_v45  ;;  %v14848_v30 = vld [vmem:[#allocation86_spill] sm:$0xff]  ;;  %v14851_v59 = vld [vmem:[#allocation136_spill] sm:$0xff] }
 0x516   :  { %v4054_v18 = vpop.permute.xlu0 %4053  ;;  %6811 = vmatmul.mubr.msk.bf16.gmra.mrb[4].mxu0 %vm4453_vm14, %v11524_v28  ;;  %v4229_v31 = vmax.f32 %v4205_v2, 0.0  ;;  %v4230_v27 = vmax.f32 %v4206_v52, 0.0  ;;  %v3983_v10 = vadd.f32 %v3940_v22, %v3863_v1 }
 0x517   :  { %v4059_v24 = vsel %vm1914_vm6, %v11270_v58, %v4054_v18  ;;  %v4079_v7 = vsel %vm1914_vm6, %v4054_v18, %v14840_v34  ;;  %4710 = vmatprep.mubr.bf16.mxu0 %v14688_v60  ;;  %v4235_v14 = vmax.f32 %v4211_v23, 0.0  ;;  %v4236_v4 = vmax.f32 %v4212_v53, 0.0  ;;  %v4056_v19 = vpop.permute.xlu1 %4055  ;;  %v14859_v34 = vld [vmem:[#allocation157_spill] sm:$0xff] }
 0x518   :  { %v4060_v45 = vsel %vm1914_vm6, %v11297_v43, %v4056_v19  ;;  %v4080_v58 = vsel %vm1914_vm6, %v4056_v19, %v14841_v29  ;;  %6977 = vmatpush1.bf16.msk.msra.mxu1 %vm8721_vm13, %v14842_v37  ;;  %v4097_v32 = vadd.f32 %v4059_v24, %v3977_v5  ;;  %v4098_v16 = vadd.f32 %v4079_v7, %v3978_v39  ;;  %v11587_v43 = vld [vmem:[%s13596_s4 + $0x88] sm:$0xff]   ;;  %v14854_v5 = vld [vmem:[#allocation20_spill] sm:$0xff]  ;;  %v14856_v24 = vld [vmem:[#allocation125_spill] sm:$0xff] }
 0x519   :  { %v11577_v61 = vpack.c.bf16 %v4236_v4, %v4230_v27  ;;  %v11579_v12 = vpack.c.bf16 %v4235_v14, %v4229_v31  ;;  %6980 = vmatprep.subr.msk.bf16.mxu1 %vm8706_vm12, %v14845_v6  ;;  %v4103_v48 = vadd.f32 %v4060_v45, %v3983_v10  ;;  %v4104_v49 = vadd.f32 %v4080_v58, %v3984_v35  ;;  %v14855_v39 = vld [vmem:[#allocation116_spill] sm:$0xff]  ;;  %v14861_v31 = vld [vmem:[#allocation134_spill] sm:$0xff] }
 0x51a   :  { %v4174_v1 = vpop.permute.xlu0 %4173  ;;  %v14860_v7 = vld [vmem:[#allocation40_spill] sm:$0xff] }
 0x51b   :  { %14843 = vst [vmem:[#allocation139_spill] sm:$0xff] %v11577_v61  ;;  %14844 = vst [vmem:[#allocation70_spill] sm:$0xff] %v11579_v12  ;;  %v4179_v38 = vsel %vm2035_vm8, %v11354_v54, %v4174_v1  ;;  %v4199_v25 = vsel %vm2035_vm8, %v4174_v1, %v14846_v8  ;;  %6950 = vmatprep.subr.msk.bf16.mxu0 %vm9508_vm0, %v11577_v61  ;;  %v4176_v52 = vpop.permute.xlu1 %4175  ;;  %6815 = vmatmul.mubr.msk.bf16.gmra.mrb[244].mxu1 %vm4453_vm14, %v14848_v30  ;;  %v14849_v54 = vld [vmem:[#allocation35_spill] sm:$0xff] }
 0x51c   :  { %v4217_v41 = vadd.f32 %v4179_v38, %v4097_v32  ;;  %v4218_v15 = vadd.f32 %v4199_v25, %v4098_v16  ;;  %v4180_v22 = vsel %vm2035_vm8, %v11369_v57, %v4176_v52  ;;  %v4200_v47 = vsel %vm2035_vm8, %v4176_v52, %v14849_v54  ;;  %6953 = vmatpush1.bf16.msk.msra.mxu0 %vm9527_vm11, %v11579_v12 }
 0x51d   :  { %6983 = vmatpush1.bf16.msk.msra.mxu1 %vm8721_vm13, %v14851_v59  ;;  %v4223_v26 = vadd.f32 %v4180_v22, %v4103_v48  ;;  %v4224_v42 = vadd.f32 %v4200_v47, %v4104_v49  ;;  %4783 = vmatprep.mubr.bf16.mxu1 %v14688_v60 }
 0x51e   :  { %6812 = vmatmul.mubr.msk.bf16.gmra.mrb[8].mxu0 %vm4453_vm14, %v11587_v43  ;;  %v4241_v57 = vmax.f32 %v4217_v41, 0.0  ;;  %v4242_v46 = vmax.f32 %v4218_v15, 0.0 }
 0x51f   :  { %4966 = vmatprep.mubr.bf16.mxu0 %v14688_v60  ;;  %v4247_v23 = vmax.f32 %v4223_v26, 0.0  ;;  %v4248_v53 = vmax.f32 %v4224_v42, 0.0 }
 0x521   :  { %v11616_v18 = vpack.c.bf16 %v4248_v53, %v4242_v46  ;;  %v11618_v33 = vpack.c.bf16 %v4247_v23, %v4241_v57 }
 0x523   :  { %14852 = vst [vmem:[#allocation57_spill] sm:$0xff] %v11616_v18  ;;  %14853 = vst [vmem:[#allocation156_spill] sm:$0xff] %v11618_v33  ;;  %6956 = vmatprep.subr.msk.bf16.mxu0 %vm9508_vm0, %v11616_v18  ;;  %6816 = vmatmul.mubr.msk.bf16.gmra.mrb[248].mxu1 %vm4453_vm14, %v14854_v5 }
 0x524   :  { %6959 = vmatpush1.bf16.msk.msra.mxu0 %vm9527_vm11, %v11618_v33  ;;  %4793 = vmatprep.mubr.bf16.mxu1 %v14688_v60 }
 0x527   :  { %6831 = vmatmul.mubr.msk.bf16.vlgmr.msra.gmra.mrb[12].mxu0 %vm4453_vm14, %v14820_v50  ;;  %v14857_v50 = vld [vmem:[#allocation149_spill] sm:$0xff] }
 0x528   :  { %4976 = vmatprep.mubr.bf16.mxu0 %v14688_v60 }
 0x52b   :  { %6817 = vmatmul.mubr.msk.bf16.gmra.mrb[252].mxu1 %vm4453_vm14, %v14855_v39 }
 0x52c   :  { %4803 = vmatprep.mubr.bf16.mxu1 %v14688_v60 }
 0x52f   :  { %6832 = vmatmul.mubr.msk.bf16.gmra.mrb[16].mxu0 %vm4453_vm14, %v14835_v36  ;;  %v14858_v36 = vld [vmem:[#allocation81_spill] sm:$0xff] }
 0x530   :  { %4986 = vmatprep.mubr.bf16.mxu0 %v14688_v60 }
 0x533   :  { %6818 = vmatmul.mubr.msk.bf16.gmra.mrb[0].mxu1 %vm4453_vm14, %v14856_v24 }
 0x534   :  { %4813 = vmatprep.mubr.bf16.mxu1 %v14688_v60 }
 0x537   :  { %6833 = vmatmul.mubr.msk.bf16.gmra.mrb[20].mxu0 %vm4453_vm14, %v14848_v30 }
 0x538   :  { %4996 = vmatprep.mubr.bf16.mxu0 %v14688_v60 }
 0x53b   :  { %6819 = vmatmul.mubr.msk.bf16.gmra.mrb[4].mxu1 %vm4453_vm14, %v14857_v50 }
 0x53c   :  { %4823 = vmatprep.mubr.bf16.mxu1 %v14688_v60 }
 0x53f   :  { %6834 = vmatmul.mubr.msk.bf16.gmra.mrb[24].mxu0 %vm4453_vm14, %v14854_v5 }
 0x540   :  { %5006 = vmatprep.mubr.bf16.mxu0 %v14688_v60 }
 0x543   :  { %6820 = vmatmul.mubr.msk.bf16.gmra.mrb[8].mxu1 %vm4453_vm14, %v14858_v36 }
 0x544   :  { %4833 = vmatprep.mubr.bf16.mxu1 %v14688_v60 }
 0x547   :  { %6835 = vmatmul.mubr.msk.bf16.gmra.mrb[28].mxu0 %vm4453_vm14, %v14855_v39 }
 0x548   :  { %5016 = vmatprep.mubr.bf16.mxu0 %v14688_v60 }
 0x54b   :  { %6821 = vmatmul.mubr.msk.bf16.gmra.mrb[12].mxu1 %vm4453_vm14, %v14859_v34 }
 0x54c   :  { %4843 = vmatprep.mubr.bf16.mxu1 %v14688_v60 }
 0x54f   :  { %6836 = vmatmul.mubr.msk.bf16.gmra.mrb[32].mxu0 %vm4453_vm14, %v14856_v24 }
 0x550   :  { %5026 = vmatprep.mubr.bf16.mxu0 %v14688_v60 }
 0x553   :  { %6822 = vmatmul.mubr.msk.bf16.gmra.mrb[16].mxu1 %vm4453_vm14, %v14860_v7 }
 0x554   :  { %4853 = vmatprep.mubr.bf16.mxu1 %v14688_v60 }
 0x557   :  { %6837 = vmatmul.mubr.msk.bf16.gmra.mrb[36].mxu0 %vm4453_vm14, %v14857_v50 }
 0x558   :  { %5036 = vmatprep.mubr.bf16.mxu0 %v14688_v60 }
 0x55b   :  { %6823 = vmatmul.mubr.msk.bf16.gmra.mrb[20].mxu1 %vm4453_vm14, %v14861_v31 }
 0x55c   :  { %4863 = vmatprep.mubr.bf16.mxu1 %v14688_v60 }
 0x55f   :  { %6838 = vmatmul.mubr.msk.bf16.gmra.mrb[40].mxu0 %vm4453_vm14, %v14858_v36 }
 0x560   :  { %5046 = vmatprep.mubr.bf16.mxu0 %v14688_v60 }
 0x563   :  { %6824 = vmatmul.mubr.msk.bf16.gmra.mrb[24].mxu1 %vm4453_vm14, %v11142_v11 }
 0x564   :  { %4873 = vmatprep.mubr.bf16.mxu1 %v14688_v60 }
 0x567   :  { %v4542_v27 = vpop.f32.mrb[196].mxu0  ;;  %6839 = vmatmul.mubr.msk.bf16.gmra.mrb[44].mxu0 %vm4453_vm14, %v14859_v34 }
 0x568   :  { %v4544_v14 = vpop.f32.mrb[197].mxu0  ;;  %5387 = vrot.lane.b32.xlu0 %v4542_v27, %s7162_s2  ;;  %5056 = vmatprep.mubr.bf16.mxu0 %v14688_v60 }
 0x569   :  { %v4546_v4 = vpop.f32.mrb[198].mxu0 }
 0x56a   :  { %5389 = vrot.lane.b32.xlu1 %v4546_v4, %s7162_s2  ;;  %v4548_v19 = vpop.f32.mrb[199].mxu0 }
 0x56b   :  { %6825 = vmatmul.mubr.msk.bf16.gmra.mrb[28].mxu1 %vm4453_vm14, %v11219_v56 }
 0x56c   :  { %5395 = vrot.lane.b32.xlu0 %v4544_v14, %s7162_s2  ;;  %4883 = vmatprep.mubr.bf16.mxu1 %v14688_v60 }
 0x56e   :  { %5397 = vrot.lane.b32.xlu1 %v4548_v19, %s7162_s2 }
 0x56f   :  { %v4552_v10 = vpop.f32.mrb[200].mxu0  ;;  %6840 = vmatmul.mubr.msk.bf16.gmra.mrb[48].mxu0 %vm4453_vm14, %v14860_v7 }
 0x570   :  { %v4554_v35 = vpop.f32.mrb[201].mxu0  ;;  %5391 = vrot.lane.b32.xlu0 %v4552_v10, %s7162_s2  ;;  %5066 = vmatprep.mubr.bf16.mxu0 %v14688_v60 }
 0x571   :  { %v4556_v45 = vpop.f32.mrb[202].mxu0 }
 0x572   :  { %5393 = vrot.lane.b32.xlu1 %v4556_v45, %s7162_s2  ;;  %v4558_v29 = vpop.f32.mrb[203].mxu0 }
 0x573   :  { %6826 = vmatmul.mubr.msk.bf16.gmra.mrb[32].mxu1 %vm4453_vm14, %v11314_v63 }
 0x574   :  { %5399 = vrot.lane.b32.xlu0 %v4554_v35, %s7162_s2  ;;  %4893 = vmatprep.mubr.bf16.mxu1 %v14688_v60 }
 0x576   :  { %5401 = vrot.lane.b32.xlu1 %v4558_v29, %s7162_s2 }
 0x577   :  { %v4562_v58 = vpop.f32.mrb[204].mxu0  ;;  %6841 = vmatmul.mubr.msk.bf16.gmra.mrb[52].mxu0 %vm4453_vm14, %v14861_v31 }
 0x578   :  { %v4564_v37 = vpop.f32.mrb[205].mxu0  ;;  %5483 = vrot.lane.b32.xlu0 %v4562_v58, %s7165_s28  ;;  %5076 = vmatprep.mubr.bf16.mxu0 %v14688_v60 }
 0x579   :  { %v4566_v32 = vpop.f32.mrb[206].mxu0 }
 0x57a   :  { %5485 = vrot.lane.b32.xlu1 %v4566_v32, %s7165_s28  ;;  %v4568_v16 = vpop.f32.mrb[207].mxu0 }
 0x57b   :  { %6827 = vmatmul.mubr.msk.bf16.gmra.mrb[36].mxu1 %vm4453_vm14, %v11387_v62 }
 0x57c   :  { %5491 = vrot.lane.b32.xlu0 %v4564_v37, %s7165_s28  ;;  %4903 = vmatprep.mubr.bf16.mxu1 %v14688_v60 }
 0x57e   :  { %5493 = vrot.lane.b32.xlu1 %v4568_v16, %s7165_s28 }
 0x57f   :  { %v4572_v1 = vpop.f32.mrb[208].mxu0  ;;  %6842 = vmatmul.mubr.msk.bf16.gmra.mrb[56].mxu0 %vm4453_vm14, %v11142_v11 }
 0x580   :  { %v4574_v6 = vpop.f32.mrb[209].mxu0  ;;  %5487 = vrot.lane.b32.xlu0 %v4572_v1, %s7165_s28  ;;  %5086 = vmatprep.mubr.bf16.mxu0 %v14688_v60 }
 0x581   :  { %v4576_v48 = vpop.f32.mrb[210].mxu0 }
 0x582   :  { %5489 = vrot.lane.b32.xlu1 %v4576_v48, %s7165_s28  ;;  %v4578_v38 = vpop.f32.mrb[211].mxu0 }
 0x583   :  { %6828 = vmatmul.mubr.msk.bf16.gmra.mrb[40].mxu1 %vm4453_vm14, %v11463_v20 }
 0x584   :  { %5495 = vrot.lane.b32.xlu0 %v4574_v6, %s7165_s28  ;;  %4913 = vmatprep.mubr.bf16.mxu1 %v14688_v60 }
 0x586   :  { %5497 = vrot.lane.b32.xlu1 %v4578_v38, %s7165_s28 }
 0x587   :  { %v4582_v8 = vpop.f32.mrb[212].mxu0  ;;  %6843 = vmatmul.mubr.msk.bf16.gmra.mrb[60].mxu0 %vm4453_vm14, %v11219_v56 }
 0x588   :  { %v4584_v11 = vpop.f32.mrb[213].mxu0  ;;  %5603 = vrot.lane.b32.xlu0 %v4582_v8, %s7167_s30  ;;  %5096 = vmatprep.mubr.bf16.mxu0 %v14688_v60 }
 0x589   :  { %v4586_v25 = vpop.f32.mrb[214].mxu0 }
 0x58a   :  { %5605 = vrot.lane.b32.xlu1 %v4586_v25, %s7167_s30  ;;  %v4588_v49 = vpop.f32.mrb[215].mxu0 }
 0x58b   :  { %6829 = vmatmul.mubr.msk.bf16.gmra.mrb[44].mxu1 %vm4453_vm14, %v11524_v28 }
 0x58c   :  { %5611 = vrot.lane.b32.xlu0 %v4584_v11, %s7167_s30  ;;  %4923 = vmatprep.mubr.bf16.mxu1 %v14688_v60 }
 0x58e   :  { %5613 = vrot.lane.b32.xlu1 %v4588_v49, %s7167_s30 }
 0x58f   :  { %v4592_v41 = vpop.f32.mrb[216].mxu0  ;;  %6844 = vmatmul.mubr.msk.bf16.gmra.mrb[64].mxu0 %vm4453_vm14, %v11314_v63 }
 0x590   :  { %v4594_v56 = vpop.f32.mrb[217].mxu0  ;;  %5607 = vrot.lane.b32.xlu0 %v4592_v41, %s7167_s30  ;;  %5106 = vmatprep.mubr.bf16.mxu0 %v14688_v60 }
 0x591   :  { %v4596_v15 = vpop.f32.mrb[218].mxu0 }
 0x592   :  { %5609 = vrot.lane.b32.xlu1 %v4596_v15, %s7167_s30  ;;  %v4598_v52 = vpop.f32.mrb[219].mxu0 }
 0x593   :  { %6830 = vmatmul.mubr.msk.bf16.gmra.mrb[48].mxu1 %vm4453_vm14, %v11587_v43 }
 0x594   :  { %5615 = vrot.lane.b32.xlu0 %v4594_v56, %s7167_s30  ;;  %6498 = vmatprep.mubr.bf16.mxu1 %v14688_v60 }
 0x596   :  { %5617 = vrot.lane.b32.xlu1 %v4598_v52, %s7167_s30 }
 0x597   :  { %v4602_v30 = vpop.f32.mrb[220].mxu0  ;;  %6845 = vmatmul.mubr.msk.bf16.gmra.mrb[68].mxu0 %vm4453_vm14, %v11387_v62 }
 0x598   :  { %v4604_v63 = vpop.f32.mrb[221].mxu0  ;;  %5723 = vrot.lane.b32.xlu0 %v4602_v30, %s7168_s8  ;;  %5116 = vmatprep.mubr.bf16.mxu0 %v14688_v60 }
 0x599   :  { %v4606_v22 = vpop.f32.mrb[222].mxu0 }
 0x59a   :  { %5725 = vrot.lane.b32.xlu1 %v4606_v22, %s7168_s8  ;;  %v4608_v54 = vpop.f32.mrb[223].mxu0 }
 0x59c   :  { %5731 = vrot.lane.b32.xlu0 %v4604_v63, %s7168_s8 }
 0x59e   :  { %5733 = vrot.lane.b32.xlu1 %v4608_v54, %s7168_s8 }
 0x59f   :  { %v4612_v47 = vpop.f32.mrb[224].mxu0  ;;  %6846 = vmatmul.mubr.msk.bf16.gmra.mrb[72].mxu0 %vm4453_vm14, %v11463_v20 }
 0x5a0   :  { %v4614_v59 = vpop.f32.mrb[225].mxu0  ;;  %5727 = vrot.lane.b32.xlu0 %v4612_v47, %s7168_s8  ;;  %5126 = vmatprep.mubr.bf16.mxu0 %v14688_v60 }
 0x5a1   :  { %v4616_v62 = vpop.f32.mrb[226].mxu0 }
 0x5a2   :  { %5729 = vrot.lane.b32.xlu1 %v4616_v62, %s7168_s8  ;;  %v4618_v26 = vpop.f32.mrb[227].mxu0 }
 0x5a4   :  { %5735 = vrot.lane.b32.xlu0 %v4614_v59, %s7168_s8 }
 0x5a6   :  { %5737 = vrot.lane.b32.xlu1 %v4618_v26, %s7168_s8 }
 0x5a7   :  { %v11751_v42 = vpop.f32.mrb[228].mxu0  ;;  %6847 = vmatmul.mubr.msk.bf16.gmra.mrb[76].mxu0 %vm4453_vm14, %v11524_v28 }
 0x5a8   :  { %14862 = vst [vmem:[#allocation41_spill] sm:$0xff] %v11751_v42  ;;  %v11755_v57 = vpop.f32.mrb[229].mxu0  ;;  %5136 = vmatprep.mubr.bf16.mxu0 %v14688_v60 }
 0x5a9   :  { %14863 = vst [vmem:[#allocation50_spill] sm:$0xff] %v11755_v57  ;;  %v11758_v20 = vpop.f32.mrb[230].mxu0 }
 0x5aa   :  { %14864 = vst [vmem:[#allocation36_spill] sm:$0xff] %v11758_v20  ;;  %v11760_v46 = vpop.f32.mrb[231].mxu0 }
 0x5ab   :  { %14865 = vst [vmem:[#allocation54_spill] sm:$0xff] %v11760_v46 }
 0x5af   :  { %v11762_v23 = vpop.f32.mrb[232].mxu0  ;;  %6848 = vmatmul.mubr.msk.bf16.gmra.mrb[80].mxu0 %vm4453_vm14, %v11587_v43 }
 0x5b0   :  { %14866 = vst [vmem:[#allocation153_spill] sm:$0xff] %v11762_v23  ;;  %v11766_v53 = vpop.f32.mrb[233].mxu0 }
 0x5b1   :  { %14867 = vst [vmem:[#allocation79_spill] sm:$0xff] %v11766_v53  ;;  %v11768_v5 = vpop.f32.mrb[234].mxu0 }
 0x5b2   :  { %14868 = vst [vmem:[#allocation83_spill] sm:$0xff] %v11768_v5  ;;  %v11770_v39 = vpop.f32.mrb[235].mxu0 }
 0x5b3   :  { %14869 = vst [vmem:[#allocation66_spill] sm:$0xff] %v11770_v39 }
 0x5b7   :  { %v4642_v28 = vpop.f32.mrb[236].mxu0 }
 0x5b8   :  { %v4644_v24 = vpop.f32.mrb[237].mxu0 }
 0x5b9   :  { %v4646_v50 = vpop.f32.mrb[238].mxu0 }
 0x5ba   :  { %v4648_v36 = vpop.f32.mrb[239].mxu0 }
 0x5bf   :  { %v11772_v34 = vpop.f32.mrb[240].mxu0 }
 0x5c0   :  { %v11774_v7 = vpop.f32.mrb[241].mxu0 }
 0x5c1   :  { %v11776_v31 = vpop.f32.mrb[242].mxu0 }
 0x5c2   :  { %v11778_v27 = vpop.f32.mrb[243].mxu0 }
 0x5c7   :  { %v11780_v14 = vpop.f32.mrb[244].mxu0 }
 0x5c8   :  { %v11782_v43 = vpop.f32.mrb[245].mxu0 }
 0x5c9   :  { %v11784_v4 = vpop.f32.mrb[246].mxu0 }
 0x5ca   :  { %v11786_v19 = vpop.f32.mrb[247].mxu0 }
 0x5cf   :  { %v11788_v10 = vpop.f32.mrb[248].mxu0 }
 0x5d0   :  { %v11790_v35 = vpop.f32.mrb[249].mxu0 }
 0x5d1   :  { %v11792_v45 = vpop.f32.mrb[250].mxu0 }
 0x5d2   :  { %v11794_v29 = vpop.f32.mrb[251].mxu0 }
 0x5d7   :  { %v11796_v58 = vpop.f32.mrb[252].mxu0 }
 0x5d8   :  { %v11798_v37 = vpop.f32.mrb[253].mxu0 }
 0x5d9   :  { %v11800_v32 = vpop.f32.mrb[254].mxu0 }
 0x5da   :  { %v11802_v16 = vpop.f32.mrb[255].mxu0 }
 0x5de   :  { %v4755_v1 = vpop.f32.mrb[236].mxu1 }
 0x5df   :  { %5403 = vrot.lane.b32.xlu0 %v4755_v1, %s7162_s2  ;;  %v4757_v6 = vpop.f32.mrb[237].mxu1 }
 0x5e0   :  { %v4759_v48 = vpop.f32.mrb[238].mxu1  ;;  %v11806_v8 = vpop.f32.mrb[0].mxu0 }
 0x5e1   :  { %5405 = vrot.lane.b32.xlu1 %v4759_v48, %s7162_s2  ;;  %v4761_v38 = vpop.f32.mrb[239].mxu1  ;;  %v11808_v11 = vpop.f32.mrb[1].mxu0 }
 0x5e2   :  { %v11811_v25 = vpop.f32.mrb[2].mxu0  ;;  %v11834_v48 = vpop.permute.xlu0 %5387 }
 0x5e3   :  { %5411 = vrot.lane.b32.xlu0 %v4757_v6, %s7162_s2  ;;  %v11813_v49 = vpop.f32.mrb[3].mxu0 }
 0x5e5   :  { %5413 = vrot.lane.b32.xlu1 %v4761_v38, %s7162_s2 }
 0x5e6   :  { %v4765_v41 = vpop.f32.mrb[240].mxu1 }
 0x5e7   :  { %5407 = vrot.lane.b32.xlu0 %v4765_v41, %s7162_s2  ;;  %v4767_v56 = vpop.f32.mrb[241].mxu1 }
 0x5e8   :  { %v4769_v15 = vpop.f32.mrb[242].mxu1 }
 0x5e9   :  { %5409 = vrot.lane.b32.xlu1 %v4769_v15, %s7162_s2  ;;  %v4771_v52 = vpop.f32.mrb[243].mxu1  ;;  %v11818_v30 = vpop.f32.mrb[4].mxu0 }
 0x5ea   :  { %v11820_v63 = vpop.f32.mrb[5].mxu0 }
 0x5eb   :  { %5415 = vrot.lane.b32.xlu0 %v4767_v56, %s7162_s2  ;;  %v11823_v22 = vpop.f32.mrb[6].mxu0  ;;  %v11841_v56 = vpop.permute.xlu1 %5389 }
 0x5ec   :  { %v11825_v54 = vpop.f32.mrb[7].mxu0  ;;  %14870 = vst [vmem:[#allocation72_spill] sm:$0xff] %v11841_v56 }
 0x5ed   :  { %5417 = vrot.lane.b32.xlu1 %v4771_v52, %s7162_s2  ;;  %v11845_v52 = vpop.permute.xlu0 %5395 }
 0x5ee   :  { %v4775_v47 = vpop.f32.mrb[244].mxu1 }
 0x5ef   :  { %5891 = vrot.lane.b32.xlu0 %v4642_v28, %s7169_s9  ;;  %v4777_v59 = vpop.f32.mrb[245].mxu1 }
 0x5f0   :  { %v4779_v62 = vpop.f32.mrb[246].mxu1 }
 0x5f1   :  { %5893 = vrot.lane.b32.xlu1 %v4646_v50, %s7169_s9  ;;  %v4781_v26 = vpop.f32.mrb[247].mxu1  ;;  %v11830_v1 = vpop.f32.mrb[8].mxu0 }
 0x5f2   :  { %v11832_v6 = vpop.f32.mrb[9].mxu0  ;;  %v11860_v13 = vpop.permute.xlu0 %5391 }
 0x5f3   :  { %5899 = vrot.lane.b32.xlu0 %v4644_v24, %s7169_s9  ;;  %v11837_v38 = vpop.f32.mrb[10].mxu0  ;;  %v11850_v24 = vpop.permute.xlu1 %5397  ;;  %14872 = vst [vmem:[#allocation128_spill] sm:$0xff] %v11860_v13 }
 0x5f4   :  { %v11839_v41 = vpop.f32.mrb[11].mxu0  ;;  %14871 = vst [vmem:[#allocation34_spill] sm:$0xff] %v11850_v24 }
 0x5f5   :  { %5901 = vrot.lane.b32.xlu1 %v4648_v36, %s7169_s9 }
 0x5f6   :  { %v4785_v28 = vpop.f32.mrb[248].mxu1  ;;  %v11876_v17 = vpop.permute.xlu0 %5399 }
 0x5f7   :  { %5499 = vrot.lane.b32.xlu0 %v4775_v47, %s7165_s28  ;;  %v4787_v50 = vpop.f32.mrb[249].mxu1  ;;  %v11864_v55 = vpop.permute.xlu1 %5393  ;;  %14874 = vst [vmem:[#allocation84_spill] sm:$0xff] %v11876_v17 }
 0x5f8   :  { %v4789_v15 = vpop.f32.mrb[250].mxu1  ;;  %14873 = vst [vmem:[#allocation103_spill] sm:$0xff] %v11864_v55 }
 0x5f9   :  { %5501 = vrot.lane.b32.xlu1 %v4779_v62, %s7165_s28  ;;  %v4791_v33 = vpop.f32.mrb[251].mxu1 }
 0x5fa   :  { %v11848_v18 = vpop.f32.mrb[12].mxu0  ;;  %v11892_v9 = vpop.permute.xlu0 %5483 }
 0x5fb   :  { %5507 = vrot.lane.b32.xlu0 %v4777_v59, %s7165_s28  ;;  %v11853_v12 = vpop.f32.mrb[13].mxu0  ;;  %v11882_v21 = vpop.permute.xlu1 %5401  ;;  %14876 = vst [vmem:[#allocation96_spill] sm:$0xff] %v11892_v9 }
 0x5fc   :  { %v11855_v61 = vpop.f32.mrb[14].mxu0  ;;  %14875 = vst [vmem:[#allocation97_spill] sm:$0xff] %v11882_v21 }
 0x5fd   :  { %5509 = vrot.lane.b32.xlu1 %v4781_v26, %s7165_s28  ;;  %v11858_v36 = vpop.f32.mrb[15].mxu0 }
 0x5fe   :  { %v4795_v47 = vpop.f32.mrb[252].mxu1 }
 0x5ff   :  { %5895 = vrot.lane.b32.xlu0 %v11772_v34, %s7169_s9  ;;  %v4797_v62 = vpop.f32.mrb[253].mxu1  ;;  %v11899_v44 = vpop.permute.xlu1 %5485 }
 0x600   :  { %v4799_v2 = vpop.f32.mrb[254].mxu1  ;;  %14877 = vst [vmem:[#allocation129_spill] sm:$0xff] %v11899_v44 }
 0x601   :  { %5897 = vrot.lane.b32.xlu1 %v11776_v31, %s7169_s9  ;;  %v4801_v59 = vpop.f32.mrb[255].mxu1 }
 0x602   :  { %v11868_v3 = vpop.f32.mrb[16].mxu0 }
 0x603   :  { %5903 = vrot.lane.b32.xlu0 %v11774_v7, %s7169_s9  ;;  %v11872_v26 = vpop.f32.mrb[17].mxu0 }
 0x604   :  { %v11874_v51 = vpop.f32.mrb[18].mxu0 }
 0x605   :  { %5905 = vrot.lane.b32.xlu1 %v11778_v27, %s7169_s9  ;;  %v11880_v34 = vpop.f32.mrb[19].mxu0 }
 0x606   :  { %v4805_v0 = vpop.f32.mrb[0].mxu1 }
 0x607   :  { %5503 = vrot.lane.b32.xlu0 %v4785_v28, %s7165_s28  ;;  %v11885_v31 = vpop.f32.mrb[1].mxu1 }
 0x608   :  { %v4809_v60 = vpop.f32.mrb[2].mxu1 }
 0x609   :  { %5505 = vrot.lane.b32.xlu1 %v4789_v15, %s7165_s28  ;;  %v11888_v7 = vpop.f32.mrb[3].mxu1 }
 0x60a   :  { %v11890_v5 = vpop.f32.mrb[20].mxu0 }
 0x60b   :  { %5511 = vrot.lane.b32.xlu0 %v4787_v50, %s7165_s28  ;;  %v11895_v27 = vpop.f32.mrb[21].mxu0  ;;  %v11912_v50 = vpop.permute.xlu0 %5491 }
 0x60c   :  { %v11897_v23 = vpop.f32.mrb[22].mxu0  ;;  %14878 = vst [vmem:[#allocation118_spill] sm:$0xff] %v11912_v50 }
 0x60d   :  { %5513 = vrot.lane.b32.xlu1 %v4791_v33, %s7165_s28  ;;  %v11902_v28 = vpop.f32.mrb[23].mxu0  ;;  %v11920_v33 = vpop.permute.xlu1 %5493 }
 0x60e   :  { %v11904_v20 = vpop.f32.mrb[4].mxu1  ;;  %14879 = vst [vmem:[#allocation59_spill] sm:$0xff] %v11920_v33 }
 0x60f   :  { %6011 = vrot.lane.b32.xlu0 %v11780_v14, %s7163_s26  ;;  %v11908_v15 = vpop.f32.mrb[5].mxu1 }
 0x610   :  { %v11910_v42 = vpop.f32.mrb[6].mxu1 }
 0x611   :  { %6013 = vrot.lane.b32.xlu1 %v11784_v4, %s7163_s26  ;;  %v11916_v39 = vpop.f32.mrb[7].mxu1  ;;  %v11934_v4 = vpop.permute.xlu0 %5487 }
 0x612   :  { %v11918_v53 = vpop.f32.mrb[24].mxu0  ;;  %14880 = vst [vmem:[#allocation112_spill] sm:$0xff] %v11934_v4 }
 0x613   :  { %6019 = vrot.lane.b32.xlu0 %v11782_v43, %s7163_s26  ;;  %v11924_v55 = vpop.f32.mrb[25].mxu0  ;;  %v11941_v43 = vpop.permute.xlu1 %5489 }
 0x614   :  { %v11926_v14 = vpop.f32.mrb[26].mxu0  ;;  %14881 = vst [vmem:[#allocation138_spill] sm:$0xff] %v11941_v43 }
 0x615   :  { %6021 = vrot.lane.b32.xlu1 %v11786_v19, %s7163_s26  ;;  %v11930_v21 = vpop.f32.mrb[27].mxu0  ;;  %v11953_v4 = vpop.permute.xlu0 %5495 }
 0x616   :  { %v11932_v46 = vpop.f32.mrb[8].mxu1  ;;  %14882 = vst [vmem:[#allocation137_spill] sm:$0xff] %v11953_v4 }
 0x617   :  { %5619 = vrot.lane.b32.xlu0 %v4795_v47, %s7167_s30  ;;  %v11937_v13 = vpop.f32.mrb[9].mxu1  ;;  %v11960_v43 = vpop.permute.xlu1 %5497 }
 0x618   :  { %v11939_v17 = vpop.f32.mrb[10].mxu1  ;;  %14884 = vst [vmem:[#allocation42_spill] sm:$0xff] %v11960_v43 }
 0x619   :  { %5621 = vrot.lane.b32.xlu1 %v4799_v2, %s7167_s30  ;;  %v11944_v57 = vpop.f32.mrb[11].mxu1 }
 0x61a   :  { %v11946_v44 = vpop.f32.mrb[28].mxu0 }
 0x61b   :  { %5627 = vrot.lane.b32.xlu0 %v4797_v62, %s7167_s30  ;;  %v11949_v19 = vpop.f32.mrb[29].mxu0 }
 0x61c   :  { %v11951_v33 = vpop.f32.mrb[30].mxu0 }
 0x61d   :  { %5629 = vrot.lane.b32.xlu1 %v4801_v59, %s7167_s30  ;;  %v11956_v47 = vpop.f32.mrb[31].mxu0  ;;  %v11974_v59 = vpop.permute.xlu0 %5603 }
 0x61e   :  { %v11958_v56 = vpop.f32.mrb[12].mxu1  ;;  %14888 = vst [vmem:[#allocation127_spill] sm:$0xff] %v11974_v59 }
 0x61f   :  { %14883 = vst [vmem:[#allocation98_spill] sm:$0xff] %v11958_v56  ;;  %6015 = vrot.lane.b32.xlu0 %v11788_v10, %s7163_s26  ;;  %v11964_v2 = vpop.f32.mrb[13].mxu1  ;;  %v11982_v10 = vpop.permute.xlu1 %5605 }
 0x620   :  { %14885 = vst [vmem:[#allocation107_spill] sm:$0xff] %v11964_v2  ;;  %v11966_v62 = vpop.f32.mrb[14].mxu1  ;;  %14889 = vst [vmem:[#allocation56_spill] sm:$0xff] %v11982_v10 }
 0x621   :  { %14886 = vst [vmem:[#allocation126_spill] sm:$0xff] %v11966_v62  ;;  %6017 = vrot.lane.b32.xlu1 %v11792_v45, %s7163_s26  ;;  %v11970_v24 = vpop.f32.mrb[15].mxu1 }
 0x622   :  { %14887 = vst [vmem:[#allocation46_spill] sm:$0xff] %v11970_v24  ;;  %v11972_v4 = vpop.f32.mrb[32].mxu0 }
 0x623   :  { %6023 = vrot.lane.b32.xlu0 %v11790_v35, %s7163_s26  ;;  %v11978_v56 = vpop.f32.mrb[33].mxu0  ;;  %v11995_v35 = vpop.permute.xlu0 %5611 }
 0x624   :  { %v11980_v43 = vpop.f32.mrb[34].mxu0  ;;  %14893 = vst [vmem:[#allocation151_spill] sm:$0xff] %v11995_v35  ;;  %v12002_v9 = vpop.permute.xlu1 %5613 }
 0x625   :  { %6025 = vrot.lane.b32.xlu1 %v11794_v29, %s7163_s26  ;;  %v11986_v2 = vpop.f32.mrb[35].mxu0  ;;  %14895 = vst [vmem:[#allocation119_spill] sm:$0xff] %v12002_v9 }
 0x626   :  { %v11988_v45 = vpop.f32.mrb[16].mxu1 }
 0x627   :  { %14890 = vst [vmem:[#allocation44_spill] sm:$0xff] %v11988_v45  ;;  %5623 = vrot.lane.b32.xlu0 %v4805_v0, %s7167_s30  ;;  %v11991_v24 = vpop.f32.mrb[17].mxu1 }
 0x628   :  { %14891 = vst [vmem:[#allocation60_spill] sm:$0xff] %v11991_v24  ;;  %v11993_v62 = vpop.f32.mrb[18].mxu1 }
 0x629   :  { %14892 = vst [vmem:[#allocation61_spill] sm:$0xff] %v11993_v62  ;;  %5625 = vrot.lane.b32.xlu1 %v4809_v60, %s7167_s30  ;;  %v11998_v59 = vpop.f32.mrb[19].mxu1  ;;  %v12016_v60 = vpop.permute.xlu0 %5607 }
 0x62a   :  { %14894 = vst [vmem:[#allocation94_spill] sm:$0xff] %v11998_v59  ;;  %v12000_v10 = vpop.f32.mrb[36].mxu0  ;;  %14896 = vst [vmem:[#allocation106_spill] sm:$0xff] %v12016_v60 }
 0x62b   :  { %5631 = vrot.lane.b32.xlu0 %v11885_v31, %s7167_s30  ;;  %v12006_v29 = vpop.f32.mrb[37].mxu0  ;;  %v12024_v31 = vpop.permute.xlu1 %5609 }
 0x62c   :  { %v12008_v0 = vpop.f32.mrb[38].mxu0  ;;  %14897 = vst [vmem:[#allocation147_spill] sm:$0xff] %v12024_v31 }
 0x62d   :  { %5633 = vrot.lane.b32.xlu1 %v11888_v7, %s7167_s30  ;;  %v12012_v24 = vpop.f32.mrb[39].mxu0 }
 0x62e   :  { %v12014_v62 = vpop.f32.mrb[20].mxu1 }
 0x62f   :  { %6131 = vrot.lane.b32.xlu0 %v11796_v58, %s7164_s27  ;;  %v12020_v59 = vpop.f32.mrb[21].mxu1  ;;  %v12038_v58 = vpop.permute.xlu0 %5615 }
 0x630   :  { %v12022_v45 = vpop.f32.mrb[22].mxu1  ;;  %14901 = vst [vmem:[#allocation108_spill] sm:$0xff] %v12038_v58 }
 0x631   :  { %6133 = vrot.lane.b32.xlu1 %v11800_v32, %s7164_s27  ;;  %v12028_v9 = vpop.f32.mrb[23].mxu1  ;;  %v12046_v32 = vpop.permute.xlu1 %5617 }
 0x632   :  { %v12030_v7 = vpop.f32.mrb[40].mxu0  ;;  %14903 = vst [vmem:[#allocation49_spill] sm:$0xff] %v12046_v32 }
 0x633   :  { %14898 = vst [vmem:[#allocation130_spill] sm:$0xff] %v12030_v7  ;;  %6139 = vrot.lane.b32.xlu0 %v11798_v37, %s7164_s27  ;;  %v12034_v60 = vpop.f32.mrb[41].mxu0 }
 0x634   :  { %14899 = vst [vmem:[#allocation109_spill] sm:$0xff] %v12034_v60  ;;  %v12036_v35 = vpop.f32.mrb[42].mxu0 }
 0x635   :  { %14900 = vst [vmem:[#allocation121_spill] sm:$0xff] %v12036_v35  ;;  %6141 = vrot.lane.b32.xlu1 %v11802_v16, %s7164_s27  ;;  %v12042_v31 = vpop.f32.mrb[43].mxu0  ;;  %v12060_v16 = vpop.permute.xlu0 %5723 }
 0x636   :  { %14902 = vst [vmem:[#allocation124_spill] sm:$0xff] %v12042_v31  ;;  %v12044_v50 = vpop.f32.mrb[24].mxu1  ;;  %14905 = vst [vmem:[#allocation89_spill] sm:$0xff] %v12060_v16 }
 0x637   :  { %5739 = vrot.lane.b32.xlu0 %v11904_v20, %s7168_s8  ;;  %v12050_v7 = vpop.f32.mrb[25].mxu1  ;;  %v12068_v20 = vpop.permute.xlu1 %5725 }
 0x638   :  { %v12052_v37 = vpop.f32.mrb[26].mxu1  ;;  %14908 = vst [vmem:[#allocation143_spill] sm:$0xff] %v12068_v20 }
 0x639   :  { %5741 = vrot.lane.b32.xlu1 %v11910_v42, %s7168_s8  ;;  %v12056_v58 = vpop.f32.mrb[27].mxu1 }
 0x63a   :  { %v12058_v60 = vpop.f32.mrb[44].mxu0 }
 0x63b   :  { %14904 = vst [vmem:[#allocation95_spill] sm:$0xff] %v12058_v60  ;;  %5747 = vrot.lane.b32.xlu0 %v11908_v15, %s7168_s8  ;;  %v12064_v32 = vpop.f32.mrb[45].mxu0  ;;  %v12082_v15 = vpop.permute.xlu0 %5731 }
 0x63c   :  { %14906 = vst [vmem:[#allocation30_spill] sm:$0xff] %v12064_v32  ;;  %v12066_v31 = vpop.f32.mrb[46].mxu0  ;;  %14910 = vst [vmem:[#allocation21_spill] sm:$0xff] %v12082_v15 }
 0x63d   :  { %14907 = vst [vmem:[#allocation99_spill] sm:$0xff] %v12066_v31  ;;  %5749 = vrot.lane.b32.xlu1 %v11916_v39, %s7168_s8  ;;  %v12072_v35 = vpop.f32.mrb[47].mxu0  ;;  %v12090_v39 = vpop.permute.xlu1 %5733 }
 0x63e   :  { %14909 = vst [vmem:[#allocation31_spill] sm:$0xff] %v12072_v35  ;;  %v12074_v42 = vpop.f32.mrb[28].mxu1  ;;  %14912 = vst [vmem:[#allocation122_spill] sm:$0xff] %v12090_v39 }
 0x63f   :  { %6135 = vrot.lane.b32.xlu0 %v11806_v8, %s7164_s27  ;;  %v12078_v60 = vpop.f32.mrb[29].mxu1 }
 0x640   :  { %v12080_v16 = vpop.f32.mrb[30].mxu1 }
 0x641   :  { %6137 = vrot.lane.b32.xlu1 %v11811_v25, %s7164_s27  ;;  %v12086_v32 = vpop.f32.mrb[31].mxu1  ;;  %v12104_v25 = vpop.permute.xlu0 %5727 }
 0x642   :  { %v12088_v31 = vpop.f32.mrb[48].mxu0  ;;  %14916 = vst [vmem:[#allocation105_spill] sm:$0xff] %v12104_v25 }
 0x643   :  { %14911 = vst [vmem:[#allocation28_spill] sm:$0xff] %v12088_v31  ;;  %6143 = vrot.lane.b32.xlu0 %v11808_v11, %s7164_s27  ;;  %v12094_v35 = vpop.f32.mrb[49].mxu0  ;;  %v12112_v11 = vpop.permute.xlu1 %5729 }
 0x644   :  { %14913 = vst [vmem:[#allocation51_spill] sm:$0xff] %v12094_v35  ;;  %v12096_v8 = vpop.f32.mrb[50].mxu0  ;;  %14917 = vst [vmem:[#allocation120_spill] sm:$0xff] %v12112_v11 }
 0x645   :  { %14914 = vst [vmem:[#allocation117_spill] sm:$0xff] %v12096_v8  ;;  %6145 = vrot.lane.b32.xlu1 %v11813_v49, %s7164_s27  ;;  %v12100_v20 = vpop.f32.mrb[51].mxu0 }
 0x646   :  { %14915 = vst [vmem:[#allocation159_spill] sm:$0xff] %v12100_v20  ;;  %v12102_v15 = vpop.f32.mrb[32].mxu1 }
 0x647   :  { %5743 = vrot.lane.b32.xlu0 %v11932_v46, %s7168_s8  ;;  %v12108_v31 = vpop.f32.mrb[33].mxu1  ;;  %v12126_v46 = vpop.permute.xlu0 %5735 }
 0x648   :  { %v12110_v39 = vpop.f32.mrb[34].mxu1  ;;  %14921 = vst [vmem:[#allocation32_spill] sm:$0xff] %v12126_v46 }
 0x649   :  { %5745 = vrot.lane.b32.xlu1 %v11939_v17, %s7168_s8  ;;  %v12116_v35 = vpop.f32.mrb[35].mxu1  ;;  %v12134_v17 = vpop.permute.xlu1 %5737 }
 0x64a   :  { %v12118_v49 = vpop.f32.mrb[52].mxu0  ;;  %14923 = vst [vmem:[#allocation140_spill] sm:$0xff] %v12134_v17 }
 0x64b   :  { %14918 = vst [vmem:[#allocation47_spill] sm:$0xff] %v12118_v49  ;;  %5751 = vrot.lane.b32.xlu0 %v11937_v13, %s7168_s8  ;;  %v12122_v20 = vpop.f32.mrb[53].mxu0 }
 0x64c   :  { %14919 = vst [vmem:[#allocation73_spill] sm:$0xff] %v12122_v20  ;;  %v12124_v8 = vpop.f32.mrb[54].mxu0 }
 0x64d   :  { %14920 = vst [vmem:[#allocation110_spill] sm:$0xff] %v12124_v8  ;;  %5753 = vrot.lane.b32.xlu1 %v11944_v57, %s7168_s8  ;;  %v12130_v11 = vpop.f32.mrb[55].mxu0 }
 0x64e   :  { %14922 = vst [vmem:[#allocation131_spill] sm:$0xff] %v12130_v11  ;;  %v12132_v25 = vpop.f32.mrb[36].mxu1 }
 0x64f   :  { %6251 = vrot.lane.b32.xlu0 %v11818_v30, %s7166_s29  ;;  %v12138_v49 = vpop.f32.mrb[37].mxu1 }
 0x650   :  { %v12140_v13 = vpop.f32.mrb[38].mxu1 }
 0x651   :  { %v12142_v20 = vpop.permute.xlu0 %5403  ;;  %6253 = vrot.lane.b32.xlu1 %v11823_v22, %s7166_s29  ;;  %v12146_v46 = vpop.f32.mrb[39].mxu1 }
 0x652   :  { %14924 = vst [vmem:[#allocation77_spill] sm:$0xff] %v12142_v20  ;;  %v12148_v57 = vpop.f32.mrb[56].mxu0 }
 0x653   :  { %14925 = vst [vmem:[#allocation39_spill] sm:$0xff] %v12148_v57  ;;  %v12150_v11 = vpop.permute.xlu1 %5405  ;;  %6259 = vrot.lane.b32.xlu0 %v11820_v63, %s7166_s29  ;;  %v12154_v17 = vpop.f32.mrb[57].mxu0 }
 0x654   :  { %14926 = vst [vmem:[#allocation161_spill] sm:$0xff] %v12150_v11  ;;  %14927 = vst [vmem:[#allocation19_spill] sm:$0xff] %v12154_v17  ;;  %v12156_v30 = vpop.f32.mrb[58].mxu0 }
 0x655   :  { %14928 = vst [vmem:[#allocation141_spill] sm:$0xff] %v12156_v30  ;;  %v12158_v8 = vpop.permute.xlu0 %5411  ;;  %6261 = vrot.lane.b32.xlu1 %v11825_v54, %s7166_s29  ;;  %v12162_v20 = vpop.f32.mrb[59].mxu0 }
 0x656   :  { %14929 = vst [vmem:[#allocation160_spill] sm:$0xff] %v12158_v8  ;;  %14930 = vst [vmem:[#allocation114_spill] sm:$0xff] %v12162_v20  ;;  %v12164_v22 = vpop.f32.mrb[40].mxu1 }
 0x657   :  { %v12166_v40 = vpop.permute.xlu1 %5413  ;;  %6255 = vrot.lane.b32.xlu0 %v11830_v1, %s7166_s29  ;;  %v12170_v57 = vpop.f32.mrb[41].mxu1 }
 0x658   :  { %14931 = vst [vmem:[#allocation90_spill] sm:$0xff] %v12166_v40  ;;  %v12172_v63 = vpop.f32.mrb[42].mxu1 }
 0x659   :  { %v12174_v17 = vpop.permute.xlu0 %5407  ;;  %6257 = vrot.lane.b32.xlu1 %v11837_v38, %s7166_s29  ;;  %v12178_v8 = vpop.f32.mrb[43].mxu1 }
 0x65a   :  { %14932 = vst [vmem:[#allocation162_spill] sm:$0xff] %v12174_v17  ;;  %v12180_v54 = vpop.f32.mrb[60].mxu0 }
 0x65b   :  { %14933 = vst [vmem:[#allocation164_spill] sm:$0xff] %v12180_v54  ;;  %v12182_v20 = vpop.permute.xlu1 %5409  ;;  %6263 = vrot.lane.b32.xlu0 %v11832_v6, %s7166_s29  ;;  %v12186_v40 = vpop.f32.mrb[61].mxu0 }
 0x65c   :  { %14934 = vst [vmem:[#allocation76_spill] sm:$0xff] %v12182_v20  ;;  %14935 = vst [vmem:[#allocation163_spill] sm:$0xff] %v12186_v40  ;;  %v12188_v1 = vpop.f32.mrb[62].mxu0 }
 0x65d   :  { %14936 = vst [vmem:[#allocation55_spill] sm:$0xff] %v12188_v1  ;;  %v12190_v30 = vpop.permute.xlu0 %5415  ;;  %6265 = vrot.lane.b32.xlu1 %v11839_v41, %s7166_s29  ;;  %v12194_v17 = vpop.f32.mrb[63].mxu0 }
 0x65e   :  { %14937 = vst [vmem:[#allocation69_spill] sm:$0xff] %v12190_v30  ;;  %14938 = vst [vmem:[#allocation92_spill] sm:$0xff] %v12194_v17  ;;  %v12196_v38 = vpop.f32.mrb[44].mxu1 }
 0x65f   :  { %v12198_v11 = vpop.permute.xlu1 %5417  ;;  %5419 = vrot.lane.b32.xlu0 %v11848_v18, %s7162_s2  ;;  %v12202_v54 = vpop.f32.mrb[45].mxu1 }
 0x660   :  { %14939 = vst [vmem:[#allocation91_spill] sm:$0xff] %v12198_v11  ;;  %v12204_v6 = vpop.f32.mrb[46].mxu1 }
 0x661   :  { %v12206_v40 = vpop.permute.xlu0 %5891  ;;  %5421 = vrot.lane.b32.xlu1 %v11855_v61, %s7162_s2  ;;  %v12210_v30 = vpop.f32.mrb[47].mxu1 }
 0x662   :  { %14940 = vst [vmem:[#allocation87_spill] sm:$0xff] %v12206_v40  ;;  %v12212_v41 = vpop.f32.mrb[64].mxu0 }
 0x663   :  { %14941 = vst [vmem:[#allocation102_spill] sm:$0xff] %v12212_v41  ;;  %v12214_v17 = vpop.permute.xlu1 %5893  ;;  %5427 = vrot.lane.b32.xlu0 %v11853_v12, %s7162_s2  ;;  %v12218_v11 = vpop.f32.mrb[65].mxu0 }
 0x664   :  { %14942 = vst [vmem:[#allocation37_spill] sm:$0xff] %v12214_v17  ;;  %14943 = vst [vmem:[#allocation78_spill] sm:$0xff] %v12218_v11  ;;  %v12220_v18 = vpop.f32.mrb[66].mxu0 }
 0x665   :  { %14944 = vst [vmem:[#allocation48_spill] sm:$0xff] %v12220_v18  ;;  %v12222_v1 = vpop.permute.xlu0 %5899  ;;  %5429 = vrot.lane.b32.xlu1 %v11858_v36, %s7162_s2  ;;  %v12226_v40 = vpop.f32.mrb[67].mxu0 }
 0x666   :  { %14945 = vst [vmem:[#allocation158_spill] sm:$0xff] %v12226_v40  ;;  %v12228_v61 = vpop.f32.mrb[48].mxu1 }
 0x667   :  { %v12230_v20 = vpop.permute.xlu1 %5901  ;;  %5907 = vrot.lane.b32.xlu0 %v12014_v62, %s7169_s9  ;;  %v12234_v17 = vpop.f32.mrb[49].mxu1 }
 0x668   :  { %14946 = vst [vmem:[#allocation88_spill] sm:$0xff] %v12230_v20  ;;  %14947 = vst [vmem:[#allocation123_spill] sm:$0xff] %v12234_v17  ;;  %v12236_v12 = vpop.f32.mrb[50].mxu1 }
 0x669   :  { %v12238_v11 = vpop.permute.xlu0 %5499  ;;  %5909 = vrot.lane.b32.xlu1 %v12022_v45, %s7169_s9  ;;  %v12242_v18 = vpop.f32.mrb[51].mxu1 }
 0x66a   :  { %14948 = vst [vmem:[#allocation80_spill] sm:$0xff] %v12238_v11  ;;  %v12244_v36 = vpop.f32.mrb[68].mxu0 }
 0x66b   :  { %14949 = vst [vmem:[#allocation132_spill] sm:$0xff] %v12244_v36  ;;  %v12246_v40 = vpop.permute.xlu1 %5501  ;;  %5915 = vrot.lane.b32.xlu0 %v12020_v59, %s7169_s9  ;;  %v12250_v41 = vpop.f32.mrb[69].mxu0 }
 0x66c   :  { %14950 = vst [vmem:[#allocation100_spill] sm:$0xff] %v12246_v40  ;;  %14951 = vst [vmem:[#allocation101_spill] sm:$0xff] %v12250_v41  ;;  %v12252_v62 = vpop.f32.mrb[70].mxu0 }
 0x66d   :  { %14952 = vst [vmem:[#allocation133_spill] sm:$0xff] %v12252_v62  ;;  %v12254_v20 = vpop.permute.xlu0 %5507  ;;  %5917 = vrot.lane.b32.xlu1 %v12028_v9, %s7169_s9  ;;  %v12258_v17 = vpop.f32.mrb[71].mxu0 }
 0x66e   :  { %14953 = vst [vmem:[#allocation142_spill] sm:$0xff] %v12258_v17 }
 0x66f   :  { %v12260_v45 = vpop.permute.xlu1 %5509  ;;  %5423 = vrot.lane.b32.xlu0 %v11868_v3, %s7162_s2 }
 0x670   :  { %14954 = vst [vmem:[#allocation7_spill] sm:$0xff] %v12260_v45 }
 0x671   :  { %v12264_v36 = vpop.permute.xlu0 %5895  ;;  %5425 = vrot.lane.b32.xlu1 %v11874_v51, %s7162_s2 }
 0x672   :  { %14955 = vst [vmem:[#allocation111_spill] sm:$0xff] %v12264_v36  ;;  %v12268_v59 = vpop.f32.mrb[72].mxu0 }
 0x673   :  { %v12270_v41 = vpop.permute.xlu1 %5897  ;;  %5431 = vrot.lane.b32.xlu0 %v11872_v26, %s7162_s2  ;;  %v12274_v9 = vpop.f32.mrb[73].mxu0 }
 0x674   :  { %14956 = vst [vmem:[#allocation22_spill] sm:$0xff] %v12270_v41  ;;  %14957 = vst [vmem:[#allocation24_spill] sm:$0xff] %v12274_v9  ;;  %v12276_v17 = vpop.f32.mrb[74].mxu0 }
 0x675   :  { %14958 = vst [vmem:[#allocation27_spill] sm:$0xff] %v12276_v17  ;;  %v12278_v62 = vpop.permute.xlu0 %5903  ;;  %5433 = vrot.lane.b32.xlu1 %v11880_v34, %s7162_s2  ;;  %v12282_v3 = vpop.f32.mrb[75].mxu0 }
 0x676   :  { %14959 = vst [vmem:[#allocation104_spill] sm:$0xff] %v12282_v3 }
 0x677   :  { %v12284_v36 = vpop.permute.xlu1 %5905  ;;  %5911 = vrot.lane.b32.xlu0 %v12044_v50, %s7169_s9 }
 0x679   :  { %v12288_v51 = vpop.permute.xlu0 %5503  ;;  %5913 = vrot.lane.b32.xlu1 %v12052_v37, %s7169_s9 }
 0x67a   :  { %14960 = vst [vmem:[#allocation152_spill] sm:$0xff] %v12288_v51  ;;  %v12292_v26 = vpop.f32.mrb[76].mxu0 }
 0x67b   :  { %v12294_v41 = vpop.permute.xlu1 %5505  ;;  %5919 = vrot.lane.b32.xlu0 %v12050_v7, %s7169_s9  ;;  %v12298_v34 = vpop.f32.mrb[77].mxu0 }
 0x67c   :  { %14961 = vst [vmem:[#allocation8_spill] sm:$0xff] %v12298_v34  ;;  %v12300_v3 = vpop.f32.mrb[78].mxu0 }
 0x67d   :  { %v12302_v9 = vpop.permute.xlu0 %5511  ;;  %5921 = vrot.lane.b32.xlu1 %v12056_v58, %s7169_s9  ;;  %v12306_v50 = vpop.f32.mrb[79].mxu0 }
 0x67e   :  { %14962 = vst [vmem:[#allocation148_spill] sm:$0xff] %v12306_v50 }
 0x67f   :  { %v12308_v17 = vpop.permute.xlu1 %5513  ;;  %5515 = vrot.lane.b32.xlu0 %v11890_v5, %s7165_s28 }
 0x680   :  { %14963 = vst [vmem:[#allocation150_spill] sm:$0xff] %v12308_v17 }
 0x681   :  { %v12312_v37 = vpop.permute.xlu0 %6011  ;;  %5517 = vrot.lane.b32.xlu1 %v11897_v23, %s7165_s28 }
 0x682   :  { %14964 = vst [vmem:[#allocation14_spill] sm:$0xff] %v12312_v37  ;;  %v12316_v7 = vpop.f32.mrb[80].mxu0 }
 0x683   :  { %v12318_v34 = vpop.permute.xlu1 %6013  ;;  %5523 = vrot.lane.b32.xlu0 %v11895_v27, %s7165_s28  ;;  %v12322_v58 = vpop.f32.mrb[81].mxu0 }
 0x684   :  { %14965 = vst [vmem:[#allocation146_spill] sm:$0xff] %v12318_v34  ;;  %v12324_v50 = vpop.f32.mrb[82].mxu0 }
 0x685   :  { %v12326_v17 = vpop.permute.xlu0 %6019  ;;  %5525 = vrot.lane.b32.xlu1 %v11902_v28, %s7165_s28  ;;  %v12330_v5 = vpop.f32.mrb[83].mxu0 }
 0x687   :  { %v12332_v37 = vpop.permute.xlu1 %6021  ;;  %6027 = vrot.lane.b32.xlu0 %v12074_v42, %s7163_s26 }
 0x689   :  { %v12336_v23 = vpop.permute.xlu0 %5619  ;;  %6029 = vrot.lane.b32.xlu1 %v12080_v16, %s7163_s26 }
 0x68a   :  { %14966 = vst [vmem:[#allocation82_spill] sm:$0xff] %v12336_v23 }
 0x68b   :  { %v12340_v27 = vpop.permute.xlu1 %5621  ;;  %6035 = vrot.lane.b32.xlu0 %v12078_v60, %s7163_s26 }
 0x68c   :  { %14967 = vst [vmem:[#allocation144_spill] sm:$0xff] %v12340_v27 }
 0x68d   :  { %v12344_v34 = vpop.permute.xlu0 %5627  ;;  %6037 = vrot.lane.b32.xlu1 %v12086_v32, %s7163_s26 }
 0x68e   :  { %14968 = vst [vmem:[#allocation63_spill] sm:$0xff] %v12344_v34 }
 0x68f   :  { %v12348_v28 = vpop.permute.xlu1 %5629  ;;  %5519 = vrot.lane.b32.xlu0 %v11918_v53, %s7165_s28 }
 0x690   :  { %14969 = vst [vmem:[#allocation29_spill] sm:$0xff] %v12348_v28 }
 0x691   :  { %v12352_v42 = vpop.permute.xlu0 %6015  ;;  %5521 = vrot.lane.b32.xlu1 %v11926_v14, %s7165_s28 }
 0x692   :  { %14970 = vst [vmem:[#allocation58_spill] sm:$0xff] %v12352_v42  ;;  %v15004_v42 = vld [vmem:[#allocation59_spill] sm:$0xff] }
 0x693   :  { %v12356_v16 = vpop.permute.xlu1 %6017  ;;  %5527 = vrot.lane.b32.xlu0 %v11924_v55, %s7165_s28 }
 0x694   :  { %14971 = vst [vmem:[#allocation71_spill] sm:$0xff] %v12356_v16 }
 0x695   :  { %v12360_v60 = vpop.permute.xlu0 %6023  ;;  %5529 = vrot.lane.b32.xlu1 %v11930_v21, %s7165_s28 }
 0x696   :  { %14972 = vst [vmem:[#allocation23_spill] sm:$0xff] %v12360_v60 }
 0x697   :  { %v12364_v32 = vpop.permute.xlu1 %6025  ;;  %6031 = vrot.lane.b32.xlu0 %v12102_v15, %s7163_s26 }
 0x698   :  { %14973 = vst [vmem:[#allocation85_spill] sm:$0xff] %v12364_v32  ;;  %v15008_v32 = vld [vmem:[#allocation127_spill] sm:$0xff] }
 0x699   :  { %v12368_v53 = vpop.permute.xlu0 %5623  ;;  %6033 = vrot.lane.b32.xlu1 %v12110_v39, %s7163_s26 }
 0x69a   :  { %14974 = vst [vmem:[#allocation18_spill] sm:$0xff] %v12368_v53 }
 0x69b   :  { %v12372_v14 = vpop.permute.xlu1 %5625  ;;  %6039 = vrot.lane.b32.xlu0 %v12108_v31, %s7163_s26 }
 0x69c   :  { %14975 = vst [vmem:[#allocation135_spill] sm:$0xff] %v12372_v14 }
 0x69d   :  { %v12376_v55 = vpop.permute.xlu0 %5631  ;;  %6041 = vrot.lane.b32.xlu1 %v12116_v35, %s7163_s26 }
 0x69f   :  { %v12380_v21 = vpop.permute.xlu1 %5633  ;;  %5635 = vrot.lane.b32.xlu0 %v11946_v44, %s7167_s30 }
 0x6a0   :  { %14976 = vst [vmem:[#allocation93_spill] sm:$0xff] %v12380_v21 }
 0x6a1   :  { %v12384_v15 = vpop.permute.xlu0 %6131  ;;  %5637 = vrot.lane.b32.xlu1 %v11951_v33, %s7167_s30 }
 0x6a2   :  { %14977 = vst [vmem:[#allocation45_spill] sm:$0xff] %v12384_v15  ;;  %v15019_v15 = vld [vmem:[#allocation77_spill] sm:$0xff] }
 0x6a3   :  { %v12388_v39 = vpop.permute.xlu1 %6133  ;;  %5643 = vrot.lane.b32.xlu0 %v11949_v19, %s7167_s30 }
 0x6a4   :  { %14978 = vst [vmem:[#allocation62_spill] sm:$0xff] %v12388_v39  ;;  %v15014_v39 = vld [vmem:[#allocation21_spill] sm:$0xff] }
 0x6a5   :  { %v12392_v31 = vpop.permute.xlu0 %6139  ;;  %5645 = vrot.lane.b32.xlu1 %v11956_v47, %s7167_s30 }
 0x6a6   :  { %14979 = vst [vmem:[#allocation74_spill] sm:$0xff] %v12392_v31  ;;  %v15021_v31 = vld [vmem:[#allocation161_spill] sm:$0xff] }
 0x6a7   :  { %v12396_v35 = vpop.permute.xlu1 %6141  ;;  %6147 = vrot.lane.b32.xlu0 %v12132_v25, %s7164_s27 }
 0x6a8   :  { %14980 = vst [vmem:[#allocation25_spill] sm:$0xff] %v12396_v35  ;;  %v15015_v35 = vld [vmem:[#allocation89_spill] sm:$0xff] }
 0x6a9   :  { %v12400_v44 = vpop.permute.xlu0 %5739  ;;  %6149 = vrot.lane.b32.xlu1 %v12140_v13, %s7164_s27 }
 0x6aa   :  { %14981 = vst [vmem:[#allocation113_spill] sm:$0xff] %v12400_v44 }
 0x6ab   :  { %v12404_v33 = vpop.permute.xlu1 %5741  ;;  %6155 = vrot.lane.b32.xlu0 %v12138_v49, %s7164_s27 }
 0x6ac   :  { %14982 = vst [vmem:[#allocation86_spill] sm:$0xff] %v12404_v33 }
 0x6ad   :  { %v12408_v19 = vpop.permute.xlu0 %5747  ;;  %6157 = vrot.lane.b32.xlu1 %v12146_v46, %s7164_s27 }
 0x6ae   :  { %14983 = vst [vmem:[#allocation35_spill] sm:$0xff] %v12408_v19 }
 0x6af   :  { %v12412_v47 = vpop.permute.xlu1 %5749  ;;  %5639 = vrot.lane.b32.xlu0 %v11972_v4, %s7167_s30 }
 0x6b0   :  { %14984 = vst [vmem:[#allocation136_spill] sm:$0xff] %v12412_v47  ;;  %v15018_v47 = vld [vmem:[#allocation143_spill] sm:$0xff] }
 0x6b1   :  { %v12416_v25 = vpop.permute.xlu0 %6135  ;;  %5641 = vrot.lane.b32.xlu1 %v11980_v43, %s7167_s30 }
 0x6b2   :  { %14985 = vst [vmem:[#allocation20_spill] sm:$0xff] %v12416_v25  ;;  %v15000_v25 = vld [vmem:[#allocation96_spill] sm:$0xff] }
 0x6b3   :  { %v12420_v13 = vpop.permute.xlu1 %6137  ;;  %5647 = vrot.lane.b32.xlu0 %v11978_v56, %s7167_s30 }
 0x6b4   :  { %14986 = vst [vmem:[#allocation116_spill] sm:$0xff] %v12420_v13  ;;  %v14999_v13 = vld [vmem:[#allocation118_spill] sm:$0xff] }
 0x6b5   :  { %v12424_v49 = vpop.permute.xlu0 %6143  ;;  %5649 = vrot.lane.b32.xlu1 %v11986_v2, %s7167_s30 }
 0x6b6   :  { %14987 = vst [vmem:[#allocation125_spill] sm:$0xff] %v12424_v49 }
 0x6b7   :  { %v12428_v46 = vpop.permute.xlu1 %6145  ;;  %6151 = vrot.lane.b32.xlu0 %v12164_v22, %s7164_s27 }
 0x6b8   :  { %14988 = vst [vmem:[#allocation149_spill] sm:$0xff] %v12428_v46  ;;  %v15005_v46 = vld [vmem:[#allocation129_spill] sm:$0xff] }
 0x6b9   :  { %v12432_v4 = vpop.permute.xlu0 %5743  ;;  %6153 = vrot.lane.b32.xlu1 %v12172_v63, %s7164_s27 }
 0x6ba   :  { %14989 = vst [vmem:[#allocation81_spill] sm:$0xff] %v12432_v4 }
 0x6bb   :  { %v12436_v43 = vpop.permute.xlu1 %5745  ;;  %6159 = vrot.lane.b32.xlu0 %v12170_v57, %s7164_s27 }
 0x6bc   :  { %14990 = vst [vmem:[#allocation157_spill] sm:$0xff] %v12436_v43 }
 0x6bd   :  { %v12440_v56 = vpop.permute.xlu0 %5751  ;;  %6161 = vrot.lane.b32.xlu1 %v12178_v8, %s7164_s27 }
 0x6be   :  { %14991 = vst [vmem:[#allocation40_spill] sm:$0xff] %v12440_v56 }
 0x6bf   :  { %v12444_v2 = vpop.permute.xlu1 %5753  ;;  %5755 = vrot.lane.b32.xlu0 %v12000_v10, %s7168_s8 }
 0x6c0   :  { %14992 = vst [vmem:[#allocation134_spill] sm:$0xff] %v12444_v2  ;;  %v5548_v2 = vsel %vm1261_vm1, %v15005_v46, %v15004_v42 }
 0x6c1   :  { %v12448_v22 = vpop.permute.xlu0 %6251  ;;  %5757 = vrot.lane.b32.xlu1 %v12008_v0, %s7168_s8  ;;  %v6589_v0 = vld [vmem:[%s13592_s0] sm:$0xff] }
 0x6c2   :  { %14993 = vst [vmem:[#allocation165_spill] sm:$0xff] %v12448_v22  ;;  %v15011_v22 = vld [vmem:[#allocation119_spill] sm:$0xff] }
 0x6c3   :  { %v12452_v63 = vpop.permute.xlu1 %6253  ;;  %5763 = vrot.lane.b32.xlu0 %v12006_v29, %s7168_s8  ;;  %v5451_v29 = vsel %vm1164_vm2, %v11834_v48, %v11845_v52 }
 0x6c4   :  { %14994 = vst [vmem:[#allocation166_spill] sm:$0xff] %v12452_v63 }
 0x6c5   :  { %v12456_v57 = vpop.permute.xlu0 %6259  ;;  %5765 = vrot.lane.b32.xlu1 %v12012_v24, %s7168_s8  ;;  %v5547_v24 = vsel %vm1261_vm1, %v15000_v25, %v14999_v13 }
 0x6c6   :  { %14995 = vst [vmem:[#allocation167_spill] sm:$0xff] %v12456_v57  ;;  %v5556_v49 = vadd.f32 %v5547_v24, %v5451_v29  ;;  %v15012_v57 = vld [vmem:[#allocation56_spill] sm:$0xff] }
 0x6c7   :  { %v12460_v8 = vpop.permute.xlu1 %6261  ;;  %6267 = vrot.lane.b32.xlu0 %v12196_v38, %s7166_s29  ;;  %v15002_v38 = vld [vmem:[#allocation34_spill] sm:$0xff]  ;;  %v5668_v29 = vsel %vm1382_vm3, %v15012_v57, %v15011_v22 }
 0x6c8   :  { %14996 = vst [vmem:[#allocation168_spill] sm:$0xff] %v12460_v8  ;;  %v15010_v8 = vld [vmem:[#allocation130_spill] sm:$0xff] }
 0x6c9   :  { %v12464_v10 = vpop.permute.xlu0 %6255  ;;  %6269 = vrot.lane.b32.xlu1 %v12204_v6, %s7166_s29 }
 0x6ca   :  { %14997 = vst [vmem:[#allocation169_spill] sm:$0xff] %v12464_v10  ;;  %v15003_v10 = vld [vmem:[#allocation72_spill] sm:$0xff] }
 0x6cb   :  { %v12476_v16 = vpop.permute.xlu1 %6257  ;;  %6275 = vrot.lane.b32.xlu0 %v12202_v54, %s7166_s29  ;;  %v5452_v6 = vsel %vm1164_vm2, %v15003_v10, %v15002_v38 }
 0x6cc   :  { %15001 = vst [vmem:[#allocation154_spill] sm:$0xff] %v12476_v16  ;;  %v15007_v16 = vld [vmem:[#allocation151_spill] sm:$0xff]  ;;  %v5562_v60 = vadd.f32 %v5548_v2, %v5452_v6  ;;  %v5787_v2 = vsel %vm1503_vm5, %v15015_v35, %v15014_v39  ;;  %v5447_v35 = vsel %vm1164_vm2, %v11845_v52, %v15019_v15  ;;  %v5448_v52 = vsel %vm1164_vm2, %v15002_v38, %v15021_v31  ;;  %v15033_v15 = vld [vmem:[#allocation138_spill] sm:$0xff] }
 0x6cd   :  { %v12488_v56 = vpop.permute.xlu0 %6263  ;;  %6277 = vrot.lane.b32.xlu1 %v12210_v30, %s7166_s29  ;;  %v5667_v54 = vsel %vm1382_vm3, %v15008_v32, %v15007_v16  ;;  %v15013_v30 = vld [vmem:[#allocation121_spill] sm:$0xff]  ;;  %v15031_v31 = vld [vmem:[#allocation103_spill] sm:$0xff] }
 0x6ce   :  { %15006 = vst [vmem:[#allocation118_spill] sm:$0xff] %v12488_v56  ;;  %v5676_v24 = vadd.f32 %v5667_v54, %v5556_v49  ;;  %v5682_v6 = vadd.f32 %v5668_v29, %v5562_v60  ;;  %v15016_v49 = vld [vmem:[#allocation109_spill] sm:$0xff]  ;;  %v15017_v54 = vld [vmem:[#allocation122_spill] sm:$0xff]  ;;  %v5544_v60 = vsel %vm1261_vm1, %v15004_v42, %v12246_v40  ;;  %v5664_v42 = vsel %vm1382_vm3, %v15011_v22, %v12340_v27 }
 0x6cf   :  { %v12496_v63 = vpop.permute.xlu1 %6265  ;;  %5759 = vrot.lane.b32.xlu0 %v15010_v8, %s7168_s8  ;;  %v5543_v8 = vsel %vm1261_vm1, %v14999_v13, %v12238_v11  ;;  %v5663_v13 = vsel %vm1382_vm3, %v15007_v16, %v12336_v23  ;;  %v5783_v16 = vsel %vm1503_vm5, %v15014_v39, %v12400_v44  ;;  %v5784_v22 = vsel %vm1503_vm5, %v15017_v54, %v12404_v33  ;;  %v15026_v33 = vld [vmem:[#allocation112_spill] sm:$0xff]  ;;  %v15030_v27 = vld [vmem:[#allocation97_spill] sm:$0xff]  ;;  %v15032_v40 = vld [vmem:[#allocation42_spill] sm:$0xff] }
 0x6d0   :  { %15009 = vst [vmem:[#allocation96_spill] sm:$0xff] %v12496_v63  ;;  %v5796_v29 = vadd.f32 %v5787_v2, %v5676_v24  ;;  %v5563_v24 = vadd.f32 %v5544_v60, %v5448_v52  ;;  %v5454_v23 = vsel %vm1164_vm2, %v15031_v31, %v15030_v27  ;;  %v15039_v31 = vld [vmem:[#allocation106_spill] sm:$0xff] }
 0x6d1   :  { %v12504_v56 = vpop.permute.xlu0 %5419  ;;  %5761 = vrot.lane.b32.xlu1 %v15013_v30, %s7168_s8  ;;  %v5788_v30 = vsel %vm1503_vm5, %v15018_v47, %v15017_v54  ;;  %v15020_v47 = vld [vmem:[#allocation124_spill] sm:$0xff]  ;;  %v15025_v54 = vld [vmem:[#allocation137_spill] sm:$0xff] }
 0x6d2   :  { %v5549_v44 = vsel %vm1261_vm1, %v15026_v33, %v15025_v54  ;;  %v15034_v33 = vld [vmem:[#allocation88_spill] sm:$0xff] }
 0x6d3   :  { %v12516_v63 = vpop.permute.xlu1 %5421  ;;  %5767 = vrot.lane.b32.xlu0 %v15016_v49, %s7168_s8  ;;  %v5557_v49 = vadd.f32 %v5543_v8, %v5447_v35  ;;  %v5683_v8 = vadd.f32 %v5664_v42, %v5563_v24  ;;  %v15028_v24 = vld [vmem:[#allocation54_spill] sm:$0xff] }
 0x6d5   :  { %v12536_v11 = vpop.permute.xlu0 %5427  ;;  %5769 = vrot.lane.b32.xlu1 %v15020_v47, %s7168_s8  ;;  %v5802_v47 = vadd.f32 %v5788_v30, %v5682_v6  ;;  %v5677_v2 = vadd.f32 %v5663_v13, %v5557_v49  ;;  %v15022_v30 = vld [vmem:[#allocation50_spill] sm:$0xff]  ;;  %v15024_v49 = vld [vmem:[#allocation128_spill] sm:$0xff] }
 0x6d6   :  { %v12556_v35 = vsel %vm1164_vm2, %v12504_v56, %v12536_v11  ;;  %v5844_v60 = vadd.f32 %v5796_v29, %v15022_v30  ;;  %v15029_v30 = vld [vmem:[#allocation123_spill] sm:$0xff] }
 0x6d7   :  { %v12558_v38 = vpop.permute.xlu1 %5429  ;;  %6271 = vrot.lane.b32.xlu0 %v12228_v61, %s7166_s29  ;;  %v5797_v6 = vadd.f32 %v5783_v16, %v5677_v2  ;;  %v15023_v61 = vld [vmem:[#allocation84_spill] sm:$0xff]  ;;  %v5803_v16 = vadd.f32 %v5784_v22, %v5683_v8  ;;  %v5850_v2 = vadd.f32 %v5802_v47, %v15028_v24 }
 0x6d8   :  { %v12570_v39 = vsel %vm1164_vm2, %v12516_v63, %v12558_v38  ;;  %v5453_v52 = vsel %vm1164_vm2, %v15024_v49, %v15023_v61  ;;  %v5550_v49 = vsel %vm1261_vm1, %v15033_v15, %v15032_v40 }
 0x6d9   :  { %v5908_v13 = vpop.permute.xlu0 %5907  ;;  %6273 = vrot.lane.b32.xlu1 %v12236_v12, %s7166_s29  ;;  %v5568_v8 = vadd.f32 %v5549_v44, %v5453_v52  ;;  %v5574_v57 = vadd.f32 %v5550_v49, %v5454_v23  ;;  %v15040_v52 = vld [vmem:[#allocation126_spill] sm:$0xff] }
 0x6da   :  { %v5951_v42 = vsel %vm1672_vm9, %v12222_v1, %v5908_v13  ;;  %v15045_v49 = vld [vmem:[#allocation110_spill] sm:$0xff] }
 0x6db   :  { %v12586_v29 = vadd.f32 %v5951_v42, %v5844_v60  ;;  %v5910_v12 = vpop.permute.xlu1 %5909  ;;  %6279 = vrot.lane.b32.xlu0 %v15029_v30, %s7166_s29  ;;  %v15036_v60 = vld [vmem:[#allocation98_spill] sm:$0xff]  ;;  %v15038_v30 = vld [vmem:[#allocation108_spill] sm:$0xff] }
 0x6dc   :  { %v5952_v22 = vsel %vm1672_vm9, %v15034_v33, %v5910_v12  ;;  %v5845_v42 = vadd.f32 %v5797_v6, %v15036_v60  ;;  %v15044_v60 = vld [vmem:[#allocation147_spill] sm:$0xff] }
 0x6dd   :  { %15027 = vst [vmem:[#allocation34_spill] sm:$0xff] %v12586_v29  ;;  %v12602_v47 = vadd.f32 %v5952_v22, %v5850_v2  ;;  %v12605_v24 = vpop.permute.xlu0 %5915  ;;  %6281 = vrot.lane.b32.xlu1 %v12242_v18, %s7166_s29  ;;  %v5669_v29 = vsel %vm1382_vm3, %v15039_v31, %v15038_v30  ;;  %v5851_v2 = vadd.f32 %v5803_v16, %v15040_v52  ;;  %v15042_v22 = vld [vmem:[#allocation47_spill] sm:$0xff]  ;;  %v15043_v18 = vld [vmem:[#allocation49_spill] sm:$0xff]  ;;  %v15046_v16 = vld [vmem:[#allocation32_spill] sm:$0xff] }
 0x6de   :  { %15037 = vst [vmem:[#allocation59_spill] sm:$0xff] %v12605_v24  ;;  %v5947_v15 = vsel %vm1672_vm9, %v5908_v13, %v12605_v24  ;;  %v5688_v13 = vadd.f32 %v5669_v29, %v5568_v8  ;;  %v15049_v29 = vld [vmem:[#allocation140_spill] sm:$0xff] }
 0x6df   :  { %15035 = vst [vmem:[#allocation72_spill] sm:$0xff] %v12602_v47  ;;  %v12616_v44 = vadd.f32 %v5947_v15, %v5845_v42  ;;  %v12619_v6 = vpop.permute.xlu1 %5917  ;;  %5923 = vrot.lane.b32.xlu0 %v15042_v22, %s7169_s9  ;;  %v5670_v47 = vsel %vm1382_vm3, %v15044_v60, %v15043_v18  ;;  %v15047_v42 = vld [vmem:[#allocation105_spill] sm:$0xff]  ;;  %v5545_v22 = vsel %vm1261_vm1, %v15025_v54, %v12288_v51  ;;  %v15050_v8 = vld [vmem:[#allocation120_spill] sm:$0xff] }
 0x6e0   :  { %15041 = vst [vmem:[#allocation129_spill] sm:$0xff] %v12619_v6  ;;  %v5948_v31 = vsel %vm1672_vm9, %v5910_v12, %v12619_v6  ;;  %v5789_v52 = vsel %vm1503_vm5, %v15047_v42, %v15046_v16  ;;  %v5694_v24 = vadd.f32 %v5670_v47, %v5574_v57  ;;  %v5546_v57 = vsel %vm1261_vm1, %v15032_v40, %v12294_v41  ;;  %v15053_v42 = vld [vmem:[#allocation76_spill] sm:$0xff] }
 0x6e1   :  { %v12630_v23 = vadd.f32 %v5948_v31, %v5851_v2  ;;  %v12632_v15 = vpop.permute.xlu0 %5423  ;;  %5925 = vrot.lane.b32.xlu1 %v15045_v49, %s7169_s9  ;;  %v15048_v31 = vld [vmem:[#allocation73_spill] sm:$0xff]  ;;  %v5790_v2 = vsel %vm1503_vm5, %v15050_v8, %v15049_v29  ;;  %v15051_v49 = vld [vmem:[#allocation162_spill] sm:$0xff]  ;;  %v5665_v54 = vsel %vm1382_vm3, %v15038_v30, %v12368_v53  ;;  %v5808_v47 = vadd.f32 %v5789_v52, %v5688_v13  ;;  %v15052_v8 = vld [vmem:[#allocation131_spill] sm:$0xff] }
 0x6e2   :  { %v5449_v6 = vsel %vm1164_vm2, %v15023_v61, %v15051_v49  ;;  %v5450_v61 = vsel %vm1164_vm2, %v15030_v27, %v15053_v42  ;;  %v5666_v40 = vsel %vm1382_vm3, %v15043_v18, %v12372_v14  ;;  %v5785_v30 = vsel %vm1503_vm5, %v15046_v16, %v12432_v4  ;;  %v15058_v53 = vld [vmem:[#allocation164_spill] sm:$0xff] }
 0x6e3   :  { %v12644_v12 = vpop.permute.xlu1 %5425  ;;  %5931 = vrot.lane.b32.xlu0 %v15048_v31, %s7169_s9  ;;  %v5569_v31 = vadd.f32 %v5545_v22, %v5449_v6  ;;  %v5814_v13 = vadd.f32 %v5790_v2, %v5694_v24  ;;  %v5575_v52 = vadd.f32 %v5546_v57, %v5450_v61  ;;  %v5786_v18 = vsel %vm1503_vm5, %v15049_v29, %v12436_v43  ;;  %v15055_v2 = vld [vmem:[#allocation79_spill] sm:$0xff]  ;;  %v15057_v43 = vld [vmem:[#allocation66_spill] sm:$0xff] }
 0x6e4   :  { %v5856_v57 = vadd.f32 %v5808_v47, %v15055_v2 }
 0x6e5   :  { %v12664_v51 = vpop.permute.xlu0 %5431  ;;  %5933 = vrot.lane.b32.xlu1 %v15052_v8, %s7169_s9  ;;  %v5689_v22 = vadd.f32 %v5665_v54, %v5569_v31  ;;  %v15054_v8 = vld [vmem:[#allocation39_spill] sm:$0xff]  ;;  %v5695_v4 = vadd.f32 %v5666_v40, %v5575_v52  ;;  %v15056_v31 = vld [vmem:[#allocation141_spill] sm:$0xff]  ;;  %v5862_v14 = vadd.f32 %v5814_v13, %v15057_v43 }
 0x6e6   :  { %v12684_v6 = vsel %vm1164_vm2, %v12632_v15, %v12664_v51 }
 0x6e7   :  { %v12686_v27 = vpop.permute.xlu1 %5433  ;;  %5927 = vrot.lane.b32.xlu0 %v15054_v8, %s7169_s9  ;;  %v5809_v24 = vadd.f32 %v5785_v30, %v5689_v22  ;;  %v5815_v8 = vadd.f32 %v5786_v18, %v5695_v4  ;;  %v15059_v30 = vld [vmem:[#allocation44_spill] sm:$0xff]  ;;  %v15061_v4 = vld [vmem:[#allocation55_spill] sm:$0xff]  ;;  %v15062_v18 = vld [vmem:[#allocation61_spill] sm:$0xff] }
 0x6e8   :  { %v12698_v16 = vsel %vm1164_vm2, %v12644_v12, %v12686_v27 }
 0x6e9   :  { %v5912_v54 = vpop.permute.xlu0 %5911  ;;  %5929 = vrot.lane.b32.xlu1 %v15056_v31, %s7169_s9  ;;  %v5857_v52 = vadd.f32 %v5809_v24, %v15059_v30 }
 0x6ea   :  { %v5953_v61 = vsel %vm1672_vm9, %v12278_v62, %v5912_v54 }
 0x6eb   :  { %v12706_v29 = vadd.f32 %v5953_v61, %v5856_v57  ;;  %v5914_v42 = vpop.permute.xlu1 %5913  ;;  %6043 = vrot.lane.b32.xlu0 %v15058_v53, %s7163_s26  ;;  %v5863_v53 = vadd.f32 %v5815_v8, %v15062_v18  ;;  %v15064_v57 = vld [vmem:[#allocation102_spill] sm:$0xff]  ;;  %v15065_v61 = vld [vmem:[#allocation48_spill] sm:$0xff] }
 0x6ec   :  { %v5954_v47 = vsel %vm1672_vm9, %v12284_v36, %v5914_v42 }
 0x6ed   :  { %v12714_v40 = vadd.f32 %v5954_v47, %v5862_v14  ;;  %v12717_v22 = vpop.permute.xlu0 %5919  ;;  %6045 = vrot.lane.b32.xlu1 %v15061_v4, %s7163_s26  ;;  %v15066_v47 = vld [vmem:[#allocation160_spill] sm:$0xff] }
 0x6ee   :  { %15060 = vst [vmem:[#allocation151_spill] sm:$0xff] %v12717_v22  ;;  %v5949_v43 = vsel %vm1672_vm9, %v5912_v54, %v12717_v22  ;;  %v5439_v54 = vsel %vm1164_vm2, %v15066_v47, %v12504_v56  ;;  %v15067_v4 = vld [vmem:[#allocation132_spill] sm:$0xff] }
 0x6ef   :  { %v5977_v13 = vadd.f32 %v5949_v43, %v5857_v52  ;;  %v12725_v2 = vpop.permute.xlu1 %5921  ;;  %6047 = vrot.lane.b32.xlu0 %v15064_v57, %s7163_s26  ;;  %v15069_v57 = vld [vmem:[#allocation133_spill] sm:$0xff] }
 0x6f0   :  { %15063 = vst [vmem:[#allocation127_spill] sm:$0xff] %v12725_v2  ;;  %v5950_v14 = vsel %vm1672_vm9, %v5914_v42, %v12725_v2  ;;  %v15068_v42 = vld [vmem:[#allocation90_spill] sm:$0xff] }
 0x6f1   :  { %v5983_v24 = vadd.f32 %v5950_v14, %v5863_v53  ;;  %v5516_v31 = vpop.permute.xlu0 %5515  ;;  %6049 = vrot.lane.b32.xlu1 %v15065_v61, %s7163_s26  ;;  %v5440_v43 = vsel %vm1164_vm2, %v15068_v42, %v12516_v63 }
 0x6f2   :  { %v5535_v8 = vsel %vm1261_vm1, %v12254_v20, %v5516_v31 }
 0x6f3   :  { %v5559_v30 = vadd.f32 %v5535_v8, %v5439_v54  ;;  %v5518_v52 = vpop.permute.xlu1 %5517  ;;  %6163 = vrot.lane.b32.xlu0 %v15067_v4, %s7164_s27 }
 0x6f4   :  { %v5536_v18 = vsel %vm1261_vm1, %v12260_v45, %v5518_v52  ;;  %v15086_v45 = vld [vmem:[#allocation8_spill] sm:$0xff] }
 0x6f5   :  { %v5565_v53 = vadd.f32 %v5536_v18, %v5440_v43  ;;  %v12750_v56 = vpop.permute.xlu0 %5523  ;;  %6165 = vrot.lane.b32.xlu1 %v15069_v57, %s7164_s27  ;;  %v15070_v43 = vld [vmem:[#allocation27_spill] sm:$0xff]  ;;  %v15073_v57 = vld [vmem:[#allocation69_spill] sm:$0xff] }
 0x6f6   :  { %v5531_v14 = vsel %vm1261_vm1, %v5516_v31, %v12750_v56  ;;  %v5551_v47 = vsel %vm1261_vm1, %v12750_v56, %v15000_v25 }
 0x6f7   :  { %v5560_v61 = vadd.f32 %v5531_v14, %v12556_v35  ;;  %v12758_v54 = vpop.permute.xlu1 %5525  ;;  %6167 = vrot.lane.b32.xlu0 %v12268_v59, %s7164_s27 }
 0x6f8   :  { %v5532_v63 = vsel %vm1261_vm1, %v5518_v52, %v12758_v54  ;;  %v5552_v25 = vsel %vm1261_vm1, %v12758_v54, %v15005_v46 }
 0x6f9   :  { %v5566_v8 = vadd.f32 %v5532_v63, %v12570_v39  ;;  %v12766_v4 = vpop.permute.xlu0 %6027  ;;  %6169 = vrot.lane.b32.xlu1 %v15070_v43, %s7164_s27  ;;  %v15074_v43 = vld [vmem:[#allocation163_spill] sm:$0xff] }
 0x6fb   :  { %v12770_v18 = vpop.permute.xlu1 %6029  ;;  %6283 = vrot.lane.b32.xlu0 %v12292_v26, %s7166_s29 }
 0x6fd   :  { %v12774_v35 = vpop.permute.xlu0 %6035  ;;  %6285 = vrot.lane.b32.xlu1 %v12300_v3, %s7166_s29 }
 0x6fe   :  { %15071 = vst [vmem:[#allocation130_spill] sm:$0xff] %v12774_v35  ;;  %v6067_v59 = vsel %vm1793_vm4, %v12766_v4, %v12774_v35  ;;  %v15077_v35 = vld [vmem:[#allocation92_spill] sm:$0xff] }
 0x6ff   :  { %v6085_v39 = vadd.f32 %v6067_v59, %v12616_v44  ;;  %v12783_v31 = vpop.permute.xlu1 %6037  ;;  %6287 = vrot.lane.b32.xlu0 %v12316_v7, %s7166_s29  ;;  %v5441_v44 = vsel %vm1164_vm2, %v15073_v57, %v12632_v15 }
 0x700   :  { %15072 = vst [vmem:[#allocation119_spill] sm:$0xff] %v12783_v31  ;;  %v6068_v26 = vsel %vm1793_vm4, %v12770_v18, %v12783_v31 }
 0x701   :  { %v6091_v52 = vadd.f32 %v6068_v26, %v12630_v23  ;;  %v5520_v3 = vpop.permute.xlu0 %5519  ;;  %6289 = vrot.lane.b32.xlu1 %v12324_v50, %s7166_s29  ;;  %v15075_v23 = vld [vmem:[#allocation91_spill] sm:$0xff]  ;;  %v15076_v50 = vld [vmem:[#allocation150_spill] sm:$0xff] }
 0x702   :  { %v5537_v7 = vsel %vm1261_vm1, %v12302_v9, %v5520_v3  ;;  %v5442_v59 = vsel %vm1164_vm2, %v15075_v23, %v12644_v12  ;;  %v15078_v12 = vld [vmem:[#allocation19_spill] sm:$0xff] }
 0x703   :  { %v5571_v14 = vadd.f32 %v5537_v7, %v5441_v44  ;;  %v5522_v63 = vpop.permute.xlu1 %5521  ;;  %6051 = vrot.lane.b32.xlu0 %v15074_v43, %s7163_s26 }
 0x704   :  { %v5538_v26 = vsel %vm1261_vm1, %v15076_v50, %v5522_v63 }
 0x705   :  { %v5577_v31 = vadd.f32 %v5538_v26, %v5442_v59  ;;  %v12810_v15 = vpop.permute.xlu0 %5527  ;;  %6053 = vrot.lane.b32.xlu1 %v15077_v35, %s7163_s26  ;;  %v15079_v35 = vld [vmem:[#allocation114_spill] sm:$0xff] }
 0x706   :  { %v5533_v44 = vsel %vm1261_vm1, %v5520_v3, %v12810_v15 }
 0x707   :  { %v5572_v7 = vadd.f32 %v5533_v44, %v12684_v6  ;;  %v12818_v43 = vpop.permute.xlu1 %5529  ;;  %5935 = vrot.lane.b32.xlu0 %v15078_v12, %s7169_s9  ;;  %v15080_v6 = vld [vmem:[#allocation101_spill] sm:$0xff]  ;;  %v15082_v44 = vld [vmem:[#allocation142_spill] sm:$0xff] }
 0x708   :  { %v5534_v59 = vsel %vm1261_vm1, %v5522_v63, %v12818_v43 }
 0x709   :  { %v5578_v26 = vadd.f32 %v5534_v59, %v12698_v16  ;;  %v12826_v2 = vpop.permute.xlu0 %6031  ;;  %5937 = vrot.lane.b32.xlu1 %v15079_v35, %s7169_s9  ;;  %v15084_v59 = vld [vmem:[#allocation78_spill] sm:$0xff] }
 0x70b   :  { %v12830_v22 = vpop.permute.xlu1 %6033  ;;  %6171 = vrot.lane.b32.xlu0 %v15080_v6, %s7164_s27 }
 0x70d   :  { %v12834_v3 = vpop.permute.xlu0 %6039  ;;  %6173 = vrot.lane.b32.xlu1 %v15082_v44, %s7164_s27  ;;  %v15085_v44 = vld [vmem:[#allocation158_spill] sm:$0xff] }
 0x70e   :  { %15081 = vst [vmem:[#allocation121_spill] sm:$0xff] %v12834_v3  ;;  %v6069_v16 = vsel %vm1793_vm4, %v12826_v2, %v12834_v3 }
 0x70f   :  { %v6097_v63 = vadd.f32 %v6069_v16, %v5977_v13  ;;  %v12842_v12 = vpop.permute.xlu1 %6041  ;;  %6055 = vrot.lane.b32.xlu0 %v15084_v59, %s7163_s26 }
 0x710   :  { %15083 = vst [vmem:[#allocation21_spill] sm:$0xff] %v12842_v12  ;;  %v6070_v35 = vsel %vm1793_vm4, %v12830_v22, %v12842_v12 }
 0x711   :  { %v6103_v6 = vadd.f32 %v6070_v35, %v5983_v24  ;;  %v5636_v42 = vpop.permute.xlu0 %5635  ;;  %6057 = vrot.lane.b32.xlu1 %v15085_v44, %s7163_s26  ;;  %v15087_v35 = vld [vmem:[#allocation148_spill] sm:$0xff] }
 0x712   :  { %v5655_v3 = vsel %vm1382_vm3, %v12344_v34, %v5636_v42 }
 0x713   :  { %v5679_v13 = vadd.f32 %v5655_v3, %v5559_v30  ;;  %v5638_v16 = vpop.permute.xlu1 %5637  ;;  %6291 = vrot.lane.b32.xlu0 %v15086_v45, %s7166_s29  ;;  %v15088_v3 = vld [vmem:[#allocation24_spill] sm:$0xff] }
 0x714   :  { %v5656_v59 = vsel %vm1382_vm3, %v12348_v28, %v5638_v16 }
 0x715   :  { %v12860_v23 = vadd.f32 %v5656_v59, %v5565_v53  ;;  %v5644_v24 = vpop.permute.xlu0 %5643  ;;  %6293 = vrot.lane.b32.xlu1 %v15087_v35, %s7166_s29  ;;  %v15089_v59 = vld [vmem:[#allocation104_spill] sm:$0xff] }
 0x716   :  { %v5651_v44 = vsel %vm1382_vm3, %v5636_v42, %v5644_v24  ;;  %v6601_v42 = vld [vmem:[%s13598_s6] sm:$0xff] }
 0x717   :  { %v12866_v12 = vadd.f32 %v5651_v44, %v5560_v61  ;;  %v5646_v30 = vpop.permute.xlu1 %5645  ;;  %6175 = vrot.lane.b32.xlu0 %v15088_v3, %s7164_s27 }
 0x718   :  { %v5652_v45 = vsel %vm1382_vm3, %v5638_v16, %v5646_v30 }
 0x719   :  { %v12872_v34 = vadd.f32 %v5652_v45, %v5566_v8  ;;  %v6148_v53 = vpop.permute.xlu0 %6147  ;;  %6177 = vrot.lane.b32.xlu1 %v15089_v59, %s7164_s27 }
 0x71b   :  { %v6150_v28 = vpop.permute.xlu1 %6149  ;;  %6295 = vrot.lane.b32.xlu0 %v12322_v58, %s7166_s29 }
 0x71d   :  { %v12881_v61 = vpop.permute.xlu0 %6155  ;;  %6297 = vrot.lane.b32.xlu1 %v12330_v5, %s7166_s29 }
 0x71e   :  { %15090 = vst [vmem:[#allocation109_spill] sm:$0xff] %v12881_v61  ;;  %v6187_v8 = vsel %vm1914_vm6, %v6148_v53, %v12881_v61 }
 0x71f   :  { %v12888_v16 = vadd.f32 %v6187_v8, %v6085_v39  ;;  %v12890_v35 = vpop.permute.xlu1 %6157  ;;  %6604 = vperm.xlu0 %7081, %v6601_v42  }
 0x720   :  { %15091 = vst [vmem:[#allocation122_spill] sm:$0xff] %v12890_v35  ;;  %v6188_v58 = vsel %vm1914_vm6, %v6150_v28, %v12890_v35 }
 0x721   :  { %v12895_v44 = vadd.f32 %v6188_v58, %v6091_v52  ;;  %v5640_v3 = vpop.permute.xlu0 %5639 }
 0x722   :  { %v5657_v5 = vsel %vm1382_vm3, %v12376_v55, %v5640_v3 }
 0x723   :  { %v12900_v45 = vadd.f32 %v5657_v5, %v5571_v14  ;;  %v5642_v59 = vpop.permute.xlu1 %5641 }
 0x724   :  { %v5658_v39 = vsel %vm1382_vm3, %v12380_v21, %v5642_v59  ;;  %v15094_v21 = vld [vmem:[#allocation87_spill] sm:$0xff] }
 0x725   :  { %v12905_v8 = vadd.f32 %v5658_v39, %v5577_v31  ;;  %v12907_v42 = vpop.permute.xlu0 %5647 }
 0x726   :  { %v5653_v52 = vsel %vm1382_vm3, %v5640_v3, %v12907_v42 }
 0x727   :  { %v12912_v58 = vadd.f32 %v5653_v52, %v5572_v7  ;;  %v12914_v35 = vpop.permute.xlu1 %5649 }
 0x728   :  { %v5654_v14 = vsel %vm1382_vm3, %v5642_v59, %v12914_v35  ;;  %v15095_v59 = vld [vmem:[#allocation37_spill] sm:$0xff] }
 0x729   :  { %v12919_v5 = vadd.f32 %v5654_v14, %v5578_v26  ;;  %v12921_v61 = vpop.permute.xlu0 %6151  ;;  %v5955_v26 = vsel %vm1672_vm9, %v15094_v21, %v12222_v1  ;;  %v5956_v14 = vsel %vm1672_vm9, %v15095_v59, %v15034_v33  ;;  %v15097_v21 = vld [vmem:[#allocation146_spill] sm:$0xff] }
 0x72a   :  { %v12959_v33 = vsel %vm1793_vm4, %v15097_v21, %v12332_v37  ;;  %v5671_v21 = vsel %vm1382_vm3, %v5644_v24, %v15008_v32 }
 0x72b   :  { %v12923_v31 = vpop.permute.xlu1 %6153 }
 0x72d   :  { %v12925_v39 = vpop.permute.xlu0 %6159 }
 0x72e   :  { %15092 = vst [vmem:[#allocation124_spill] sm:$0xff] %v12925_v39  ;;  %v6189_v7 = vsel %vm1914_vm6, %v12921_v61, %v12925_v39  ;;  %v15100_v39 = vld [vmem:[#allocation45_spill] sm:$0xff] }
 0x72f   :  { %v12931_v3 = vadd.f32 %v6189_v7, %v6097_v63  ;;  %v12933_v52 = vpop.permute.xlu1 %6161  ;;  %v15096_v7 = vld [vmem:[#allocation14_spill] sm:$0xff] }
 0x730   :  { %15093 = vst [vmem:[#allocation50_spill] sm:$0xff] %v12933_v52  ;;  %v6190_v63 = vsel %vm1914_vm6, %v12923_v31, %v12933_v52  ;;  %v6075_v1 = vsel %vm1793_vm4, %v15096_v7, %v12326_v17  ;;  %v5455_v52 = vsel %vm1164_vm2, %v12536_v11, %v11834_v48  ;;  %v5456_v7 = vsel %vm1164_vm2, %v12558_v38, %v15003_v10  ;;  %v15098_v48 = vld [vmem:[#allocation56_spill] sm:$0xff]  ;;  %v15099_v38 = vld [vmem:[#allocation74_spill] sm:$0xff] }
 0x731   :  { %v12965_v56 = vadd.f32 %v6190_v63, %v6103_v6  ;;  %v5756_v59 = vpop.permute.xlu0 %5755  ;;  %v5555_v54 = vadd.f32 %v5551_v47, %v5455_v52  ;;  %v6071_v6 = vsel %vm1793_vm4, %v12326_v17, %v12766_v4  ;;  %v5672_v11 = vsel %vm1382_vm3, %v5646_v30, %v15098_v48  ;;  %v15101_v52 = vld [vmem:[#allocation136_spill] sm:$0xff]  ;;  %v15102_v48 = vld [vmem:[#allocation95_spill] sm:$0xff] }
 0x732   :  { %v5775_v46 = vsel %vm1503_vm5, %v12408_v19, %v5756_v59  ;;  %v6195_v32 = vsel %vm1914_vm6, %v15100_v39, %v15099_v38  ;;  %v5561_v24 = vadd.f32 %v5552_v25, %v5456_v7  ;;  %v6072_v47 = vsel %vm1793_vm4, %v12332_v37, %v12770_v18  ;;  %v15104_v7 = vld [vmem:[#allocation34_spill] sm:$0xff]  ;;  %v15105_v18 = vld [vmem:[#allocation89_spill] sm:$0xff] }
 0x733   :  { %v5799_v63 = vadd.f32 %v5775_v46, %v5679_v13  ;;  %v5758_v10 = vpop.permute.xlu1 %5757  ;;  %v5675_v4 = vadd.f32 %v5671_v21, %v5555_v54  ;;  %v6191_v13 = vsel %vm1914_vm6, %v15099_v38, %v6148_v53  ;;  %v6084_v25 = vadd.f32 %v6071_v6, %v15104_v7  ;;  %v15106_v54 = vld [vmem:[#allocation25_spill] sm:$0xff]  ;;  %v15108_v6 = vld [vmem:[#allocation72_spill] sm:$0xff]  ;;  %v15109_v7 = vld [vmem:[#allocation143_spill] sm:$0xff] }
 0x734   :  { %v5776_v17 = vsel %vm1503_vm5, %v15101_v52, %v5758_v10  ;;  %v5681_v19 = vadd.f32 %v5672_v11, %v5561_v24  ;;  %v6192_v53 = vsel %vm1914_vm6, %v15106_v54, %v6150_v28  ;;  %v6090_v11 = vadd.f32 %v6072_v47, %v15108_v6 }
 0x735   :  { %v5805_v30 = vadd.f32 %v5776_v17, %v12860_v23  ;;  %v5764_v46 = vpop.permute.xlu0 %5763  ;;  %v13004_v39 = vadd.f32 %v5799_v63, %v15102_v48  ;;  %v15107_v63 = vld [vmem:[#allocation99_spill] sm:$0xff]  ;;  %v6204_v24 = vadd.f32 %v6191_v13, %v6084_v25  ;;  %v15113_v13 = vld [vmem:[#allocation112_spill] sm:$0xff] }
 0x736   :  { %v5771_v37 = vsel %vm1503_vm5, %v5756_v59, %v5764_v46  ;;  %v5791_v21 = vsel %vm1503_vm5, %v5764_v46, %v15105_v18  ;;  %v15110_v18 = vld [vmem:[#allocation41_spill] sm:$0xff]  ;;  %v6210_v25 = vadd.f32 %v6192_v53, %v6090_v11  ;;  %v15120_v11 = vld [vmem:[#allocation128_spill] sm:$0xff] }
 0x737   :  { %15103 = vst [vmem:[#allocation84_spill] sm:$0xff] %v13004_v39  ;;  %v5795_v38 = vadd.f32 %v5791_v21, %v5675_v4  ;;  %v5800_v23 = vadd.f32 %v5771_v37, %v12866_v12  ;;  %v5766_v17 = vpop.permute.xlu1 %5765  ;;  %v13017_v48 = vadd.f32 %v5805_v30, %v15107_v63  ;;  %v15111_v37 = vld [vmem:[#allocation30_spill] sm:$0xff] }
 0x738   :  { %v5772_v59 = vsel %vm1503_vm5, %v5758_v10, %v5766_v17  ;;  %v5792_v46 = vsel %vm1503_vm5, %v5766_v17, %v15109_v7  ;;  %v15112_v30 = vld [vmem:[#allocation62_spill] sm:$0xff]  ;;  %v5553_v10 = vsel %vm1261_vm1, %v12810_v15, %v15113_v13  ;;  %v15114_v17 = vld [vmem:[#allocation167_spill] sm:$0xff] }
 0x739   :  { %v5843_v39 = vadd.f32 %v5795_v38, %v15110_v18  ;;  %v5801_v28 = vadd.f32 %v5792_v46, %v5681_v19  ;;  %v5806_v4 = vadd.f32 %v5772_v59, %v12872_v34  ;;  %v6268_v12 = vpop.permute.xlu0 %6267  ;;  %v13028_v21 = vadd.f32 %v5800_v23, %v15111_v37  ;;  %v15115_v38 = vld [vmem:[#allocation36_spill] sm:$0xff]  ;;  %v15116_v59 = vld [vmem:[#allocation31_spill] sm:$0xff]  ;;  %v15119_v15 = vld [vmem:[#allocation166_spill] sm:$0xff] }
 0x73a   :  { %v6196_v47 = vsel %vm1914_vm6, %v15112_v30, %v15106_v54  ;;  %v6311_v19 = vsel %vm2035_vm8, %v15114_v17, %v6268_v12  ;;  %v15117_v54 = vld [vmem:[#allocation165_spill] sm:$0xff]  ;;  %v15118_v18 = vld [vmem:[#allocation168_spill] sm:$0xff] }
 0x73b   :  { %v5963_v34 = vadd.f32 %v5955_v26, %v5843_v39  ;;  %v5849_v63 = vadd.f32 %v5801_v28, %v15115_v38  ;;  %v6324_v23 = vadd.f32 %v6311_v19, %v6204_v24  ;;  %v6270_v6 = vpop.permute.xlu1 %6269  ;;  %v13043_v7 = vadd.f32 %v5806_v4, %v15116_v59  ;;  %v15121_v24 = vld [vmem:[#allocation103_spill] sm:$0xff]  ;;  %v15122_v38 = vld [vmem:[#allocation138_spill] sm:$0xff] }
 0x73c   :  { %v6315_v46 = vsel %vm2035_vm8, %v15117_v54, %v15114_v17  ;;  %v6316_v53 = vsel %vm2035_vm8, %v15119_v15, %v15118_v18  ;;  %v5457_v39 = vsel %vm1164_vm2, %v12664_v51, %v15120_v11  ;;  %v6312_v26 = vsel %vm2035_vm8, %v15118_v18, %v6270_v6  ;;  %v15123_v59 = vld [vmem:[#allocation23_spill] sm:$0xff] }
 0x73d   :  { %v5458_v28 = vsel %vm1164_vm2, %v12686_v27, %v15121_v24  ;;  %v6083_v4 = vadd.f32 %v6075_v1, %v5963_v34  ;;  %v5969_v37 = vadd.f32 %v5956_v14, %v5849_v63  ;;  %v6330_v13 = vadd.f32 %v6312_v26, %v6210_v25  ;;  %v13064_v17 = vpop.permute.xlu0 %6275  ;;  %v15124_v63 = vld [vmem:[#allocation106_spill] sm:$0xff] }
 0x73e   :  { %v5567_v19 = vadd.f32 %v5553_v10, %v5457_v39  ;;  %v5554_v51 = vsel %vm1261_vm1, %v12818_v43, %v15122_v38  ;;  %v6073_v18 = vsel %vm1793_vm4, %v15123_v59, %v12826_v2  ;;  %v6307_v27 = vsel %vm2035_vm8, %v6268_v12, %v13064_v17 }
 0x73f   :  { %v6203_v1 = vadd.f32 %v6195_v32, %v6083_v4  ;;  %v6089_v14 = vadd.f32 %v12959_v33, %v5969_v37  ;;  %v6348_v25 = vmax.f32 %v6324_v23, 0.0  ;;  %v6354_v34 = vmax.f32 %v6330_v13, 0.0  ;;  %v13078_v10 = vpop.permute.xlu1 %6277  ;;  %v15128_v13 = vld [vmem:[#allocation125_spill] sm:$0xff] }
 0x740   :  { %v5673_v43 = vsel %vm1382_vm3, %v12907_v42, %v15124_v63  ;;  %v5674_v2 = vsel %vm1382_vm3, %v12914_v35, %v15044_v60  ;;  %v6325_v11 = vadd.f32 %v6307_v27, %v12888_v16  ;;  %v6308_v33 = vsel %vm2035_vm8, %v6270_v6, %v13078_v10  ;;  %v15125_v42 = vld [vmem:[#allocation85_spill] sm:$0xff]  ;;  %v15126_v35 = vld [vmem:[#allocation40_spill] sm:$0xff] }
 0x741   :  { %v5573_v32 = vadd.f32 %v5554_v51, %v5458_v28  ;;  %v6323_v12 = vadd.f32 %v6315_v46, %v6203_v1  ;;  %v6209_v23 = vadd.f32 %v6196_v47, %v6089_v14  ;;  %v6985_v39 = vpack.c.bf16 %v6354_v34, %v6348_v25  ;;  %v5760_v26 = vpop.permute.xlu0 %5759  ;;  %v15129_v51 = vld [vmem:[#allocation134_spill] sm:$0xff]  ;;  %v15130_v1 = vld [vmem:[#allocation28_spill] sm:$0xff]  ;;  %v15131_v25 = vld [vmem:[#allocation149_spill] sm:$0xff] }
 0x742   :  { %v6096_v24 = vadd.f32 %v6073_v18, %v12706_v29  ;;  %v6074_v4 = vsel %vm1793_vm4, %v15125_v42, %v12830_v22  ;;  %v6331_v60 = vadd.f32 %v6308_v33, %v12895_v44  ;;  %v5777_v16 = vsel %vm1503_vm5, %v15126_v35, %v5760_v26  ;;  %v15150_v46 = vld [vmem:[#allocation152_spill] sm:$0xff] }
 0x743   :  { %v5687_v37 = vadd.f32 %v5673_v43, %v5567_v19  ;;  %v5693_v6 = vadd.f32 %v5674_v2, %v5573_v32  ;;  %v6329_v28 = vadd.f32 %v6316_v53, %v6209_v23  ;;  %v5811_v47 = vadd.f32 %v5777_v16, %v12900_v45  ;;  %6986 = vmatprep.subr.msk.bf16.mxu1 %vm8706_vm12, %v6985_v39  ;;  %v5762_v29 = vpop.permute.xlu1 %5761  ;;  %v15132_v43 = vld [vmem:[#allocation105_spill] sm:$0xff]  ;;  %v15134_v16 = vld [vmem:[#allocation120_spill] sm:$0xff] }
 0x744   :  { %v6193_v22 = vsel %vm1914_vm6, %v15128_v13, %v12921_v61  ;;  %v6349_v38 = vmax.f32 %v6325_v11, 0.0  ;;  %v6355_v44 = vmax.f32 %v6331_v60, 0.0  ;;  %v5778_v18 = vsel %vm1503_vm5, %v15129_v51, %v5762_v29 }
 0x745   :  { %v6347_v19 = vmax.f32 %v6323_v12, 0.0  ;;  %v6353_v27 = vmax.f32 %v6329_v28, 0.0  ;;  %v5817_v53 = vadd.f32 %v5778_v18, %v12905_v8  ;;  %v5768_v45 = vpop.permute.xlu0 %5767  ;;  %v13113_v14 = vadd.f32 %v5811_v47, %v15130_v1  ;;  %v15133_v12 = vld [vmem:[#allocation117_spill] sm:$0xff]  ;;  %v15137_v18 = vld [vmem:[#allocation51_spill] sm:$0xff] }
 0x746   :  { %v6194_v34 = vsel %vm1914_vm6, %v15131_v25, %v12923_v31  ;;  %v13119_v61 = vpack.c.bf16 %v6355_v44, %v6349_v38  ;;  %v5773_v63 = vsel %vm1503_vm5, %v5760_v26, %v5768_v45  ;;  %v5793_v2 = vsel %vm1503_vm5, %v5768_v45, %v15132_v43  ;;  %v15135_v28 = vld [vmem:[#allocation153_spill] sm:$0xff]  ;;  %v15141_v1 = vld [vmem:[#allocation159_spill] sm:$0xff]  ;;  %v15142_v43 = vld [vmem:[#allocation22_spill] sm:$0xff] }
 0x747   :  { %v5807_v11 = vadd.f32 %v5793_v2, %v5687_v37  ;;  %v5812_v8 = vadd.f32 %v5773_v63, %v12912_v58  ;;  %v5770_v33 = vpop.permute.xlu1 %5769  ;;  %v6988_v32 = vpack.c.bf16 %v6353_v27, %v6347_v19  ;;  %v13128_v23 = vadd.f32 %v5817_v53, %v15133_v12  ;;  %v15140_v27 = vld [vmem:[#allocation83_spill] sm:$0xff] }
 0x748   :  { %v6102_v39 = vadd.f32 %v6074_v4, %v12714_v40  ;;  %v6216_v31 = vadd.f32 %v6193_v22, %v6096_v24  ;;  %v5774_v60 = vsel %vm1503_vm5, %v5762_v29, %v5770_v33  ;;  %v5794_v26 = vsel %vm1503_vm5, %v5770_v33, %v15134_v16  ;;  %v15138_v40 = vld [vmem:[#allocation111_spill] sm:$0xff]  ;;  %v15139_v29 = vld [vmem:[#allocation118_spill] sm:$0xff] }
 0x749   :  { %v5855_v47 = vadd.f32 %v5807_v11, %v15135_v28  ;;  %v5813_v37 = vadd.f32 %v5794_v26, %v5693_v6  ;;  %v5818_v58 = vadd.f32 %v5774_v60, %v12919_v5  ;;  %6989 = vmatpush1.bf16.msk.msra.mxu1 %vm8721_vm13, %v6988_v32  ;;  %v6272_v44 = vpop.permute.xlu0 %6271  ;;  %v13141_v19 = vadd.f32 %v5812_v8, %v15137_v18  ;;  %v15144_v11 = vld [vmem:[#allocation96_spill] sm:$0xff] }
 0x74a   :  { %v5957_v24 = vsel %vm1672_vm9, %v15138_v40, %v12278_v62  ;;  %v6222_v4 = vadd.f32 %v6194_v34, %v6102_v39  ;;  %v6313_v22 = vsel %vm2035_vm8, %v15139_v29, %v6272_v44  ;;  %v5958_v2 = vsel %vm1672_vm9, %v15142_v43, %v12284_v36  ;;  %v15143_v62 = vld [vmem:[#allocation58_spill] sm:$0xff]  ;;  %v15146_v36 = vld [vmem:[#allocation20_spill] sm:$0xff] }
 0x74b   :  { %v5975_v6 = vadd.f32 %v5957_v24, %v5855_v47  ;;  %v5861_v5 = vadd.f32 %v5813_v37, %v15140_v27  ;;  %v6336_v53 = vadd.f32 %v6313_v22, %v6216_v31  ;;  %v6274_v45 = vpop.permute.xlu1 %6273  ;;  %v13152_v63 = vadd.f32 %v5818_v58, %v15141_v1  ;;  %v15145_v31 = vld [vmem:[#allocation71_spill] sm:$0xff]  ;;  %v15147_v18 = vld [vmem:[#allocation116_spill] sm:$0xff]  ;;  %v15148_v24 = vld [vmem:[#allocation169_spill] sm:$0xff] }
 0x74c   :  { %v6077_v34 = vsel %vm1793_vm4, %v15143_v62, %v15123_v59  ;;  %v6314_v8 = vsel %vm2035_vm8, %v15144_v11, %v6274_v45  ;;  %v6078_v60 = vsel %vm1793_vm4, %v15145_v31, %v15125_v42  ;;  %v6197_v16 = vsel %vm1914_vm6, %v15146_v36, %v15128_v13 }
 0x74d   :  { %v6095_v33 = vadd.f32 %v6077_v34, %v5975_v6  ;;  %v5981_v32 = vadd.f32 %v5958_v2, %v5861_v5  ;;  %v6342_v12 = vadd.f32 %v6314_v8, %v6222_v4  ;;  %v13165_v39 = vpop.permute.xlu0 %6279  ;;  %v6360_v47 = vmax.f32 %v6336_v53, 0.0  ;;  %v15149_v53 = vld [vmem:[#allocation154_spill] sm:$0xff] }
 0x74e   :  { %v6309_v59 = vsel %vm2035_vm8, %v6272_v44, %v13165_v39  ;;  %v6198_v42 = vsel %vm1914_vm6, %v15147_v18, %v15131_v25  ;;  %v6317_v13 = vsel %vm2035_vm8, %v15148_v24, %v15139_v29  ;;  %v6318_v25 = vsel %vm2035_vm8, %v15149_v53, %v15144_v11 }
 0x74f   :  { %v6215_v26 = vadd.f32 %v6197_v16, %v6095_v33  ;;  %v6101_v28 = vadd.f32 %v6078_v60, %v5981_v32  ;;  %v6366_v37 = vmax.f32 %v6342_v12, 0.0  ;;  %v13178_v58 = vpop.permute.xlu1 %6281  ;;  %v6337_v4 = vadd.f32 %v6309_v59, %v12931_v3  ;;  %v15151_v59 = vld [vmem:[#allocation9_spill] sm:$0xff] }
 0x750   :  { %v6310_v44 = vsel %vm2035_vm8, %v6274_v45, %v13178_v58  ;;  %v5541_v16 = vsel %vm1261_vm1, %v15150_v46, %v12302_v9  ;;  %v5445_v38 = vsel %vm1164_vm2, %v15051_v49, %v15073_v57  ;;  %v15153_v9 = vld [vmem:[#allocation18_spill] sm:$0xff]  ;;  %v15155_v49 = vld [vmem:[#allocation77_spill] sm:$0xff] }
 0x751   :  { %v6335_v22 = vadd.f32 %v6317_v13, %v6215_v26  ;;  %v6221_v6 = vadd.f32 %v6198_v42, %v6101_v28  ;;  %v6991_v27 = vpack.c.bf16 %v6366_v37, %v6360_v47  ;;  %v13192_v5 = vpop.permute.xlu0 %5923  ;;  %v6343_v1 = vadd.f32 %v6310_v44, %v12965_v56  ;;  %v13216_v56 = vld [vmem:[%s13597_s5] sm:$0xf]  ;;  %v15152_v28 = vld [vmem:[#allocation80_spill] sm:$0xff] }
 0x752   :  { %v6361_v29 = vmax.f32 %v6337_v4, 0.0  ;;  %v5539_v47 = vsel %vm1261_vm1, %v15152_v28, %v12254_v20  ;;  %v5542_v37 = vsel %vm1261_vm1, %v12294_v41, %v15076_v50  ;;  %v5661_v42 = vsel %vm1382_vm3, %v15153_v9, %v12376_v55  ;;  %v15154_v13 = vld [vmem:[#allocation160_spill] sm:$0xff]  ;;  %v15156_v4 = vld [vmem:[#allocation91_spill] sm:$0xff]  ;;  %v15158_v50 = vld [vmem:[#allocation10_spill] sm:$0xff] }
 0x753   :  { %v6341_v2 = vadd.f32 %v6318_v25, %v6221_v6  ;;  %6992 = vmatprep.subr.msk.bf16.mxu1 %vm8706_vm12, %v6991_v27  ;;  %v13201_v3 = vpop.permute.xlu1 %5925  ;;  %v6367_v45 = vmax.f32 %v6343_v1, 0.0  ;;  %v6359_v34 = vmax.f32 %v6335_v22, 0.0  ;;  %vm6462_vm12 = vcmask 916480   ;;  %v15157_v20 = vld [vmem:[#allocation76_spill] sm:$0xff]  ;;  %v15160_v55 = vld [vmem:[#allocation7_spill] sm:$0xff] }
 0x754   :  { %v5443_v57 = vsel %vm1164_vm2, %v15155_v49, %v15154_v13  ;;  %v5446_v44 = vsel %vm1164_vm2, %v15157_v20, %v15156_v4  ;;  %v5570_v22 = vadd.f32 %v5541_v16, %v5445_v38  ;;  %v15159_v6 = vmov 0   ;;  %v15161_v27 = vld [vmem:[#allocation100_spill] sm:$0xff]  ;;  %v15162_v1 = vld [vmem:[#allocation63_spill] sm:$0xff]  ;;  %v15169_v49 = vld [vmem:[#allocation90_spill] sm:$0xff] }
 0x755   :  { %v6365_v8 = vmax.f32 %v6341_v2, 0.0  ;;  %v13203_v33 = vpop.permute.xlu0 %5931  ;;  %v13205_v32 = vpack.c.bf16 %v6367_v45, %v6361_v29  ;;  %v5540_v25 = vsel %vm1261_vm1, %v15161_v27, %v15160_v55  ;;  %v15163_v2 = vld [vmem:[#allocation82_spill] sm:$0xff]  ;;  %v15164_v45 = vld [vmem:[#allocation93_spill] sm:$0xff]  ;;  %v15167_v16 = vld [vmem:[#allocation15_spill] sm:$0xff]  ;;  %v5558_v38 = vadd.f32 %v5539_v47, %v5443_v57 }
 0x756   :  { %v5659_v29 = vsel %vm1382_vm3, %v15163_v2, %v15162_v1  ;;  %v5576_v28 = vadd.f32 %v5542_v37, %v5446_v44  ;;  %v5690_v9 = vadd.f32 %v5661_v42, %v5570_v22  ;;  %v15170_v4 = vld [vmem:[#allocation161_spill] sm:$0xff]  ;;  %v15172_v55 = vld [vmem:[#allocation144_spill] sm:$0xff] }
 0x757   :  { %v13207_v12 = vpop.permute.xlu1 %5933  ;;  %v6994_v60 = vpack.c.bf16 %v6365_v8, %v6359_v34  ;;  %v15165_v34 = vld [vmem:[#allocation135_spill] sm:$0xff]  ;;  %v5444_v20 = vsel %vm1164_vm2, %v15170_v4, %v15169_v49  ;;  %v15174_v1 = vld [vmem:[#allocation113_spill] sm:$0xff]  ;;  %v5678_v57 = vadd.f32 %v5659_v29, %v5558_v38  ;;  %v15179_v4 = vld [vmem:[#allocation52_spill] sm:$0xff] }
 0x758   :  { %v5662_v8 = vsel %vm1382_vm3, %v15165_v34, %v15164_v45  ;;  %v15175_v47 = vld [vmem:[#allocation157_spill] sm:$0xff]  ;;  %v5564_v42 = vadd.f32 %v5540_v25, %v5444_v20  ;;  %v15176_v34 = vld [vmem:[#allocation67_spill] sm:$0xff] }
 0x759   :  { %v13209_v11 = vpop.permute.xlu0 %5927  ;;  %6995 = vmatpush1.bf16.msk.msra.mxu1 %vm8721_vm13, %v6994_v60  ;;  %v15166_v60 = vld [vmem:[#allocation81_spill] sm:$0xff]  ;;  %v5782_v37 = vsel %vm1503_vm5, %v15175_v47, %v15129_v51  ;;  %v5696_v44 = vadd.f32 %v5662_v8, %v5576_v28 }
 0x75a   :  { %6507 = vmatprep.subr.bf16.mxu1 %v15151_v59  ;;  %v5781_v46 = vsel %vm1503_vm5, %v15166_v60, %v15126_v35  ;;  %v15173_v35 = vld [vmem:[#allocation35_spill] sm:$0xff]  ;;  %v15203_v59 = vld [vmem:[#allocation84_spill] sm:$0xff] }
 0x75b   :  { %v13223_v26 = vpop.permute.xlu1 %5929  ;;  %v5779_v2 = vsel %vm1503_vm5, %v15174_v1, %v15173_v35  ;;  %v5810_v22 = vadd.f32 %v5781_v46, %v5690_v9  ;;  %v5816_v29 = vadd.f32 %v5782_v37, %v5696_v44  ;;  %v15180_v46 = vld [vmem:[#allocation151_spill] sm:$0xff]  ;;  %v15181_v9 = vld [vmem:[#allocation60_spill] sm:$0xff] }
 0x75c   :  { %6849 = vmatmul.mubr.msk.bf16.vlgmr.msra.gmra.mrb[52].mxu1 %vm6462_vm12, %v13216_v56  ;;  %v5798_v25 = vadd.f32 %v5779_v2, %v5678_v57  ;;  %v5945_v38 = vsel %vm1672_vm9, %v15180_v46, %v13209_v11  ;;  %v15184_v35 = vld [vmem:[#allocation127_spill] sm:$0xff]  ;;  %v15185_v2 = vld [vmem:[#allocation121_spill] sm:$0xff] }
 0x75d   :  { %v13251_v41 = vpop.permute.xlu0 %6043  ;;  %6508 = vmatpush1.bf16.msra.mxu1 %v15158_v50  ;;  %6539 = vmatprep.mubr.bf16.mxu1 %v15159_v6  ;;  %v15171_v50 = vld [vmem:[#allocation29_spill] sm:$0xff]  ;;  %v5858_v20 = vadd.f32 %v5810_v22, %v15181_v9  ;;  %v5946_v1 = vsel %vm1672_vm9, %v15184_v35, %v13223_v26  ;;  %v15186_v37 = vld [vmem:[#allocation43_spill] sm:$0xff]  ;;  %v15188_v22 = vld [vmem:[#allocation94_spill] sm:$0xff] }
 0x75e   :  { %6998 = vmatprep.subr.msk.bf16.mxu1 %vm9190_vm7, %v15167_v16  ;;  %v5660_v27 = vsel %vm1382_vm3, %v15172_v55, %v15171_v50  ;;  %v15178_v16 = vld [vmem:[#allocation86_spill] sm:$0xff]  ;;  %v15183_v55 = vld [vmem:[#allocation59_spill] sm:$0xff]  ;;  %v15191_v9 = vld [vmem:[#allocation21_spill] sm:$0xff] }
 0x75f   :  { %v13274_v13 = vpop.permute.xlu1 %6045  ;;  %v5780_v49 = vsel %vm1503_vm5, %v15178_v16, %v15101_v52  ;;  %v5684_v51 = vadd.f32 %v5660_v27, %v5564_v42  ;;  %v15182_v52 = vld [vmem:[#allocation155_spill] sm:$0xff]  ;;  %v5943_v27 = vsel %vm1672_vm9, %v15183_v55, %v13192_v5  ;;  %v5978_v44 = vadd.f32 %v5945_v38, %v5858_v20  ;;  %v15192_v20 = vld [vmem:[#allocation46_spill] sm:$0xff] }
 0x760   :  { %v15187_v42 = vld [vmem:[#allocation107_spill] sm:$0xff] }
 0x761   :  { %v13292_v45 = vpop.permute.xlu0 %6047  ;;  %7001 = vmatpush1.bf16.msk.msra.mxu1 %vm9196_vm10, %v15176_v34  ;;  %v5804_v28 = vadd.f32 %v5780_v49, %v5684_v51  ;;  %v5846_v57 = vadd.f32 %v5798_v25, %v15187_v42  ;;  %v5864_v34 = vadd.f32 %v5816_v29, %v15188_v22  ;;  %v15189_v49 = vld [vmem:[#allocation129_spill] sm:$0xff]  ;;  %v15190_v51 = vld [vmem:[#allocation130_spill] sm:$0xff] }
 0x762   :  { %7004 = vmatprep.subr.msk.bf16.mxu1 %vm9190_vm7, %v15179_v4  ;;  %v6065_v47 = vsel %vm1793_vm4, %v15185_v2, %v13292_v45  ;;  %v5944_v4 = vsel %vm1672_vm9, %v15189_v49, %v13201_v3  ;;  %v6063_v46 = vsel %vm1793_vm4, %v15190_v51, %v13251_v41  ;;  %v15193_v2 = vld [vmem:[#allocation33_spill] sm:$0xff] }
 0x763   :  { %v13304_v8 = vpop.permute.xlu1 %6049  ;;  %v5966_v38 = vadd.f32 %v5943_v27, %v5846_v57  ;;  %v5852_v29 = vadd.f32 %v5804_v28, %v15192_v20  ;;  %v6098_v55 = vadd.f32 %v6065_v47, %v5978_v44  ;;  %v15195_v22 = vld [vmem:[#allocation109_spill] sm:$0xff]  ;;  %v15196_v28 = vld [vmem:[#allocation124_spill] sm:$0xff] }
 0x764   :  { %v6066_v25 = vsel %vm1793_vm4, %v15191_v9, %v13304_v8  ;;  %v15197_v47 = vld [vmem:[#allocation145_spill] sm:$0xff]  ;;  %v15198_v9 = vld [vmem:[#allocation122_spill] sm:$0xff] }
 0x765   :  { %v13311_v50 = vpop.permute.xlu0 %6163  ;;  %7007 = vmatpush1.bf16.msk.msra.mxu1 %vm9196_vm10, %v15182_v52  ;;  %v5984_v52 = vadd.f32 %v5946_v1, %v5864_v34  ;;  %v5972_v57 = vadd.f32 %v5944_v4, %v5852_v29  ;;  %v6086_v44 = vadd.f32 %v6063_v46, %v5966_v38  ;;  %v15200_v4 = vld [vmem:[#allocation75_spill] sm:$0xff] }
 0x766   :  { %7010 = vmatprep.subr.msk.bf16.mxu1 %vm9190_vm7, %v15186_v37  ;;  %v15194_v37 = vld [vmem:[#allocation119_spill] sm:$0xff]  ;;  %v6183_v27 = vsel %vm1914_vm6, %v15195_v22, %v13311_v50 }
 0x767   :  { %v13333_v16 = vpop.permute.xlu1 %6165  ;;  %v6064_v42 = vsel %vm1793_vm4, %v15194_v37, %v13274_v13  ;;  %v6104_v34 = vadd.f32 %v6066_v25, %v5984_v52 }
 0x768   :  { %v6184_v20 = vsel %vm1914_vm6, %v15198_v9, %v13333_v16  ;;  %v6092_v22 = vadd.f32 %v6064_v42, %v5972_v57 }
 0x769   :  { %v13348_v35 = vpop.permute.xlu0 %6167  ;;  %7013 = vmatpush1.bf16.msk.msra.mxu1 %vm9196_vm10, %v15193_v2  ;;  %v15199_v2 = vld [vmem:[#allocation50_spill] sm:$0xff] }
 0x76a   :  { %v6185_v1 = vsel %vm1914_vm6, %v15196_v28, %v13348_v35  ;;  %7016 = vmatprep.subr.msk.bf16.mxu1 %vm9190_vm7, %v15197_v47  ;;  %v6206_v28 = vadd.f32 %v6183_v27, %v6086_v44  ;;  %v6212_v25 = vadd.f32 %v6184_v20, %v6092_v22 }
 0x76b   :  { %v6218_v49 = vadd.f32 %v6185_v1, %v6098_v55  ;;  %v13368_v51 = vpop.permute.xlu1 %6169 }
 0x76c   :  { %v6186_v37 = vsel %vm1914_vm6, %v15199_v2, %v13368_v51 }
 0x76d   :  { %v6224_v53 = vadd.f32 %v6186_v37, %v6104_v34  ;;  %v13378_v47 = vpop.permute.xlu0 %6283  ;;  %7019 = vmatpush1.bf16.msk.msra.mxu1 %vm9196_vm10, %v15200_v4 }
 0x76e   :  { %v6303_v46 = vsel %vm2035_vm8, %v13064_v17, %v13378_v47 }
 0x76f   :  { %v6326_v38 = vadd.f32 %v6303_v46, %v6206_v28  ;;  %v13387_v29 = vpop.permute.xlu1 %6285  ;;  %v15202_v46 = vld [vmem:[#allocation11_spill] sm:$0xff] }
 0x770   :  { %v6304_v52 = vsel %vm2035_vm8, %v13078_v10, %v13387_v29 }
 0x771   :  { %v6332_v55 = vadd.f32 %v6304_v52, %v6212_v25  ;;  %v13393_v42 = vpop.permute.xlu0 %6287  ;;  %v6350_v1 = vmax.f32 %v6326_v38, 0.0  ;;  %v5940_v38 = vsel %vm1672_vm9, %v13201_v3, %v13207_v12  ;;  %v15206_v3 = vld [vmem:[#allocation12_spill] sm:$0xff] }
 0x772   :  { %v6305_v27 = vsel %vm2035_vm8, %v13165_v39, %v13393_v42 }
 0x773   :  { %v6356_v57 = vmax.f32 %v6332_v55, 0.0  ;;  %v6338_v17 = vadd.f32 %v6305_v27, %v6218_v49  ;;  %v13399_v44 = vpop.permute.xlu1 %6289  ;;  %v15205_v55 = vld [vmem:[#allocation14_spill] sm:$0xff] }
 0x774   :  { %v6306_v34 = vsel %vm2035_vm8, %v13178_v58, %v13399_v44  ;;  %v5939_v58 = vsel %vm1672_vm9, %v13192_v5, %v13203_v33  ;;  %v15204_v5 = vld [vmem:[#allocation37_spill] sm:$0xff] }
 0x775   :  { %v7021_v9 = vpack.c.bf16 %v6356_v57, %v6350_v1  ;;  %v6344_v10 = vadd.f32 %v6306_v34, %v6224_v53  ;;  %v6052_v20 = vpop.permute.xlu0 %6051  ;;  %v6362_v2 = vmax.f32 %v6338_v17, 0.0  ;;  %v15201_v53 = vld [vmem:[#allocation87_spill] sm:$0xff]  ;;  %v5967_v25 = vadd.f32 %v5939_v58, %v15203_v59  ;;  %v15207_v1 = vld [vmem:[#allocation146_spill] sm:$0xff]  ;;  %v15208_v34 = vld [vmem:[#allocation65_spill] sm:$0xff] }
 0x776   :  { %v6059_v52 = vsel %vm1793_vm4, %v13251_v41, %v6052_v20  ;;  %v6079_v27 = vsel %vm1793_vm4, %v6052_v20, %v15205_v55  ;;  %v15210_v20 = vld [vmem:[#allocation45_spill] sm:$0xff]  ;;  %v15211_v58 = vld [vmem:[#allocation38_spill] sm:$0xff] }
 0x777   :  { %v6368_v37 = vmax.f32 %v6344_v10, 0.0  ;;  %7022 = vmatprep.subr.msk.bf16.mxu1 %vm9190_vm7, %v7021_v9  ;;  %v6054_v22 = vpop.permute.xlu1 %6053  ;;  %v15213_v59 = vld [vmem:[#allocation17_spill] sm:$0xff] }
 0x778   :  { %7025 = vmatpush1.bf16.msk.msra.mxu1 %vm9196_vm10, %v13119_v61  ;;  %v5959_v61 = vsel %vm1672_vm9, %v13203_v33, %v15201_v53 }
 0x779   :  { %v7027_v39 = vpack.c.bf16 %v6368_v37, %v6362_v2  ;;  %v5936_v49 = vpop.permute.xlu0 %5935  ;;  %v5968_v33 = vadd.f32 %v5959_v61, %v13028_v21  ;;  %v6080_v21 = vsel %vm1793_vm4, %v6054_v22, %v15207_v1  ;;  %v6087_v2 = vadd.f32 %v6059_v52, %v5967_v25 }
 0x77a   :  { %v5941_v41 = vsel %vm1672_vm9, %v13209_v11, %v5936_v49  ;;  %v5961_v57 = vsel %vm1672_vm9, %v5936_v49, %v15138_v40 }
 0x77b   :  { %7028 = vmatprep.subr.msk.bf16.mxu1 %vm9190_vm7, %v7027_v39  ;;  %v5938_v28 = vpop.permute.xlu1 %5937  ;;  %v6088_v37 = vadd.f32 %v6079_v27, %v5968_v33  ;;  %v5979_v49 = vadd.f32 %v5941_v41, %v13113_v14 }
 0x77c   :  { %7031 = vmatpush1.bf16.msk.msra.mxu1 %vm9196_vm10, %v13205_v32  ;;  %v5960_v32 = vsel %vm1672_vm9, %v13207_v12, %v15204_v5  ;;  %v6060_v12 = vsel %vm1793_vm4, %v13274_v13, %v6054_v22  ;;  %v5942_v61 = vsel %vm1672_vm9, %v13223_v26, %v5938_v28 }
 0x77d   :  { %v6172_v4 = vpop.permute.xlu0 %6171  ;;  %6548 = vmatprep.subr.bf16.mxu1 %v15202_v46  ;;  %v5974_v13 = vadd.f32 %v5960_v32, %v13043_v7 }
 0x77e   :  { %v6179_v10 = vsel %vm1914_vm6, %v13311_v50, %v6172_v4  ;;  %v6199_v11 = vsel %vm1914_vm6, %v6172_v4, %v15210_v20  ;;  %v5980_v50 = vadd.f32 %v5961_v57, %v13141_v19 }
 0x77f   :  { %v6174_v60 = vpop.permute.xlu1 %6173  ;;  %6850 = vmatmul.mubr.msk.bf16.vlgmr.msra.gmra.mrb[56].mxu1 %vm6462_vm12, %v13216_v56  ;;  %v6094_v39 = vadd.f32 %v6080_v21, %v5974_v13  ;;  %v6208_v4 = vadd.f32 %v6199_v11, %v6088_v37 }
 0x780   :  { %6549 = vmatpush1.bf16.msra.mxu1 %v15206_v3  ;;  %6580 = vmatprep.mubr.bf16.mxu1 %v15159_v6  ;;  %v5973_v6 = vadd.f32 %v5940_v38, %v13017_v48  ;;  %v6180_v40 = vsel %vm1914_vm6, %v13333_v16, %v6174_v60  ;;  %v6200_v48 = vsel %vm1914_vm6, %v6174_v60, %v15112_v30 }
 0x781   :  { %v6056_v17 = vpop.permute.xlu0 %6055  ;;  %7034 = vmatprep.subr.msk.bf16.mxu1 %vm9508_vm0, %v15208_v34  ;;  %v5962_v16 = vsel %vm1672_vm9, %v5938_v28, %v15142_v43  ;;  %v6207_v30 = vadd.f32 %v6179_v10, %v6087_v2  ;;  %v6214_v19 = vadd.f32 %v6200_v48, %v6094_v39  ;;  %v5985_v60 = vadd.f32 %v5942_v61, %v13128_v23  ;;  %v15217_v2 = vld [vmem:[#allocation57_spill] sm:$0xff] }
 0x782   :  { %v6093_v7 = vadd.f32 %v6060_v12, %v5973_v6  ;;  %v6061_v43 = vsel %vm1793_vm4, %v13292_v45, %v6056_v17  ;;  %v6081_v28 = vsel %vm1793_vm4, %v6056_v17, %v15143_v62  ;;  %v5986_v33 = vadd.f32 %v5962_v16, %v13152_v63  ;;  %v15214_v45 = vld [vmem:[#allocation64_spill] sm:$0xff] }
 0x783   :  { %v6058_v22 = vpop.permute.xlu1 %6057  ;;  %v6100_v27 = vadd.f32 %v6081_v28, %v5980_v50 }
 0x784   :  { %7037 = vmatpush1.bf16.msk.msra.mxu1 %vm9527_vm11, %v15211_v58  ;;  %v6213_v14 = vadd.f32 %v6180_v40, %v6093_v7  ;;  %v6062_v62 = vsel %vm1793_vm4, %v13304_v8, %v6058_v22  ;;  %v6082_v23 = vsel %vm1793_vm4, %v6058_v22, %v15145_v31  ;;  %v15219_v58 = vld [vmem:[#allocation156_spill] sm:$0xff] }
 0x785   :  { %v6292_v46 = vpop.permute.xlu0 %6291  ;;  %7040 = vmatprep.subr.msk.bf16.mxu1 %vm9508_vm0, %v15213_v59  ;;  %v6105_v57 = vadd.f32 %v6062_v62, %v5985_v60  ;;  %v6106_v17 = vadd.f32 %v6082_v23, %v5986_v33  ;;  %v6590_v59 = vld [vmem:[%s13592_s0 + $0x8] sm:$0xff] }
 0x786   :  { %v6299_v25 = vsel %vm2035_vm8, %v13378_v47, %v6292_v46  ;;  %v6319_v26 = vsel %vm2035_vm8, %v6292_v46, %v15117_v54 }
 0x787   :  { %v6327_v38 = vadd.f32 %v6299_v25, %v6207_v30  ;;  %v6328_v5 = vadd.f32 %v6319_v26, %v6208_v4  ;;  %v6294_v32 = vpop.permute.xlu1 %6293 }
 0x788   :  { %v6300_v47 = vsel %vm2035_vm8, %v13387_v29, %v6294_v32  ;;  %v6320_v54 = vsel %vm2035_vm8, %v6294_v32, %v15119_v15  ;;  %7043 = vmatpush1.bf16.msk.msra.mxu1 %vm9527_vm11, %v15214_v45  ;;  %v15215_v29 = vld [vmem:[#allocation139_spill] sm:$0xff]  ;;  %v6099_v15 = vadd.f32 %v6061_v43, %v5979_v49  ;;  %v15218_v49 = vld [vmem:[#allocation154_spill] sm:$0xff] }
 0x789   :  { %v6333_v63 = vadd.f32 %v6300_v47, %v6213_v14  ;;  %v6334_v52 = vadd.f32 %v6320_v54, %v6214_v19  ;;  %v6176_v55 = vpop.permute.xlu0 %6175  ;;  %7046 = vmatprep.subr.msk.bf16.mxu1 %vm9508_vm0, %v15215_v29  ;;  %v6351_v12 = vmax.f32 %v6327_v38, 0.0  ;;  %v6352_v1 = vmax.f32 %v6328_v5, 0.0  ;;  %v6592_v5 = vld [vmem:[%s13592_s0 + $0x18] sm:$0xff] }
 0x78a   :  { %v6181_v3 = vsel %vm1914_vm6, %v13348_v35, %v6176_v55  ;;  %v6201_v8 = vsel %vm1914_vm6, %v6176_v55, %v15146_v36  ;;  %v15216_v35 = vld [vmem:[#allocation70_spill] sm:$0xff] }
 0x78b   :  { %v6357_v31 = vmax.f32 %v6333_v63, 0.0  ;;  %v6358_v21 = vmax.f32 %v6334_v52, 0.0  ;;  %v6178_v41 = vpop.permute.xlu1 %6177  ;;  %v6219_v10 = vadd.f32 %v6181_v3, %v6099_v15  ;;  %v6220_v20 = vadd.f32 %v6201_v8, %v6100_v27  ;;  %v6593_v63 = vld [vmem:[%s13592_s0 + $0x20] sm:$0xff]  ;;  %v6594_v52 = vld [vmem:[%s13592_s0 + $0x28] sm:$0xff] }
 0x78c   :  { %v6182_v34 = vsel %vm1914_vm6, %v13368_v51, %v6178_v41  ;;  %v6202_v6 = vsel %vm1914_vm6, %v6178_v41, %v15147_v18  ;;  %7049 = vmatpush1.bf16.msk.msra.mxu1 %vm9527_vm11, %v15216_v35 }
 0x78d   :  { %v7057_v36 = vpack.c.bf16 %v6358_v21, %v6352_v1  ;;  %v7060_v13 = vpack.c.bf16 %v6357_v31, %v6351_v12  ;;  %v6296_v11 = vpop.permute.xlu0 %6295  ;;  %7052 = vmatprep.subr.msk.bf16.mxu1 %vm9508_vm0, %v15217_v2  ;;  %v6225_v37 = vadd.f32 %v6182_v34, %v6105_v57  ;;  %v6226_v40 = vadd.f32 %v6202_v6, %v6106_v17 }
 0x78e   :  { %v6301_v51 = vsel %vm2035_vm8, %v13393_v42, %v6296_v11  ;;  %v6321_v18 = vsel %vm2035_vm8, %v6296_v11, %v15148_v24 }
 0x78f   :  { %v6339_v48 = vadd.f32 %v6301_v51, %v6219_v10  ;;  %v6340_v22 = vadd.f32 %v6321_v18, %v6220_v20  ;;  %v6298_v7 = vpop.permute.xlu1 %6297 }
 0x790   :  { %v6302_v39 = vsel %vm2035_vm8, %v13399_v44, %v6298_v7  ;;  %v6322_v50 = vsel %vm2035_vm8, %v6298_v7, %v15218_v49  ;;  %7055 = vmatpush1.bf16.msk.msra.mxu1 %vm9527_vm11, %v15219_v58 }
 0x791   :  { %v6345_v42 = vadd.f32 %v6302_v39, %v6225_v37  ;;  %v6346_v61 = vadd.f32 %v6322_v50, %v6226_v40  ;;  %7058 = vmatprep.subr.msk.bf16.mxu1 %vm9508_vm0, %v7057_v36  ;;  %v6363_v24 = vmax.f32 %v6339_v48, 0.0  ;;  %v6364_v16 = vmax.f32 %v6340_v22, 0.0 }
 0x793   :  { %v6369_v30 = vmax.f32 %v6345_v42, 0.0  ;;  %v6370_v4 = vmax.f32 %v6346_v61, 0.0 }
 0x794   :  { %7061 = vmatpush1.bf16.msk.msra.mxu1 %vm9527_vm11, %v7060_v13 }
 0x795   :  { %v7063_v44 = vpack.c.bf16 %v6370_v4, %v6364_v16  ;;  %v7066_v46 = vpack.c.bf16 %v6369_v30, %v6363_v24 }
 0x797   :  { %7064 = vmatprep.subr.msk.bf16.mxu1 %vm9508_vm0, %v7063_v44 }
 0x798   :  { %7067 = vmatpush1.bf16.msk.msra.mxu1 %vm9527_vm11, %v7066_v46 }
 0x79b   :  { %6851 = vmatmul.mubr.msk.bf16.vlgmr.msra.gmra.mrb[60].mxu1 %vm6462_vm12, %v13216_v56  ;;  %v6591_v56 = vld [vmem:[%s13592_s0 + $0x10] sm:$0xff] }
 0x79e   :  { %v6605_v19 = vpop.permute.xlu0 %6604 }
 0x82f   :  { %v6500_v14 = vpop.f32.mrb[52].mxu1 }
 0x830   :  { %v6595_v25 = vadd.f32 %v6589_v0, %v6500_v14  ;;  %v6502_v26 = vpop.f32.mrb[53].mxu1 }
 0x831   :  { %v6596_v9 = vadd.f32 %v6590_v59, %v6502_v26  ;;  %v6504_v43 = vpop.f32.mrb[54].mxu1 }
 0x832   :  { %v6505_v28 = vpop.f32.mrb[55].mxu1  ;;  %v6607_v53 = vadd.f32 %v6605_v19, %v6595_v25 }
 0x833   :  { %v6608_v38 = vadd.f32 %v6605_v19, %v6596_v9 }
 0x834   :  { %6613 = vst [vmem:[#allocation4] sm:$0xff] %v6607_v53 }
 0x835   :  { %6614 = vst [vmem:[#allocation4 + $0x8] sm:$0xff] %v6608_v38 }
 0x852   :  { %v6541_v32 = vpop.f32.mrb[56].mxu1 }
 0x853   :  { %v6597_v60 = vadd.f32 %v6591_v56, %v6541_v32  ;;  %v6543_v33 = vpop.f32.mrb[57].mxu1 }
 0x854   :  { %v6598_v47 = vadd.f32 %v6592_v5, %v6543_v33  ;;  %v6545_v54 = vpop.f32.mrb[58].mxu1 }
 0x855   :  { %v6609_v45 = vadd.f32 %v6605_v19, %v6597_v60  ;;  %v6546_v62 = vpop.f32.mrb[59].mxu1 }
 0x856   :  { %v6610_v23 = vadd.f32 %v6605_v19, %v6598_v47 }
 0x857   :  { %6615 = vst [vmem:[#allocation4 + $0x10] sm:$0xff] %v6609_v45 }
 0x858   :  { %6616 = vst [vmem:[#allocation4 + $0x18] sm:$0xff] %v6610_v23 }
 0x86e   :  { %v6582_v55 = vpop.f32.mrb[60].mxu1 }
 0x86f   :  { %v6599_v29 = vadd.f32 %v6593_v63, %v6582_v55  ;;  %v6584_v15 = vpop.f32.mrb[61].mxu1 }
 0x870   :  { %v6600_v27 = vadd.f32 %v6594_v52, %v6584_v15  ;;  %v6586_v3 = vpop.f32.mrb[62].mxu1 }
 0x871   :  { %v6611_v8 = vadd.f32 %v6605_v19, %v6599_v29  ;;  %v6587_v12 = vpop.f32.mrb[63].mxu1 }
 0x872   :  { %v6612_v1 = vadd.f32 %v6605_v19, %v6600_v27 }
 0x873   :  { %6617 = vst [vmem:[#allocation4 + $0x20] sm:$0xff] %v6611_v8 }
 0x874   :  { %6618 = vst [vmem:[#allocation4 + $0x28] sm:$0xff] %v6612_v1 }
 0x875   :  { %7147 = shalt.err (!%p7144_p4)
}
 0x876   :  { %s7148_s21 = scalar_lea.hbm %s13599_s7, 768 }
 0x877   :  { %p7149_p5 = scmp.ne.s32.totalorder %s13599_s7, %s7148_s21  ;;  %p7152_p6 = scmp.lt.u32.totalorder %s7148_s21, %s13599_s7 }
 0x879   :  { %p7154_p7 = pnand %p7152_p6, %p7149_p5 }
 0x87b   :  { %7157 = shalt.err (!%p7154_p7)
}
 0x87c   :  { %6628 = dma.vmem_to_hbm [thread:$0]  %s6626_s18, 768, %s13599_s7, [#allocation5]  }
 0x87d   :  { %7158 = dma.done.wait [#allocation5], 768  }
 0x87e   :  { %7159 = vsyncadd [#allocation5], 4294966528 }
 0x87f   :  { %6632 = vsyncpa [#allocation5], 1 }

</bundles_post_ra>
